<compile_context>
chip_gen: v6e
topology: v6e:2x2x1
jax: 0.10.0
libtpu: 0.0.40
codegen_flags: <defaults>
</compile_context>

<pallas_src>
import functools

import jax
import jax.numpy as jnp
from jax import lax
from jax.experimental import pallas as pl
from jax.experimental.pallas import tpu as pltpu


N_GRAPHEME, N_CONSONANT, N_VOWEL = 168, 7, 11
HEAD_PAD = 256          # lane-dense padded width of the fused head output
_OFF = 8                # 8-aligned sublane offset of the image interior inside the
                        # padded VMEM scratch (left halo column sits at _OFF - 1)


# ----------------------------------------------------------------------------
# Fused forward kernel
# ----------------------------------------------------------------------------
def _fused_forward_kernel(x_ref, w0_ref, b0_ref, w1_ref, b1_ref, p_ref,
                          wfc_ref, bfc_ref, wh_ref, bh_ref, out_ref,
                          pad0_ref, pad1_ref, *, gem_eps):
    B, H, W, c_in = x_ref.shape
    c0 = w0_ref.shape[1]            # conv0 output channels
    M = B * H * W                   # batch folded into the matmul M dimension

    def write_padded(pad_ref, val):
        # Zero halo, then store the interior at an 8-aligned sublane offset so
        # the tiled-dim store is fully aligned (no wrapper jnp.pad needed).
        pad_ref[...] = jnp.zeros(pad_ref.shape, pad_ref.dtype)
        pad_ref[:, 1:H + 1, _OFF:_OFF + W, :] = val

    def im2col3x3(pad_ref, c):
        # Gather the nine 3x3 taps into ONE (M, 9*c) patch -> a single MXU
        # matmul with K = 9*c instead of nine tiny K=c matmuls.
        cols = [pad_ref[:, dy:dy + H, _OFF - 1 + dx:_OFF - 1 + dx + W, :]
                .reshape(M, c)
                for dy in range(3) for dx in range(3)]
        return jnp.concatenate(cols, axis=-1)

    # ---- conv0: Conv2d(c_in, 3, k=3, s=1, p=1, bias=True) --------------------
    write_padded(pad0_ref, x_ref[...])
    h0 = jnp.dot(im2col3x3(pad0_ref, c_in), w0_ref[...],
                 preferred_element_type=jnp.float32) + b0_ref[...]      # (M, c0)

    # ---- synthetic base_model.features: 3x3 conv (c0 -> C) + ReLU ------------
    write_padded(pad1_ref, h0.reshape(B, H, W, c0))
    h1 = jnp.dot(im2col3x3(pad1_ref, c0), w1_ref[...],
                 preferred_element_type=jnp.float32) + b1_ref[...]      # (M, C)
    h1 = jnp.maximum(h1, 0.0)

    # ---- GeM pooling: (mean_{HW} clamp(x, eps)^p) ^ (1/p) ---------------------
    p = p_ref[0]
    xp = jnp.exp(p * jnp.log(jnp.maximum(h1, gem_eps)))                 # x ** p
    # Per-image spatial mean via a small selector matmul on the MXU.
    lane = lax.broadcasted_iota(jnp.int32, (B, M), 1)
    lo = lax.broadcasted_iota(jnp.int32, (B, M), 0) * (H * W)
    sel = jnp.where((lane >= lo) & (lane < lo + H * W),
                    1.0 / (H * W), 0.0).astype(jnp.float32)             # (B, M)
    m = jnp.dot(sel, xp, preferred_element_type=jnp.float32)            # (B, C)
    feat = jnp.exp(jnp.log(m) / p)                                      # mean^(1/p)

    # ---- fc1: Linear + (inference BatchNorm1d folded at trace time) + ReLU ---
    h = jnp.dot(feat, wfc_ref[...],
                preferred_element_type=jnp.float32) + bfc_ref[...]
    h = jnp.maximum(h, 0.0)

    # ---- grapheme / consonant / vowel heads as ONE lane-dense matmul ---------
    out_ref[...] = jnp.dot(h, wh_ref[...],
                           preferred_element_type=jnp.float32) + bh_ref[...]


def _fused_forward(x_nhwc, w0, b0, w1, b1, gem_p, wfc, bfc, wh, bh, *, gem_eps):
    B, H, W, c_in = x_nhwc.shape
    c0 = w0.shape[1]
    vmem = pl.BlockSpec(memory_space=pltpu.MemorySpace.VMEM)
    smem = pl.BlockSpec(memory_space=pltpu.MemorySpace.SMEM)
    return pl.pallas_call(
        functools.partial(_fused_forward_kernel, gem_eps=gem_eps),
        out_shape=jax.ShapeDtypeStruct((B, HEAD_PAD), jnp.float32),
        in_specs=[vmem, vmem, vmem, vmem, vmem, smem, vmem, vmem, vmem, vmem],
        out_specs=vmem,
        scratch_shapes=[
            pltpu.VMEM((B, H + 2, W + 2 * _OFF, c_in), jnp.float32),
            pltpu.VMEM((B, H + 2, W + 2 * _OFF, c0), jnp.float32),
        ],
    )(x_nhwc, w0, b0, w1, b1, gem_p, wfc, bfc, wh, bh)


# ----------------------------------------------------------------------------
# Forward wrapper (trace-time parameter folding, then one fused kernel)
# ----------------------------------------------------------------------------
def forward(params, x_nchw, *, gem_eps=1e-6, bn_eps=1e-5):
    """Returns (grapheme, consonant, vowel) logits, matching the torch order."""
    # TODO(synk): `self.rgb` is referenced in the reference forward() but never
    # defined in __init__; treated as identity (input already has in_channels).
    x = jnp.transpose(x_nchw, (0, 2, 3, 1)).astype(jnp.float32)     # NCHW -> NHWC

    # --- trace-time constant folding on (tiny) parameters ---------------------
    c_in, c0 = params["conv0_w"].shape[2], params["conv0_w"].shape[3]
    inch = params["feat_w"].shape[3]
    w0 = params["conv0_w"].reshape(9 * c_in, c0)        # im2col conv0 weight
    b0 = params["conv0_b"].reshape(1, c0)
    w1 = params["feat_w"].reshape(9 * c0, inch)         # im2col backbone weight
    b1 = params["feat_b"].reshape(1, inch)

    # Fold inference-mode BatchNorm1d into fc1's weight/bias.
    scale = params["bn_gamma"] * lax.rsqrt(params["bn_var"] + bn_eps)   # (1, hdim)
    wfc = params["fc1_w"] * scale
    bfc = (params["fc1_b"] - params["bn_mean"]) * scale + params["bn_beta"]

    # Concatenate the three heads into one lane-dense (hdim, 256) matmul.
    wh = jnp.concatenate([params["wg"], params["wc"], params["wv"]], axis=1)
    bh = jnp.concatenate([params["bg"], params["bc"], params["bv"]], axis=1)
    n_tot = wh.shape[1]
    assert n_tot <= HEAD_PAD
    wh = jnp.pad(wh, ((0, 0), (0, HEAD_PAD - n_tot)))
    bh = jnp.pad(bh, ((0, 0), (0, HEAD_PAD - n_tot)))

    out = _fused_forward(x, w0, b0, w1, b1, params["gem_p"],
                         wfc, bfc, wh, bh, gem_eps=gem_eps)

    ng, nc, nv = N_GRAPHEME, N_CONSONANT, N_VOWEL
    logits_g = out[:, :ng]
    logits_c = out[:, ng:ng + nc]
    logits_v = out[:, ng + nc:ng + nc + nv]
    return logits_g, logits_c, logits_v


# ----------------------------------------------------------------------------
# Pure-JAX/XLA reference (same semantics, no Pallas) for validation
# ----------------------------------------------------------------------------
def forward_reference(params, x_nchw, *, gem_eps=1e-6, bn_eps=1e-5):
    dn = ("NHWC", "HWIO", "NHWC")
    hp = lax.Precision.HIGHEST
    x = jnp.transpose(x_nchw, (0, 2, 3, 1)).astype(jnp.float32)
    h = lax.conv_general_dilated(x, params["conv0_w"], (1, 1), "SAME",
                                 dimension_numbers=dn, precision=hp)
    h = h + params["conv0_b"]
    h = lax.conv_general_dilated(h, params["feat_w"], (1, 1), "SAME",
                                 dimension_numbers=dn, precision=hp)
    h = jnp.maximum(h + params["feat_b"], 0.0)
    p = params["gem_p"][0]
    m = jnp.mean(jnp.maximum(h, gem_eps) ** p, axis=(1, 2))            # (B, C)
    feat = m ** (1.0 / p)
    z = jnp.dot(feat, params["fc1_w"], precision=hp) + params["fc1_b"]
    z = (z - params["bn_mean"]) * (params["bn_gamma"]
                                   * lax.rsqrt(params["bn_var"] + bn_eps)) \
        + params["bn_beta"]
    z = jnp.maximum(z, 0.0)
    lg = jnp.dot(z, params["wg"], precision=hp) + params["bg"]
    lc = jnp.dot(z, params["wc"], precision=hp) + params["bc"]
    lv = jnp.dot(z, params["wv"], precision=hp) + params["bv"]
    return lg, lc, lv


# ----------------------------------------------------------------------------
# Deterministic synthetic parameters
# ----------------------------------------------------------------------------
def init_params(key, in_channels=3, inch=32, hdim=32,
                n_grapheme=N_GRAPHEME, n_vowel=N_VOWEL, n_consonant=N_CONSONANT):
    ks = jax.random.split(key, 16)

    def dense(k, shape, scale=0.05):
        return scale * jax.random.normal(k, shape, jnp.float32)

    return dict(
        # conv0: Conv2d(in_channels, 3, k=3, s=1, p=1, bias=True), HWIO layout
        conv0_w=dense(ks[0], (3, 3, in_channels, 3)),
        conv0_b=dense(ks[1], (3,), 0.02),
        # TODO(synk): base_model.features is an external pretrained backbone;
        # replaced by a synthetic single 3x3 conv (3 -> inch) + ReLU stand-in.
        feat_w=dense(ks[2], (3, 3, 3, inch)),
        feat_b=dense(ks[3], (inch,), 0.02),
        # GeM: p parameter initialized to 3
        gem_p=jnp.array([3.0], jnp.float32),
        # fc1: Linear(inch, hdim) + BatchNorm1d(hdim) + ReLU
        # TODO(synk): BatchNorm1d reproduced in inference mode (running stats);
        # training-mode batch statistics are not replicated.
        fc1_w=dense(ks[4], (inch, hdim)),
        fc1_b=dense(ks[5], (1, hdim)),
        bn_gamma=1.0 + dense(ks[6], (1, hdim), 0.1),
        bn_beta=dense(ks[7], (1, hdim), 0.05),
        bn_mean=dense(ks[8], (1, hdim), 0.02),
        bn_var=1.0 + jnp.abs(dense(ks[9], (1, hdim), 0.1)),
        # heads stored (in_features, out_features) so kernel matmuls are x @ W
        wg=dense(ks[10], (hdim, n_grapheme)),
        bg=dense(ks[11], (1, n_grapheme)),
        wc=dense(ks[12], (hdim, n_consonant)),
        bc=dense(ks[13], (1, n_consonant)),
        wv=dense(ks[14], (hdim, n_vowel)),
        bv=dense(ks[15], (1, n_vowel)),
    )


if __name__ == "__main__":
    key = jax.random.PRNGKey(0)
    pkey, xkey = jax.random.split(key)
    params = init_params(pkey)
    # NCHW input, PyTorch conv convention: batch=2, channels=3, 16x16 spatial
    x = jax.random.normal(xkey, (2, 3, 16, 16), jnp.float32)

    fwd = jax.jit(forward)
    logits_g, logits_c, logits_v = fwd(params, x)
    jax.block_until_ready((logits_g, logits_c, logits_v))

    assert logits_g.shape == (2, N_GRAPHEME)
    assert logits_c.shape == (2, N_CONSONANT)
    assert logits_v.shape == (2, N_VOWEL)
    assert jnp.all(jnp.isfinite(logits_g))
    assert jnp.all(jnp.isfinite(logits_c))
    assert jnp.all(jnp.isfinite(logits_v))

    # Validate the fused Pallas kernel against the pure-JAX/XLA reference.
    ref_g, ref_c, ref_v = jax.jit(forward_reference)(params, x)
    for name, got, want in (("grapheme", logits_g, ref_g),
                            ("consonant", logits_c, ref_c),
                            ("vowel", logits_v, ref_v)):
        err = float(jnp.max(jnp.abs(got - want)))
        assert jnp.allclose(got, want, rtol=3e-2, atol=3e-3), (name, err)

    print("KERNEL_OK")
</pallas_src>

<mosaic_0001>
module attributes {stable_mosaic.version = 11 : i64} {
  func.func @_fused_forward_kernel(%arg0: memref<2x16x16x3xf32, #tpu.memory_space<vmem>>, %arg1: memref<27x3xf32, #tpu.memory_space<vmem>>, %arg2: memref<1x3xf32, #tpu.memory_space<vmem>>, %arg3: memref<27x32xf32, #tpu.memory_space<vmem>>, %arg4: memref<1x32xf32, #tpu.memory_space<vmem>>, %arg5: memref<1xf32, #tpu.memory_space<smem>>, %arg6: memref<32x32xf32, #tpu.memory_space<vmem>>, %arg7: memref<1x32xf32, #tpu.memory_space<vmem>>, %arg8: memref<32x256xf32, #tpu.memory_space<vmem>>, %arg9: memref<1x256xf32, #tpu.memory_space<vmem>>, %arg10: memref<2x256xf32, #tpu.memory_space<vmem>>, %arg11: memref<2x18x32x3xf32, #tpu.memory_space<vmem>>, %arg12: memref<2x18x32x3xf32, #tpu.memory_space<vmem>>) attributes {dimension_semantics = [], scalar_prefetch = 0 : i64, scratch_operands = 2 : i64, tpu.core_type = #tpu.core_type<tc>} {
    %c0 = arith.constant 0 : index
    %c0_0 = arith.constant 0 : index
    %c0_1 = arith.constant 0 : index
    %c0_2 = arith.constant 0 : index
    %0 = vector.load %arg0[%c0, %c0_0, %c0_1, %c0_2] : memref<2x16x16x3xf32, #tpu.memory_space<vmem>>, vector<2x16x16x3xf32>
    %cst = arith.constant 0.000000e+00 : f32
    %1 = vector.broadcast %cst : f32 to vector<2x18x32x3xf32>
    %c0_3 = arith.constant 0 : index
    %c0_4 = arith.constant 0 : index
    %c0_5 = arith.constant 0 : index
    %c0_6 = arith.constant 0 : index
    %2 = vector.load %arg11[%c0_3, %c0_4, %c0_5, %c0_6] : memref<2x18x32x3xf32, #tpu.memory_space<vmem>>, vector<2x18x32x3xf32>
    tpu.vector_store %arg11[%c0_3, %c0_4, %c0_5, %c0_6], %1 {strides = array<i32>} : memref<2x18x32x3xf32, #tpu.memory_space<vmem>>, vector<2x18x32x3xf32>,
    %c0_7 = arith.constant 0 : index
    %c1 = arith.constant 1 : index
    %c8 = arith.constant 8 : index
    %c0_8 = arith.constant 0 : index
    %3 = vector.load %arg11[%c0_7, %c1, %c8, %c0_8] : memref<2x18x32x3xf32, #tpu.memory_space<vmem>>, vector<2x16x16x3xf32>
    tpu.vector_store %arg11[%c0_7, %c1, %c8, %c0_8], %0 {strides = array<i32>} : memref<2x18x32x3xf32, #tpu.memory_space<vmem>>, vector<2x16x16x3xf32>,
    %c0_9 = arith.constant 0 : index
    %c0_10 = arith.constant 0 : index
    %c7 = arith.constant 7 : index
    %c0_11 = arith.constant 0 : index
    %4 = vector.load %arg11[%c0_9, %c0_10, %c7, %c0_11] : memref<2x18x32x3xf32, #tpu.memory_space<vmem>>, vector<2x16x16x3xf32>
    %5 = vector.shape_cast %4 : vector<2x16x16x3xf32> to vector<512x3xf32>
    %c0_12 = arith.constant 0 : index
    %c0_13 = arith.constant 0 : index
    %c8_14 = arith.constant 8 : index
    %c0_15 = arith.constant 0 : index
    %6 = vector.load %arg11[%c0_12, %c0_13, %c8_14, %c0_15] : memref<2x18x32x3xf32, #tpu.memory_space<vmem>>, vector<2x16x16x3xf32>
    %7 = vector.shape_cast %6 : vector<2x16x16x3xf32> to vector<512x3xf32>
    %c0_16 = arith.constant 0 : index
    %c0_17 = arith.constant 0 : index
    %c9 = arith.constant 9 : index
    %c0_18 = arith.constant 0 : index
    %8 = vector.load %arg11[%c0_16, %c0_17, %c9, %c0_18] : memref<2x18x32x3xf32, #tpu.memory_space<vmem>>, vector<2x16x16x3xf32>
    %9 = vector.shape_cast %8 : vector<2x16x16x3xf32> to vector<512x3xf32>
    %c0_19 = arith.constant 0 : index
    %c1_20 = arith.constant 1 : index
    %c7_21 = arith.constant 7 : index
    %c0_22 = arith.constant 0 : index
    %10 = vector.load %arg11[%c0_19, %c1_20, %c7_21, %c0_22] : memref<2x18x32x3xf32, #tpu.memory_space<vmem>>, vector<2x16x16x3xf32>
    %11 = vector.shape_cast %10 : vector<2x16x16x3xf32> to vector<512x3xf32>
    %c0_23 = arith.constant 0 : index
    %c1_24 = arith.constant 1 : index
    %c8_25 = arith.constant 8 : index
    %c0_26 = arith.constant 0 : index
    %12 = vector.load %arg11[%c0_23, %c1_24, %c8_25, %c0_26] : memref<2x18x32x3xf32, #tpu.memory_space<vmem>>, vector<2x16x16x3xf32>
    %13 = vector.shape_cast %12 : vector<2x16x16x3xf32> to vector<512x3xf32>
    %c0_27 = arith.constant 0 : index
    %c1_28 = arith.constant 1 : index
    %c9_29 = arith.constant 9 : index
    %c0_30 = arith.constant 0 : index
    %14 = vector.load %arg11[%c0_27, %c1_28, %c9_29, %c0_30] : memref<2x18x32x3xf32, #tpu.memory_space<vmem>>, vector<2x16x16x3xf32>
    %15 = vector.shape_cast %14 : vector<2x16x16x3xf32> to vector<512x3xf32>
    %c0_31 = arith.constant 0 : index
    %c2 = arith.constant 2 : index
    %c7_32 = arith.constant 7 : index
    %c0_33 = arith.constant 0 : index
    %16 = vector.load %arg11[%c0_31, %c2, %c7_32, %c0_33] : memref<2x18x32x3xf32, #tpu.memory_space<vmem>>, vector<2x16x16x3xf32>
    %17 = vector.shape_cast %16 : vector<2x16x16x3xf32> to vector<512x3xf32>
    %c0_34 = arith.constant 0 : index
    %c2_35 = arith.constant 2 : index
    %c8_36 = arith.constant 8 : index
    %c0_37 = arith.constant 0 : index
    %18 = vector.load %arg11[%c0_34, %c2_35, %c8_36, %c0_37] : memref<2x18x32x3xf32, #tpu.memory_space<vmem>>, vector<2x16x16x3xf32>
    %19 = vector.shape_cast %18 : vector<2x16x16x3xf32> to vector<512x3xf32>
    %c0_38 = arith.constant 0 : index
    %c2_39 = arith.constant 2 : index
    %c9_40 = arith.constant 9 : index
    %c0_41 = arith.constant 0 : index
    %20 = vector.load %arg11[%c0_38, %c2_39, %c9_40, %c0_41] : memref<2x18x32x3xf32, #tpu.memory_space<vmem>>, vector<2x16x16x3xf32>
    %21 = vector.shape_cast %20 : vector<2x16x16x3xf32> to vector<512x3xf32>
    %22 = tpu.concatenate %5, %7, %9, %11, %13, %15, %17, %19, %21 in 1 : vector<512x3xf32>, vector<512x3xf32>, vector<512x3xf32>, vector<512x3xf32>, vector<512x3xf32>, vector<512x3xf32>, vector<512x3xf32>, vector<512x3xf32>, vector<512x3xf32> -> vector<512x27xf32>
    %c0_42 = arith.constant 0 : index
    %c0_43 = arith.constant 0 : index
    %23 = vector.load %arg1[%c0_42, %c0_43] : memref<27x3xf32, #tpu.memory_space<vmem>>, vector<27x3xf32>
    %cst_44 = arith.constant dense<0.000000e+00> : vector<512x3xf32>
    %24 = tpu.matmul %22, %23, %cst_44 {dimension_numbers = #tpu.dot_dimension_numbers<[1], [0], [0], [1], [0, 0, 1, 1], [], []>} : vector<512x27xf32>, vector<27x3xf32>, vector<512x3xf32> -> vector<512x3xf32>
    %c0_45 = arith.constant 0 : index
    %c0_46 = arith.constant 0 : index
    %25 = vector.load %arg2[%c0_45, %c0_46] : memref<1x3xf32, #tpu.memory_space<vmem>>, vector<1x3xf32>
    %26 = vector.broadcast %25 : vector<1x3xf32> to vector<512x3xf32>
    %27 = arith.addf %24, %26 : vector<512x3xf32>
    %28 = vector.shape_cast %27 : vector<512x3xf32> to vector<2x16x16x3xf32>
    %cst_47 = arith.constant 0.000000e+00 : f32
    %29 = vector.broadcast %cst_47 : f32 to vector<2x18x32x3xf32>
    %c0_48 = arith.constant 0 : index
    %c0_49 = arith.constant 0 : index
    %c0_50 = arith.constant 0 : index
    %c0_51 = arith.constant 0 : index
    %30 = vector.load %arg12[%c0_48, %c0_49, %c0_50, %c0_51] : memref<2x18x32x3xf32, #tpu.memory_space<vmem>>, vector<2x18x32x3xf32>
    tpu.vector_store %arg12[%c0_48, %c0_49, %c0_50, %c0_51], %29 {strides = array<i32>} : memref<2x18x32x3xf32, #tpu.memory_space<vmem>>, vector<2x18x32x3xf32>,
    %c0_52 = arith.constant 0 : index
    %c1_53 = arith.constant 1 : index
    %c8_54 = arith.constant 8 : index
    %c0_55 = arith.constant 0 : index
    %31 = vector.load %arg12[%c0_52, %c1_53, %c8_54, %c0_55] : memref<2x18x32x3xf32, #tpu.memory_space<vmem>>, vector<2x16x16x3xf32>
    tpu.vector_store %arg12[%c0_52, %c1_53, %c8_54, %c0_55], %28 {strides = array<i32>} : memref<2x18x32x3xf32, #tpu.memory_space<vmem>>, vector<2x16x16x3xf32>,
    %c0_56 = arith.constant 0 : index
    %c0_57 = arith.constant 0 : index
    %c7_58 = arith.constant 7 : index
    %c0_59 = arith.constant 0 : index
    %32 = vector.load %arg12[%c0_56, %c0_57, %c7_58, %c0_59] : memref<2x18x32x3xf32, #tpu.memory_space<vmem>>, vector<2x16x16x3xf32>
    %33 = vector.shape_cast %32 : vector<2x16x16x3xf32> to vector<512x3xf32>
    %c0_60 = arith.constant 0 : index
    %c0_61 = arith.constant 0 : index
    %c8_62 = arith.constant 8 : index
    %c0_63 = arith.constant 0 : index
    %34 = vector.load %arg12[%c0_60, %c0_61, %c8_62, %c0_63] : memref<2x18x32x3xf32, #tpu.memory_space<vmem>>, vector<2x16x16x3xf32>
    %35 = vector.shape_cast %34 : vector<2x16x16x3xf32> to vector<512x3xf32>
    %c0_64 = arith.constant 0 : index
    %c0_65 = arith.constant 0 : index
    %c9_66 = arith.constant 9 : index
    %c0_67 = arith.constant 0 : index
    %36 = vector.load %arg12[%c0_64, %c0_65, %c9_66, %c0_67] : memref<2x18x32x3xf32, #tpu.memory_space<vmem>>, vector<2x16x16x3xf32>
    %37 = vector.shape_cast %36 : vector<2x16x16x3xf32> to vector<512x3xf32>
    %c0_68 = arith.constant 0 : index
    %c1_69 = arith.constant 1 : index
    %c7_70 = arith.constant 7 : index
    %c0_71 = arith.constant 0 : index
    %38 = vector.load %arg12[%c0_68, %c1_69, %c7_70, %c0_71] : memref<2x18x32x3xf32, #tpu.memory_space<vmem>>, vector<2x16x16x3xf32>
    %39 = vector.shape_cast %38 : vector<2x16x16x3xf32> to vector<512x3xf32>
    %c0_72 = arith.constant 0 : index
    %c1_73 = arith.constant 1 : index
    %c8_74 = arith.constant 8 : index
    %c0_75 = arith.constant 0 : index
    %40 = vector.load %arg12[%c0_72, %c1_73, %c8_74, %c0_75] : memref<2x18x32x3xf32, #tpu.memory_space<vmem>>, vector<2x16x16x3xf32>
    %41 = vector.shape_cast %40 : vector<2x16x16x3xf32> to vector<512x3xf32>
    %c0_76 = arith.constant 0 : index
    %c1_77 = arith.constant 1 : index
    %c9_78 = arith.constant 9 : index
    %c0_79 = arith.constant 0 : index
    %42 = vector.load %arg12[%c0_76, %c1_77, %c9_78, %c0_79] : memref<2x18x32x3xf32, #tpu.memory_space<vmem>>, vector<2x16x16x3xf32>
    %43 = vector.shape_cast %42 : vector<2x16x16x3xf32> to vector<512x3xf32>
    %c0_80 = arith.constant 0 : index
    %c2_81 = arith.constant 2 : index
    %c7_82 = arith.constant 7 : index
    %c0_83 = arith.constant 0 : index
    %44 = vector.load %arg12[%c0_80, %c2_81, %c7_82, %c0_83] : memref<2x18x32x3xf32, #tpu.memory_space<vmem>>, vector<2x16x16x3xf32>
    %45 = vector.shape_cast %44 : vector<2x16x16x3xf32> to vector<512x3xf32>
    %c0_84 = arith.constant 0 : index
    %c2_85 = arith.constant 2 : index
    %c8_86 = arith.constant 8 : index
    %c0_87 = arith.constant 0 : index
    %46 = vector.load %arg12[%c0_84, %c2_85, %c8_86, %c0_87] : memref<2x18x32x3xf32, #tpu.memory_space<vmem>>, vector<2x16x16x3xf32>
    %47 = vector.shape_cast %46 : vector<2x16x16x3xf32> to vector<512x3xf32>
    %c0_88 = arith.constant 0 : index
    %c2_89 = arith.constant 2 : index
    %c9_90 = arith.constant 9 : index
    %c0_91 = arith.constant 0 : index
    %48 = vector.load %arg12[%c0_88, %c2_89, %c9_90, %c0_91] : memref<2x18x32x3xf32, #tpu.memory_space<vmem>>, vector<2x16x16x3xf32>
    %49 = vector.shape_cast %48 : vector<2x16x16x3xf32> to vector<512x3xf32>
    %50 = tpu.concatenate %33, %35, %37, %39, %41, %43, %45, %47, %49 in 1 : vector<512x3xf32>, vector<512x3xf32>, vector<512x3xf32>, vector<512x3xf32>, vector<512x3xf32>, vector<512x3xf32>, vector<512x3xf32>, vector<512x3xf32>, vector<512x3xf32> -> vector<512x27xf32>
    %c0_92 = arith.constant 0 : index
    %c0_93 = arith.constant 0 : index
    %51 = vector.load %arg3[%c0_92, %c0_93] : memref<27x32xf32, #tpu.memory_space<vmem>>, vector<27x32xf32>
    %cst_94 = arith.constant dense<0.000000e+00> : vector<512x32xf32>
    %52 = tpu.matmul %50, %51, %cst_94 {dimension_numbers = #tpu.dot_dimension_numbers<[1], [0], [0], [1], [0, 0, 1, 1], [], []>} : vector<512x27xf32>, vector<27x32xf32>, vector<512x32xf32> -> vector<512x32xf32>
    %c0_95 = arith.constant 0 : index
    %c0_96 = arith.constant 0 : index
    %53 = vector.load %arg4[%c0_95, %c0_96] : memref<1x32xf32, #tpu.memory_space<vmem>>, vector<1x32xf32>
    %54 = vector.broadcast %53 : vector<1x32xf32> to vector<512x32xf32>
    %55 = arith.addf %52, %54 : vector<512x32xf32>
    %cst_97 = arith.constant 0.000000e+00 : f32
    %56 = vector.broadcast %cst_97 : f32 to vector<512x32xf32>
    %57 = arith.maximumf %55, %56 : vector<512x32xf32>
    %c0_98 = arith.constant 0 : index
    %58 = memref.load %arg5[%c0_98] : memref<1xf32, #tpu.memory_space<smem>>
    %cst_99 = arith.constant 9.99999997E-7 : f32
    %59 = vector.broadcast %cst_99 : f32 to vector<512x32xf32>
    %60 = arith.maximumf %57, %59 : vector<512x32xf32>
    %61 = math.log %60 : vector<512x32xf32>
    %62 = vector.broadcast %58 : f32 to vector<512x32xf32>
    %63 = arith.mulf %62, %61 : vector<512x32xf32>
    %64 = math.exp %63 : vector<512x32xf32>
    %65 = tpu.iota {dimensions = array<i32: 1>} : vector<2x512xi32>
    %66 = tpu.iota {dimensions = array<i32: 0>} : vector<2x512xi32>
    %c256_i32 = arith.constant 256 : i32
    %67 = vector.broadcast %c256_i32 : i32 to vector<2x512xi32>
    %68 = arith.muli %66, %67 : vector<2x512xi32>
    %69 = arith.cmpi sge, %65, %68 : vector<2x512xi32>
    %c256_i32_100 = arith.constant 256 : i32
    %70 = vector.broadcast %c256_i32_100 : i32 to vector<2x512xi32>
    %71 = arith.addi %68, %70 : vector<2x512xi32>
    %72 = arith.cmpi slt, %65, %71 : vector<2x512xi32>
    %73 = arith.andi %69, %72 : vector<2x512xi1>
    %cst_101 = arith.constant 3.906250e-03 : f32
    %cst_102 = arith.constant 0.000000e+00 : f32
    %74 = vector.broadcast %cst_101 : f32 to vector<2x512xf32>
    %75 = vector.broadcast %cst_102 : f32 to vector<2x512xf32>
    %76 = arith.select %73, %74, %75 : vector<2x512xi1>, vector<2x512xf32>
    %cst_103 = arith.constant dense<0.000000e+00> : vector<2x32xf32>
    %77 = tpu.matmul %76, %64, %cst_103 {dimension_numbers = #tpu.dot_dimension_numbers<[1], [0], [0], [1], [0, 0, 1, 1], [], []>} : vector<2x512xf32>, vector<512x32xf32>, vector<2x32xf32> -> vector<2x32xf32>
    %78 = math.log %77 : vector<2x32xf32>
    %79 = vector.broadcast %58 : f32 to vector<2x32xf32>
    %80 = arith.divf %78, %79 : vector<2x32xf32>
    %81 = math.exp %80 : vector<2x32xf32>
    %c0_104 = arith.constant 0 : index
    %c0_105 = arith.constant 0 : index
    %82 = vector.load %arg6[%c0_104, %c0_105] : memref<32x32xf32, #tpu.memory_space<vmem>>, vector<32x32xf32>
    %cst_106 = arith.constant dense<0.000000e+00> : vector<2x32xf32>
    %83 = tpu.matmul %81, %82, %cst_106 {dimension_numbers = #tpu.dot_dimension_numbers<[1], [0], [0], [1], [0, 0, 1, 1], [], []>} : vector<2x32xf32>, vector<32x32xf32>, vector<2x32xf32> -> vector<2x32xf32>
    %c0_107 = arith.constant 0 : index
    %c0_108 = arith.constant 0 : index
    %84 = vector.load %arg7[%c0_107, %c0_108] : memref<1x32xf32, #tpu.memory_space<vmem>>, vector<1x32xf32>
    %85 = vector.broadcast %84 : vector<1x32xf32> to vector<2x32xf32>
    %86 = arith.addf %83, %85 : vector<2x32xf32>
    %cst_109 = arith.constant 0.000000e+00 : f32
    %87 = vector.broadcast %cst_109 : f32 to vector<2x32xf32>
    %88 = arith.maximumf %86, %87 : vector<2x32xf32>
    %c0_110 = arith.constant 0 : index
    %c0_111 = arith.constant 0 : index
    %89 = vector.load %arg8[%c0_110, %c0_111] : memref<32x256xf32, #tpu.memory_space<vmem>>, vector<32x256xf32>
    %cst_112 = arith.constant dense<0.000000e+00> : vector<2x256xf32>
    %90 = tpu.matmul %88, %89, %cst_112 {dimension_numbers = #tpu.dot_dimension_numbers<[1], [0], [0], [1], [0, 0, 1, 1], [], []>} : vector<2x32xf32>, vector<32x256xf32>, vector<2x256xf32> -> vector<2x256xf32>
    %c0_113 = arith.constant 0 : index
    %c0_114 = arith.constant 0 : index
    %91 = vector.load %arg9[%c0_113, %c0_114] : memref<1x256xf32, #tpu.memory_space<vmem>>, vector<1x256xf32>
    %92 = vector.broadcast %91 : vector<1x256xf32> to vector<2x256xf32>
    %93 = arith.addf %90, %92 : vector<2x256xf32>
    %c0_115 = arith.constant 0 : index
    %c0_116 = arith.constant 0 : index
    %94 = vector.load %arg10[%c0_115, %c0_116] : memref<2x256xf32, #tpu.memory_space<vmem>>, vector<2x256xf32>
    tpu.vector_store %arg10[%c0_115, %c0_116], %93 {strides = array<i32>} : memref<2x256xf32, #tpu.memory_space<vmem>>, vector<2x256xf32>,
    return
  }
}

</mosaic_0001>

<bundles_post_ra>
// kernel: forward.1
= control target key start
LH: loop header
LB: loop body
LE: loop exit
PB: predicated region body
PF: predicated region fallthrough
CT: control target
= control target key end

     0   :  { %vm100_vm0 = vcmask 23552   ;;  %v15426_v0 = vmov 0.0   ;;  %s9723_s17 = smov 3   ;;  %s9724_s18 = smov 6   ;;  %vm3658_vm1 = vcmask 1042432   ;;  %vm2999_vm2 = vcmask 48128   ;;  %s15415_s0 = inlined_call_operand.vmem [shape: f32[2,16,16,3], index: 0, kind: input, shape index: {}]   ;;  %s15416_s1 = inlined_call_operand.vmem [shape: f32[27,3], index: 1, kind: input, shape index: {}]   ;;  %s15417_s2 = inlined_call_operand.vmem [shape: f32[1,3], index: 2, kind: input, shape index: {}]   ;;  %s15418_s3 = inlined_call_operand.vmem [shape: f32[27,32], index: 3, kind: input, shape index: {}]   ;;  %s15419_s4 = inlined_call_operand.vmem [shape: f32[1,32], index: 4, kind: input, shape index: {}]   ;;  %s15420_s5 = inlined_call_operand.<no memory space> [shape: f32[1], index: 5, kind: input, shape index: {}]   ;;  %s15421_s6 = inlined_call_operand.vmem [shape: f32[32,32], index: 6, kind: input, shape index: {}]   ;;  %s15422_s8 = inlined_call_operand.vmem [shape: f32[32,256], index: 8, kind: input, shape index: {}]   ;;  %s15423_s7 = inlined_call_operand.vmem [shape: f32[1,32], index: 7, kind: input, shape index: {}]   ;;  %s15424_s9 = inlined_call_operand.vmem [shape: f32[1,256], index: 9, kind: input, shape index: {}]   ;;  %s15425_s10 = inlined_call_operand.vmem [shape: f32[2,256], index: 10, kind: output, shape index: {}]  }
   0x1   :  { %102 = vst.msk [vmem:[#allocation2 + $0x8] sm:$0xff] %vm100_vm0, %v15426_v0  ;;  %101 = vst.msk [vmem:[#allocation2] sm:$0xff] %vm100_vm0, %v15426_v0  ;;  %v36_v1 = vld [vmem:[%s15415_s0] sm:$0xff]  ;;  %v37_v2 = vld [vmem:[%s15415_s0 + $0x8] sm:$0xff]  ;;  %s9726_s27 = smov 12   ;;  %s9727_s28 = smov 15  }
   0x2   :  { %103 = vst.msk [vmem:[#allocation2 + $0x10] sm:$0xff] %vm100_vm0, %v15426_v0  ;;  %104 = vst.msk [vmem:[#allocation2 + $0x18] sm:$0xff] %vm100_vm0, %v15426_v0  ;;  %v38_v3 = vld [vmem:[%s15415_s0 + $0x10] sm:$0xff]  ;;  %v39_v4 = vld [vmem:[%s15415_s0 + $0x18] sm:$0xff]  ;;  %s9728_s29 = smov 18   ;;  %s9730_s20 = smov 24  }
   0x3   :  { %105 = vst.msk [vmem:[#allocation2 + $0x20] sm:$0xff] %vm100_vm0, %v15426_v0  ;;  %106 = vst.msk [vmem:[#allocation2 + $0x28] sm:$0xff] %vm100_vm0, %v15426_v0  ;;  %v40_v5 = vld [vmem:[%s15415_s0 + $0x20] sm:$0xff]  ;;  %v41_v6 = vld [vmem:[%s15415_s0 + $0x28] sm:$0xff]  ;;  %vm3064_vm3 = vcmask 72704   ;;  %vm3129_vm4 = vcmask 97280  }
   0x4   :  { %107 = vst.msk [vmem:[#allocation2 + $0x30] sm:$0xff] %vm100_vm0, %v15426_v0  ;;  %108 = vst.msk [vmem:[#allocation2 + $0x38] sm:$0xff] %vm100_vm0, %v15426_v0  ;;  %v42_v7 = vld [vmem:[%s15415_s0 + $0x30] sm:$0xff]  ;;  %v43_v8 = vld [vmem:[%s15415_s0 + $0x38] sm:$0xff]  ;;  %vm3194_vm5 = vcmask 121856   ;;  %vm3259_vm6 = vcmask 146432  }
   0x5   :  { %109 = vst.msk [vmem:[#allocation2 + $0x40] sm:$0xff] %vm100_vm0, %v15426_v0  ;;  %110 = vst.msk [vmem:[#allocation2 + $0x48] sm:$0xff] %vm100_vm0, %v15426_v0  ;;  %v44_v9 = vld [vmem:[%s15415_s0 + $0x40] sm:$0xff]  ;;  %v45_v10 = vld [vmem:[%s15415_s0 + $0x48] sm:$0xff]  ;;  %vm3324_vm7 = vcmask 171008   ;;  %vm3389_vm8 = vcmask 195584  }
   0x6   :  { %111 = vst.msk [vmem:[#allocation2 + $0x50] sm:$0xff] %vm100_vm0, %v15426_v0  ;;  %112 = vst.msk [vmem:[#allocation2 + $0x58] sm:$0xff] %vm100_vm0, %v15426_v0  ;;  %v46_v11 = vld [vmem:[%s15415_s0 + $0x50] sm:$0xff]  ;;  %v47_v12 = vld [vmem:[%s15415_s0 + $0x58] sm:$0xff]  ;;  %vm3465_vm9 = vcmask 220160  }
   0x7   :  { %113 = vst.msk [vmem:[#allocation2 + $0x60] sm:$0xff] %vm100_vm0, %v15426_v0  ;;  %114 = vst.msk [vmem:[#allocation2 + $0x68] sm:$0xff] %vm100_vm0, %v15426_v0  ;;  %v48_v13 = vld [vmem:[%s15415_s0 + $0x60] sm:$0xff]  ;;  %v49_v14 = vld [vmem:[%s15415_s0 + $0x68] sm:$0xff] }
   0x8   :  { %115 = vst.msk [vmem:[#allocation2 + $0x70] sm:$0xff] %vm100_vm0, %v15426_v0  ;;  %116 = vst.msk [vmem:[#allocation2 + $0x78] sm:$0xff] %vm100_vm0, %v15426_v0  ;;  %v50_v15 = vld [vmem:[%s15415_s0 + $0x70] sm:$0xff]  ;;  %v51_v16 = vld [vmem:[%s15415_s0 + $0x78] sm:$0xff] }
   0x9   :  { %117 = vst.msk [vmem:[#allocation2 + $0x80] sm:$0xff] %vm100_vm0, %v15426_v0  ;;  %118 = vst.msk [vmem:[#allocation2 + $0x88] sm:$0xff] %vm100_vm0, %v15426_v0  ;;  %v52_v17 = vld [vmem:[%s15415_s0 + $0x80] sm:$0xff]  ;;  %v53_v18 = vld [vmem:[%s15415_s0 + $0x88] sm:$0xff] }
   0xa   :  { %119 = vst.msk [vmem:[#allocation2 + $0x90] sm:$0xff] %vm100_vm0, %v15426_v0  ;;  %120 = vst.msk [vmem:[#allocation2 + $0x98] sm:$0xff] %vm100_vm0, %v15426_v0  ;;  %v54_v19 = vld [vmem:[%s15415_s0 + $0x90] sm:$0xff]  ;;  %v55_v20 = vld [vmem:[%s15415_s0 + $0x98] sm:$0xff] }
   0xb   :  { %121 = vst.msk [vmem:[#allocation2 + $0xa0] sm:$0xff] %vm100_vm0, %v15426_v0  ;;  %122 = vst.msk [vmem:[#allocation2 + $0xa8] sm:$0xff] %vm100_vm0, %v15426_v0  ;;  %v56_v21 = vld [vmem:[%s15415_s0 + $0xa0] sm:$0xff]  ;;  %v374_v22 = vld [vmem:[#allocation2 + $0x8] sm:$0xff] }
   0xc   :  { %123 = vst.msk [vmem:[#allocation2 + $0xb0] sm:$0xff] %vm100_vm0, %v15426_v0  ;;  %124 = vst.msk [vmem:[#allocation2 + $0xb8] sm:$0xff] %vm100_vm0, %v15426_v0  ;;  %v57_v23 = vld [vmem:[%s15415_s0 + $0xa8] sm:$0xff]  ;;  %951 = vrot.lane.b32.xlu0 %v374_v22, %s9723_s17  ;;  %v375_v25 = vld [vmem:[#allocation2 + $0x10] sm:$0xff] }
   0xd   :  { %125 = vst.msk [vmem:[#allocation2 + $0xc0] sm:$0xff] %vm100_vm0, %v15426_v0  ;;  %126 = vst.msk [vmem:[#allocation2 + $0xc8] sm:$0xff] %vm100_vm0, %v15426_v0  ;;  %v58_v30 = vld [vmem:[%s15415_s0 + $0xb0] sm:$0xff]  ;;  %v59_v31 = vld [vmem:[%s15415_s0 + $0xb8] sm:$0xff] }
   0xe   :  { %127 = vst.msk [vmem:[#allocation2 + $0xd0] sm:$0xff] %vm100_vm0, %v15426_v0  ;;  %128 = vst.msk [vmem:[#allocation2 + $0xd8] sm:$0xff] %vm100_vm0, %v15426_v0  ;;  %v60_v32 = vld [vmem:[%s15415_s0 + $0xc0] sm:$0xff]  ;;  %v61_v33 = vld [vmem:[%s15415_s0 + $0xc8] sm:$0xff] }
   0xf   :  { %129 = vst.msk [vmem:[#allocation2 + $0xe0] sm:$0xff] %vm100_vm0, %v15426_v0  ;;  %130 = vst.msk [vmem:[#allocation2 + $0xe8] sm:$0xff] %vm100_vm0, %v15426_v0  ;;  %v62_v34 = vld [vmem:[%s15415_s0 + $0xd0] sm:$0xff]  ;;  %v63_v35 = vld [vmem:[%s15415_s0 + $0xd8] sm:$0xff] }
  0x10   :  { %131 = vst.msk [vmem:[#allocation2 + $0xf0] sm:$0xff] %vm100_vm0, %v15426_v0  ;;  %132 = vst.msk [vmem:[#allocation2 + $0xf8] sm:$0xff] %vm100_vm0, %v15426_v0  ;;  %953 = vrot.lane.b32.xlu0 %v375_v25, %s9723_s17  ;;  %v64_v36 = vld [vmem:[%s15415_s0 + $0xe0] sm:$0xff]  ;;  %v65_v37 = vld [vmem:[%s15415_s0 + $0xe8] sm:$0xff] }
  0x11   :  { %133 = vst.msk [vmem:[#allocation2 + $0x100] sm:$0xff] %vm100_vm0, %v15426_v0  ;;  %134 = vst.msk [vmem:[#allocation2 + $0x108] sm:$0xff] %vm100_vm0, %v15426_v0  ;;  %v68_v39 = vld [vmem:[%s15415_s0 + $0x100] sm:$0xff]  ;;  %v69_v41 = vld [vmem:[%s15415_s0 + $0x108] sm:$0xff] }
  0x12   :  { %135 = vst.msk [vmem:[#allocation2 + $0x110] sm:$0xff] %vm100_vm0, %v15426_v0  ;;  %136 = vst.msk [vmem:[#allocation2 + $0x118] sm:$0xff] %vm100_vm0, %v15426_v0  ;;  %v70_v42 = vld [vmem:[%s15415_s0 + $0x110] sm:$0xff]  ;;  %v71_v43 = vld [vmem:[%s15415_s0 + $0x118] sm:$0xff] }
  0x13   :  { %137 = vst.msk [vmem:[#allocation2 + $0x120] sm:$0xff] %vm100_vm0, %v15426_v0  ;;  %138 = vst.msk [vmem:[#allocation2 + $0x128] sm:$0xff] %vm100_vm0, %v15426_v0  ;;  %v72_v45 = vld [vmem:[%s15415_s0 + $0x120] sm:$0xff]  ;;  %v73_v46 = vld [vmem:[%s15415_s0 + $0x128] sm:$0xff] }
  0x14   :  { %139 = vst.msk [vmem:[#allocation2 + $0x130] sm:$0xff] %vm100_vm0, %v15426_v0  ;;  %140 = vst.msk [vmem:[#allocation2 + $0x138] sm:$0xff] %vm100_vm0, %v15426_v0  ;;  %v74_v47 = vld [vmem:[%s15415_s0 + $0x130] sm:$0xff]  ;;  %v75_v48 = vld [vmem:[%s15415_s0 + $0x138] sm:$0xff] }
  0x15   :  { %141 = vst.msk [vmem:[#allocation2 + $0x140] sm:$0xff] %vm100_vm0, %v15426_v0  ;;  %142 = vst.msk [vmem:[#allocation2 + $0x148] sm:$0xff] %vm100_vm0, %v15426_v0  ;;  %v76_v49 = vld [vmem:[%s15415_s0 + $0x140] sm:$0xff]  ;;  %v77_v50 = vld [vmem:[%s15415_s0 + $0x148] sm:$0xff] }
  0x16   :  { %143 = vst.msk [vmem:[#allocation2 + $0x150] sm:$0xff] %vm100_vm0, %v15426_v0  ;;  %144 = vst.msk [vmem:[#allocation2 + $0x158] sm:$0xff] %vm100_vm0, %v15426_v0  ;;  %v78_v51 = vld [vmem:[%s15415_s0 + $0x150] sm:$0xff]  ;;  %v79_v52 = vld [vmem:[%s15415_s0 + $0x158] sm:$0xff] }
  0x17   :  { %145 = vst.msk [vmem:[#allocation2 + $0x160] sm:$0xff] %vm100_vm0, %v15426_v0  ;;  %146 = vst.msk [vmem:[#allocation2 + $0x168] sm:$0xff] %vm100_vm0, %v15426_v0  ;;  %v80_v53 = vld [vmem:[%s15415_s0 + $0x160] sm:$0xff]  ;;  %v81_v54 = vld [vmem:[%s15415_s0 + $0x168] sm:$0xff] }
  0x18   :  { %147 = vst.msk [vmem:[#allocation2 + $0x170] sm:$0xff] %vm100_vm0, %v15426_v0  ;;  %148 = vst.msk [vmem:[#allocation2 + $0x178] sm:$0xff] %vm100_vm0, %v15426_v0  ;;  %v82_v57 = vld [vmem:[%s15415_s0 + $0x170] sm:$0xff]  ;;  %v83_v58 = vld [vmem:[%s15415_s0 + $0x178] sm:$0xff] }
  0x19   :  { %149 = vst.msk [vmem:[#allocation2 + $0x180] sm:$0xff] %vm100_vm0, %v15426_v0  ;;  %150 = vst.msk [vmem:[#allocation2 + $0x188] sm:$0xff] %vm100_vm0, %v15426_v0  ;;  %v84_v62 = vld [vmem:[%s15415_s0 + $0x180] sm:$0xff]  ;;  %v85_v63 = vld [vmem:[%s15415_s0 + $0x188] sm:$0xff] }
  0x1a   :  { %151 = vst.msk [vmem:[#allocation2 + $0x190] sm:$0xff] %vm100_vm0, %v15426_v0  ;;  %152 = vst.msk [vmem:[#allocation2 + $0x198] sm:$0xff] %vm100_vm0, %v15426_v0 }
  0x1b   :  { %153 = vst.msk [vmem:[#allocation2 + $0x1a0] sm:$0xff] %vm100_vm0, %v15426_v0  ;;  %154 = vst.msk [vmem:[#allocation2 + $0x1a8] sm:$0xff] %vm100_vm0, %v15426_v0 }
  0x1c   :  { %155 = vst.msk [vmem:[#allocation2 + $0x1b0] sm:$0xff] %vm100_vm0, %v15426_v0  ;;  %156 = vst.msk [vmem:[#allocation2 + $0x1b8] sm:$0xff] %vm100_vm0, %v15426_v0 }
  0x1d   :  { %157 = vst.msk [vmem:[#allocation2 + $0x1c0] sm:$0xff] %vm100_vm0, %v15426_v0  ;;  %158 = vst.msk [vmem:[#allocation2 + $0x1c8] sm:$0xff] %vm100_vm0, %v15426_v0 }
  0x1e   :  { %159 = vst.msk [vmem:[#allocation2 + $0x1d0] sm:$0xff] %vm100_vm0, %v15426_v0  ;;  %160 = vst.msk [vmem:[#allocation2 + $0x1d8] sm:$0xff] %vm100_vm0, %v15426_v0 }
  0x1f   :  { %161 = vst.msk [vmem:[#allocation2 + $0x1e0] sm:$0xff] %vm100_vm0, %v15426_v0  ;;  %162 = vst.msk [vmem:[#allocation2 + $0x1e8] sm:$0xff] %vm100_vm0, %v15426_v0 }
  0x20   :  { %163 = vst.msk [vmem:[#allocation2 + $0x1f0] sm:$0xff] %vm100_vm0, %v15426_v0  ;;  %164 = vst.msk [vmem:[#allocation2 + $0x1f8] sm:$0xff] %vm100_vm0, %v15426_v0 }
  0x21   :  { %165 = vst.msk [vmem:[#allocation2 + $0x200] sm:$0xff] %vm100_vm0, %v15426_v0  ;;  %166 = vst.msk [vmem:[#allocation2 + $0x208] sm:$0xff] %vm100_vm0, %v15426_v0 }
  0x22   :  { %167 = vst.msk [vmem:[#allocation2 + $0x210] sm:$0xff] %vm100_vm0, %v15426_v0  ;;  %168 = vst.msk [vmem:[#allocation2 + $0x218] sm:$0xff] %vm100_vm0, %v15426_v0 }
  0x23   :  { %169 = vst.msk [vmem:[#allocation2 + $0x220] sm:$0xff] %vm100_vm0, %v15426_v0  ;;  %170 = vst.msk [vmem:[#allocation2 + $0x228] sm:$0xff] %vm100_vm0, %v15426_v0 }
  0x24   :  { %171 = vst.msk [vmem:[#allocation2 + $0x230] sm:$0xff] %vm100_vm0, %v15426_v0  ;;  %172 = vst.msk [vmem:[#allocation2 + $0x238] sm:$0xff] %vm100_vm0, %v15426_v0 }
  0x25   :  { %173 = vst.msk [vmem:[#allocation2 + $0x240] sm:$0xff] %vm100_vm0, %v15426_v0  ;;  %174 = vst.msk [vmem:[#allocation2 + $0x248] sm:$0xff] %vm100_vm0, %v15426_v0 }
  0x26   :  { %175 = vst.msk [vmem:[#allocation2 + $0x250] sm:$0xff] %vm100_vm0, %v15426_v0  ;;  %176 = vst.msk [vmem:[#allocation2 + $0x258] sm:$0xff] %vm100_vm0, %v15426_v0 }
  0x27   :  { %177 = vst.msk [vmem:[#allocation2 + $0x260] sm:$0xff] %vm100_vm0, %v15426_v0  ;;  %178 = vst.msk [vmem:[#allocation2 + $0x268] sm:$0xff] %vm100_vm0, %v15426_v0 }
  0x28   :  { %179 = vst.msk [vmem:[#allocation2 + $0x270] sm:$0xff] %vm100_vm0, %v15426_v0  ;;  %180 = vst.msk [vmem:[#allocation2 + $0x278] sm:$0xff] %vm100_vm0, %v15426_v0 }
  0x29   :  { %181 = vst.msk [vmem:[#allocation2 + $0x280] sm:$0xff] %vm100_vm0, %v15426_v0  ;;  %182 = vst.msk [vmem:[#allocation2 + $0x288] sm:$0xff] %vm100_vm0, %v15426_v0 }
  0x2a   :  { %183 = vst.msk [vmem:[#allocation2 + $0x290] sm:$0xff] %vm100_vm0, %v15426_v0  ;;  %184 = vst.msk [vmem:[#allocation2 + $0x298] sm:$0xff] %vm100_vm0, %v15426_v0 }
  0x2b   :  { %185 = vst.msk [vmem:[#allocation2 + $0x2a0] sm:$0xff] %vm100_vm0, %v15426_v0  ;;  %186 = vst.msk [vmem:[#allocation2 + $0x2a8] sm:$0xff] %vm100_vm0, %v15426_v0 }
  0x2c   :  { %187 = vst.msk [vmem:[#allocation2 + $0x2b0] sm:$0xff] %vm100_vm0, %v15426_v0  ;;  %188 = vst.msk [vmem:[#allocation2 + $0x2b8] sm:$0xff] %vm100_vm0, %v15426_v0 }
  0x2d   :  { %189 = vst.msk [vmem:[#allocation2 + $0x2c0] sm:$0xff] %vm100_vm0, %v15426_v0  ;;  %190 = vst.msk [vmem:[#allocation2 + $0x2c8] sm:$0xff] %vm100_vm0, %v15426_v0 }
  0x2e   :  { %191 = vst.msk [vmem:[#allocation2 + $0x2d0] sm:$0xff] %vm100_vm0, %v15426_v0  ;;  %192 = vst.msk [vmem:[#allocation2 + $0x2d8] sm:$0xff] %vm100_vm0, %v15426_v0 }
  0x2f   :  { %193 = vst.msk [vmem:[#allocation2 + $0x2e0] sm:$0xff] %vm100_vm0, %v15426_v0  ;;  %194 = vst.msk [vmem:[#allocation2 + $0x2e8] sm:$0xff] %vm100_vm0, %v15426_v0 }
  0x30   :  { %195 = vst.msk [vmem:[#allocation2 + $0x2f0] sm:$0xff] %vm100_vm0, %v15426_v0  ;;  %196 = vst.msk [vmem:[#allocation2 + $0x2f8] sm:$0xff] %vm100_vm0, %v15426_v0 }
  0x31   :  { %197 = vst.msk [vmem:[#allocation2 + $0x300] sm:$0xff] %vm100_vm0, %v15426_v0  ;;  %198 = vst.msk [vmem:[#allocation2 + $0x308] sm:$0xff] %vm100_vm0, %v15426_v0 }
  0x32   :  { %199 = vst.msk [vmem:[#allocation2 + $0x310] sm:$0xff] %vm100_vm0, %v15426_v0  ;;  %200 = vst.msk [vmem:[#allocation2 + $0x318] sm:$0xff] %vm100_vm0, %v15426_v0 }
  0x33   :  { %201 = vst.msk [vmem:[#allocation2 + $0x320] sm:$0xff] %vm100_vm0, %v15426_v0  ;;  %202 = vst.msk [vmem:[#allocation2 + $0x328] sm:$0xff] %vm100_vm0, %v15426_v0 }
  0x34   :  { %203 = vst.msk [vmem:[#allocation2 + $0x330] sm:$0xff] %vm100_vm0, %v15426_v0  ;;  %204 = vst.msk [vmem:[#allocation2 + $0x338] sm:$0xff] %vm100_vm0, %v15426_v0 }
  0x35   :  { %205 = vst.msk [vmem:[#allocation2 + $0x340] sm:$0xff] %vm100_vm0, %v15426_v0  ;;  %206 = vst.msk [vmem:[#allocation2 + $0x348] sm:$0xff] %vm100_vm0, %v15426_v0 }
  0x36   :  { %207 = vst.msk [vmem:[#allocation2 + $0x350] sm:$0xff] %vm100_vm0, %v15426_v0  ;;  %208 = vst.msk [vmem:[#allocation2 + $0x358] sm:$0xff] %vm100_vm0, %v15426_v0 }
  0x37   :  { %209 = vst.msk [vmem:[#allocation2 + $0x360] sm:$0xff] %vm100_vm0, %v15426_v0  ;;  %210 = vst.msk [vmem:[#allocation2 + $0x368] sm:$0xff] %vm100_vm0, %v15426_v0 }
  0x38   :  { %211 = vst.msk [vmem:[#allocation2 + $0x370] sm:$0xff] %vm100_vm0, %v15426_v0  ;;  %212 = vst.msk [vmem:[#allocation2 + $0x378] sm:$0xff] %vm100_vm0, %v15426_v0 }
  0x39   :  { %213 = vst.msk [vmem:[#allocation2 + $0x380] sm:$0xff] %vm100_vm0, %v15426_v0  ;;  %214 = vst.msk [vmem:[#allocation2 + $0x388] sm:$0xff] %vm100_vm0, %v15426_v0 }
  0x3a   :  { %215 = vst.msk [vmem:[#allocation2 + $0x390] sm:$0xff] %vm100_vm0, %v15426_v0  ;;  %216 = vst.msk [vmem:[#allocation2 + $0x398] sm:$0xff] %vm100_vm0, %v15426_v0 }
  0x3b   :  { %217 = vst.msk [vmem:[#allocation2 + $0x3a0] sm:$0xff] %vm100_vm0, %v15426_v0  ;;  %218 = vst.msk [vmem:[#allocation2 + $0x3a8] sm:$0xff] %vm100_vm0, %v15426_v0 }
  0x3c   :  { %219 = vst.msk [vmem:[#allocation2 + $0x3b0] sm:$0xff] %vm100_vm0, %v15426_v0  ;;  %220 = vst.msk [vmem:[#allocation2 + $0x3b8] sm:$0xff] %vm100_vm0, %v15426_v0 }
  0x3d   :  { %221 = vst.msk [vmem:[#allocation2 + $0x3c0] sm:$0xff] %vm100_vm0, %v15426_v0  ;;  %222 = vst.msk [vmem:[#allocation2 + $0x3c8] sm:$0xff] %vm100_vm0, %v15426_v0 }
  0x3e   :  { %223 = vst.msk [vmem:[#allocation2 + $0x3d0] sm:$0xff] %vm100_vm0, %v15426_v0  ;;  %224 = vst.msk [vmem:[#allocation2 + $0x3d8] sm:$0xff] %vm100_vm0, %v15426_v0 }
  0x3f   :  { %225 = vst.msk [vmem:[#allocation2 + $0x3e0] sm:$0xff] %vm100_vm0, %v15426_v0  ;;  %226 = vst.msk [vmem:[#allocation2 + $0x3e8] sm:$0xff] %vm100_vm0, %v15426_v0 }
  0x40   :  { %227 = vst.msk [vmem:[#allocation2 + $0x3f0] sm:$0xff] %vm100_vm0, %v15426_v0  ;;  %228 = vst.msk [vmem:[#allocation2 + $0x3f8] sm:$0xff] %vm100_vm0, %v15426_v0 }
  0x41   :  { %229 = vst.msk [vmem:[#allocation2 + $0x400] sm:$0xff] %vm100_vm0, %v15426_v0  ;;  %230 = vst.msk [vmem:[#allocation2 + $0x408] sm:$0xff] %vm100_vm0, %v15426_v0 }
  0x42   :  { %231 = vst.msk [vmem:[#allocation2 + $0x410] sm:$0xff] %vm100_vm0, %v15426_v0  ;;  %232 = vst.msk [vmem:[#allocation2 + $0x418] sm:$0xff] %vm100_vm0, %v15426_v0 }
  0x43   :  { %233 = vst.msk [vmem:[#allocation2 + $0x420] sm:$0xff] %vm100_vm0, %v15426_v0  ;;  %234 = vst.msk [vmem:[#allocation2 + $0x428] sm:$0xff] %vm100_vm0, %v15426_v0 }
  0x44   :  { %235 = vst.msk [vmem:[#allocation2 + $0x430] sm:$0xff] %vm100_vm0, %v15426_v0  ;;  %236 = vst.msk [vmem:[#allocation2 + $0x438] sm:$0xff] %vm100_vm0, %v15426_v0 }
  0x45   :  { %237 = vst.msk [vmem:[#allocation2 + $0x440] sm:$0xff] %vm100_vm0, %v15426_v0  ;;  %238 = vst.msk [vmem:[#allocation2 + $0x448] sm:$0xff] %vm100_vm0, %v15426_v0 }
  0x46   :  { %239 = vst.msk [vmem:[#allocation2 + $0x450] sm:$0xff] %vm100_vm0, %v15426_v0  ;;  %240 = vst.msk [vmem:[#allocation2 + $0x458] sm:$0xff] %vm100_vm0, %v15426_v0 }
  0x47   :  { %241 = vst.msk [vmem:[#allocation2 + $0x460] sm:$0xff] %vm100_vm0, %v15426_v0  ;;  %242 = vst.msk [vmem:[#allocation2 + $0x468] sm:$0xff] %vm100_vm0, %v15426_v0 }
  0x48   :  { %243 = vst.msk [vmem:[#allocation2 + $0x470] sm:$0xff] %vm100_vm0, %v15426_v0  ;;  %244 = vst.msk [vmem:[#allocation2 + $0x478] sm:$0xff] %vm100_vm0, %v15426_v0 }
  0x49   :  { %4047 = vst.msk [vmem:[#allocation3] sm:$0xff] %vm100_vm0, %v15426_v0  ;;  %4048 = vst.msk [vmem:[#allocation3 + $0x8] sm:$0xff] %vm100_vm0, %v15426_v0 }
  0x4a   :  { %4049 = vst.msk [vmem:[#allocation3 + $0x10] sm:$0xff] %vm100_vm0, %v15426_v0  ;;  %4050 = vst.msk [vmem:[#allocation3 + $0x18] sm:$0xff] %vm100_vm0, %v15426_v0 }
  0x4b   :  { %4051 = vst.msk [vmem:[#allocation3 + $0x20] sm:$0xff] %vm100_vm0, %v15426_v0  ;;  %4052 = vst.msk [vmem:[#allocation3 + $0x28] sm:$0xff] %vm100_vm0, %v15426_v0 }
  0x4c   :  { %4053 = vst.msk [vmem:[#allocation3 + $0x30] sm:$0xff] %vm100_vm0, %v15426_v0  ;;  %4054 = vst.msk [vmem:[#allocation3 + $0x38] sm:$0xff] %vm100_vm0, %v15426_v0 }
  0x4d   :  { %4055 = vst.msk [vmem:[#allocation3 + $0x40] sm:$0xff] %vm100_vm0, %v15426_v0  ;;  %4056 = vst.msk [vmem:[#allocation3 + $0x48] sm:$0xff] %vm100_vm0, %v15426_v0 }
  0x4e   :  { %4057 = vst.msk [vmem:[#allocation3 + $0x50] sm:$0xff] %vm100_vm0, %v15426_v0  ;;  %4058 = vst.msk [vmem:[#allocation3 + $0x58] sm:$0xff] %vm100_vm0, %v15426_v0 }
  0x4f   :  { %4059 = vst.msk [vmem:[#allocation3 + $0x60] sm:$0xff] %vm100_vm0, %v15426_v0  ;;  %4060 = vst.msk [vmem:[#allocation3 + $0x68] sm:$0xff] %vm100_vm0, %v15426_v0 }
  0x50   :  { %4061 = vst.msk [vmem:[#allocation3 + $0x70] sm:$0xff] %vm100_vm0, %v15426_v0  ;;  %4062 = vst.msk [vmem:[#allocation3 + $0x78] sm:$0xff] %vm100_vm0, %v15426_v0 }
  0x51   :  { %4063 = vst.msk [vmem:[#allocation3 + $0x80] sm:$0xff] %vm100_vm0, %v15426_v0  ;;  %4064 = vst.msk [vmem:[#allocation3 + $0x88] sm:$0xff] %vm100_vm0, %v15426_v0 }
  0x52   :  { %4065 = vst.msk [vmem:[#allocation3 + $0x90] sm:$0xff] %vm100_vm0, %v15426_v0  ;;  %4066 = vst.msk [vmem:[#allocation3 + $0x98] sm:$0xff] %vm100_vm0, %v15426_v0 }
  0x53   :  { %4067 = vst.msk [vmem:[#allocation3 + $0xa0] sm:$0xff] %vm100_vm0, %v15426_v0  ;;  %4068 = vst.msk [vmem:[#allocation3 + $0xa8] sm:$0xff] %vm100_vm0, %v15426_v0 }
  0x54   :  { %4069 = vst.msk [vmem:[#allocation3 + $0xb0] sm:$0xff] %vm100_vm0, %v15426_v0  ;;  %4070 = vst.msk [vmem:[#allocation3 + $0xb8] sm:$0xff] %vm100_vm0, %v15426_v0 }
  0x55   :  { %4071 = vst.msk [vmem:[#allocation3 + $0xc0] sm:$0xff] %vm100_vm0, %v15426_v0  ;;  %4072 = vst.msk [vmem:[#allocation3 + $0xc8] sm:$0xff] %vm100_vm0, %v15426_v0 }
  0x56   :  { %4073 = vst.msk [vmem:[#allocation3 + $0xd0] sm:$0xff] %vm100_vm0, %v15426_v0  ;;  %4074 = vst.msk [vmem:[#allocation3 + $0xd8] sm:$0xff] %vm100_vm0, %v15426_v0 }
  0x57   :  { %4075 = vst.msk [vmem:[#allocation3 + $0xe0] sm:$0xff] %vm100_vm0, %v15426_v0  ;;  %4076 = vst.msk [vmem:[#allocation3 + $0xe8] sm:$0xff] %vm100_vm0, %v15426_v0 }
  0x58   :  { %4077 = vst.msk [vmem:[#allocation3 + $0xf0] sm:$0xff] %vm100_vm0, %v15426_v0  ;;  %4078 = vst.msk [vmem:[#allocation3 + $0xf8] sm:$0xff] %vm100_vm0, %v15426_v0 }
  0x59   :  { %4079 = vst.msk [vmem:[#allocation3 + $0x100] sm:$0xff] %vm100_vm0, %v15426_v0  ;;  %4080 = vst.msk [vmem:[#allocation3 + $0x108] sm:$0xff] %vm100_vm0, %v15426_v0 }
  0x5a   :  { %4081 = vst.msk [vmem:[#allocation3 + $0x110] sm:$0xff] %vm100_vm0, %v15426_v0  ;;  %4082 = vst.msk [vmem:[#allocation3 + $0x118] sm:$0xff] %vm100_vm0, %v15426_v0 }
  0x5b   :  { %4083 = vst.msk [vmem:[#allocation3 + $0x120] sm:$0xff] %vm100_vm0, %v15426_v0  ;;  %4084 = vst.msk [vmem:[#allocation3 + $0x128] sm:$0xff] %vm100_vm0, %v15426_v0 }
  0x5c   :  { %4085 = vst.msk [vmem:[#allocation3 + $0x130] sm:$0xff] %vm100_vm0, %v15426_v0  ;;  %4086 = vst.msk [vmem:[#allocation3 + $0x138] sm:$0xff] %vm100_vm0, %v15426_v0 }
  0x5d   :  { %4087 = vst.msk [vmem:[#allocation3 + $0x140] sm:$0xff] %vm100_vm0, %v15426_v0  ;;  %4088 = vst.msk [vmem:[#allocation3 + $0x148] sm:$0xff] %vm100_vm0, %v15426_v0 }
  0x5e   :  { %4089 = vst.msk [vmem:[#allocation3 + $0x150] sm:$0xff] %vm100_vm0, %v15426_v0  ;;  %4090 = vst.msk [vmem:[#allocation3 + $0x158] sm:$0xff] %vm100_vm0, %v15426_v0 }
  0x5f   :  { %4091 = vst.msk [vmem:[#allocation3 + $0x160] sm:$0xff] %vm100_vm0, %v15426_v0  ;;  %4092 = vst.msk [vmem:[#allocation3 + $0x168] sm:$0xff] %vm100_vm0, %v15426_v0 }
  0x60   :  { %4093 = vst.msk [vmem:[#allocation3 + $0x170] sm:$0xff] %vm100_vm0, %v15426_v0  ;;  %4094 = vst.msk [vmem:[#allocation3 + $0x178] sm:$0xff] %vm100_vm0, %v15426_v0 }
  0x61   :  { %4095 = vst.msk [vmem:[#allocation3 + $0x180] sm:$0xff] %vm100_vm0, %v15426_v0  ;;  %4096 = vst.msk [vmem:[#allocation3 + $0x188] sm:$0xff] %vm100_vm0, %v15426_v0 }
  0x62   :  { %4097 = vst.msk [vmem:[#allocation3 + $0x190] sm:$0xff] %vm100_vm0, %v15426_v0  ;;  %4098 = vst.msk [vmem:[#allocation3 + $0x198] sm:$0xff] %vm100_vm0, %v15426_v0 }
  0x63   :  { %4099 = vst.msk [vmem:[#allocation3 + $0x1a0] sm:$0xff] %vm100_vm0, %v15426_v0  ;;  %4100 = vst.msk [vmem:[#allocation3 + $0x1a8] sm:$0xff] %vm100_vm0, %v15426_v0 }
  0x64   :  { %4101 = vst.msk [vmem:[#allocation3 + $0x1b0] sm:$0xff] %vm100_vm0, %v15426_v0  ;;  %4102 = vst.msk [vmem:[#allocation3 + $0x1b8] sm:$0xff] %vm100_vm0, %v15426_v0 }
  0x65   :  { %4103 = vst.msk [vmem:[#allocation3 + $0x1c0] sm:$0xff] %vm100_vm0, %v15426_v0  ;;  %4104 = vst.msk [vmem:[#allocation3 + $0x1c8] sm:$0xff] %vm100_vm0, %v15426_v0 }
  0x66   :  { %4105 = vst.msk [vmem:[#allocation3 + $0x1d0] sm:$0xff] %vm100_vm0, %v15426_v0  ;;  %4106 = vst.msk [vmem:[#allocation3 + $0x1d8] sm:$0xff] %vm100_vm0, %v15426_v0 }
  0x67   :  { %4107 = vst.msk [vmem:[#allocation3 + $0x1e0] sm:$0xff] %vm100_vm0, %v15426_v0  ;;  %4108 = vst.msk [vmem:[#allocation3 + $0x1e8] sm:$0xff] %vm100_vm0, %v15426_v0 }
  0x68   :  { %4109 = vst.msk [vmem:[#allocation3 + $0x1f0] sm:$0xff] %vm100_vm0, %v15426_v0  ;;  %4110 = vst.msk [vmem:[#allocation3 + $0x1f8] sm:$0xff] %vm100_vm0, %v15426_v0 }
  0x69   :  { %4111 = vst.msk [vmem:[#allocation3 + $0x200] sm:$0xff] %vm100_vm0, %v15426_v0  ;;  %4112 = vst.msk [vmem:[#allocation3 + $0x208] sm:$0xff] %vm100_vm0, %v15426_v0 }
  0x6a   :  { %4113 = vst.msk [vmem:[#allocation3 + $0x210] sm:$0xff] %vm100_vm0, %v15426_v0  ;;  %4114 = vst.msk [vmem:[#allocation3 + $0x218] sm:$0xff] %vm100_vm0, %v15426_v0 }
  0x6b   :  { %4115 = vst.msk [vmem:[#allocation3 + $0x220] sm:$0xff] %vm100_vm0, %v15426_v0  ;;  %4116 = vst.msk [vmem:[#allocation3 + $0x228] sm:$0xff] %vm100_vm0, %v15426_v0 }
  0x6c   :  { %4117 = vst.msk [vmem:[#allocation3 + $0x230] sm:$0xff] %vm100_vm0, %v15426_v0  ;;  %4118 = vst.msk [vmem:[#allocation3 + $0x238] sm:$0xff] %vm100_vm0, %v15426_v0 }
  0x6d   :  { %4119 = vst.msk [vmem:[#allocation3 + $0x240] sm:$0xff] %vm100_vm0, %v15426_v0  ;;  %4120 = vst.msk [vmem:[#allocation3 + $0x248] sm:$0xff] %vm100_vm0, %v15426_v0 }
  0x6e   :  { %4121 = vst.msk [vmem:[#allocation3 + $0x250] sm:$0xff] %vm100_vm0, %v15426_v0  ;;  %4122 = vst.msk [vmem:[#allocation3 + $0x258] sm:$0xff] %vm100_vm0, %v15426_v0 }
  0x6f   :  { %4123 = vst.msk [vmem:[#allocation3 + $0x260] sm:$0xff] %vm100_vm0, %v15426_v0  ;;  %4124 = vst.msk [vmem:[#allocation3 + $0x268] sm:$0xff] %vm100_vm0, %v15426_v0 }
  0x70   :  { %4125 = vst.msk [vmem:[#allocation3 + $0x270] sm:$0xff] %vm100_vm0, %v15426_v0  ;;  %4126 = vst.msk [vmem:[#allocation3 + $0x278] sm:$0xff] %vm100_vm0, %v15426_v0 }
  0x71   :  { %4127 = vst.msk [vmem:[#allocation3 + $0x280] sm:$0xff] %vm100_vm0, %v15426_v0  ;;  %4128 = vst.msk [vmem:[#allocation3 + $0x288] sm:$0xff] %vm100_vm0, %v15426_v0 }
  0x72   :  { %4129 = vst.msk [vmem:[#allocation3 + $0x290] sm:$0xff] %vm100_vm0, %v15426_v0  ;;  %4130 = vst.msk [vmem:[#allocation3 + $0x298] sm:$0xff] %vm100_vm0, %v15426_v0 }
  0x73   :  { %4131 = vst.msk [vmem:[#allocation3 + $0x2a0] sm:$0xff] %vm100_vm0, %v15426_v0  ;;  %4132 = vst.msk [vmem:[#allocation3 + $0x2a8] sm:$0xff] %vm100_vm0, %v15426_v0 }
  0x74   :  { %4133 = vst.msk [vmem:[#allocation3 + $0x2b0] sm:$0xff] %vm100_vm0, %v15426_v0  ;;  %4134 = vst.msk [vmem:[#allocation3 + $0x2b8] sm:$0xff] %vm100_vm0, %v15426_v0 }
  0x75   :  { %4135 = vst.msk [vmem:[#allocation3 + $0x2c0] sm:$0xff] %vm100_vm0, %v15426_v0  ;;  %4136 = vst.msk [vmem:[#allocation3 + $0x2c8] sm:$0xff] %vm100_vm0, %v15426_v0 }
  0x76   :  { %4137 = vst.msk [vmem:[#allocation3 + $0x2d0] sm:$0xff] %vm100_vm0, %v15426_v0  ;;  %4138 = vst.msk [vmem:[#allocation3 + $0x2d8] sm:$0xff] %vm100_vm0, %v15426_v0 }
  0x77   :  { %4139 = vst.msk [vmem:[#allocation3 + $0x2e0] sm:$0xff] %vm100_vm0, %v15426_v0  ;;  %4140 = vst.msk [vmem:[#allocation3 + $0x2e8] sm:$0xff] %vm100_vm0, %v15426_v0 }
  0x78   :  { %4141 = vst.msk [vmem:[#allocation3 + $0x2f0] sm:$0xff] %vm100_vm0, %v15426_v0  ;;  %4142 = vst.msk [vmem:[#allocation3 + $0x2f8] sm:$0xff] %vm100_vm0, %v15426_v0 }
  0x79   :  { %4143 = vst.msk [vmem:[#allocation3 + $0x300] sm:$0xff] %vm100_vm0, %v15426_v0  ;;  %4144 = vst.msk [vmem:[#allocation3 + $0x308] sm:$0xff] %vm100_vm0, %v15426_v0 }
  0x7a   :  { %4145 = vst.msk [vmem:[#allocation3 + $0x310] sm:$0xff] %vm100_vm0, %v15426_v0  ;;  %4146 = vst.msk [vmem:[#allocation3 + $0x318] sm:$0xff] %vm100_vm0, %v15426_v0 }
  0x7b   :  { %4147 = vst.msk [vmem:[#allocation3 + $0x320] sm:$0xff] %vm100_vm0, %v15426_v0  ;;  %4148 = vst.msk [vmem:[#allocation3 + $0x328] sm:$0xff] %vm100_vm0, %v15426_v0 }
  0x7c   :  { %4149 = vst.msk [vmem:[#allocation3 + $0x330] sm:$0xff] %vm100_vm0, %v15426_v0  ;;  %4150 = vst.msk [vmem:[#allocation3 + $0x338] sm:$0xff] %vm100_vm0, %v15426_v0 }
  0x7d   :  { %4151 = vst.msk [vmem:[#allocation3 + $0x340] sm:$0xff] %vm100_vm0, %v15426_v0  ;;  %4152 = vst.msk [vmem:[#allocation3 + $0x348] sm:$0xff] %vm100_vm0, %v15426_v0 }
  0x7e   :  { %4153 = vst.msk [vmem:[#allocation3 + $0x350] sm:$0xff] %vm100_vm0, %v15426_v0  ;;  %4154 = vst.msk [vmem:[#allocation3 + $0x358] sm:$0xff] %vm100_vm0, %v15426_v0 }
  0x7f   :  { %4155 = vst.msk [vmem:[#allocation3 + $0x360] sm:$0xff] %vm100_vm0, %v15426_v0  ;;  %4156 = vst.msk [vmem:[#allocation3 + $0x368] sm:$0xff] %vm100_vm0, %v15426_v0 }
  0x80   :  { %4157 = vst.msk [vmem:[#allocation3 + $0x370] sm:$0xff] %vm100_vm0, %v15426_v0  ;;  %4158 = vst.msk [vmem:[#allocation3 + $0x378] sm:$0xff] %vm100_vm0, %v15426_v0 }
  0x81   :  { %4159 = vst.msk [vmem:[#allocation3 + $0x380] sm:$0xff] %vm100_vm0, %v15426_v0  ;;  %4160 = vst.msk [vmem:[#allocation3 + $0x388] sm:$0xff] %vm100_vm0, %v15426_v0 }
  0x82   :  { %4161 = vst.msk [vmem:[#allocation3 + $0x390] sm:$0xff] %vm100_vm0, %v15426_v0  ;;  %4162 = vst.msk [vmem:[#allocation3 + $0x398] sm:$0xff] %vm100_vm0, %v15426_v0 }
  0x83   :  { %4163 = vst.msk [vmem:[#allocation3 + $0x3a0] sm:$0xff] %vm100_vm0, %v15426_v0  ;;  %4164 = vst.msk [vmem:[#allocation3 + $0x3a8] sm:$0xff] %vm100_vm0, %v15426_v0 }
  0x84   :  { %4165 = vst.msk [vmem:[#allocation3 + $0x3b0] sm:$0xff] %vm100_vm0, %v15426_v0  ;;  %4166 = vst.msk [vmem:[#allocation3 + $0x3b8] sm:$0xff] %vm100_vm0, %v15426_v0 }
  0x85   :  { %4167 = vst.msk [vmem:[#allocation3 + $0x3c0] sm:$0xff] %vm100_vm0, %v15426_v0  ;;  %4168 = vst.msk [vmem:[#allocation3 + $0x3c8] sm:$0xff] %vm100_vm0, %v15426_v0 }
  0x86   :  { %4169 = vst.msk [vmem:[#allocation3 + $0x3d0] sm:$0xff] %vm100_vm0, %v15426_v0  ;;  %4170 = vst.msk [vmem:[#allocation3 + $0x3d8] sm:$0xff] %vm100_vm0, %v15426_v0 }
  0x87   :  { %4171 = vst.msk [vmem:[#allocation3 + $0x3e0] sm:$0xff] %vm100_vm0, %v15426_v0  ;;  %4172 = vst.msk [vmem:[#allocation3 + $0x3e8] sm:$0xff] %vm100_vm0, %v15426_v0 }
  0x88   :  { %4173 = vst.msk [vmem:[#allocation3 + $0x3f0] sm:$0xff] %vm100_vm0, %v15426_v0  ;;  %4174 = vst.msk [vmem:[#allocation3 + $0x3f8] sm:$0xff] %vm100_vm0, %v15426_v0 }
  0x89   :  { %4175 = vst.msk [vmem:[#allocation3 + $0x400] sm:$0xff] %vm100_vm0, %v15426_v0  ;;  %4176 = vst.msk [vmem:[#allocation3 + $0x408] sm:$0xff] %vm100_vm0, %v15426_v0 }
  0x8a   :  { %4177 = vst.msk [vmem:[#allocation3 + $0x410] sm:$0xff] %vm100_vm0, %v15426_v0  ;;  %4178 = vst.msk [vmem:[#allocation3 + $0x418] sm:$0xff] %vm100_vm0, %v15426_v0 }
  0x8b   :  { %4179 = vst.msk [vmem:[#allocation3 + $0x420] sm:$0xff] %vm100_vm0, %v15426_v0  ;;  %4180 = vst.msk [vmem:[#allocation3 + $0x428] sm:$0xff] %vm100_vm0, %v15426_v0 }
  0x8c   :  { %4181 = vst.msk [vmem:[#allocation3 + $0x430] sm:$0xff] %vm100_vm0, %v15426_v0  ;;  %4182 = vst.msk [vmem:[#allocation3 + $0x438] sm:$0xff] %vm100_vm0, %v15426_v0 }
  0x8d   :  { %4183 = vst.msk [vmem:[#allocation3 + $0x440] sm:$0xff] %vm100_vm0, %v15426_v0  ;;  %4184 = vst.msk [vmem:[#allocation3 + $0x448] sm:$0xff] %vm100_vm0, %v15426_v0 }
  0x8e   :  { %4185 = vst.msk [vmem:[#allocation3 + $0x450] sm:$0xff] %vm100_vm0, %v15426_v0  ;;  %4186 = vst.msk [vmem:[#allocation3 + $0x458] sm:$0xff] %vm100_vm0, %v15426_v0 }
  0x8f   :  { %4187 = vst.msk [vmem:[#allocation3 + $0x460] sm:$0xff] %vm100_vm0, %v15426_v0  ;;  %4188 = vst.msk [vmem:[#allocation3 + $0x468] sm:$0xff] %vm100_vm0, %v15426_v0 }
  0x90   :  { %4189 = vst.msk [vmem:[#allocation3 + $0x470] sm:$0xff] %vm100_vm0, %v15426_v0  ;;  %4190 = vst.msk [vmem:[#allocation3 + $0x478] sm:$0xff] %vm100_vm0, %v15426_v0 }
  0x91   :  { %246 = vst.msk [vmem:[#allocation2 + $0x28] sm:$0xff] %vm100_vm0, %v36_v1  ;;  %247 = vst.msk [vmem:[#allocation2 + $0x30] sm:$0xff] %vm100_vm0, %v37_v2  ;;  %v86_v1 = vld [vmem:[%s15415_s0 + $0x190] sm:$0xff]  ;;  %v87_v2 = vld [vmem:[%s15415_s0 + $0x198] sm:$0xff] }
  0x92   :  { %248 = vst.msk [vmem:[#allocation2 + $0x48] sm:$0xff] %vm100_vm0, %v38_v3  ;;  %249 = vst.msk [vmem:[#allocation2 + $0x50] sm:$0xff] %vm100_vm0, %v39_v4  ;;  %v88_v3 = vld [vmem:[%s15415_s0 + $0x1a0] sm:$0xff]  ;;  %v89_v4 = vld [vmem:[%s15415_s0 + $0x1a8] sm:$0xff] }
  0x93   :  { %250 = vst.msk [vmem:[#allocation2 + $0x68] sm:$0xff] %vm100_vm0, %v40_v5  ;;  %251 = vst.msk [vmem:[#allocation2 + $0x70] sm:$0xff] %vm100_vm0, %v41_v6  ;;  %v90_v5 = vld [vmem:[%s15415_s0 + $0x1b0] sm:$0xff]  ;;  %v91_v6 = vld [vmem:[%s15415_s0 + $0x1b8] sm:$0xff] }
  0x94   :  { %252 = vst.msk [vmem:[#allocation2 + $0x88] sm:$0xff] %vm100_vm0, %v42_v7  ;;  %253 = vst.msk [vmem:[#allocation2 + $0x90] sm:$0xff] %vm100_vm0, %v43_v8  ;;  %v92_v8 = vld [vmem:[%s15415_s0 + $0x1c0] sm:$0xff] }
  0x95   :  { %254 = vst.msk [vmem:[#allocation2 + $0xa8] sm:$0xff] %vm100_vm0, %v44_v9  ;;  %255 = vst.msk [vmem:[#allocation2 + $0xb0] sm:$0xff] %vm100_vm0, %v45_v10  ;;  %v93_v9 = vld [vmem:[%s15415_s0 + $0x1c8] sm:$0xff]  ;;  %v94_v10 = vld [vmem:[%s15415_s0 + $0x1d0] sm:$0xff] }
  0x96   :  { %256 = vst.msk [vmem:[#allocation2 + $0xc8] sm:$0xff] %vm100_vm0, %v46_v11  ;;  %257 = vst.msk [vmem:[#allocation2 + $0xd0] sm:$0xff] %vm100_vm0, %v47_v12  ;;  %v95_v12 = vld [vmem:[%s15415_s0 + $0x1d8] sm:$0xff] }
  0x97   :  { %258 = vst.msk [vmem:[#allocation2 + $0xe8] sm:$0xff] %vm100_vm0, %v48_v13  ;;  %259 = vst.msk [vmem:[#allocation2 + $0xf0] sm:$0xff] %vm100_vm0, %v49_v14  ;;  %v96_v14 = vld [vmem:[%s15415_s0 + $0x1e0] sm:$0xff] }
  0x98   :  { %260 = vst.msk [vmem:[#allocation2 + $0x108] sm:$0xff] %vm100_vm0, %v50_v15  ;;  %261 = vst.msk [vmem:[#allocation2 + $0x110] sm:$0xff] %vm100_vm0, %v51_v16  ;;  %v376_v24 = vld [vmem:[#allocation2 + $0x28] sm:$0xff]  ;;  %v377_v26 = vld [vmem:[#allocation2 + $0x30] sm:$0xff] }
  0x99   :  { %262 = vst.msk [vmem:[#allocation2 + $0x128] sm:$0xff] %vm100_vm0, %v52_v17  ;;  %263 = vst.msk [vmem:[#allocation2 + $0x130] sm:$0xff] %vm100_vm0, %v53_v18  ;;  %955 = vrot.lane.b32.xlu1 %v376_v24, %s9723_s17  ;;  %v378_v27 = vld [vmem:[#allocation2 + $0x48] sm:$0xff]  ;;  %v379_v28 = vld [vmem:[#allocation2 + $0x50] sm:$0xff] }
  0x9a   :  { %264 = vst.msk [vmem:[#allocation2 + $0x148] sm:$0xff] %vm100_vm0, %v54_v19  ;;  %265 = vst.msk [vmem:[#allocation2 + $0x150] sm:$0xff] %vm100_vm0, %v55_v20  ;;  %v380_v29 = vld [vmem:[#allocation2 + $0x68] sm:$0xff]  ;;  %959 = vrot.lane.b32.xlu0 %v378_v27, %s9723_s17  ;;  %v381_v38 = vld [vmem:[#allocation2 + $0x70] sm:$0xff] }
  0x9b   :  { %266 = vst.msk [vmem:[#allocation2 + $0x168] sm:$0xff] %vm100_vm0, %v56_v21  ;;  %267 = vst.msk [vmem:[#allocation2 + $0x170] sm:$0xff] %vm100_vm0, %v57_v23  ;;  %v382_v40 = vld [vmem:[#allocation2 + $0x88] sm:$0xff]  ;;  %v383_v44 = vld [vmem:[#allocation2 + $0x90] sm:$0xff] }
  0x9c   :  { %268 = vst.msk [vmem:[#allocation2 + $0x188] sm:$0xff] %vm100_vm0, %v58_v30  ;;  %269 = vst.msk [vmem:[#allocation2 + $0x190] sm:$0xff] %vm100_vm0, %v59_v31  ;;  %v384_v55 = vld [vmem:[#allocation2 + $0xa8] sm:$0xff]  ;;  %v385_v56 = vld [vmem:[#allocation2 + $0xb0] sm:$0xff] }
  0x9d   :  { %957 = vrot.lane.b32.xlu1 %v377_v26, %s9723_s17  ;;  %270 = vst.msk [vmem:[#allocation2 + $0x1a8] sm:$0xff] %vm100_vm0, %v60_v32  ;;  %271 = vst.msk [vmem:[#allocation2 + $0x1b0] sm:$0xff] %vm100_vm0, %v61_v33  ;;  %v386_v59 = vld [vmem:[#allocation2 + $0xc8] sm:$0xff]  ;;  %v387_v60 = vld [vmem:[#allocation2 + $0xd0] sm:$0xff] }
  0x9e   :  { %272 = vst.msk [vmem:[#allocation2 + $0x1c8] sm:$0xff] %vm100_vm0, %v62_v34  ;;  %273 = vst.msk [vmem:[#allocation2 + $0x1d0] sm:$0xff] %vm100_vm0, %v63_v35  ;;  %963 = vrot.lane.b32.xlu0 %v380_v29, %s9723_s17  ;;  %v388_v61 = vld [vmem:[#allocation2 + $0xe8] sm:$0xff]  ;;  %v389_v7 = vld [vmem:[#allocation2 + $0xf0] sm:$0xff] }
  0x9f   :  { %274 = vst.msk [vmem:[#allocation2 + $0x1e8] sm:$0xff] %vm100_vm0, %v64_v36  ;;  %275 = vst.msk [vmem:[#allocation2 + $0x1f0] sm:$0xff] %vm100_vm0, %v65_v37  ;;  %v390_v11 = vld [vmem:[#allocation2 + $0x108] sm:$0xff]  ;;  %v391_v13 = vld [vmem:[#allocation2 + $0x110] sm:$0xff] }
  0xa0   :  { %278 = vst.msk [vmem:[#allocation2 + $0x268] sm:$0xff] %vm100_vm0, %v68_v39  ;;  %279 = vst.msk [vmem:[#allocation2 + $0x270] sm:$0xff] %vm100_vm0, %v69_v41  ;;  %v97_v15 = vld [vmem:[%s15415_s0 + $0x1e8] sm:$0xff]  ;;  %v393_v17 = vld [vmem:[#allocation2 + $0x130] sm:$0xff] }
  0xa1   :  { %961 = vrot.lane.b32.xlu1 %v379_v28, %s9723_s17  ;;  %280 = vst.msk [vmem:[#allocation2 + $0x288] sm:$0xff] %vm100_vm0, %v70_v42  ;;  %281 = vst.msk [vmem:[#allocation2 + $0x290] sm:$0xff] %vm100_vm0, %v71_v43  ;;  %v392_v16 = vld [vmem:[#allocation2 + $0x128] sm:$0xff]  ;;  %v395_v19 = vld [vmem:[#allocation2 + $0x150] sm:$0xff] }
  0xa2   :  { %282 = vst.msk [vmem:[#allocation2 + $0x2a8] sm:$0xff] %vm100_vm0, %v72_v45  ;;  %283 = vst.msk [vmem:[#allocation2 + $0x2b0] sm:$0xff] %vm100_vm0, %v73_v46  ;;  %967 = vrot.lane.b32.xlu0 %v382_v40, %s9723_s17  ;;  %v394_v18 = vld [vmem:[#allocation2 + $0x148] sm:$0xff]  ;;  %v397_v21 = vld [vmem:[#allocation2 + $0x170] sm:$0xff] }
  0xa3   :  { %284 = vst.msk [vmem:[#allocation2 + $0x2c8] sm:$0xff] %vm100_vm0, %v74_v47  ;;  %285 = vst.msk [vmem:[#allocation2 + $0x2d0] sm:$0xff] %vm100_vm0, %v75_v48  ;;  %v396_v20 = vld [vmem:[#allocation2 + $0x168] sm:$0xff]  ;;  %v399_v23 = vld [vmem:[#allocation2 + $0x190] sm:$0xff] }
  0xa4   :  { %286 = vst.msk [vmem:[#allocation2 + $0x2e8] sm:$0xff] %vm100_vm0, %v76_v49  ;;  %287 = vst.msk [vmem:[#allocation2 + $0x2f0] sm:$0xff] %vm100_vm0, %v77_v50  ;;  %v398_v22 = vld [vmem:[#allocation2 + $0x188] sm:$0xff]  ;;  %v401_v25 = vld [vmem:[#allocation2 + $0x1b0] sm:$0xff] }
  0xa5   :  { %965 = vrot.lane.b32.xlu1 %v381_v38, %s9723_s17  ;;  %288 = vst.msk [vmem:[#allocation2 + $0x308] sm:$0xff] %vm100_vm0, %v78_v51  ;;  %289 = vst.msk [vmem:[#allocation2 + $0x310] sm:$0xff] %vm100_vm0, %v79_v52  ;;  %v400_v24 = vld [vmem:[#allocation2 + $0x1a8] sm:$0xff]  ;;  %v403_v27 = vld [vmem:[#allocation2 + $0x1d0] sm:$0xff] }
  0xa6   :  { %290 = vst.msk [vmem:[#allocation2 + $0x328] sm:$0xff] %vm100_vm0, %v80_v53  ;;  %291 = vst.msk [vmem:[#allocation2 + $0x330] sm:$0xff] %vm100_vm0, %v81_v54  ;;  %971 = vrot.lane.b32.xlu0 %v384_v55, %s9723_s17  ;;  %v402_v26 = vld [vmem:[#allocation2 + $0x1c8] sm:$0xff]  ;;  %v405_v29 = vld [vmem:[#allocation2 + $0x1f0] sm:$0xff] }
  0xa7   :  { %292 = vst.msk [vmem:[#allocation2 + $0x348] sm:$0xff] %vm100_vm0, %v82_v57  ;;  %293 = vst.msk [vmem:[#allocation2 + $0x350] sm:$0xff] %vm100_vm0, %v83_v58  ;;  %v404_v28 = vld [vmem:[#allocation2 + $0x1e8] sm:$0xff]  ;;  %v407_v31 = vld [vmem:[#allocation2 + $0x250] sm:$0xff]  ;;  %v10662_v57 = vpop.permute.xlu0 %951 }
  0xa8   :  { %294 = vst.msk [vmem:[#allocation2 + $0x368] sm:$0xff] %vm100_vm0, %v84_v62  ;;  %295 = vst.msk [vmem:[#allocation2 + $0x370] sm:$0xff] %vm100_vm0, %v85_v63  ;;  %v406_v30 = vld [vmem:[#allocation2 + $0x248] sm:$0xff]  ;;  %v409_v33 = vld [vmem:[#allocation2 + $0x270] sm:$0xff] }
  0xa9   :  { %969 = vrot.lane.b32.xlu1 %v383_v44, %s9723_s17  ;;  %296 = vst.msk [vmem:[#allocation2 + $0x388] sm:$0xff] %vm100_vm0, %v86_v1  ;;  %297 = vst.msk [vmem:[#allocation2 + $0x390] sm:$0xff] %vm100_vm0, %v87_v2  ;;  %v408_v32 = vld [vmem:[#allocation2 + $0x268] sm:$0xff]  ;;  %v411_v35 = vld [vmem:[#allocation2 + $0x290] sm:$0xff] }
  0xaa   :  { %975 = vrot.lane.b32.xlu0 %v386_v59, %s9723_s17  ;;  %298 = vst.msk [vmem:[#allocation2 + $0x3a8] sm:$0xff] %vm100_vm0, %v88_v3  ;;  %299 = vst.msk [vmem:[#allocation2 + $0x3b0] sm:$0xff] %vm100_vm0, %v89_v4  ;;  %v410_v34 = vld [vmem:[#allocation2 + $0x288] sm:$0xff]  ;;  %v413_v37 = vld [vmem:[#allocation2 + $0x2b0] sm:$0xff] }
  0xab   :  { %300 = vst.msk [vmem:[#allocation2 + $0x3c8] sm:$0xff] %vm100_vm0, %v90_v5  ;;  %301 = vst.msk [vmem:[#allocation2 + $0x3d0] sm:$0xff] %vm100_vm0, %v91_v6  ;;  %v412_v36 = vld [vmem:[#allocation2 + $0x2a8] sm:$0xff]  ;;  %v415_v39 = vld [vmem:[#allocation2 + $0x2d0] sm:$0xff] }
  0xac   :  { %302 = vst.msk [vmem:[#allocation2 + $0x3e8] sm:$0xff] %vm100_vm0, %v92_v8  ;;  %303 = vst.msk [vmem:[#allocation2 + $0x3f0] sm:$0xff] %vm100_vm0, %v93_v9  ;;  %v414_v38 = vld [vmem:[#allocation2 + $0x2c8] sm:$0xff]  ;;  %v417_v41 = vld [vmem:[#allocation2 + $0x2f0] sm:$0xff] }
  0xad   :  { %973 = vrot.lane.b32.xlu1 %v385_v56, %s9723_s17  ;;  %304 = vst.msk [vmem:[#allocation2 + $0x408] sm:$0xff] %vm100_vm0, %v94_v10  ;;  %305 = vst.msk [vmem:[#allocation2 + $0x410] sm:$0xff] %vm100_vm0, %v95_v12  ;;  %v416_v40 = vld [vmem:[#allocation2 + $0x2e8] sm:$0xff]  ;;  %v419_v43 = vld [vmem:[#allocation2 + $0x310] sm:$0xff] }
  0xae   :  { %979 = vrot.lane.b32.xlu0 %v388_v61, %s9723_s17  ;;  %306 = vst.msk [vmem:[#allocation2 + $0x428] sm:$0xff] %vm100_vm0, %v96_v14  ;;  %307 = vst.msk [vmem:[#allocation2 + $0x430] sm:$0xff] %vm100_vm0, %v97_v15  ;;  %v418_v42 = vld [vmem:[#allocation2 + $0x308] sm:$0xff]  ;;  %v421_v45 = vld [vmem:[#allocation2 + $0x330] sm:$0xff]  ;;  %v10668_v61 = vpop.permute.xlu0 %953 }
  0xaf   :  { %v420_v44 = vld [vmem:[#allocation2 + $0x328] sm:$0xff]  ;;  %v423_v47 = vld [vmem:[#allocation2 + $0x350] sm:$0xff] }
  0xb0   :  { %v422_v46 = vld [vmem:[#allocation2 + $0x348] sm:$0xff]  ;;  %v425_v49 = vld [vmem:[#allocation2 + $0x370] sm:$0xff] }
  0xb1   :  { %977 = vrot.lane.b32.xlu1 %v387_v60, %s9723_s17  ;;  %v424_v48 = vld [vmem:[#allocation2 + $0x368] sm:$0xff]  ;;  %v427_v51 = vld [vmem:[#allocation2 + $0x390] sm:$0xff] }
  0xb2   :  { %983 = vrot.lane.b32.xlu0 %v390_v11, %s9723_s17  ;;  %v426_v50 = vld [vmem:[#allocation2 + $0x388] sm:$0xff]  ;;  %v429_v53 = vld [vmem:[#allocation2 + $0x3b0] sm:$0xff] }
  0xb3   :  { %v428_v52 = vld [vmem:[#allocation2 + $0x3a8] sm:$0xff]  ;;  %v431_v55 = vld [vmem:[#allocation2 + $0x3d0] sm:$0xff] }
  0xb4   :  { %v430_v54 = vld [vmem:[#allocation2 + $0x3c8] sm:$0xff]  ;;  %v433_v58 = vld [vmem:[#allocation2 + $0x3f0] sm:$0xff] }
  0xb5   :  { %981 = vrot.lane.b32.xlu1 %v389_v7, %s9723_s17  ;;  %v432_v56 = vld [vmem:[#allocation2 + $0x3e8] sm:$0xff]  ;;  %v435_v62 = vld [vmem:[#allocation2 + $0x410] sm:$0xff] }
  0xb6   :  { %987 = vrot.lane.b32.xlu0 %v392_v16, %s9723_s17  ;;  %v434_v60 = vld [vmem:[#allocation2 + $0x408] sm:$0xff]  ;;  %v437_v3 = vld [vmem:[#allocation2 + $0x430] sm:$0xff] }
  0xb7   :  { %v436_v1 = vld [vmem:[#allocation2 + $0x428] sm:$0xff]  ;;  %v439_v7 = vld [vmem:[#allocation2 + $0x11] sm:$0xff] }
  0xb8   :  { %v438_v5 = vld [vmem:[#allocation2 + $0x9] sm:$0xff]  ;;  %v441_v11 = vld [vmem:[#allocation2 + $0x31] sm:$0xff] }
  0xb9   :  { %985 = vrot.lane.b32.xlu1 %v391_v13, %s9723_s17  ;;  %v440_v9 = vld [vmem:[#allocation2 + $0x29] sm:$0xff]  ;;  %v443_v15 = vld [vmem:[#allocation2 + $0x51] sm:$0xff] }
  0xba   :  { %991 = vrot.lane.b32.xlu0 %v394_v18, %s9723_s17  ;;  %v442_v13 = vld [vmem:[#allocation2 + $0x49] sm:$0xff] }
  0xbd   :  { %989 = vrot.lane.b32.xlu1 %v393_v17, %s9723_s17  ;;  %v444_v17 = vld [vmem:[#allocation2 + $0x69] sm:$0xff] }
  0xbe   :  { %995 = vrot.lane.b32.xlu0 %v396_v20, %s9723_s17 }
  0xc1   :  { %993 = vrot.lane.b32.xlu1 %v395_v19, %s9723_s17  ;;  %v445_v19 = vld [vmem:[#allocation2 + $0x71] sm:$0xff] }
  0xc2   :  { %999 = vrot.lane.b32.xlu0 %v398_v22, %s9723_s17 }
  0xc5   :  { %997 = vrot.lane.b32.xlu1 %v397_v21, %s9723_s17  ;;  %v446_v21 = vld [vmem:[#allocation2 + $0x89] sm:$0xff] }
  0xc6   :  { %1003 = vrot.lane.b32.xlu0 %v400_v24, %s9723_s17 }
  0xc9   :  { %1001 = vrot.lane.b32.xlu1 %v399_v23, %s9723_s17  ;;  %v447_v23 = vld [vmem:[#allocation2 + $0x91] sm:$0xff] }
  0xca   :  { %1007 = vrot.lane.b32.xlu0 %v402_v26, %s9723_s17 }
  0xcd   :  { %1005 = vrot.lane.b32.xlu1 %v401_v25, %s9723_s17  ;;  %v448_v25 = vld [vmem:[#allocation2 + $0xa9] sm:$0xff] }
  0xce   :  { %1011 = vrot.lane.b32.xlu0 %v404_v28, %s9723_s17 }
  0xd1   :  { %1009 = vrot.lane.b32.xlu1 %v403_v27, %s9723_s17  ;;  %v449_v27 = vld [vmem:[#allocation2 + $0xb1] sm:$0xff] }
  0xd2   :  { %1015 = vrot.lane.b32.xlu0 %v406_v30, %s9723_s17 }
  0xd5   :  { %1013 = vrot.lane.b32.xlu1 %v405_v29, %s9723_s17  ;;  %v450_v29 = vld [vmem:[#allocation2 + $0xc9] sm:$0xff] }
  0xd6   :  { %1019 = vrot.lane.b32.xlu0 %v408_v32, %s9723_s17 }
  0xd9   :  { %1017 = vrot.lane.b32.xlu1 %v407_v31, %s9723_s17  ;;  %v451_v31 = vld [vmem:[#allocation2 + $0xd1] sm:$0xff] }
  0xda   :  { %1023 = vrot.lane.b32.xlu0 %v410_v34, %s9723_s17 }
  0xdd   :  { %1021 = vrot.lane.b32.xlu1 %v409_v33, %s9723_s17  ;;  %v452_v33 = vld [vmem:[#allocation2 + $0xe9] sm:$0xff] }
  0xde   :  { %1027 = vrot.lane.b32.xlu0 %v412_v36, %s9723_s17 }
  0xe1   :  { %1025 = vrot.lane.b32.xlu1 %v411_v35, %s9723_s17  ;;  %v453_v35 = vld [vmem:[#allocation2 + $0xf1] sm:$0xff] }
  0xe2   :  { %1031 = vrot.lane.b32.xlu0 %v414_v38, %s9723_s17 }
  0xe5   :  { %1029 = vrot.lane.b32.xlu1 %v413_v37, %s9723_s17  ;;  %v454_v37 = vld [vmem:[#allocation2 + $0x109] sm:$0xff] }
  0xe6   :  { %1035 = vrot.lane.b32.xlu0 %v416_v40, %s9723_s17 }
  0xe9   :  { %1033 = vrot.lane.b32.xlu1 %v415_v39, %s9723_s17  ;;  %v455_v39 = vld [vmem:[#allocation2 + $0x111] sm:$0xff] }
  0xea   :  { %1039 = vrot.lane.b32.xlu0 %v418_v42, %s9723_s17 }
  0xed   :  { %1037 = vrot.lane.b32.xlu1 %v417_v41, %s9723_s17  ;;  %v456_v41 = vld [vmem:[#allocation2 + $0x129] sm:$0xff] }
  0xee   :  { %1043 = vrot.lane.b32.xlu0 %v420_v44, %s9723_s17 }
  0xf1   :  { %1041 = vrot.lane.b32.xlu1 %v419_v43, %s9723_s17  ;;  %v457_v43 = vld [vmem:[#allocation2 + $0x131] sm:$0xff] }
  0xf2   :  { %1047 = vrot.lane.b32.xlu0 %v422_v46, %s9723_s17 }
  0xf5   :  { %1045 = vrot.lane.b32.xlu1 %v421_v45, %s9723_s17  ;;  %v458_v45 = vld [vmem:[#allocation2 + $0x149] sm:$0xff] }
  0xf6   :  { %1051 = vrot.lane.b32.xlu0 %v424_v48, %s9723_s17 }
  0xf9   :  { %1049 = vrot.lane.b32.xlu1 %v423_v47, %s9723_s17  ;;  %v459_v47 = vld [vmem:[#allocation2 + $0x151] sm:$0xff] }
  0xfa   :  { %1055 = vrot.lane.b32.xlu0 %v426_v50, %s9723_s17 }
  0xfd   :  { %1053 = vrot.lane.b32.xlu1 %v425_v49, %s9723_s17  ;;  %v460_v49 = vld [vmem:[#allocation2 + $0x169] sm:$0xff] }
  0xfe   :  { %1059 = vrot.lane.b32.xlu0 %v428_v52, %s9723_s17 }
 0x101   :  { %1057 = vrot.lane.b32.xlu1 %v427_v51, %s9723_s17  ;;  %v461_v51 = vld [vmem:[#allocation2 + $0x171] sm:$0xff] }
 0x102   :  { %1063 = vrot.lane.b32.xlu0 %v430_v54, %s9723_s17 }
 0x105   :  { %1061 = vrot.lane.b32.xlu1 %v429_v53, %s9723_s17  ;;  %v462_v53 = vld [vmem:[#allocation2 + $0x189] sm:$0xff] }
 0x106   :  { %1067 = vrot.lane.b32.xlu0 %v432_v56, %s9723_s17 }
 0x109   :  { %1065 = vrot.lane.b32.xlu1 %v431_v55, %s9723_s17  ;;  %v463_v55 = vld [vmem:[#allocation2 + $0x191] sm:$0xff] }
 0x10a   :  { %1071 = vrot.lane.b32.xlu0 %v434_v60, %s9723_s17 }
 0x10b   :  { %v10664_v59 = vpop.permute.xlu1 %955 }
 0x10c   :  { %v10674_v2 = vpop.permute.xlu0 %959 }
 0x10d   :  { %1069 = vrot.lane.b32.xlu1 %v433_v58, %s9723_s17  ;;  %v464_v58 = vld [vmem:[#allocation2 + $0x1a9] sm:$0xff] }
 0x10e   :  { %1075 = vrot.lane.b32.xlu0 %v436_v1, %s9723_s17 }
 0x10f   :  { %v10670_v63 = vpop.permute.xlu1 %957 }
 0x110   :  { %v10680_v6 = vpop.permute.xlu0 %963 }
 0x111   :  { %1073 = vrot.lane.b32.xlu1 %v435_v62, %s9723_s17  ;;  %15429 = vst [vmem:[#allocation6_spill] sm:$0xff] %v10680_v6  ;;  %v465_v62 = vld [vmem:[#allocation2 + $0x1b1] sm:$0xff] }
 0x112   :  { %1207 = vrot.lane.b32.xlu0 %v438_v5, %s9724_s18  ;;  %v67_v5 = vld [vmem:[%s15415_s0 + $0xf8] sm:$0xff] }
 0x113   :  { %v10676_v4 = vpop.permute.xlu1 %961  ;;  %277 = vst.msk [vmem:[#allocation2 + $0x210] sm:$0xff] %vm100_vm0, %v67_v5  ;;  %v480_v5 = vld [vmem:[#allocation2 + $0x2e9] sm:$0xff] }
 0x114   :  { %15428 = vst [vmem:[#allocation5_spill] sm:$0xff] %v10676_v4  ;;  %v10686_v10 = vpop.permute.xlu0 %967 }
 0x115   :  { %1077 = vrot.lane.b32.xlu1 %v437_v3, %s9723_s17  ;;  %15431 = vst [vmem:[#allocation8_spill] sm:$0xff] %v10686_v10  ;;  %v66_v3 = vld [vmem:[%s15415_s0 + $0xf0] sm:$0xff] }
 0x116   :  { %1211 = vrot.lane.b32.xlu0 %v440_v9, %s9724_s18  ;;  %276 = vst.msk [vmem:[#allocation2 + $0x208] sm:$0xff] %vm100_vm0, %v66_v3 }
 0x117   :  { %v10682_v8 = vpop.permute.xlu1 %965 }
 0x118   :  { %15430 = vst [vmem:[#allocation7_spill] sm:$0xff] %v10682_v8  ;;  %v10692_v14 = vpop.permute.xlu0 %971 }
 0x119   :  { %1209 = vrot.lane.b32.xlu1 %v439_v7, %s9724_s18  ;;  %15433 = vst [vmem:[#allocation10_spill] sm:$0xff] %v10692_v14  ;;  %v466_v7 = vld [vmem:[#allocation2 + $0x1c9] sm:$0xff] }
 0x11a   :  { %1215 = vrot.lane.b32.xlu0 %v442_v13, %s9724_s18 }
 0x11b   :  { %v10688_v12 = vpop.permute.xlu1 %969 }
 0x11c   :  { %15432 = vst [vmem:[#allocation9_spill] sm:$0xff] %v10688_v12  ;;  %v10698_v18 = vpop.permute.xlu0 %975  ;;  %v11426_v12 = vld [vmem:[#allocation2 + $0x1d1] sm:$0xff] }
 0x11d   :  { %1213 = vrot.lane.b32.xlu1 %v441_v11, %s9724_s18  ;;  %15435 = vst [vmem:[#allocation12_spill] sm:$0xff] %v10698_v18  ;;  %v467_v11 = vld [vmem:[#allocation2 + $0x1d1] sm:$0xff] }
 0x11e   :  { %1219 = vrot.lane.b32.xlu0 %v444_v17, %s9724_s18 }
 0x11f   :  { %v10694_v16 = vpop.permute.xlu1 %973 }
 0x120   :  { %15434 = vst [vmem:[#allocation11_spill] sm:$0xff] %v10694_v16  ;;  %v10704_v22 = vpop.permute.xlu0 %979  ;;  %v11378_v16 = vld [vmem:[#allocation2 + $0x151] sm:$0xff] }
 0x121   :  { %1217 = vrot.lane.b32.xlu1 %v443_v15, %s9724_s18  ;;  %15437 = vst [vmem:[#allocation14_spill] sm:$0xff] %v10704_v22  ;;  %v468_v15 = vld [vmem:[#allocation2 + $0x1e9] sm:$0xff] }
 0x122   :  { %1223 = vrot.lane.b32.xlu0 %v446_v21, %s9724_s18 }
 0x123   :  { %v10700_v20 = vpop.permute.xlu1 %977 }
 0x124   :  { %15436 = vst [vmem:[#allocation13_spill] sm:$0xff] %v10700_v20  ;;  %v10710_v26 = vpop.permute.xlu0 %983  ;;  %v11330_v20 = vld [vmem:[#allocation2 + $0xd1] sm:$0xff] }
 0x125   :  { %1221 = vrot.lane.b32.xlu1 %v445_v19, %s9724_s18  ;;  %15439 = vst [vmem:[#allocation16_spill] sm:$0xff] %v10710_v26  ;;  %v469_v19 = vld [vmem:[#allocation2 + $0x1f1] sm:$0xff] }
 0x126   :  { %1227 = vrot.lane.b32.xlu0 %v448_v25, %s9724_s18 }
 0x127   :  { %v10706_v24 = vpop.permute.xlu1 %981 }
 0x128   :  { %15438 = vst [vmem:[#allocation15_spill] sm:$0xff] %v10706_v24  ;;  %v10716_v30 = vpop.permute.xlu0 %987  ;;  %v11306_v24 = vld [vmem:[#allocation2 + $0x91] sm:$0xff] }
 0x129   :  { %1225 = vrot.lane.b32.xlu1 %v447_v23, %s9724_s18  ;;  %15441 = vst [vmem:[#allocation18_spill] sm:$0xff] %v10716_v30  ;;  %v470_v23 = vld [vmem:[#allocation2 + $0x249] sm:$0xff] }
 0x12a   :  { %1231 = vrot.lane.b32.xlu0 %v450_v29, %s9724_s18 }
 0x12b   :  { %v10712_v28 = vpop.permute.xlu1 %985 }
 0x12c   :  { %15440 = vst [vmem:[#allocation17_spill] sm:$0xff] %v10712_v28  ;;  %v10722_v34 = vpop.permute.xlu0 %991  ;;  %v631_v28 = vld [vmem:[#allocation2 + $0x31] sm:$0xff] }
 0x12d   :  { %1229 = vrot.lane.b32.xlu1 %v449_v27, %s9724_s18  ;;  %15443 = vst [vmem:[#allocation20_spill] sm:$0xff] %v10722_v34  ;;  %v471_v27 = vld [vmem:[#allocation2 + $0x251] sm:$0xff] }
 0x12e   :  { %1235 = vrot.lane.b32.xlu0 %v452_v33, %s9724_s18 }
 0x12f   :  { %v10718_v32 = vpop.permute.xlu1 %989 }
 0x130   :  { %15442 = vst [vmem:[#allocation19_spill] sm:$0xff] %v10718_v32  ;;  %v10728_v38 = vpop.permute.xlu0 %995 }
 0x131   :  { %1233 = vrot.lane.b32.xlu1 %v451_v31, %s9724_s18  ;;  %15445 = vst [vmem:[#allocation22_spill] sm:$0xff] %v10728_v38  ;;  %v472_v31 = vld [vmem:[#allocation2 + $0x269] sm:$0xff] }
 0x132   :  { %1239 = vrot.lane.b32.xlu0 %v454_v37, %s9724_s18 }
 0x133   :  { %v10724_v36 = vpop.permute.xlu1 %993 }
 0x134   :  { %15444 = vst [vmem:[#allocation21_spill] sm:$0xff] %v10724_v36  ;;  %v10734_v42 = vpop.permute.xlu0 %999 }
 0x135   :  { %1237 = vrot.lane.b32.xlu1 %v453_v35, %s9724_s18  ;;  %15447 = vst [vmem:[#allocation24_spill] sm:$0xff] %v10734_v42  ;;  %v473_v35 = vld [vmem:[#allocation2 + $0x271] sm:$0xff] }
 0x136   :  { %1243 = vrot.lane.b32.xlu0 %v456_v41, %s9724_s18 }
 0x137   :  { %v10730_v40 = vpop.permute.xlu1 %997 }
 0x138   :  { %15446 = vst [vmem:[#allocation23_spill] sm:$0xff] %v10730_v40  ;;  %v10740_v46 = vpop.permute.xlu0 %1003 }
 0x139   :  { %1241 = vrot.lane.b32.xlu1 %v455_v39, %s9724_s18  ;;  %15449 = vst [vmem:[#allocation26_spill] sm:$0xff] %v10740_v46  ;;  %v474_v39 = vld [vmem:[#allocation2 + $0x289] sm:$0xff] }
 0x13a   :  { %1247 = vrot.lane.b32.xlu0 %v458_v45, %s9724_s18 }
 0x13b   :  { %v10736_v44 = vpop.permute.xlu1 %1001 }
 0x13c   :  { %15448 = vst [vmem:[#allocation25_spill] sm:$0xff] %v10736_v44  ;;  %v10746_v50 = vpop.permute.xlu0 %1007 }
 0x13d   :  { %1245 = vrot.lane.b32.xlu1 %v457_v43, %s9724_s18  ;;  %15451 = vst [vmem:[#allocation28_spill] sm:$0xff] %v10746_v50  ;;  %v475_v43 = vld [vmem:[#allocation2 + $0x291] sm:$0xff] }
 0x13e   :  { %1251 = vrot.lane.b32.xlu0 %v460_v49, %s9724_s18  ;;  %v335_v50 = vld [vmem:[#allocation2 + $0x18f] sm:$0xff] }
 0x13f   :  { %v10742_v48 = vpop.permute.xlu1 %1005 }
 0x140   :  { %15450 = vst [vmem:[#allocation27_spill] sm:$0xff] %v10742_v48  ;;  %v10752_v54 = vpop.permute.xlu0 %1011 }
 0x141   :  { %1249 = vrot.lane.b32.xlu1 %v459_v47, %s9724_s18  ;;  %15453 = vst [vmem:[#allocation30_spill] sm:$0xff] %v10752_v54  ;;  %v476_v47 = vld [vmem:[#allocation2 + $0x2a9] sm:$0xff] }
 0x142   :  { %1255 = vrot.lane.b32.xlu0 %v462_v53, %s9724_s18  ;;  %v333_v54 = vld [vmem:[#allocation2 + $0x16f] sm:$0xff] }
 0x143   :  { %v10748_v52 = vpop.permute.xlu1 %1009 }
 0x144   :  { %15452 = vst [vmem:[#allocation29_spill] sm:$0xff] %v10748_v52  ;;  %v10758_v60 = vpop.permute.xlu0 %1015 }
 0x145   :  { %1253 = vrot.lane.b32.xlu1 %v461_v51, %s9724_s18  ;;  %15455 = vst [vmem:[#allocation32_spill] sm:$0xff] %v10758_v60  ;;  %v477_v51 = vld [vmem:[#allocation2 + $0x2b1] sm:$0xff] }
 0x146   :  { %1259 = vrot.lane.b32.xlu0 %v464_v58, %s9724_s18  ;;  %v331_v60 = vld [vmem:[#allocation2 + $0x14f] sm:$0xff] }
 0x147   :  { %v10754_v56 = vpop.permute.xlu1 %1013 }
 0x148   :  { %15454 = vst [vmem:[#allocation31_spill] sm:$0xff] %v10754_v56  ;;  %v10772_v9 = vpop.permute.xlu0 %1019 }
 0x149   :  { %1257 = vrot.lane.b32.xlu1 %v463_v55, %s9724_s18  ;;  %15457 = vst [vmem:[#allocation34_spill] sm:$0xff] %v10772_v9  ;;  %v478_v55 = vld [vmem:[#allocation2 + $0x2c9] sm:$0xff] }
 0x14a   :  { %1263 = vrot.lane.b32.xlu0 %v466_v7, %s9724_s18  ;;  %v329_v9 = vld [vmem:[#allocation2 + $0x12f] sm:$0xff] }
 0x14b   :  { %v10760_v1 = vpop.permute.xlu1 %1017 }
 0x14c   :  { %15456 = vst [vmem:[#allocation33_spill] sm:$0xff] %v10760_v1  ;;  %v10778_v17 = vpop.permute.xlu0 %1023 }
 0x14d   :  { %1261 = vrot.lane.b32.xlu1 %v465_v62, %s9724_s18  ;;  %15459 = vst [vmem:[#allocation36_spill] sm:$0xff] %v10778_v17  ;;  %v479_v62 = vld [vmem:[#allocation2 + $0x2d1] sm:$0xff] }
 0x14e   :  { %1267 = vrot.lane.b32.xlu0 %v468_v15, %s9724_s18  ;;  %v327_v17 = vld [vmem:[#allocation2 + $0x10f] sm:$0xff] }
 0x14f   :  { %v10774_v13 = vpop.permute.xlu1 %1021 }
 0x150   :  { %15458 = vst [vmem:[#allocation35_spill] sm:$0xff] %v10774_v13  ;;  %v10784_v25 = vpop.permute.xlu0 %1027 }
 0x151   :  { %1265 = vrot.lane.b32.xlu1 %v467_v11, %s9724_s18  ;;  %15461 = vst [vmem:[#allocation38_spill] sm:$0xff] %v10784_v25  ;;  %v481_v11 = vld [vmem:[#allocation2 + $0x2f1] sm:$0xff] }
 0x152   :  { %1271 = vrot.lane.b32.xlu0 %v470_v23, %s9724_s18  ;;  %v325_v25 = vld [vmem:[#allocation2 + $0xef] sm:$0xff] }
 0x153   :  { %v10780_v21 = vpop.permute.xlu1 %1025 }
 0x154   :  { %15460 = vst [vmem:[#allocation37_spill] sm:$0xff] %v10780_v21  ;;  %v10790_v33 = vpop.permute.xlu0 %1031 }
 0x155   :  { %1269 = vrot.lane.b32.xlu1 %v469_v19, %s9724_s18  ;;  %15463 = vst [vmem:[#allocation40_spill] sm:$0xff] %v10790_v33  ;;  %v482_v19 = vld [vmem:[#allocation2 + $0x309] sm:$0xff] }
 0x156   :  { %1275 = vrot.lane.b32.xlu0 %v472_v31, %s9724_s18  ;;  %v323_v33 = vld [vmem:[#allocation2 + $0xcf] sm:$0xff] }
 0x157   :  { %v10786_v29 = vpop.permute.xlu1 %1029 }
 0x158   :  { %15462 = vst [vmem:[#allocation39_spill] sm:$0xff] %v10786_v29  ;;  %v10796_v41 = vpop.permute.xlu0 %1035 }
 0x159   :  { %1273 = vrot.lane.b32.xlu1 %v471_v27, %s9724_s18  ;;  %15465 = vst [vmem:[#allocation42_spill] sm:$0xff] %v10796_v41  ;;  %v483_v27 = vld [vmem:[#allocation2 + $0x311] sm:$0xff] }
 0x15a   :  { %1279 = vrot.lane.b32.xlu0 %v474_v39, %s9724_s18  ;;  %v321_v41 = vld [vmem:[#allocation2 + $0xaf] sm:$0xff] }
 0x15b   :  { %v10792_v37 = vpop.permute.xlu1 %1033 }
 0x15c   :  { %15464 = vst [vmem:[#allocation41_spill] sm:$0xff] %v10792_v37  ;;  %v10802_v49 = vpop.permute.xlu0 %1039 }
 0x15d   :  { %1277 = vrot.lane.b32.xlu1 %v473_v35, %s9724_s18  ;;  %15467 = vst [vmem:[#allocation44_spill] sm:$0xff] %v10802_v49  ;;  %v484_v35 = vld [vmem:[#allocation2 + $0x329] sm:$0xff] }
 0x15e   :  { %1283 = vrot.lane.b32.xlu0 %v476_v47, %s9724_s18  ;;  %v319_v49 = vld [vmem:[#allocation2 + $0x8f] sm:$0xff] }
 0x15f   :  { %v10798_v45 = vpop.permute.xlu1 %1037 }
 0x160   :  { %15466 = vst [vmem:[#allocation43_spill] sm:$0xff] %v10798_v45  ;;  %v10808_v58 = vpop.permute.xlu0 %1043 }
 0x161   :  { %1281 = vrot.lane.b32.xlu1 %v475_v43, %s9724_s18  ;;  %15469 = vst [vmem:[#allocation46_spill] sm:$0xff] %v10808_v58  ;;  %v485_v43 = vld [vmem:[#allocation2 + $0x331] sm:$0xff] }
 0x162   :  { %1287 = vrot.lane.b32.xlu0 %v478_v55, %s9724_s18  ;;  %v317_v58 = vld [vmem:[#allocation2 + $0x6f] sm:$0xff] }
 0x163   :  { %v10804_v53 = vpop.permute.xlu1 %1041 }
 0x164   :  { %15468 = vst [vmem:[#allocation45_spill] sm:$0xff] %v10804_v53  ;;  %v10814_v7 = vpop.permute.xlu0 %1047 }
 0x165   :  { %1285 = vrot.lane.b32.xlu1 %v477_v51, %s9724_s18  ;;  %15471 = vst [vmem:[#allocation48_spill] sm:$0xff] %v10814_v7  ;;  %v486_v51 = vld [vmem:[#allocation2 + $0x349] sm:$0xff] }
 0x166   :  { %1291 = vrot.lane.b32.xlu0 %v480_v5, %s9724_s18  ;;  %v315_v7 = vld [vmem:[#allocation2 + $0x4f] sm:$0xff] }
 0x167   :  { %v10810_v3 = vpop.permute.xlu1 %1045 }
 0x168   :  { %15470 = vst [vmem:[#allocation47_spill] sm:$0xff] %v10810_v3  ;;  %v10820_v23 = vpop.permute.xlu0 %1051 }
 0x169   :  { %1289 = vrot.lane.b32.xlu1 %v479_v62, %s9724_s18  ;;  %15473 = vst [vmem:[#allocation50_spill] sm:$0xff] %v10820_v23  ;;  %v487_v62 = vld [vmem:[#allocation2 + $0x351] sm:$0xff] }
 0x16a   :  { %1295 = vrot.lane.b32.xlu0 %v482_v19, %s9724_s18  ;;  %v313_v23 = vld [vmem:[#allocation2 + $0x2f] sm:$0xff] }
 0x16b   :  { %v10816_v15 = vpop.permute.xlu1 %1049 }
 0x16c   :  { %15472 = vst [vmem:[#allocation49_spill] sm:$0xff] %v10816_v15  ;;  %v10826_v39 = vpop.permute.xlu0 %1055 }
 0x16d   :  { %1293 = vrot.lane.b32.xlu1 %v481_v11, %s9724_s18  ;;  %15475 = vst [vmem:[#allocation52_spill] sm:$0xff] %v10826_v39  ;;  %v488_v11 = vld [vmem:[#allocation2 + $0x369] sm:$0xff] }
 0x16e   :  { %1299 = vrot.lane.b32.xlu0 %v484_v35, %s9724_s18  ;;  %v490_v35 = vld [vmem:[#allocation2 + $0x389] sm:$0xff] }
 0x16f   :  { %v10822_v31 = vpop.permute.xlu1 %1053 }
 0x170   :  { %15474 = vst [vmem:[#allocation51_spill] sm:$0xff] %v10822_v31  ;;  %v10832_v55 = vpop.permute.xlu0 %1059 }
 0x171   :  { %1297 = vrot.lane.b32.xlu1 %v483_v27, %s9724_s18  ;;  %15477 = vst [vmem:[#allocation54_spill] sm:$0xff] %v10832_v55  ;;  %v489_v27 = vld [vmem:[#allocation2 + $0x371] sm:$0xff] }
 0x172   :  { %1303 = vrot.lane.b32.xlu0 %v486_v51, %s9724_s18  ;;  %v491_v55 = vld [vmem:[#allocation2 + $0x391] sm:$0xff]  ;;  %v492_v51 = vld [vmem:[#allocation2 + $0x3a9] sm:$0xff] }
 0x173   :  { %v10828_v47 = vpop.permute.xlu1 %1057 }
 0x174   :  { %15476 = vst [vmem:[#allocation53_spill] sm:$0xff] %v10828_v47  ;;  %v10838_v19 = vpop.permute.xlu0 %1063 }
 0x175   :  { %1301 = vrot.lane.b32.xlu1 %v485_v43, %s9724_s18  ;;  %15479 = vst [vmem:[#allocation56_spill] sm:$0xff] %v10838_v19  ;;  %v493_v19 = vld [vmem:[#allocation2 + $0x3b1] sm:$0xff] }
 0x176   :  { %1307 = vrot.lane.b32.xlu0 %v488_v11, %s9724_s18  ;;  %v494_v11 = vld [vmem:[#allocation2 + $0x3c9] sm:$0xff] }
 0x177   :  { %v10834_v5 = vpop.permute.xlu1 %1061 }
 0x178   :  { %15478 = vst [vmem:[#allocation55_spill] sm:$0xff] %v10834_v5  ;;  %v10844_v43 = vpop.permute.xlu0 %1067 }
 0x179   :  { %1305 = vrot.lane.b32.xlu1 %v487_v62, %s9724_s18  ;;  %15481 = vst [vmem:[#allocation58_spill] sm:$0xff] %v10844_v43  ;;  %v495_v43 = vld [vmem:[#allocation2 + $0x3d1] sm:$0xff] }
 0x17a   :  { %1311 = vrot.lane.b32.xlu0 %v490_v35, %s9724_s18 }
 0x17b   :  { %v10840_v0 = vpop.permute.xlu1 %1065 }
 0x17c   :  { %15480 = vst [vmem:[#allocation57_spill] sm:$0xff] %v10840_v0  ;;  %v10850_v62 = vpop.permute.xlu0 %1071 }
 0x17d   :  { %1309 = vrot.lane.b32.xlu1 %v489_v27, %s9724_s18  ;;  %15483 = vst [vmem:[#allocation60_spill] sm:$0xff] %v10850_v62  ;;  %v497_v62 = vld [vmem:[#allocation2 + $0x3f1] sm:$0xff] }
 0x17e   :  { %1315 = vrot.lane.b32.xlu0 %v492_v51, %s9724_s18  ;;  %v99_v51 = vld [vmem:[%s15415_s0 + $0x1f8] sm:$0xff] }
 0x17f   :  { %v10846_v47 = vpop.permute.xlu1 %1069  ;;  %309 = vst.msk [vmem:[#allocation2 + $0x450] sm:$0xff] %vm100_vm0, %v99_v51  ;;  %v312_v51 = vld [vmem:[#allocation2 + $0x27] sm:$0xff] }
 0x180   :  { %15482 = vst [vmem:[#allocation59_spill] sm:$0xff] %v10846_v47  ;;  %v10856_v27 = vpop.permute.xlu0 %1075 }
 0x181   :  { %1313 = vrot.lane.b32.xlu1 %v491_v55, %s9724_s18  ;;  %15485 = vst [vmem:[#allocation62_spill] sm:$0xff] %v10856_v27  ;;  %v496_v55 = vld [vmem:[#allocation2 + $0x3e9] sm:$0xff] }
 0x182   :  { %1319 = vrot.lane.b32.xlu0 %v494_v11, %s9724_s18 }
 0x183   :  { %v10852_v5 = vpop.permute.xlu1 %1073 }
 0x184   :  { %15484 = vst [vmem:[#allocation61_spill] sm:$0xff] %v10852_v5  ;;  %v10862_v35 = vpop.permute.xlu0 %1207  ;;  %v501_v5 = vld [vmem:[#allocation2 + $0x431] sm:$0xff] }
 0x185   :  { %1317 = vrot.lane.b32.xlu1 %v493_v19, %s9724_s18  ;;  %v98_v19 = vld [vmem:[%s15415_s0 + $0x1f0] sm:$0xff]  ;;  %s9725_s0 = smov 9  }
 0x186   :  { %1323 = vrot.lane.b32.xlu0 %v496_v55, %s9724_s18  ;;  %308 = vst.msk [vmem:[#allocation2 + $0x448] sm:$0xff] %vm100_vm0, %v98_v19  ;;  %v500_v55 = vld [vmem:[#allocation2 + $0x429] sm:$0xff] }
 0x187   :  { %v10858_v0 = vpop.permute.xlu1 %1077 }
 0x188   :  { %15486 = vst [vmem:[#allocation63_spill] sm:$0xff] %v10858_v0  ;;  %v10876_v11 = vpop.permute.xlu0 %1211  ;;  %v499_v0 = vld [vmem:[#allocation2 + $0x411] sm:$0xff] }
 0x189   :  { %1321 = vrot.lane.b32.xlu1 %v495_v43, %s9724_s18  ;;  %v498_v43 = vld [vmem:[#allocation2 + $0x409] sm:$0xff] }
 0x18a   :  { %1327 = vrot.lane.b32.xlu0 %v498_v43, %s9724_s18  ;;  %v314_v43 = vld [vmem:[#allocation2 + $0x47] sm:$0xff] }
 0x18b   :  { %v10864_v47 = vpop.permute.xlu1 %1209 }
 0x18c   :  { %v10882_v19 = vpop.permute.xlu0 %1215 }
 0x18d   :  { %1325 = vrot.lane.b32.xlu1 %v497_v62, %s9724_s18 }
 0x18e   :  { %1331 = vrot.lane.b32.xlu0 %v500_v55, %s9724_s18  ;;  %v316_v55 = vld [vmem:[#allocation2 + $0x67] sm:$0xff] }
 0x18f   :  { %v10878_v27 = vpop.permute.xlu1 %1213 }
 0x190   :  { %v10888_v62 = vpop.permute.xlu0 %1219 }
 0x191   :  { %1329 = vrot.lane.b32.xlu1 %v499_v0, %s9724_s18  ;;  %15488 = vst [vmem:[#allocation65_spill] sm:$0xff] %v10888_v62  ;;  %v666_v62 = vld [vmem:[#allocation2 + $0x2a9] sm:$0xff] }
 0x192   :  { %1463 = vrot.lane.b32.xlu0 %v312_v51, %s9725_s0  ;;  %v318_v51 = vld [vmem:[#allocation2 + $0x87] sm:$0xff] }
 0x193   :  { %v10884_v39 = vpop.permute.xlu1 %1217 }
 0x194   :  { %15487 = vst [vmem:[#allocation64_spill] sm:$0xff] %v10884_v39  ;;  %v10894_v0 = vpop.permute.xlu0 %1223  ;;  %v696_v39 = vld [vmem:[#allocation2 + $0x4f] sm:$0xff] }
 0x195   :  { %1333 = vrot.lane.b32.xlu1 %v501_v5, %s9724_s18  ;;  %15490 = vst [vmem:[#allocation67_spill] sm:$0xff] %v10894_v0  ;;  %v11438_v0 = vld [vmem:[#allocation2 + $0x1f1] sm:$0xff] }
 0x196   :  { %1467 = vrot.lane.b32.xlu0 %v314_v43, %s9725_s0  ;;  %v320_v43 = vld [vmem:[#allocation2 + $0xa7] sm:$0xff] }
 0x197   :  { %v10890_v31 = vpop.permute.xlu1 %1221 }
 0x198   :  { %15489 = vst [vmem:[#allocation66_spill] sm:$0xff] %v10890_v31  ;;  %v10900_v5 = vpop.permute.xlu0 %1227  ;;  %v663_v31 = vld [vmem:[#allocation2 + $0x271] sm:$0xff] }
 0x199   :  { %1465 = vrot.lane.b32.xlu1 %v313_v23, %s9725_s0  ;;  %15492 = vst [vmem:[#allocation69_spill] sm:$0xff] %v10900_v5  ;;  %v11390_v5 = vld [vmem:[#allocation2 + $0x171] sm:$0xff] }
 0x19a   :  { %1471 = vrot.lane.b32.xlu0 %v316_v55, %s9725_s0  ;;  %v322_v55 = vld [vmem:[#allocation2 + $0xc7] sm:$0xff] }
 0x19b   :  { %v10896_v15 = vpop.permute.xlu1 %1225 }
 0x19c   :  { %15491 = vst [vmem:[#allocation68_spill] sm:$0xff] %v10896_v15  ;;  %v10906_v23 = vpop.permute.xlu0 %1231  ;;  %v11414_v15 = vld [vmem:[#allocation2 + $0x1b1] sm:$0xff] }
 0x19d   :  { %1469 = vrot.lane.b32.xlu1 %v315_v7, %s9725_s0  ;;  %15494 = vst [vmem:[#allocation71_spill] sm:$0xff] %v10906_v23  ;;  %v11342_v23 = vld [vmem:[#allocation2 + $0xf1] sm:$0xff] }
 0x19e   :  { %1475 = vrot.lane.b32.xlu0 %v318_v51, %s9725_s0  ;;  %v324_v51 = vld [vmem:[#allocation2 + $0xe7] sm:$0xff] }
 0x19f   :  { %v10902_v3 = vpop.permute.xlu1 %1229 }
 0x1a0   :  { %15493 = vst [vmem:[#allocation70_spill] sm:$0xff] %v10902_v3  ;;  %v10912_v7 = vpop.permute.xlu0 %1235  ;;  %v11366_v3 = vld [vmem:[#allocation2 + $0x131] sm:$0xff] }
 0x1a1   :  { %1473 = vrot.lane.b32.xlu1 %v317_v58, %s9725_s0  ;;  %15496 = vst [vmem:[#allocation73_spill] sm:$0xff] %v10912_v7  ;;  %v11314_v7 = vld [vmem:[#allocation2 + $0xa9] sm:$0xff] }
 0x1a2   :  { %1479 = vrot.lane.b32.xlu0 %v320_v43, %s9725_s0  ;;  %v326_v43 = vld [vmem:[#allocation2 + $0x107] sm:$0xff] }
 0x1a3   :  { %v10908_v53 = vpop.permute.xlu1 %1233 }
 0x1a4   :  { %15495 = vst [vmem:[#allocation72_spill] sm:$0xff] %v10908_v53  ;;  %v10918_v58 = vpop.permute.xlu0 %1239 }
 0x1a5   :  { %1477 = vrot.lane.b32.xlu1 %v319_v49, %s9725_s0  ;;  %15498 = vst [vmem:[#allocation75_spill] sm:$0xff] %v10918_v58  ;;  %v11282_v58 = vld [vmem:[#allocation2 + $0x51] sm:$0xff] }
 0x1a6   :  { %1483 = vrot.lane.b32.xlu0 %v322_v55, %s9725_s0  ;;  %v328_v55 = vld [vmem:[#allocation2 + $0x127] sm:$0xff] }
 0x1a7   :  { %v10914_v45 = vpop.permute.xlu1 %1237 }
 0x1a8   :  { %15497 = vst [vmem:[#allocation74_spill] sm:$0xff] %v10914_v45  ;;  %v10924_v49 = vpop.permute.xlu0 %1243 }
 0x1a9   :  { %1481 = vrot.lane.b32.xlu1 %v321_v41, %s9725_s0  ;;  %15500 = vst [vmem:[#allocation77_spill] sm:$0xff] %v10924_v49  ;;  %v581_v49 = vld [vmem:[#allocation2 + $0x110] sm:$0xff] }
 0x1aa   :  { %1487 = vrot.lane.b32.xlu0 %v324_v51, %s9725_s0  ;;  %v330_v51 = vld [vmem:[#allocation2 + $0x147] sm:$0xff] }
 0x1ab   :  { %v10920_v37 = vpop.permute.xlu1 %1241 }
 0x1ac   :  { %15499 = vst [vmem:[#allocation76_spill] sm:$0xff] %v10920_v37  ;;  %v10930_v41 = vpop.permute.xlu0 %1247 }
 0x1ad   :  { %1485 = vrot.lane.b32.xlu1 %v323_v33, %s9725_s0  ;;  %15502 = vst [vmem:[#allocation79_spill] sm:$0xff] %v10930_v41  ;;  %v577_v41 = vld [vmem:[#allocation2 + $0xd0] sm:$0xff] }
 0x1ae   :  { %1491 = vrot.lane.b32.xlu0 %v326_v43, %s9725_s0  ;;  %v332_v43 = vld [vmem:[#allocation2 + $0x167] sm:$0xff] }
 0x1af   :  { %v10926_v29 = vpop.permute.xlu1 %1245 }
 0x1b0   :  { %15501 = vst [vmem:[#allocation78_spill] sm:$0xff] %v10926_v29  ;;  %v10936_v33 = vpop.permute.xlu0 %1251  ;;  %v579_v29 = vld [vmem:[#allocation2 + $0xf0] sm:$0xff] }
 0x1b1   :  { %1489 = vrot.lane.b32.xlu1 %v325_v25, %s9725_s0  ;;  %15504 = vst [vmem:[#allocation81_spill] sm:$0xff] %v10936_v33  ;;  %v573_v33 = vld [vmem:[#allocation2 + $0x90] sm:$0xff] }
 0x1b2   :  { %1495 = vrot.lane.b32.xlu0 %v328_v55, %s9725_s0  ;;  %v334_v55 = vld [vmem:[#allocation2 + $0x187] sm:$0xff] }
 0x1b3   :  { %v10932_v21 = vpop.permute.xlu1 %1249 }
 0x1b4   :  { %15503 = vst [vmem:[#allocation80_spill] sm:$0xff] %v10932_v21  ;;  %v10942_v25 = vpop.permute.xlu0 %1255  ;;  %v575_v21 = vld [vmem:[#allocation2 + $0xb0] sm:$0xff] }
 0x1b5   :  { %1493 = vrot.lane.b32.xlu1 %v327_v17, %s9725_s0  ;;  %15506 = vst [vmem:[#allocation83_spill] sm:$0xff] %v10942_v25  ;;  %v569_v25 = vld [vmem:[#allocation2 + $0x50] sm:$0xff] }
 0x1b6   :  { %1499 = vrot.lane.b32.xlu0 %v330_v51, %s9725_s0  ;;  %v336_v51 = vld [vmem:[#allocation2 + $0x1a7] sm:$0xff] }
 0x1b7   :  { %v10938_v13 = vpop.permute.xlu1 %1253 }
 0x1b8   :  { %15505 = vst [vmem:[#allocation82_spill] sm:$0xff] %v10938_v13  ;;  %v10948_v17 = vpop.permute.xlu0 %1259  ;;  %v571_v13 = vld [vmem:[#allocation2 + $0x70] sm:$0xff] }
 0x1b9   :  { %1497 = vrot.lane.b32.xlu1 %v329_v9, %s9725_s0  ;;  %15508 = vst [vmem:[#allocation85_spill] sm:$0xff] %v10948_v17  ;;  %v565_v17 = vld [vmem:[#allocation2 + $0x44f] sm:$0xff] }
 0x1ba   :  { %1503 = vrot.lane.b32.xlu0 %v332_v43, %s9725_s0  ;;  %v338_v43 = vld [vmem:[#allocation2 + $0x1c7] sm:$0xff] }
 0x1bb   :  { %v10944_v1 = vpop.permute.xlu1 %1257 }
 0x1bc   :  { %15507 = vst [vmem:[#allocation84_spill] sm:$0xff] %v10944_v1  ;;  %v10954_v9 = vpop.permute.xlu0 %1263  ;;  %v567_v1 = vld [vmem:[#allocation2 + $0x30] sm:$0xff] }
 0x1bd   :  { %1501 = vrot.lane.b32.xlu1 %v331_v60, %s9725_s0  ;;  %15510 = vst [vmem:[#allocation87_spill] sm:$0xff] %v10954_v9 }
 0x1be   :  { %1507 = vrot.lane.b32.xlu0 %v334_v55, %s9725_s0  ;;  %v340_v55 = vld [vmem:[#allocation2 + $0x1e7] sm:$0xff] }
 0x1bf   :  { %v10950_v56 = vpop.permute.xlu1 %1261 }
 0x1c0   :  { %15509 = vst [vmem:[#allocation86_spill] sm:$0xff] %v10950_v56  ;;  %v10960_v60 = vpop.permute.xlu0 %1267  ;;  %v337_v56 = vld [vmem:[#allocation2 + $0x1af] sm:$0xff] }
 0x1c1   :  { %1505 = vrot.lane.b32.xlu1 %v333_v54, %s9725_s0  ;;  %15512 = vst [vmem:[#allocation89_spill] sm:$0xff] %v10960_v60 }
 0x1c2   :  { %1511 = vrot.lane.b32.xlu0 %v336_v51, %s9725_s0 }
 0x1c3   :  { %v10956_v52 = vpop.permute.xlu1 %1265 }
 0x1c4   :  { %15511 = vst [vmem:[#allocation88_spill] sm:$0xff] %v10956_v52  ;;  %v10966_v54 = vpop.permute.xlu0 %1271  ;;  %v339_v52 = vld [vmem:[#allocation2 + $0x1cf] sm:$0xff] }
 0x1c5   :  { %1509 = vrot.lane.b32.xlu1 %v335_v50, %s9725_s0  ;;  %15514 = vst [vmem:[#allocation91_spill] sm:$0xff] %v10966_v54  ;;  %v533_v54 = vld [vmem:[#allocation2 + $0x20f] sm:$0xff] }
 0x1c6   :  { %1515 = vrot.lane.b32.xlu0 %v338_v43, %s9725_s0  ;;  %v344_v43 = vld [vmem:[#allocation2 + $0x267] sm:$0xff] }
 0x1c7   :  { %v10962_v48 = vpop.permute.xlu1 %1269 }
 0x1c8   :  { %15513 = vst [vmem:[#allocation90_spill] sm:$0xff] %v10962_v48  ;;  %v10972_v50 = vpop.permute.xlu0 %1275  ;;  %v341_v48 = vld [vmem:[#allocation2 + $0x1ef] sm:$0xff] }
 0x1c9   :  { %1513 = vrot.lane.b32.xlu1 %v337_v56, %s9725_s0  ;;  %15516 = vst [vmem:[#allocation93_spill] sm:$0xff] %v10972_v50  ;;  %v532_v56 = vld [vmem:[#allocation2 + $0x207] sm:$0xff] }
 0x1ca   :  { %1519 = vrot.lane.b32.xlu0 %v340_v55, %s9725_s0  ;;  %v346_v55 = vld [vmem:[#allocation2 + $0x287] sm:$0xff] }
 0x1cb   :  { %v10968_v9 = vpop.permute.xlu1 %1273 }
 0x1cc   :  { %15515 = vst [vmem:[#allocation92_spill] sm:$0xff] %v10968_v9  ;;  %v10978_v51 = vpop.permute.xlu0 %1279 }
 0x1cd   :  { %1517 = vrot.lane.b32.xlu1 %v339_v52, %s9725_s0  ;;  %15518 = vst [vmem:[#allocation95_spill] sm:$0xff] %v10978_v51 }
 0x1ce   :  { %1523 = vrot.lane.b32.xlu0 %v532_v56, %s9725_s0  ;;  %v348_v56 = vld [vmem:[#allocation2 + $0x2a7] sm:$0xff] }
 0x1cf   :  { %v10974_v60 = vpop.permute.xlu1 %1277 }
 0x1d0   :  { %15517 = vst [vmem:[#allocation94_spill] sm:$0xff] %v10974_v60  ;;  %v10984_v52 = vpop.permute.xlu0 %1283  ;;  %v345_v60 = vld [vmem:[#allocation2 + $0x26f] sm:$0xff] }
 0x1d1   :  { %1521 = vrot.lane.b32.xlu1 %v341_v48, %s9725_s0  ;;  %15520 = vst [vmem:[#allocation97_spill] sm:$0xff] %v10984_v52 }
 0x1d2   :  { %1527 = vrot.lane.b32.xlu0 %v344_v43, %s9725_s0  ;;  %v350_v43 = vld [vmem:[#allocation2 + $0x2c7] sm:$0xff] }
 0x1d3   :  { %v10980_v9 = vpop.permute.xlu1 %1281 }
 0x1d4   :  { %15519 = vst [vmem:[#allocation96_spill] sm:$0xff] %v10980_v9  ;;  %v10990_v48 = vpop.permute.xlu0 %1287  ;;  %v347_v9 = vld [vmem:[#allocation2 + $0x28f] sm:$0xff] }
 0x1d5   :  { %1525 = vrot.lane.b32.xlu1 %v533_v54, %s9725_s0  ;;  %15522 = vst [vmem:[#allocation99_spill] sm:$0xff] %v10990_v48 }
 0x1d6   :  { %1531 = vrot.lane.b32.xlu0 %v346_v55, %s9725_s0  ;;  %v352_v55 = vld [vmem:[#allocation2 + $0x2e7] sm:$0xff] }
 0x1d7   :  { %v10986_v50 = vpop.permute.xlu1 %1285 }
 0x1d8   :  { %15521 = vst [vmem:[#allocation98_spill] sm:$0xff] %v10986_v50  ;;  %v10996_v54 = vpop.permute.xlu0 %1291  ;;  %v349_v50 = vld [vmem:[#allocation2 + $0x2af] sm:$0xff] }
 0x1d9   :  { %1529 = vrot.lane.b32.xlu1 %v345_v60, %s9725_s0  ;;  %15524 = vst [vmem:[#allocation101_spill] sm:$0xff] %v10996_v54 }
 0x1da   :  { %1535 = vrot.lane.b32.xlu0 %v348_v56, %s9725_s0  ;;  %v354_v56 = vld [vmem:[#allocation2 + $0x307] sm:$0xff] }
 0x1db   :  { %v10992_v51 = vpop.permute.xlu1 %1289 }
 0x1dc   :  { %15523 = vst [vmem:[#allocation100_spill] sm:$0xff] %v10992_v51  ;;  %v11002_v60 = vpop.permute.xlu0 %1295  ;;  %v351_v51 = vld [vmem:[#allocation2 + $0x2cf] sm:$0xff] }
 0x1dd   :  { %1533 = vrot.lane.b32.xlu1 %v347_v9, %s9725_s0  ;;  %15526 = vst [vmem:[#allocation103_spill] sm:$0xff] %v11002_v60 }
 0x1de   :  { %1539 = vrot.lane.b32.xlu0 %v350_v43, %s9725_s0  ;;  %v356_v43 = vld [vmem:[#allocation2 + $0x327] sm:$0xff] }
 0x1df   :  { %v10998_v52 = vpop.permute.xlu1 %1293 }
 0x1e0   :  { %15525 = vst [vmem:[#allocation102_spill] sm:$0xff] %v10998_v52  ;;  %v11008_v9 = vpop.permute.xlu0 %1299  ;;  %v353_v52 = vld [vmem:[#allocation2 + $0x2ef] sm:$0xff] }
 0x1e1   :  { %1537 = vrot.lane.b32.xlu1 %v349_v50, %s9725_s0  ;;  %15528 = vst [vmem:[#allocation105_spill] sm:$0xff] %v11008_v9 }
 0x1e2   :  { %1543 = vrot.lane.b32.xlu0 %v352_v55, %s9725_s0  ;;  %v358_v55 = vld [vmem:[#allocation2 + $0x347] sm:$0xff] }
 0x1e3   :  { %v11004_v48 = vpop.permute.xlu1 %1297 }
 0x1e4   :  { %15527 = vst [vmem:[#allocation104_spill] sm:$0xff] %v11004_v48  ;;  %v11014_v50 = vpop.permute.xlu0 %1303  ;;  %v355_v48 = vld [vmem:[#allocation2 + $0x30f] sm:$0xff] }
 0x1e5   :  { %1541 = vrot.lane.b32.xlu1 %v351_v51, %s9725_s0  ;;  %15530 = vst [vmem:[#allocation107_spill] sm:$0xff] %v11014_v50 }
 0x1e6   :  { %1547 = vrot.lane.b32.xlu0 %v354_v56, %s9725_s0  ;;  %v360_v56 = vld [vmem:[#allocation2 + $0x367] sm:$0xff] }
 0x1e7   :  { %v11010_v54 = vpop.permute.xlu1 %1301 }
 0x1e8   :  { %15529 = vst [vmem:[#allocation106_spill] sm:$0xff] %v11010_v54  ;;  %v11020_v51 = vpop.permute.xlu0 %1307  ;;  %v357_v54 = vld [vmem:[#allocation2 + $0x32f] sm:$0xff] }
 0x1e9   :  { %1545 = vrot.lane.b32.xlu1 %v353_v52, %s9725_s0  ;;  %15532 = vst [vmem:[#allocation109_spill] sm:$0xff] %v11020_v51 }
 0x1ea   :  { %1551 = vrot.lane.b32.xlu0 %v356_v43, %s9725_s0  ;;  %v362_v43 = vld [vmem:[#allocation2 + $0x387] sm:$0xff] }
 0x1eb   :  { %v11016_v60 = vpop.permute.xlu1 %1305 }
 0x1ec   :  { %15531 = vst [vmem:[#allocation108_spill] sm:$0xff] %v11016_v60  ;;  %v11026_v52 = vpop.permute.xlu0 %1311  ;;  %v359_v60 = vld [vmem:[#allocation2 + $0x34f] sm:$0xff] }
 0x1ed   :  { %1549 = vrot.lane.b32.xlu1 %v355_v48, %s9725_s0  ;;  %15534 = vst [vmem:[#allocation111_spill] sm:$0xff] %v11026_v52 }
 0x1ee   :  { %1555 = vrot.lane.b32.xlu0 %v358_v55, %s9725_s0  ;;  %v364_v55 = vld [vmem:[#allocation2 + $0x3a7] sm:$0xff] }
 0x1ef   :  { %v11022_v9 = vpop.permute.xlu1 %1309 }
 0x1f0   :  { %15533 = vst [vmem:[#allocation110_spill] sm:$0xff] %v11022_v9  ;;  %v11032_v48 = vpop.permute.xlu0 %1315  ;;  %v361_v9 = vld [vmem:[#allocation2 + $0x36f] sm:$0xff] }
 0x1f1   :  { %1553 = vrot.lane.b32.xlu1 %v357_v54, %s9725_s0  ;;  %15536 = vst [vmem:[#allocation113_spill] sm:$0xff] %v11032_v48 }
 0x1f2   :  { %1559 = vrot.lane.b32.xlu0 %v360_v56, %s9725_s0  ;;  %v366_v56 = vld [vmem:[#allocation2 + $0x3c7] sm:$0xff] }
 0x1f3   :  { %v11028_v50 = vpop.permute.xlu1 %1313 }
 0x1f4   :  { %15535 = vst [vmem:[#allocation112_spill] sm:$0xff] %v11028_v50  ;;  %v11038_v54 = vpop.permute.xlu0 %1319  ;;  %v363_v50 = vld [vmem:[#allocation2 + $0x38f] sm:$0xff] }
 0x1f5   :  { %1557 = vrot.lane.b32.xlu1 %v359_v60, %s9725_s0  ;;  %15538 = vst [vmem:[#allocation115_spill] sm:$0xff] %v11038_v54 }
 0x1f6   :  { %1563 = vrot.lane.b32.xlu0 %v362_v43, %s9725_s0  ;;  %v368_v43 = vld [vmem:[#allocation2 + $0x3e7] sm:$0xff] }
 0x1f7   :  { %v11034_v51 = vpop.permute.xlu1 %1317 }
 0x1f8   :  { %15537 = vst [vmem:[#allocation114_spill] sm:$0xff] %v11034_v51  ;;  %v11044_v60 = vpop.permute.xlu0 %1323  ;;  %v365_v51 = vld [vmem:[#allocation2 + $0x3af] sm:$0xff] }
 0x1f9   :  { %1561 = vrot.lane.b32.xlu1 %v361_v9, %s9725_s0  ;;  %15540 = vst [vmem:[#allocation117_spill] sm:$0xff] %v11044_v60 }
 0x1fa   :  { %1567 = vrot.lane.b32.xlu0 %v364_v55, %s9725_s0  ;;  %v370_v55 = vld [vmem:[#allocation2 + $0x407] sm:$0xff] }
 0x1fb   :  { %v11040_v52 = vpop.permute.xlu1 %1321 }
 0x1fc   :  { %15539 = vst [vmem:[#allocation116_spill] sm:$0xff] %v11040_v52  ;;  %v11050_v9 = vpop.permute.xlu0 %1327  ;;  %v367_v52 = vld [vmem:[#allocation2 + $0x3cf] sm:$0xff] }
 0x1fd   :  { %1565 = vrot.lane.b32.xlu1 %v363_v50, %s9725_s0  ;;  %15542 = vst [vmem:[#allocation119_spill] sm:$0xff] %v11050_v9 }
 0x1fe   :  { %1571 = vrot.lane.b32.xlu0 %v366_v56, %s9725_s0  ;;  %v372_v56 = vld [vmem:[#allocation2 + $0x427] sm:$0xff] }
 0x1ff   :  { %v11046_v48 = vpop.permute.xlu1 %1325 }
 0x200   :  { %15541 = vst [vmem:[#allocation118_spill] sm:$0xff] %v11046_v48  ;;  %v11056_v50 = vpop.permute.xlu0 %1331  ;;  %v369_v48 = vld [vmem:[#allocation2 + $0x3ef] sm:$0xff] }
 0x201   :  { %1569 = vrot.lane.b32.xlu1 %v365_v51, %s9725_s0  ;;  %15544 = vst [vmem:[#allocation121_spill] sm:$0xff] %v11056_v50 }
 0x202   :  { %1575 = vrot.lane.b32.xlu0 %v368_v43, %s9725_s0 }
 0x203   :  { %v11052_v54 = vpop.permute.xlu1 %1329 }
 0x204   :  { %15543 = vst [vmem:[#allocation120_spill] sm:$0xff] %v11052_v54  ;;  %v11062_v51 = vpop.permute.xlu0 %1463  ;;  %v371_v54 = vld [vmem:[#allocation2 + $0x40f] sm:$0xff] }
 0x205   :  { %1573 = vrot.lane.b32.xlu1 %v367_v52, %s9725_s0 }
 0x206   :  { %1579 = vrot.lane.b32.xlu0 %v370_v55, %s9725_s0 }
 0x207   :  { %v11058_v60 = vpop.permute.xlu1 %1333 }
 0x208   :  { %15545 = vst [vmem:[#allocation122_spill] sm:$0xff] %v11058_v60  ;;  %v11068_v52 = vpop.permute.xlu0 %1467  ;;  %v373_v60 = vld [vmem:[#allocation2 + $0x42f] sm:$0xff] }
 0x209   :  { %1577 = vrot.lane.b32.xlu1 %v369_v48, %s9725_s0  ;;  %v564_v48 = vld [vmem:[#allocation2 + $0x447] sm:$0xff] }
 0x20a   :  { %1583 = vrot.lane.b32.xlu0 %v372_v56, %s9725_s0 }
 0x20b   :  { %v11064_v9 = vpop.permute.xlu1 %1465 }
 0x20c   :  { %v11074_v43 = vpop.permute.xlu0 %1471 }
 0x20d   :  { %1581 = vrot.lane.b32.xlu1 %v371_v54, %s9725_s0  ;;  %v566_v54 = vld [vmem:[#allocation2 + $0x28] sm:$0xff] }
 0x20e   :  { %1587 = vrot.lane.b32.xlu0 %v564_v48, %s9725_s0 }
 0x20f   :  { %v11070_v50 = vpop.permute.xlu1 %1469 }
 0x210   :  { %v11080_v55 = vpop.permute.xlu0 %1475 }
 0x211   :  { %1585 = vrot.lane.b32.xlu1 %v373_v60, %s9725_s0  ;;  %15547 = vst [vmem:[#allocation124_spill] sm:$0xff] %v11080_v55  ;;  %v568_v60 = vld [vmem:[#allocation2 + $0x48] sm:$0xff] }
 0x212   :  { %1719 = vrot.lane.b32.xlu0 %v566_v54, %s9726_s27 }
 0x213   :  { %v11076_v46 = vpop.permute.xlu1 %1473 }
 0x214   :  { %15546 = vst [vmem:[#allocation123_spill] sm:$0xff] %v11076_v46  ;;  %v11086_v56 = vpop.permute.xlu0 %1479 }
 0x215   :  { %1589 = vrot.lane.b32.xlu1 %v565_v17, %s9725_s0  ;;  %15549 = vst [vmem:[#allocation126_spill] sm:$0xff] %v11086_v56  ;;  %v570_v17 = vld [vmem:[#allocation2 + $0x68] sm:$0xff] }
 0x216   :  { %1723 = vrot.lane.b32.xlu0 %v568_v60, %s9726_s27 }
 0x217   :  { %v11082_v44 = vpop.permute.xlu1 %1477 }
 0x218   :  { %15548 = vst [vmem:[#allocation125_spill] sm:$0xff] %v11082_v44  ;;  %v11092_v48 = vpop.permute.xlu0 %1483 }
 0x219   :  { %1721 = vrot.lane.b32.xlu1 %v567_v1, %s9726_s27  ;;  %15551 = vst [vmem:[#allocation128_spill] sm:$0xff] %v11092_v48  ;;  %v572_v1 = vld [vmem:[#allocation2 + $0x88] sm:$0xff] }
 0x21a   :  { %1727 = vrot.lane.b32.xlu0 %v570_v17, %s9726_s27 }
 0x21b   :  { %v11088_v42 = vpop.permute.xlu1 %1481 }
 0x21c   :  { %15550 = vst [vmem:[#allocation127_spill] sm:$0xff] %v11088_v42  ;;  %v11098_v54 = vpop.permute.xlu0 %1487 }
 0x21d   :  { %1725 = vrot.lane.b32.xlu1 %v569_v25, %s9726_s27  ;;  %15553 = vst [vmem:[#allocation130_spill] sm:$0xff] %v11098_v54  ;;  %v574_v25 = vld [vmem:[#allocation2 + $0xa8] sm:$0xff] }
 0x21e   :  { %1731 = vrot.lane.b32.xlu0 %v572_v1, %s9726_s27 }
 0x21f   :  { %v11094_v40 = vpop.permute.xlu1 %1485 }
 0x220   :  { %15552 = vst [vmem:[#allocation129_spill] sm:$0xff] %v11094_v40  ;;  %v11104_v60 = vpop.permute.xlu0 %1491 }
 0x221   :  { %1729 = vrot.lane.b32.xlu1 %v571_v13, %s9726_s27  ;;  %15555 = vst [vmem:[#allocation132_spill] sm:$0xff] %v11104_v60  ;;  %v576_v13 = vld [vmem:[#allocation2 + $0xc8] sm:$0xff] }
 0x222   :  { %1735 = vrot.lane.b32.xlu0 %v574_v25, %s9726_s27 }
 0x223   :  { %v11100_v38 = vpop.permute.xlu1 %1489 }
 0x224   :  { %15554 = vst [vmem:[#allocation131_spill] sm:$0xff] %v11100_v38  ;;  %v11110_v17 = vpop.permute.xlu0 %1495  ;;  %v11318_v38 = vld [vmem:[#allocation2 + $0xb1] sm:$0xff] }
 0x225   :  { %1733 = vrot.lane.b32.xlu1 %v573_v33, %s9726_s27  ;;  %15557 = vst [vmem:[#allocation134_spill] sm:$0xff] %v11110_v17  ;;  %v578_v33 = vld [vmem:[#allocation2 + $0xe8] sm:$0xff] }
 0x226   :  { %1739 = vrot.lane.b32.xlu0 %v576_v13, %s9726_s27 }
 0x227   :  { %v11106_v36 = vpop.permute.xlu1 %1493 }
 0x228   :  { %15556 = vst [vmem:[#allocation133_spill] sm:$0xff] %v11106_v36  ;;  %v11116_v1 = vpop.permute.xlu0 %1499  ;;  %v11302_v36 = vld [vmem:[#allocation2 + $0x89] sm:$0xff] }
 0x229   :  { %1737 = vrot.lane.b32.xlu1 %v575_v21, %s9726_s27  ;;  %15559 = vst [vmem:[#allocation136_spill] sm:$0xff] %v11116_v1  ;;  %v580_v21 = vld [vmem:[#allocation2 + $0x108] sm:$0xff]  ;;  %v583_v1 = vld [vmem:[#allocation2 + $0x130] sm:$0xff] }
 0x22a   :  { %1743 = vrot.lane.b32.xlu0 %v578_v33, %s9726_s27 }
 0x22b   :  { %v11112_v34 = vpop.permute.xlu1 %1497 }
 0x22c   :  { %15558 = vst [vmem:[#allocation135_spill] sm:$0xff] %v11112_v34  ;;  %v11122_v25 = vpop.permute.xlu0 %1503 }
 0x22d   :  { %1741 = vrot.lane.b32.xlu1 %v577_v41, %s9726_s27  ;;  %15561 = vst [vmem:[#allocation138_spill] sm:$0xff] %v11122_v25  ;;  %v582_v41 = vld [vmem:[#allocation2 + $0x128] sm:$0xff]  ;;  %v585_v25 = vld [vmem:[#allocation2 + $0x150] sm:$0xff] }
 0x22e   :  { %1747 = vrot.lane.b32.xlu0 %v580_v21, %s9726_s27 }
 0x22f   :  { %v11118_v32 = vpop.permute.xlu1 %1501 }
 0x230   :  { %15560 = vst [vmem:[#allocation137_spill] sm:$0xff] %v11118_v32  ;;  %v11128_v13 = vpop.permute.xlu0 %1507 }
 0x231   :  { %1745 = vrot.lane.b32.xlu1 %v579_v29, %s9726_s27  ;;  %15563 = vst [vmem:[#allocation140_spill] sm:$0xff] %v11128_v13  ;;  %v584_v29 = vld [vmem:[#allocation2 + $0x148] sm:$0xff]  ;;  %v587_v13 = vld [vmem:[#allocation2 + $0x170] sm:$0xff] }
 0x232   :  { %1751 = vrot.lane.b32.xlu0 %v582_v41, %s9726_s27 }
 0x233   :  { %v11124_v30 = vpop.permute.xlu1 %1505 }
 0x234   :  { %15562 = vst [vmem:[#allocation139_spill] sm:$0xff] %v11124_v30  ;;  %v11134_v33 = vpop.permute.xlu0 %1511 }
 0x235   :  { %1749 = vrot.lane.b32.xlu1 %v581_v49, %s9726_s27  ;;  %15565 = vst [vmem:[#allocation142_spill] sm:$0xff] %v11134_v33  ;;  %v586_v49 = vld [vmem:[#allocation2 + $0x168] sm:$0xff]  ;;  %v589_v33 = vld [vmem:[#allocation2 + $0x190] sm:$0xff] }
 0x236   :  { %1755 = vrot.lane.b32.xlu0 %v584_v29, %s9726_s27 }
 0x237   :  { %v11130_v34 = vpop.permute.xlu1 %1509 }
 0x238   :  { %15564 = vst [vmem:[#allocation141_spill] sm:$0xff] %v11130_v34  ;;  %v11140_v21 = vpop.permute.xlu0 %1515 }
 0x239   :  { %1753 = vrot.lane.b32.xlu1 %v583_v1, %s9726_s27  ;;  %15567 = vst [vmem:[#allocation144_spill] sm:$0xff] %v11140_v21  ;;  %v588_v1 = vld [vmem:[#allocation2 + $0x188] sm:$0xff]  ;;  %v591_v21 = vld [vmem:[#allocation2 + $0x1b0] sm:$0xff] }
 0x23a   :  { %1759 = vrot.lane.b32.xlu0 %v586_v49, %s9726_s27 }
 0x23b   :  { %v11136_v32 = vpop.permute.xlu1 %1513 }
 0x23c   :  { %15566 = vst [vmem:[#allocation143_spill] sm:$0xff] %v11136_v32  ;;  %v11146_v41 = vpop.permute.xlu0 %1519 }
 0x23d   :  { %1757 = vrot.lane.b32.xlu1 %v585_v25, %s9726_s27  ;;  %15569 = vst [vmem:[#allocation146_spill] sm:$0xff] %v11146_v41  ;;  %v590_v25 = vld [vmem:[#allocation2 + $0x1a8] sm:$0xff]  ;;  %v593_v41 = vld [vmem:[#allocation2 + $0x1d0] sm:$0xff] }
 0x23e   :  { %1763 = vrot.lane.b32.xlu0 %v588_v1, %s9726_s27 }
 0x23f   :  { %v11142_v30 = vpop.permute.xlu1 %1517 }
 0x240   :  { %15568 = vst [vmem:[#allocation145_spill] sm:$0xff] %v11142_v30  ;;  %v11152_v29 = vpop.permute.xlu0 %1523 }
 0x241   :  { %1761 = vrot.lane.b32.xlu1 %v587_v13, %s9726_s27  ;;  %15571 = vst [vmem:[#allocation148_spill] sm:$0xff] %v11152_v29  ;;  %v592_v13 = vld [vmem:[#allocation2 + $0x1c8] sm:$0xff]  ;;  %v595_v29 = vld [vmem:[#allocation2 + $0x1f0] sm:$0xff] }
 0x242   :  { %1767 = vrot.lane.b32.xlu0 %v590_v25, %s9726_s27 }
 0x243   :  { %v11148_v34 = vpop.permute.xlu1 %1521 }
 0x244   :  { %15570 = vst [vmem:[#allocation147_spill] sm:$0xff] %v11148_v34  ;;  %v11158_v49 = vpop.permute.xlu0 %1527 }
 0x245   :  { %1765 = vrot.lane.b32.xlu1 %v589_v33, %s9726_s27  ;;  %15573 = vst [vmem:[#allocation150_spill] sm:$0xff] %v11158_v49  ;;  %v594_v33 = vld [vmem:[#allocation2 + $0x1e8] sm:$0xff]  ;;  %v597_v49 = vld [vmem:[#allocation2 + $0x210] sm:$0xff] }
 0x246   :  { %1771 = vrot.lane.b32.xlu0 %v592_v13, %s9726_s27 }
 0x247   :  { %v11154_v32 = vpop.permute.xlu1 %1525 }
 0x248   :  { %15572 = vst [vmem:[#allocation149_spill] sm:$0xff] %v11154_v32  ;;  %v11164_v1 = vpop.permute.xlu0 %1531 }
 0x249   :  { %1769 = vrot.lane.b32.xlu1 %v591_v21, %s9726_s27  ;;  %15575 = vst [vmem:[#allocation152_spill] sm:$0xff] %v11164_v1  ;;  %v596_v21 = vld [vmem:[#allocation2 + $0x208] sm:$0xff]  ;;  %v599_v1 = vld [vmem:[#allocation2 + $0x270] sm:$0xff] }
 0x24a   :  { %1775 = vrot.lane.b32.xlu0 %v594_v33, %s9726_s27 }
 0x24b   :  { %v11160_v30 = vpop.permute.xlu1 %1529 }
 0x24c   :  { %15574 = vst [vmem:[#allocation151_spill] sm:$0xff] %v11160_v30  ;;  %v11170_v25 = vpop.permute.xlu0 %1535 }
 0x24d   :  { %1773 = vrot.lane.b32.xlu1 %v593_v41, %s9726_s27  ;;  %15577 = vst [vmem:[#allocation154_spill] sm:$0xff] %v11170_v25  ;;  %v598_v41 = vld [vmem:[#allocation2 + $0x268] sm:$0xff]  ;;  %v601_v25 = vld [vmem:[#allocation2 + $0x290] sm:$0xff] }
 0x24e   :  { %1779 = vrot.lane.b32.xlu0 %v596_v21, %s9726_s27 }
 0x24f   :  { %v11166_v34 = vpop.permute.xlu1 %1533 }
 0x250   :  { %15576 = vst [vmem:[#allocation153_spill] sm:$0xff] %v11166_v34  ;;  %v11176_v13 = vpop.permute.xlu0 %1539 }
 0x251   :  { %1777 = vrot.lane.b32.xlu1 %v595_v29, %s9726_s27  ;;  %15579 = vst [vmem:[#allocation156_spill] sm:$0xff] %v11176_v13  ;;  %v600_v29 = vld [vmem:[#allocation2 + $0x288] sm:$0xff]  ;;  %v603_v13 = vld [vmem:[#allocation2 + $0x2b0] sm:$0xff] }
 0x252   :  { %1783 = vrot.lane.b32.xlu0 %v598_v41, %s9726_s27 }
 0x253   :  { %v11172_v32 = vpop.permute.xlu1 %1537 }
 0x254   :  { %15578 = vst [vmem:[#allocation155_spill] sm:$0xff] %v11172_v32  ;;  %v11182_v33 = vpop.permute.xlu0 %1543 }
 0x255   :  { %1781 = vrot.lane.b32.xlu1 %v597_v49, %s9726_s27  ;;  %15581 = vst [vmem:[#allocation158_spill] sm:$0xff] %v11182_v33  ;;  %v602_v49 = vld [vmem:[#allocation2 + $0x2a8] sm:$0xff]  ;;  %v605_v33 = vld [vmem:[#allocation2 + $0x2d0] sm:$0xff] }
 0x256   :  { %1787 = vrot.lane.b32.xlu0 %v600_v29, %s9726_s27 }
 0x257   :  { %v11178_v30 = vpop.permute.xlu1 %1541 }
 0x258   :  { %15580 = vst [vmem:[#allocation157_spill] sm:$0xff] %v11178_v30  ;;  %v11188_v21 = vpop.permute.xlu0 %1547 }
 0x259   :  { %1785 = vrot.lane.b32.xlu1 %v599_v1, %s9726_s27  ;;  %15583 = vst [vmem:[#allocation160_spill] sm:$0xff] %v11188_v21  ;;  %v604_v1 = vld [vmem:[#allocation2 + $0x2c8] sm:$0xff]  ;;  %v607_v21 = vld [vmem:[#allocation2 + $0x2f0] sm:$0xff] }
 0x25a   :  { %1791 = vrot.lane.b32.xlu0 %v602_v49, %s9726_s27 }
 0x25b   :  { %v11184_v34 = vpop.permute.xlu1 %1545 }
 0x25c   :  { %15582 = vst [vmem:[#allocation159_spill] sm:$0xff] %v11184_v34  ;;  %v11194_v41 = vpop.permute.xlu0 %1551 }
 0x25d   :  { %1789 = vrot.lane.b32.xlu1 %v601_v25, %s9726_s27  ;;  %15585 = vst [vmem:[#allocation162_spill] sm:$0xff] %v11194_v41  ;;  %v606_v25 = vld [vmem:[#allocation2 + $0x2e8] sm:$0xff]  ;;  %v609_v41 = vld [vmem:[#allocation2 + $0x310] sm:$0xff] }
 0x25e   :  { %1795 = vrot.lane.b32.xlu0 %v604_v1, %s9726_s27 }
 0x25f   :  { %v11190_v32 = vpop.permute.xlu1 %1549 }
 0x260   :  { %15584 = vst [vmem:[#allocation161_spill] sm:$0xff] %v11190_v32  ;;  %v11200_v29 = vpop.permute.xlu0 %1555 }
 0x261   :  { %1793 = vrot.lane.b32.xlu1 %v603_v13, %s9726_s27  ;;  %15587 = vst [vmem:[#allocation164_spill] sm:$0xff] %v11200_v29  ;;  %v608_v13 = vld [vmem:[#allocation2 + $0x308] sm:$0xff]  ;;  %v611_v29 = vld [vmem:[#allocation2 + $0x330] sm:$0xff] }
 0x262   :  { %1799 = vrot.lane.b32.xlu0 %v606_v25, %s9726_s27 }
 0x263   :  { %v11196_v30 = vpop.permute.xlu1 %1553 }
 0x264   :  { %15586 = vst [vmem:[#allocation163_spill] sm:$0xff] %v11196_v30  ;;  %v11206_v49 = vpop.permute.xlu0 %1559 }
 0x265   :  { %1797 = vrot.lane.b32.xlu1 %v605_v33, %s9726_s27  ;;  %15589 = vst [vmem:[#allocation166_spill] sm:$0xff] %v11206_v49  ;;  %v610_v33 = vld [vmem:[#allocation2 + $0x328] sm:$0xff]  ;;  %v613_v49 = vld [vmem:[#allocation2 + $0x350] sm:$0xff] }
 0x266   :  { %1803 = vrot.lane.b32.xlu0 %v608_v13, %s9726_s27 }
 0x267   :  { %v11202_v34 = vpop.permute.xlu1 %1557 }
 0x268   :  { %15588 = vst [vmem:[#allocation165_spill] sm:$0xff] %v11202_v34  ;;  %v11212_v1 = vpop.permute.xlu0 %1563 }
 0x269   :  { %1801 = vrot.lane.b32.xlu1 %v607_v21, %s9726_s27  ;;  %15591 = vst [vmem:[#allocation168_spill] sm:$0xff] %v11212_v1  ;;  %v612_v21 = vld [vmem:[#allocation2 + $0x348] sm:$0xff]  ;;  %v615_v1 = vld [vmem:[#allocation2 + $0x370] sm:$0xff] }
 0x26a   :  { %1807 = vrot.lane.b32.xlu0 %v610_v33, %s9726_s27 }
 0x26b   :  { %v11208_v32 = vpop.permute.xlu1 %1561 }
 0x26c   :  { %15590 = vst [vmem:[#allocation167_spill] sm:$0xff] %v11208_v32  ;;  %v11218_v25 = vpop.permute.xlu0 %1567 }
 0x26d   :  { %1805 = vrot.lane.b32.xlu1 %v609_v41, %s9726_s27  ;;  %15593 = vst [vmem:[#allocation170_spill] sm:$0xff] %v11218_v25  ;;  %v614_v41 = vld [vmem:[#allocation2 + $0x368] sm:$0xff]  ;;  %v617_v25 = vld [vmem:[#allocation2 + $0x390] sm:$0xff] }
 0x26e   :  { %1811 = vrot.lane.b32.xlu0 %v612_v21, %s9726_s27 }
 0x26f   :  { %v11214_v30 = vpop.permute.xlu1 %1565 }
 0x270   :  { %15592 = vst [vmem:[#allocation169_spill] sm:$0xff] %v11214_v30  ;;  %v11224_v13 = vpop.permute.xlu0 %1571 }
 0x271   :  { %1809 = vrot.lane.b32.xlu1 %v611_v29, %s9726_s27  ;;  %15595 = vst [vmem:[#allocation172_spill] sm:$0xff] %v11224_v13  ;;  %v616_v29 = vld [vmem:[#allocation2 + $0x388] sm:$0xff]  ;;  %v619_v13 = vld [vmem:[#allocation2 + $0x3b0] sm:$0xff] }
 0x272   :  { %1815 = vrot.lane.b32.xlu0 %v614_v41, %s9726_s27 }
 0x273   :  { %v11220_v34 = vpop.permute.xlu1 %1569 }
 0x274   :  { %15594 = vst [vmem:[#allocation171_spill] sm:$0xff] %v11220_v34  ;;  %v11230_v33 = vpop.permute.xlu0 %1575 }
 0x275   :  { %1813 = vrot.lane.b32.xlu1 %v613_v49, %s9726_s27  ;;  %15597 = vst [vmem:[#allocation174_spill] sm:$0xff] %v11230_v33  ;;  %v618_v49 = vld [vmem:[#allocation2 + $0x3a8] sm:$0xff]  ;;  %v621_v33 = vld [vmem:[#allocation2 + $0x3d0] sm:$0xff] }
 0x276   :  { %1819 = vrot.lane.b32.xlu0 %v616_v29, %s9726_s27 }
 0x277   :  { %v11226_v32 = vpop.permute.xlu1 %1573 }
 0x278   :  { %15596 = vst [vmem:[#allocation173_spill] sm:$0xff] %v11226_v32  ;;  %v11236_v21 = vpop.permute.xlu0 %1579 }
 0x279   :  { %1817 = vrot.lane.b32.xlu1 %v615_v1, %s9726_s27  ;;  %15599 = vst [vmem:[#allocation176_spill] sm:$0xff] %v11236_v21  ;;  %v620_v1 = vld [vmem:[#allocation2 + $0x3c8] sm:$0xff]  ;;  %v623_v21 = vld [vmem:[#allocation2 + $0x3f0] sm:$0xff] }
 0x27a   :  { %1823 = vrot.lane.b32.xlu0 %v618_v49, %s9726_s27 }
 0x27b   :  { %v11232_v30 = vpop.permute.xlu1 %1577 }
 0x27c   :  { %15598 = vst [vmem:[#allocation175_spill] sm:$0xff] %v11232_v30  ;;  %v11242_v41 = vpop.permute.xlu0 %1583 }
 0x27d   :  { %1821 = vrot.lane.b32.xlu1 %v617_v25, %s9726_s27  ;;  %15601 = vst [vmem:[#allocation178_spill] sm:$0xff] %v11242_v41  ;;  %v622_v25 = vld [vmem:[#allocation2 + $0x3e8] sm:$0xff]  ;;  %v625_v41 = vld [vmem:[#allocation2 + $0x410] sm:$0xff] }
 0x27e   :  { %1827 = vrot.lane.b32.xlu0 %v620_v1, %s9726_s27 }
 0x27f   :  { %v11238_v34 = vpop.permute.xlu1 %1581 }
 0x280   :  { %15600 = vst [vmem:[#allocation177_spill] sm:$0xff] %v11238_v34  ;;  %v11248_v29 = vpop.permute.xlu0 %1587 }
 0x281   :  { %1825 = vrot.lane.b32.xlu1 %v619_v13, %s9726_s27  ;;  %15603 = vst [vmem:[#allocation180_spill] sm:$0xff] %v11248_v29  ;;  %v624_v13 = vld [vmem:[#allocation2 + $0x408] sm:$0xff]  ;;  %v627_v29 = vld [vmem:[#allocation2 + $0x430] sm:$0xff] }
 0x282   :  { %1831 = vrot.lane.b32.xlu0 %v622_v25, %s9726_s27 }
 0x283   :  { %v11244_v32 = vpop.permute.xlu1 %1585 }
 0x284   :  { %15602 = vst [vmem:[#allocation179_spill] sm:$0xff] %v11244_v32  ;;  %v11254_v49 = vpop.permute.xlu0 %1719 }
 0x285   :  { %1829 = vrot.lane.b32.xlu1 %v621_v33, %s9726_s27  ;;  %v626_v33 = vld [vmem:[#allocation2 + $0x428] sm:$0xff] }
 0x286   :  { %1835 = vrot.lane.b32.xlu0 %v624_v13, %s9726_s27 }
 0x287   :  { %v11250_v30 = vpop.permute.xlu1 %1589 }
 0x288   :  { %15604 = vst [vmem:[#allocation181_spill] sm:$0xff] %v11250_v30  ;;  %v11260_v1 = vpop.permute.xlu0 %1723  ;;  %v629_v30 = vld [vmem:[#allocation2 + $0x450] sm:$0xff] }
 0x289   :  { %1833 = vrot.lane.b32.xlu1 %v623_v21, %s9726_s27  ;;  %v628_v21 = vld [vmem:[#allocation2 + $0x448] sm:$0xff] }
 0x28a   :  { %1839 = vrot.lane.b32.xlu0 %v626_v33, %s9726_s27 }
 0x28b   :  { %v11256_v34 = vpop.permute.xlu1 %1721 }
 0x28c   :  { %v11266_v25 = vpop.permute.xlu0 %1727 }
 0x28d   :  { %1837 = vrot.lane.b32.xlu1 %v625_v41, %s9726_s27  ;;  %15605 = vst [vmem:[#allocation182_spill] sm:$0xff] %v11266_v25  ;;  %v630_v41 = vld [vmem:[#allocation2 + $0x29] sm:$0xff] }
 0x28e   :  { %1843 = vrot.lane.b32.xlu0 %v628_v21, %s9726_s27 }
 0x28f   :  { %v11262_v32 = vpop.permute.xlu1 %1725 }
 0x290   :  { %v11272_v13 = vpop.permute.xlu0 %1731 }
 0x291   :  { %1841 = vrot.lane.b32.xlu1 %v627_v29, %s9726_s27  ;;  %15607 = vst [vmem:[#allocation184_spill] sm:$0xff] %v11272_v13  ;;  %v11278_v29 = vld [vmem:[#allocation2 + $0x49] sm:$0xff] }
 0x292   :  { %1975 = vrot.lane.b32.xlu0 %v630_v41, %s9727_s28  ;;  %v11294_v41 = vld [vmem:[#allocation2 + $0x71] sm:$0xff] }
 0x293   :  { %v11268_v37 = vpop.permute.xlu1 %1729 }
 0x294   :  { %15606 = vst [vmem:[#allocation183_spill] sm:$0xff] %v11268_v37  ;;  %v11280_v33 = vpop.permute.xlu0 %1735 }
 0x295   :  { %1845 = vrot.lane.b32.xlu1 %v629_v30, %s9726_s27  ;;  %15609 = vst [vmem:[#allocation186_spill] sm:$0xff] %v11280_v33  ;;  %v11290_v30 = vld [vmem:[#allocation2 + $0x69] sm:$0xff] }
 0x296   :  { %1979 = vrot.lane.b32.xlu0 %v11278_v29, %s9727_s28 }
 0x297   :  { %v11274_v17 = vpop.permute.xlu1 %1733 }
 0x298   :  { %15608 = vst [vmem:[#allocation185_spill] sm:$0xff] %v11274_v17  ;;  %v11292_v26 = vpop.permute.xlu0 %1739  ;;  %v11450_v17 = vld [vmem:[#allocation2 + $0x211] sm:$0xff] }
 0x299   :  { %1977 = vrot.lane.b32.xlu1 %v631_v28, %s9727_s28  ;;  %15611 = vst [vmem:[#allocation188_spill] sm:$0xff] %v11292_v26 }
 0x29a   :  { %1983 = vrot.lane.b32.xlu0 %v11290_v30, %s9727_s28 }
 0x29b   :  { %v11284_v21 = vpop.permute.xlu1 %1737 }
 0x29c   :  { %15610 = vst [vmem:[#allocation187_spill] sm:$0xff] %v11284_v21  ;;  %v11304_v45 = vpop.permute.xlu0 %1743  ;;  %v11402_v21 = vld [vmem:[#allocation2 + $0x191] sm:$0xff] }
 0x29d   :  { %1981 = vrot.lane.b32.xlu1 %v11282_v58, %s9727_s28  ;;  %15613 = vst [vmem:[#allocation190_spill] sm:$0xff] %v11304_v45 }
 0x29e   :  { %1987 = vrot.lane.b32.xlu0 %v11302_v36, %s9727_s28 }
 0x29f   :  { %v11296_v28 = vpop.permute.xlu1 %1741 }
 0x2a0   :  { %15612 = vst [vmem:[#allocation189_spill] sm:$0xff] %v11296_v28  ;;  %v11316_v22 = vpop.permute.xlu0 %1747  ;;  %v11354_v28 = vld [vmem:[#allocation2 + $0x111] sm:$0xff] }
 0x2a1   :  { %1985 = vrot.lane.b32.xlu1 %v11294_v41, %s9727_s28  ;;  %15615 = vst [vmem:[#allocation192_spill] sm:$0xff] %v11316_v22 }
 0x2a2   :  { %1991 = vrot.lane.b32.xlu0 %v11314_v7, %s9727_s28 }
 0x2a3   :  { %v11308_v60 = vpop.permute.xlu1 %1745 }
 0x2a4   :  { %15614 = vst [vmem:[#allocation191_spill] sm:$0xff] %v11308_v60  ;;  %v11326_v60 = vld [vmem:[#allocation2 + $0xc9] sm:$0xff]  ;;  %v11328_v45 = vpop.permute.xlu0 %1751 }
 0x2a5   :  { %1989 = vrot.lane.b32.xlu1 %v11306_v24, %s9727_s28  ;;  %15617 = vst [vmem:[#allocation194_spill] sm:$0xff] %v11328_v45 }
 0x2a6   :  { %1995 = vrot.lane.b32.xlu0 %v11326_v60, %s9727_s28 }
 0x2a7   :  { %v11320_v53 = vpop.permute.xlu1 %1749 }
 0x2a8   :  { %15616 = vst [vmem:[#allocation193_spill] sm:$0xff] %v11320_v53  ;;  %v11338_v53 = vld [vmem:[#allocation2 + $0xe9] sm:$0xff]  ;;  %v11340_v22 = vpop.permute.xlu0 %1755 }
 0x2a9   :  { %1993 = vrot.lane.b32.xlu1 %v11318_v38, %s9727_s28  ;;  %15619 = vst [vmem:[#allocation196_spill] sm:$0xff] %v11340_v22 }
 0x2aa   :  { %1999 = vrot.lane.b32.xlu0 %v11338_v53, %s9727_s28 }
 0x2ab   :  { %v11332_v54 = vpop.permute.xlu1 %1753 }
 0x2ac   :  { %15618 = vst [vmem:[#allocation195_spill] sm:$0xff] %v11332_v54  ;;  %v11350_v54 = vld [vmem:[#allocation2 + $0x109] sm:$0xff]  ;;  %v11352_v45 = vpop.permute.xlu0 %1759 }
 0x2ad   :  { %1997 = vrot.lane.b32.xlu1 %v11330_v20, %s9727_s28  ;;  %15621 = vst [vmem:[#allocation198_spill] sm:$0xff] %v11352_v45 }
 0x2ae   :  { %2003 = vrot.lane.b32.xlu0 %v11350_v54, %s9727_s28 }
 0x2af   :  { %v11344_v18 = vpop.permute.xlu1 %1757 }
 0x2b0   :  { %15620 = vst [vmem:[#allocation197_spill] sm:$0xff] %v11344_v18  ;;  %v11362_v18 = vld [vmem:[#allocation2 + $0x129] sm:$0xff]  ;;  %v11364_v22 = vpop.permute.xlu0 %1763 }
 0x2b1   :  { %2001 = vrot.lane.b32.xlu1 %v11342_v23, %s9727_s28  ;;  %15623 = vst [vmem:[#allocation200_spill] sm:$0xff] %v11364_v22 }
 0x2b2   :  { %2007 = vrot.lane.b32.xlu0 %v11362_v18, %s9727_s28 }
 0x2b3   :  { %v11356_v40 = vpop.permute.xlu1 %1761 }
 0x2b4   :  { %15622 = vst [vmem:[#allocation199_spill] sm:$0xff] %v11356_v40  ;;  %v11374_v40 = vld [vmem:[#allocation2 + $0x149] sm:$0xff]  ;;  %v11376_v45 = vpop.permute.xlu0 %1767 }
 0x2b5   :  { %2005 = vrot.lane.b32.xlu1 %v11354_v28, %s9727_s28  ;;  %15625 = vst [vmem:[#allocation202_spill] sm:$0xff] %v11376_v45 }
 0x2b6   :  { %2011 = vrot.lane.b32.xlu0 %v11374_v40, %s9727_s28 }
 0x2b7   :  { %v11368_v26 = vpop.permute.xlu1 %1765 }
 0x2b8   :  { %15624 = vst [vmem:[#allocation201_spill] sm:$0xff] %v11368_v26  ;;  %v11386_v26 = vld [vmem:[#allocation2 + $0x169] sm:$0xff]  ;;  %v11388_v22 = vpop.permute.xlu0 %1771 }
 0x2b9   :  { %2009 = vrot.lane.b32.xlu1 %v11366_v3, %s9727_s28  ;;  %15627 = vst [vmem:[#allocation204_spill] sm:$0xff] %v11388_v22 }
 0x2ba   :  { %2015 = vrot.lane.b32.xlu0 %v11386_v26, %s9727_s28 }
 0x2bb   :  { %v11380_v48 = vpop.permute.xlu1 %1769 }
 0x2bc   :  { %15626 = vst [vmem:[#allocation203_spill] sm:$0xff] %v11380_v48  ;;  %v11398_v48 = vld [vmem:[#allocation2 + $0x189] sm:$0xff]  ;;  %v11400_v45 = vpop.permute.xlu0 %1775 }
 0x2bd   :  { %2013 = vrot.lane.b32.xlu1 %v11378_v16, %s9727_s28  ;;  %15629 = vst [vmem:[#allocation206_spill] sm:$0xff] %v11400_v45 }
 0x2be   :  { %2019 = vrot.lane.b32.xlu0 %v11398_v48, %s9727_s28 }
 0x2bf   :  { %v11392_v14 = vpop.permute.xlu1 %1773 }
 0x2c0   :  { %15628 = vst [vmem:[#allocation205_spill] sm:$0xff] %v11392_v14  ;;  %v11410_v14 = vld [vmem:[#allocation2 + $0x1a9] sm:$0xff]  ;;  %v11412_v22 = vpop.permute.xlu0 %1779 }
 0x2c1   :  { %2017 = vrot.lane.b32.xlu1 %v11390_v5, %s9727_s28  ;;  %15631 = vst [vmem:[#allocation208_spill] sm:$0xff] %v11412_v22 }
 0x2c2   :  { %2023 = vrot.lane.b32.xlu0 %v11410_v14, %s9727_s28 }
 0x2c3   :  { %v11404_v42 = vpop.permute.xlu1 %1777 }
 0x2c4   :  { %15630 = vst [vmem:[#allocation207_spill] sm:$0xff] %v11404_v42  ;;  %v11422_v42 = vld [vmem:[#allocation2 + $0x1c9] sm:$0xff]  ;;  %v11424_v45 = vpop.permute.xlu0 %1783 }
 0x2c5   :  { %2021 = vrot.lane.b32.xlu1 %v11402_v21, %s9727_s28  ;;  %15633 = vst [vmem:[#allocation210_spill] sm:$0xff] %v11424_v45 }
 0x2c6   :  { %2027 = vrot.lane.b32.xlu0 %v11422_v42, %s9727_s28 }
 0x2c7   :  { %v11416_v33 = vpop.permute.xlu1 %1781 }
 0x2c8   :  { %15632 = vst [vmem:[#allocation209_spill] sm:$0xff] %v11416_v33  ;;  %v11434_v33 = vld [vmem:[#allocation2 + $0x1e9] sm:$0xff]  ;;  %v11436_v22 = vpop.permute.xlu0 %1787 }
 0x2c9   :  { %2025 = vrot.lane.b32.xlu1 %v11414_v15, %s9727_s28  ;;  %15635 = vst [vmem:[#allocation212_spill] sm:$0xff] %v11436_v22 }
 0x2ca   :  { %2031 = vrot.lane.b32.xlu0 %v11434_v33, %s9727_s28 }
 0x2cb   :  { %v11428_v56 = vpop.permute.xlu1 %1785 }
 0x2cc   :  { %15634 = vst [vmem:[#allocation211_spill] sm:$0xff] %v11428_v56  ;;  %v11446_v56 = vld [vmem:[#allocation2 + $0x209] sm:$0xff]  ;;  %v11448_v45 = vpop.permute.xlu0 %1791 }
 0x2cd   :  { %2029 = vrot.lane.b32.xlu1 %v11426_v12, %s9727_s28  ;;  %15637 = vst [vmem:[#allocation214_spill] sm:$0xff] %v11448_v45  ;;  %v664_v45 = vld [vmem:[#allocation2 + $0x289] sm:$0xff] }
 0x2ce   :  { %2035 = vrot.lane.b32.xlu0 %v11446_v56, %s9727_s28 }
 0x2cf   :  { %v11440_v10 = vpop.permute.xlu1 %1789 }
 0x2d0   :  { %15636 = vst [vmem:[#allocation213_spill] sm:$0xff] %v11440_v10  ;;  %v662_v10 = vld [vmem:[#allocation2 + $0x269] sm:$0xff]  ;;  %v11458_v22 = vpop.permute.xlu0 %1795 }
 0x2d1   :  { %2033 = vrot.lane.b32.xlu1 %v11438_v0, %s9727_s28  ;;  %15639 = vst [vmem:[#allocation216_spill] sm:$0xff] %v11458_v22  ;;  %v667_v22 = vld [vmem:[#allocation2 + $0x2b1] sm:$0xff] }
 0x2d2   :  { %2039 = vrot.lane.b32.xlu0 %v662_v10, %s9727_s28  ;;  %v668_v10 = vld [vmem:[#allocation2 + $0x2c9] sm:$0xff] }
 0x2d3   :  { %v11452_v44 = vpop.permute.xlu1 %1793 }
 0x2d4   :  { %15638 = vst [vmem:[#allocation215_spill] sm:$0xff] %v11452_v44  ;;  %v11464_v8 = vpop.permute.xlu0 %1799  ;;  %v665_v44 = vld [vmem:[#allocation2 + $0x291] sm:$0xff] }
 0x2d5   :  { %2037 = vrot.lane.b32.xlu1 %v11450_v17, %s9727_s28  ;;  %15641 = vst [vmem:[#allocation218_spill] sm:$0xff] %v11464_v8  ;;  %v669_v8 = vld [vmem:[#allocation2 + $0x2d1] sm:$0xff] }
 0x2d6   :  { %2043 = vrot.lane.b32.xlu0 %v664_v45, %s9727_s28 }
 0x2d7   :  { %v11460_v13 = vpop.permute.xlu1 %1797 }
 0x2d8   :  { %15640 = vst [vmem:[#allocation217_spill] sm:$0xff] %v11460_v13  ;;  %v11470_v6 = vpop.permute.xlu0 %1803 }
 0x2d9   :  { %2041 = vrot.lane.b32.xlu1 %v663_v31, %s9727_s28  ;;  %15643 = vst [vmem:[#allocation220_spill] sm:$0xff] %v11470_v6  ;;  %v671_v6 = vld [vmem:[#allocation2 + $0x2f1] sm:$0xff] }
 0x2da   :  { %2047 = vrot.lane.b32.xlu0 %v666_v62, %s9727_s28 }
 0x2db   :  { %v11466_v55 = vpop.permute.xlu1 %1801 }
 0x2dc   :  { %15642 = vst [vmem:[#allocation219_spill] sm:$0xff] %v11466_v55  ;;  %v11476_v31 = vpop.permute.xlu0 %1807 }
 0x2dd   :  { %2045 = vrot.lane.b32.xlu1 %v665_v44, %s9727_s28  ;;  %15645 = vst [vmem:[#allocation222_spill] sm:$0xff] %v11476_v31  ;;  %v670_v44 = vld [vmem:[#allocation2 + $0x2e9] sm:$0xff]  ;;  %v673_v31 = vld [vmem:[#allocation2 + $0x311] sm:$0xff] }
 0x2de   :  { %2051 = vrot.lane.b32.xlu0 %v668_v10, %s9727_s28 }
 0x2df   :  { %v11472_v37 = vpop.permute.xlu1 %1805 }
 0x2e0   :  { %15644 = vst [vmem:[#allocation221_spill] sm:$0xff] %v11472_v37  ;;  %v11482_v45 = vpop.permute.xlu0 %1811 }
 0x2e1   :  { %2049 = vrot.lane.b32.xlu1 %v667_v22, %s9727_s28  ;;  %15647 = vst [vmem:[#allocation224_spill] sm:$0xff] %v11482_v45  ;;  %v672_v22 = vld [vmem:[#allocation2 + $0x309] sm:$0xff]  ;;  %v675_v45 = vld [vmem:[#allocation2 + $0x331] sm:$0xff] }
 0x2e2   :  { %2055 = vrot.lane.b32.xlu0 %v670_v44, %s9727_s28 }
 0x2e3   :  { %v11478_v13 = vpop.permute.xlu1 %1809 }
 0x2e4   :  { %15646 = vst [vmem:[#allocation223_spill] sm:$0xff] %v11478_v13  ;;  %v11488_v62 = vpop.permute.xlu0 %1815 }
 0x2e5   :  { %2053 = vrot.lane.b32.xlu1 %v669_v8, %s9727_s28  ;;  %15649 = vst [vmem:[#allocation226_spill] sm:$0xff] %v11488_v62  ;;  %v674_v8 = vld [vmem:[#allocation2 + $0x329] sm:$0xff]  ;;  %v677_v62 = vld [vmem:[#allocation2 + $0x351] sm:$0xff] }
 0x2e6   :  { %2059 = vrot.lane.b32.xlu0 %v672_v22, %s9727_s28 }
 0x2e7   :  { %v11484_v55 = vpop.permute.xlu1 %1813 }
 0x2e8   :  { %15648 = vst [vmem:[#allocation225_spill] sm:$0xff] %v11484_v55  ;;  %v11494_v10 = vpop.permute.xlu0 %1819 }
 0x2e9   :  { %2057 = vrot.lane.b32.xlu1 %v671_v6, %s9727_s28  ;;  %15651 = vst [vmem:[#allocation228_spill] sm:$0xff] %v11494_v10  ;;  %v676_v6 = vld [vmem:[#allocation2 + $0x349] sm:$0xff]  ;;  %v679_v10 = vld [vmem:[#allocation2 + $0x371] sm:$0xff] }
 0x2ea   :  { %2063 = vrot.lane.b32.xlu0 %v674_v8, %s9727_s28 }
 0x2eb   :  { %v11490_v37 = vpop.permute.xlu1 %1817 }
 0x2ec   :  { %15650 = vst [vmem:[#allocation227_spill] sm:$0xff] %v11490_v37  ;;  %v11500_v44 = vpop.permute.xlu0 %1823 }
 0x2ed   :  { %2061 = vrot.lane.b32.xlu1 %v673_v31, %s9727_s28  ;;  %15653 = vst [vmem:[#allocation230_spill] sm:$0xff] %v11500_v44  ;;  %v678_v31 = vld [vmem:[#allocation2 + $0x369] sm:$0xff]  ;;  %v681_v44 = vld [vmem:[#allocation2 + $0x391] sm:$0xff] }
 0x2ee   :  { %2067 = vrot.lane.b32.xlu0 %v676_v6, %s9727_s28 }
 0x2ef   :  { %v11496_v13 = vpop.permute.xlu1 %1821 }
 0x2f0   :  { %15652 = vst [vmem:[#allocation229_spill] sm:$0xff] %v11496_v13  ;;  %v11506_v22 = vpop.permute.xlu0 %1827 }
 0x2f1   :  { %2065 = vrot.lane.b32.xlu1 %v675_v45, %s9727_s28  ;;  %15655 = vst [vmem:[#allocation232_spill] sm:$0xff] %v11506_v22  ;;  %v680_v45 = vld [vmem:[#allocation2 + $0x389] sm:$0xff]  ;;  %v683_v22 = vld [vmem:[#allocation2 + $0x3b1] sm:$0xff] }
 0x2f2   :  { %2071 = vrot.lane.b32.xlu0 %v678_v31, %s9727_s28 }
 0x2f3   :  { %v11502_v55 = vpop.permute.xlu1 %1825 }
 0x2f4   :  { %15654 = vst [vmem:[#allocation231_spill] sm:$0xff] %v11502_v55  ;;  %v11512_v8 = vpop.permute.xlu0 %1831 }
 0x2f5   :  { %2069 = vrot.lane.b32.xlu1 %v677_v62, %s9727_s28  ;;  %15657 = vst [vmem:[#allocation234_spill] sm:$0xff] %v11512_v8  ;;  %v682_v62 = vld [vmem:[#allocation2 + $0x3a9] sm:$0xff]  ;;  %v685_v8 = vld [vmem:[#allocation2 + $0x3d1] sm:$0xff] }
 0x2f6   :  { %2075 = vrot.lane.b32.xlu0 %v680_v45, %s9727_s28 }
 0x2f7   :  { %v11508_v37 = vpop.permute.xlu1 %1829 }
 0x2f8   :  { %15656 = vst [vmem:[#allocation233_spill] sm:$0xff] %v11508_v37  ;;  %v11518_v6 = vpop.permute.xlu0 %1835 }
 0x2f9   :  { %2073 = vrot.lane.b32.xlu1 %v679_v10, %s9727_s28  ;;  %15659 = vst [vmem:[#allocation236_spill] sm:$0xff] %v11518_v6  ;;  %v684_v10 = vld [vmem:[#allocation2 + $0x3c9] sm:$0xff]  ;;  %v687_v6 = vld [vmem:[#allocation2 + $0x3f1] sm:$0xff] }
 0x2fa   :  { %2079 = vrot.lane.b32.xlu0 %v682_v62, %s9727_s28 }
 0x2fb   :  { %v11514_v13 = vpop.permute.xlu1 %1833 }
 0x2fc   :  { %15658 = vst [vmem:[#allocation235_spill] sm:$0xff] %v11514_v13  ;;  %v11524_v31 = vpop.permute.xlu0 %1839 }
 0x2fd   :  { %2077 = vrot.lane.b32.xlu1 %v681_v44, %s9727_s28  ;;  %15661 = vst [vmem:[#allocation238_spill] sm:$0xff] %v11524_v31  ;;  %v686_v44 = vld [vmem:[#allocation2 + $0x3e9] sm:$0xff]  ;;  %v689_v31 = vld [vmem:[#allocation2 + $0x411] sm:$0xff] }
 0x2fe   :  { %2083 = vrot.lane.b32.xlu0 %v684_v10, %s9727_s28 }
 0x2ff   :  { %v11520_v55 = vpop.permute.xlu1 %1837 }
 0x300   :  { %15660 = vst [vmem:[#allocation237_spill] sm:$0xff] %v11520_v55  ;;  %v11530_v45 = vpop.permute.xlu0 %1843 }
 0x301   :  { %2081 = vrot.lane.b32.xlu1 %v683_v22, %s9727_s28  ;;  %15663 = vst [vmem:[#allocation240_spill] sm:$0xff] %v11530_v45  ;;  %v688_v22 = vld [vmem:[#allocation2 + $0x409] sm:$0xff]  ;;  %v691_v45 = vld [vmem:[#allocation2 + $0x431] sm:$0xff] }
 0x302   :  { %2087 = vrot.lane.b32.xlu0 %v686_v44, %s9727_s28 }
 0x303   :  { %v11526_v37 = vpop.permute.xlu1 %1841 }
 0x304   :  { %15662 = vst [vmem:[#allocation239_spill] sm:$0xff] %v11526_v37  ;;  %v11536_v62 = vpop.permute.xlu0 %1975 }
 0x305   :  { %2085 = vrot.lane.b32.xlu1 %v685_v8, %s9727_s28  ;;  %v690_v8 = vld [vmem:[#allocation2 + $0x429] sm:$0xff] }
 0x306   :  { %2091 = vrot.lane.b32.xlu0 %v688_v22, %s9727_s28 }
 0x307   :  { %v11532_v13 = vpop.permute.xlu1 %1845 }
 0x308   :  { %15664 = vst [vmem:[#allocation241_spill] sm:$0xff] %v11532_v13  ;;  %v11542_v10 = vpop.permute.xlu0 %1979  ;;  %v693_v13 = vld [vmem:[#allocation2 + $0x451] sm:$0xff] }
 0x309   :  { %2089 = vrot.lane.b32.xlu1 %v687_v6, %s9727_s28  ;;  %v692_v6 = vld [vmem:[#allocation2 + $0x449] sm:$0xff] }
 0x30a   :  { %2095 = vrot.lane.b32.xlu0 %v690_v8, %s9727_s28 }
 0x30b   :  { %v11538_v55 = vpop.permute.xlu1 %1977 }
 0x30c   :  { %v11548_v44 = vpop.permute.xlu0 %1983 }
 0x30d   :  { %2093 = vrot.lane.b32.xlu1 %v689_v31, %s9727_s28  ;;  %15665 = vst [vmem:[#allocation242_spill] sm:$0xff] %v11548_v44  ;;  %v695_v31 = vld [vmem:[#allocation2 + $0x47] sm:$0xff]  ;;  %v698_v44 = vld [vmem:[#allocation2 + $0x6f] sm:$0xff] }
 0x30e   :  { %2099 = vrot.lane.b32.xlu0 %v692_v6, %s9727_s28 }
 0x30f   :  { %v11544_v37 = vpop.permute.xlu1 %1981 }
 0x310   :  { %v11554_v22 = vpop.permute.xlu0 %1987 }
 0x311   :  { %2097 = vrot.lane.b32.xlu1 %v691_v45, %s9727_s28  ;;  %15667 = vst [vmem:[#allocation244_spill] sm:$0xff] %v11554_v22  ;;  %v697_v45 = vld [vmem:[#allocation2 + $0x67] sm:$0xff]  ;;  %v700_v22 = vld [vmem:[#allocation2 + $0x8f] sm:$0xff] }
 0x312   :  { %2231 = vrot.lane.b32.xlu0 %v695_v31, %s9728_s29 }
 0x313   :  { %v11550_v46 = vpop.permute.xlu1 %1985 }
 0x314   :  { %15666 = vst [vmem:[#allocation243_spill] sm:$0xff] %v11550_v46  ;;  %v11560_v8 = vpop.permute.xlu0 %1991 }
 0x315   :  { %2101 = vrot.lane.b32.xlu1 %v693_v13, %s9727_s28  ;;  %15669 = vst [vmem:[#allocation246_spill] sm:$0xff] %v11560_v8  ;;  %v699_v13 = vld [vmem:[#allocation2 + $0x87] sm:$0xff]  ;;  %v702_v8 = vld [vmem:[#allocation2 + $0xaf] sm:$0xff] }
 0x316   :  { %2235 = vrot.lane.b32.xlu0 %v697_v45, %s9728_s29 }
 0x317   :  { %v11556_v25 = vpop.permute.xlu1 %1989 }
 0x318   :  { %15668 = vst [vmem:[#allocation245_spill] sm:$0xff] %v11556_v25  ;;  %v11566_v6 = vpop.permute.xlu0 %1995 }
 0x319   :  { %2233 = vrot.lane.b32.xlu1 %v696_v39, %s9728_s29  ;;  %15671 = vst [vmem:[#allocation248_spill] sm:$0xff] %v11566_v6  ;;  %v701_v39 = vld [vmem:[#allocation2 + $0xa7] sm:$0xff]  ;;  %v704_v6 = vld [vmem:[#allocation2 + $0xcf] sm:$0xff] }
 0x31a   :  { %2239 = vrot.lane.b32.xlu0 %v699_v13, %s9728_s29 }
 0x31b   :  { %v11562_v46 = vpop.permute.xlu1 %1993 }
 0x31c   :  { %15670 = vst [vmem:[#allocation247_spill] sm:$0xff] %v11562_v46  ;;  %v11572_v31 = vpop.permute.xlu0 %1999 }
 0x31d   :  { %2237 = vrot.lane.b32.xlu1 %v698_v44, %s9728_s29  ;;  %15673 = vst [vmem:[#allocation250_spill] sm:$0xff] %v11572_v31  ;;  %v703_v44 = vld [vmem:[#allocation2 + $0xc7] sm:$0xff]  ;;  %v706_v31 = vld [vmem:[#allocation2 + $0xef] sm:$0xff] }
 0x31e   :  { %2243 = vrot.lane.b32.xlu0 %v701_v39, %s9728_s29 }
 0x31f   :  { %v11568_v25 = vpop.permute.xlu1 %1997 }
 0x320   :  { %15672 = vst [vmem:[#allocation249_spill] sm:$0xff] %v11568_v25  ;;  %v11578_v45 = vpop.permute.xlu0 %2003 }
 0x321   :  { %2241 = vrot.lane.b32.xlu1 %v700_v22, %s9728_s29  ;;  %15675 = vst [vmem:[#allocation252_spill] sm:$0xff] %v11578_v45  ;;  %v705_v22 = vld [vmem:[#allocation2 + $0xe7] sm:$0xff]  ;;  %v708_v45 = vld [vmem:[#allocation2 + $0x10f] sm:$0xff] }
 0x322   :  { %2247 = vrot.lane.b32.xlu0 %v703_v44, %s9728_s29 }
 0x323   :  { %v11574_v4 = vpop.permute.xlu1 %2001 }
 0x324   :  { %15674 = vst [vmem:[#allocation251_spill] sm:$0xff] %v11574_v4  ;;  %v11584_v13 = vpop.permute.xlu0 %2007 }
 0x325   :  { %2245 = vrot.lane.b32.xlu1 %v702_v8, %s9728_s29  ;;  %15677 = vst [vmem:[#allocation254_spill] sm:$0xff] %v11584_v13  ;;  %v707_v8 = vld [vmem:[#allocation2 + $0x107] sm:$0xff]  ;;  %v710_v13 = vld [vmem:[#allocation2 + $0x12f] sm:$0xff] }
 0x326   :  { %2251 = vrot.lane.b32.xlu0 %v705_v22, %s9728_s29 }
 0x327   :  { %v11580_v46 = vpop.permute.xlu1 %2005 }
 0x328   :  { %15676 = vst [vmem:[#allocation253_spill] sm:$0xff] %v11580_v46  ;;  %v11590_v39 = vpop.permute.xlu0 %2011 }
 0x329   :  { %2249 = vrot.lane.b32.xlu1 %v704_v6, %s9728_s29  ;;  %15679 = vst [vmem:[#allocation256_spill] sm:$0xff] %v11590_v39  ;;  %v709_v6 = vld [vmem:[#allocation2 + $0x127] sm:$0xff]  ;;  %v712_v39 = vld [vmem:[#allocation2 + $0x14f] sm:$0xff] }
 0x32a   :  { %2255 = vrot.lane.b32.xlu0 %v707_v8, %s9728_s29 }
 0x32b   :  { %v11586_v25 = vpop.permute.xlu1 %2009 }
 0x32c   :  { %15678 = vst [vmem:[#allocation255_spill] sm:$0xff] %v11586_v25  ;;  %v11596_v44 = vpop.permute.xlu0 %2015 }
 0x32d   :  { %2253 = vrot.lane.b32.xlu1 %v706_v31, %s9728_s29  ;;  %15681 = vst [vmem:[#allocation258_spill] sm:$0xff] %v11596_v44  ;;  %v711_v31 = vld [vmem:[#allocation2 + $0x147] sm:$0xff]  ;;  %v714_v44 = vld [vmem:[#allocation2 + $0x16f] sm:$0xff] }
 0x32e   :  { %2259 = vrot.lane.b32.xlu0 %v709_v6, %s9728_s29 }
 0x32f   :  { %v11592_v4 = vpop.permute.xlu1 %2013 }
 0x330   :  { %15680 = vst [vmem:[#allocation257_spill] sm:$0xff] %v11592_v4  ;;  %v11602_v22 = vpop.permute.xlu0 %2019 }
 0x331   :  { %2257 = vrot.lane.b32.xlu1 %v708_v45, %s9728_s29  ;;  %15683 = vst [vmem:[#allocation260_spill] sm:$0xff] %v11602_v22  ;;  %v713_v45 = vld [vmem:[#allocation2 + $0x167] sm:$0xff]  ;;  %v716_v22 = vld [vmem:[#allocation2 + $0x18f] sm:$0xff] }
 0x332   :  { %2263 = vrot.lane.b32.xlu0 %v711_v31, %s9728_s29 }
 0x333   :  { %v11598_v46 = vpop.permute.xlu1 %2017 }
 0x334   :  { %15682 = vst [vmem:[#allocation259_spill] sm:$0xff] %v11598_v46  ;;  %v11608_v8 = vpop.permute.xlu0 %2023 }
 0x335   :  { %2261 = vrot.lane.b32.xlu1 %v710_v13, %s9728_s29  ;;  %15685 = vst [vmem:[#allocation262_spill] sm:$0xff] %v11608_v8  ;;  %v715_v13 = vld [vmem:[#allocation2 + $0x187] sm:$0xff]  ;;  %v718_v8 = vld [vmem:[#allocation2 + $0x1af] sm:$0xff] }
 0x336   :  { %2267 = vrot.lane.b32.xlu0 %v713_v45, %s9728_s29  ;;  %v719_v45 = vld [vmem:[#allocation2 + $0x1c7] sm:$0xff] }
 0x337   :  { %v11604_v25 = vpop.permute.xlu1 %2021 }
 0x338   :  { %15684 = vst [vmem:[#allocation261_spill] sm:$0xff] %v11604_v25  ;;  %v11614_v6 = vpop.permute.xlu0 %2027 }
 0x339   :  { %2265 = vrot.lane.b32.xlu1 %v712_v39, %s9728_s29  ;;  %15686 = vst [vmem:[#allocation263_spill] sm:$0xff] %v11614_v6  ;;  %v717_v39 = vld [vmem:[#allocation2 + $0x1a7] sm:$0xff] }
 0x33a   :  { %2271 = vrot.lane.b32.xlu0 %v715_v13, %s9728_s29 }
 0x33b   :  { %v11610_v4 = vpop.permute.xlu1 %2025 }
 0x33c   :  { %v11620_v31 = vpop.permute.xlu0 %2031 }
 0x33d   :  { %2269 = vrot.lane.b32.xlu1 %v714_v44, %s9728_s29  ;;  %15688 = vst [vmem:[#allocation265_spill] sm:$0xff] %v11620_v31  ;;  %v3457_v44 = vld [vmem:[%s15416_s1 + $0x18] sm:$0x7] }
 0x33e   :  { %2275 = vrot.lane.b32.xlu0 %v717_v39, %s9728_s29  ;;  %9152 = vmatprep.subr.msk.mxu0 %vm3658_vm1, %v3457_v44  ;;  %v3455_v39 = vld [vmem:[%s15416_s1 + $0x8] sm:$0xff] }
 0x33f   :  { %v11616_v46 = vpop.permute.xlu1 %2029  ;;  %9153 = vmatpush3.msk.msra.mxu0 %vm3658_vm1, %v3457_v44  ;;  %v3454_v44 = vld [vmem:[%s15416_s1] sm:$0xff] }
 0x340   :  { %15687 = vst [vmem:[#allocation264_spill] sm:$0xff] %v11616_v46  ;;  %v11634_v13 = vpop.permute.xlu0 %2035  ;;  %v722_v46 = vld [vmem:[#allocation2 + $0x1ef] sm:$0xff] }
 0x341   :  { %2273 = vrot.lane.b32.xlu1 %v716_v22, %s9728_s29  ;;  %v3456_v22 = vld [vmem:[%s15416_s1 + $0x10] sm:$0xff]  ;;  %15690 = vst [vmem:[#allocation267_spill] sm:$0xff] %v11634_v13  ;;  %s9729_s1 = smov 21  }
 0x342   :  { %9154 = vmatprep.subr.mxu0 %v3456_v22  ;;  %2279 = vrot.lane.b32.xlu0 %v719_v45, %s9728_s29  ;;  %v723_v45 = vld [vmem:[#allocation2 + $0x207] sm:$0xff] }
 0x343   :  { %v11622_v25 = vpop.permute.xlu1 %2033  ;;  %9155 = vmatpush3.msra.mxu0 %v3456_v22 }
 0x344   :  { %15689 = vst [vmem:[#allocation266_spill] sm:$0xff] %v11622_v25  ;;  %v720_v25 = vld [vmem:[#allocation2 + $0x1cf] sm:$0xff]  ;;  %9156 = vmatprep.subr.mxu0 %v3455_v39  ;;  %v11646_v13 = vpop.permute.xlu0 %2039 }
 0x345   :  { %2277 = vrot.lane.b32.xlu1 %v718_v8, %s9728_s29  ;;  %v721_v8 = vld [vmem:[#allocation2 + $0x1e7] sm:$0xff]  ;;  %9157 = vmatpush3.msra.mxu0 %v3455_v39  ;;  %15692 = vst [vmem:[#allocation269_spill] sm:$0xff] %v11646_v13  ;;  %v760_v13 = vld [vmem:[#allocation2 + $0x50] sm:$0xff] }
 0x346   :  { %9158 = vmatprep.subr.mxu0 %v3454_v44  ;;  %2283 = vrot.lane.b32.xlu0 %v721_v8, %s9728_s29  ;;  %v761_v8 = vld [vmem:[#allocation2 + $0x68] sm:$0xff] }
 0x347   :  { %v11636_v31 = vpop.permute.xlu1 %2037  ;;  %9159 = vmatpush3.msra.mxu0 %v3454_v44 }
 0x348   :  { %15691 = vst [vmem:[#allocation268_spill] sm:$0xff] %v11636_v31  ;;  %v11652_v31 = vpop.permute.xlu0 %2043 }
 0x349   :  { %2281 = vrot.lane.b32.xlu1 %v720_v25, %s9728_s29  ;;  %15694 = vst [vmem:[#allocation271_spill] sm:$0xff] %v11652_v31  ;;  %v759_v25 = vld [vmem:[#allocation2 + $0x48] sm:$0xff] }
 0x34a   :  { %2287 = vrot.lane.b32.xlu0 %v723_v45, %s9728_s29  ;;  %v762_v45 = vld [vmem:[#allocation2 + $0x70] sm:$0xff] }
 0x34b   :  { %v11648_v22 = vpop.permute.xlu1 %2041 }
 0x34c   :  { %15693 = vst [vmem:[#allocation270_spill] sm:$0xff] %v11648_v22  ;;  %v11658_v6 = vpop.permute.xlu0 %2047 }
 0x34d   :  { %2285 = vrot.lane.b32.xlu1 %v722_v46, %s9728_s29  ;;  %15696 = vst [vmem:[#allocation273_spill] sm:$0xff] %v11658_v6 }
 0x34e   :  { %2489 = vrot.lane.b32.xlu0 %v760_v13, %s9729_s1  ;;  %v763_v13 = vld [vmem:[#allocation2 + $0x88] sm:$0xff] }
 0x34f   :  { %v11654_v39 = vpop.permute.xlu1 %2045 }
 0x350   :  { %15695 = vst [vmem:[#allocation272_spill] sm:$0xff] %v11654_v39  ;;  %v11665_v46 = vpop.permute.xlu0 %2051  ;;  %v788_v39 = vld [vmem:[#allocation2 + $0x210] sm:$0xff] }
 0x351   :  { %2487 = vrot.lane.b32.xlu1 %v759_v25, %s9729_s1  ;;  %15698 = vst [vmem:[#allocation275_spill] sm:$0xff] %v11665_v46 }
 0x352   :  { %2745 = vrot.lane.b32.xlu0 %v11282_v58, %s9730_s20  ;;  %v764_v58 = vld [vmem:[#allocation2 + $0x90] sm:$0xff] }
 0x353   :  { %v11660_v22 = vpop.permute.xlu1 %2049 }
 0x354   :  { %15697 = vst [vmem:[#allocation274_spill] sm:$0xff] %v11660_v22  ;;  %v11672_v25 = vpop.permute.xlu0 %2055 }
 0x355   :  { %2743 = vrot.lane.b32.xlu1 %v11278_v29, %s9730_s20  ;;  %15700 = vst [vmem:[#allocation277_spill] sm:$0xff] %v11672_v25 }
 0x356   :  { %2493 = vrot.lane.b32.xlu0 %v762_v45, %s9729_s1  ;;  %v765_v45 = vld [vmem:[#allocation2 + $0xa8] sm:$0xff] }
 0x357   :  { %v11667_v44 = vpop.permute.xlu1 %2053 }
 0x358   :  { %15699 = vst [vmem:[#allocation276_spill] sm:$0xff] %v11667_v44  ;;  %v11679_v29 = vpop.permute.xlu0 %2059 }
 0x359   :  { %2491 = vrot.lane.b32.xlu1 %v761_v8, %s9729_s1  ;;  %15702 = vst [vmem:[#allocation279_spill] sm:$0xff] %v11679_v29 }
 0x35a   :  { %2749 = vrot.lane.b32.xlu0 %v11294_v41, %s9730_s20  ;;  %v766_v41 = vld [vmem:[#allocation2 + $0xb0] sm:$0xff] }
 0x35b   :  { %v11674_v22 = vpop.permute.xlu1 %2057 }
 0x35c   :  { %15701 = vst [vmem:[#allocation278_spill] sm:$0xff] %v11674_v22  ;;  %v11686_v8 = vpop.permute.xlu0 %2063  ;;  %v724_v22 = vld [vmem:[#allocation2 + $0x20f] sm:$0xff] }
 0x35d   :  { %2747 = vrot.lane.b32.xlu1 %v11290_v30, %s9730_s20  ;;  %15704 = vst [vmem:[#allocation281_spill] sm:$0xff] %v11686_v8 }
 0x35e   :  { %2497 = vrot.lane.b32.xlu0 %v764_v58, %s9729_s1  ;;  %v767_v58 = vld [vmem:[#allocation2 + $0xc8] sm:$0xff] }
 0x35f   :  { %v11681_v46 = vpop.permute.xlu1 %2061 }
 0x360   :  { %15703 = vst [vmem:[#allocation280_spill] sm:$0xff] %v11681_v46  ;;  %v11693_v30 = vpop.permute.xlu0 %2067 }
 0x361   :  { %2495 = vrot.lane.b32.xlu1 %v763_v13, %s9729_s1  ;;  %15706 = vst [vmem:[#allocation283_spill] sm:$0xff] %v11693_v30 }
 0x362   :  { %2753 = vrot.lane.b32.xlu0 %v11306_v24, %s9730_s20  ;;  %v768_v24 = vld [vmem:[#allocation2 + $0xd0] sm:$0xff] }
 0x363   :  { %v11688_v25 = vpop.permute.xlu1 %2065 }
 0x364   :  { %15705 = vst [vmem:[#allocation282_spill] sm:$0xff] %v11688_v25  ;;  %v11700_v13 = vpop.permute.xlu0 %2071 }
 0x365   :  { %2751 = vrot.lane.b32.xlu1 %v11302_v36, %s9730_s20  ;;  %15708 = vst [vmem:[#allocation285_spill] sm:$0xff] %v11700_v13 }
 0x366   :  { %2501 = vrot.lane.b32.xlu0 %v766_v41, %s9729_s1  ;;  %v769_v41 = vld [vmem:[#allocation2 + $0xe8] sm:$0xff] }
 0x367   :  { %v11695_v29 = vpop.permute.xlu1 %2069 }
 0x368   :  { %15707 = vst [vmem:[#allocation284_spill] sm:$0xff] %v11695_v29  ;;  %v11707_v36 = vpop.permute.xlu0 %2075 }
 0x369   :  { %2499 = vrot.lane.b32.xlu1 %v765_v45, %s9729_s1  ;;  %15710 = vst [vmem:[#allocation287_spill] sm:$0xff] %v11707_v36 }
 0x36a   :  { %2757 = vrot.lane.b32.xlu0 %v11318_v38, %s9730_s20  ;;  %v770_v38 = vld [vmem:[#allocation2 + $0xf0] sm:$0xff] }
 0x36b   :  { %v11702_v8 = vpop.permute.xlu1 %2073 }
 0x36c   :  { %15709 = vst [vmem:[#allocation286_spill] sm:$0xff] %v11702_v8  ;;  %v11714_v45 = vpop.permute.xlu0 %2079 }
 0x36d   :  { %2755 = vrot.lane.b32.xlu1 %v11314_v7, %s9730_s20  ;;  %15712 = vst [vmem:[#allocation289_spill] sm:$0xff] %v11714_v45 }
 0x36e   :  { %2505 = vrot.lane.b32.xlu0 %v768_v24, %s9729_s1  ;;  %v771_v24 = vld [vmem:[#allocation2 + $0x108] sm:$0xff] }
 0x36f   :  { %v11709_v30 = vpop.permute.xlu1 %2077 }
 0x370   :  { %15711 = vst [vmem:[#allocation288_spill] sm:$0xff] %v11709_v30  ;;  %v11721_v7 = vpop.permute.xlu0 %2083 }
 0x371   :  { %2503 = vrot.lane.b32.xlu1 %v767_v58, %s9729_s1  ;;  %15714 = vst [vmem:[#allocation291_spill] sm:$0xff] %v11721_v7 }
 0x372   :  { %2761 = vrot.lane.b32.xlu0 %v11330_v20, %s9730_s20  ;;  %v772_v20 = vld [vmem:[#allocation2 + $0x110] sm:$0xff] }
 0x373   :  { %v11716_v13 = vpop.permute.xlu1 %2081 }
 0x374   :  { %15713 = vst [vmem:[#allocation290_spill] sm:$0xff] %v11716_v13  ;;  %v11728_v58 = vpop.permute.xlu0 %2087 }
 0x375   :  { %2759 = vrot.lane.b32.xlu1 %v11326_v60, %s9730_s20  ;;  %15716 = vst [vmem:[#allocation293_spill] sm:$0xff] %v11728_v58 }
 0x376   :  { %2509 = vrot.lane.b32.xlu0 %v770_v38, %s9729_s1  ;;  %v773_v38 = vld [vmem:[#allocation2 + $0x128] sm:$0xff] }
 0x377   :  { %v11723_v36 = vpop.permute.xlu1 %2085 }
 0x378   :  { %15715 = vst [vmem:[#allocation292_spill] sm:$0xff] %v11723_v36  ;;  %v11735_v60 = vpop.permute.xlu0 %2091 }
 0x379   :  { %2507 = vrot.lane.b32.xlu1 %v769_v41, %s9729_s1  ;;  %15718 = vst [vmem:[#allocation295_spill] sm:$0xff] %v11735_v60 }
 0x37a   :  { %2765 = vrot.lane.b32.xlu0 %v11342_v23, %s9730_s20  ;;  %v774_v23 = vld [vmem:[#allocation2 + $0x130] sm:$0xff] }
 0x37b   :  { %v11730_v45 = vpop.permute.xlu1 %2089 }
 0x37c   :  { %15717 = vst [vmem:[#allocation294_spill] sm:$0xff] %v11730_v45  ;;  %v11742_v41 = vpop.permute.xlu0 %2095 }
 0x37d   :  { %2763 = vrot.lane.b32.xlu1 %v11338_v53, %s9730_s20  ;;  %15720 = vst [vmem:[#allocation297_spill] sm:$0xff] %v11742_v41 }
 0x37e   :  { %2513 = vrot.lane.b32.xlu0 %v772_v20, %s9729_s1  ;;  %v775_v20 = vld [vmem:[#allocation2 + $0x148] sm:$0xff] }
 0x37f   :  { %v11737_v7 = vpop.permute.xlu1 %2093 }
 0x380   :  { %15719 = vst [vmem:[#allocation296_spill] sm:$0xff] %v11737_v7  ;;  %v11749_v53 = vpop.permute.xlu0 %2099 }
 0x381   :  { %2511 = vrot.lane.b32.xlu1 %v771_v24, %s9729_s1  ;;  %15722 = vst [vmem:[#allocation299_spill] sm:$0xff] %v11749_v53 }
 0x382   :  { %2769 = vrot.lane.b32.xlu0 %v11354_v28, %s9730_s20  ;;  %v776_v28 = vld [vmem:[#allocation2 + $0x150] sm:$0xff] }
 0x383   :  { %v11744_v58 = vpop.permute.xlu1 %2097 }
 0x384   :  { %15721 = vst [vmem:[#allocation298_spill] sm:$0xff] %v11744_v58  ;;  %v11756_v24 = vpop.permute.xlu0 %2231 }
 0x385   :  { %2767 = vrot.lane.b32.xlu1 %v11350_v54, %s9730_s20 }
 0x386   :  { %2517 = vrot.lane.b32.xlu0 %v774_v23, %s9729_s1  ;;  %v777_v23 = vld [vmem:[#allocation2 + $0x168] sm:$0xff] }
 0x387   :  { %v11751_v60 = vpop.permute.xlu1 %2101 }
 0x388   :  { %15723 = vst [vmem:[#allocation300_spill] sm:$0xff] %v11751_v60  ;;  %v11763_v54 = vpop.permute.xlu0 %2235 }
 0x389   :  { %2515 = vrot.lane.b32.xlu1 %v773_v38, %s9729_s1 }
 0x38a   :  { %2773 = vrot.lane.b32.xlu0 %v11366_v3, %s9730_s20  ;;  %v778_v3 = vld [vmem:[#allocation2 + $0x170] sm:$0xff] }
 0x38b   :  { %v11758_v41 = vpop.permute.xlu1 %2233 }
 0x38c   :  { %v11770_v38 = vpop.permute.xlu0 %2239 }
 0x38d   :  { %2771 = vrot.lane.b32.xlu1 %v11362_v18, %s9730_s20 }
 0x38e   :  { %2521 = vrot.lane.b32.xlu0 %v776_v28, %s9729_s1  ;;  %v779_v28 = vld [vmem:[#allocation2 + $0x188] sm:$0xff] }
 0x38f   :  { %v11765_v53 = vpop.permute.xlu1 %2237 }
 0x390   :  { %v11777_v18 = vpop.permute.xlu0 %2243 }
 0x391   :  { %2519 = vrot.lane.b32.xlu1 %v775_v20, %s9729_s1 }
 0x392   :  { %2777 = vrot.lane.b32.xlu0 %v11378_v16, %s9730_s20  ;;  %v780_v16 = vld [vmem:[#allocation2 + $0x190] sm:$0xff] }
 0x393   :  { %v11772_v60 = vpop.permute.xlu1 %2241 }
 0x394   :  { %v11784_v20 = vpop.permute.xlu0 %2247 }
 0x395   :  { %2775 = vrot.lane.b32.xlu1 %v11374_v40, %s9730_s20 }
 0x396   :  { %2525 = vrot.lane.b32.xlu0 %v778_v3, %s9729_s1  ;;  %v781_v3 = vld [vmem:[#allocation2 + $0x1a8] sm:$0xff] }
 0x397   :  { %v11779_v58 = vpop.permute.xlu1 %2245 }
 0x398   :  { %v11791_v40 = vpop.permute.xlu0 %2251 }
 0x399   :  { %2523 = vrot.lane.b32.xlu1 %v777_v23, %s9729_s1 }
 0x39a   :  { %2781 = vrot.lane.b32.xlu0 %v11390_v5, %s9730_s20  ;;  %v782_v5 = vld [vmem:[#allocation2 + $0x1b0] sm:$0xff] }
 0x39b   :  { %v11786_v7 = vpop.permute.xlu1 %2249 }
 0x39c   :  { %v11798_v23 = vpop.permute.xlu0 %2255 }
 0x39d   :  { %2779 = vrot.lane.b32.xlu1 %v11386_v26, %s9730_s20 }
 0x39e   :  { %2529 = vrot.lane.b32.xlu0 %v780_v16, %s9729_s1  ;;  %v783_v16 = vld [vmem:[#allocation2 + $0x1c8] sm:$0xff] }
 0x39f   :  { %v11793_v45 = vpop.permute.xlu1 %2253 }
 0x3a0   :  { %v11805_v26 = vpop.permute.xlu0 %2259 }
 0x3a1   :  { %2527 = vrot.lane.b32.xlu1 %v779_v28, %s9729_s1 }
 0x3a2   :  { %2785 = vrot.lane.b32.xlu0 %v11402_v21, %s9730_s20  ;;  %v784_v21 = vld [vmem:[#allocation2 + $0x1d0] sm:$0xff] }
 0x3a3   :  { %v11800_v36 = vpop.permute.xlu1 %2257 }
 0x3a4   :  { %v11812_v28 = vpop.permute.xlu0 %2263 }
 0x3a5   :  { %2783 = vrot.lane.b32.xlu1 %v11398_v48, %s9730_s20 }
 0x3a6   :  { %2533 = vrot.lane.b32.xlu0 %v782_v5, %s9729_s1  ;;  %v785_v5 = vld [vmem:[#allocation2 + $0x1e8] sm:$0xff] }
 0x3a7   :  { %v11807_v13 = vpop.permute.xlu1 %2261 }
 0x3a8   :  { %v11819_v48 = vpop.permute.xlu0 %2267 }
 0x3a9   :  { %2531 = vrot.lane.b32.xlu1 %v781_v3, %s9729_s1 }
 0x3aa   :  { %2789 = vrot.lane.b32.xlu0 %v11414_v15, %s9730_s20  ;;  %v786_v15 = vld [vmem:[#allocation2 + $0x1f0] sm:$0xff] }
 0x3ab   :  { %v11814_v30 = vpop.permute.xlu1 %2265 }
 0x3ac   :  { %v11826_v3 = vpop.permute.xlu0 %2271 }
 0x3ad   :  { %2787 = vrot.lane.b32.xlu1 %v11410_v14, %s9730_s20 }
 0x3ae   :  { %2537 = vrot.lane.b32.xlu0 %v784_v21, %s9729_s1 }
 0x3af   :  { %v11821_v8 = vpop.permute.xlu1 %2269 }
 0x3b0   :  { %v11833_v14 = vpop.permute.xlu0 %2275 }
 0x3b1   :  { %2535 = vrot.lane.b32.xlu1 %v783_v16, %s9729_s1 }
 0x3b2   :  { %2793 = vrot.lane.b32.xlu0 %v11426_v12, %s9730_s20 }
 0x3b3   :  { %v11828_v29 = vpop.permute.xlu1 %2273 }
 0x3b4   :  { %v11840_v16 = vpop.permute.xlu0 %2279 }
 0x3b5   :  { %2791 = vrot.lane.b32.xlu1 %v11422_v42, %s9730_s20  ;;  %v310_v42 = vld [vmem:[#allocation2 + $0x7] sm:$0xff] }
 0x3b6   :  { %2541 = vrot.lane.b32.xlu0 %v786_v15, %s9729_s1  ;;  %v2935_v12 = vsel %vm100_vm0, %v310_v42, %v10662_v57  ;;  %v787_v15 = vld [vmem:[#allocation2 + $0x208] sm:$0xff] }
 0x3b7   :  { %v11835_v25 = vpop.permute.xlu1 %2277 }
 0x3b8   :  { %v11847_v21 = vpop.permute.xlu0 %2283 }
 0x3b9   :  { %2539 = vrot.lane.b32.xlu1 %v785_v5, %s9729_s1  ;;  %v311_v5 = vld [vmem:[#allocation2 + $0xf] sm:$0xff] }
 0x3ba   :  { %2797 = vrot.lane.b32.xlu0 %v11438_v0, %s9730_s20  ;;  %v2936_v57 = vsel %vm100_vm0, %v311_v5, %v10668_v61 }
 0x3bb   :  { %v11842_v46 = vpop.permute.xlu1 %2281 }
 0x3bc   :  { %v11858_v6 = vpop.permute.xlu0 %2287 }
 0x3bd   :  { %2795 = vrot.lane.b32.xlu1 %v11434_v33, %s9730_s20  ;;  %v3000_v33 = vsel %vm2999_vm2, %v2935_v12, %v10862_v35  ;;  %v3001_v35 = vsel %vm2999_vm2, %v2936_v57, %v10864_v47 }
 0x3be   :  { %v3065_v31 = vsel %vm3064_vm3, %v3000_v33, %v11062_v51  ;;  %2543 = vrot.lane.b32.xlu0 %v787_v15, %s9729_s1  ;;  %v3066_v51 = vsel %vm3064_vm3, %v3001_v35, %v11064_v9  ;;  %v9644_v9 = vld [vmem:[#allocation2 + $0x27] sm:$0xff]  ;;  %v726_v33 = vld [vmem:[#allocation2 + $0x22f] sm:$0xff] }
 0x3bf   :  { %v11849_v44 = vpop.permute.xlu1 %2285  ;;  %v3130_v42 = vsel %vm3129_vm4, %v3065_v31, %v11254_v49  ;;  %v3131_v49 = vsel %vm3129_vm4, %v3066_v51, %v11256_v34  ;;  %v725_v34 = vld [vmem:[#allocation2 + $0x227] sm:$0xff]  ;;  %v790_v51 = vld [vmem:[#allocation2 + $0x230] sm:$0xff] }
 0x3c0   :  { %v2490_v12 = vpop.permute.xlu0 %2489  ;;  %v789_v35 = vld [vmem:[#allocation2 + $0x228] sm:$0xff] }
 0x3c1   :  { %2289 = vrot.lane.b32.xlu1 %v724_v22, %s9728_s29  ;;  %v3195_v22 = vsel %vm3194_vm5, %v3130_v42, %v11536_v62  ;;  %v3196_v62 = vsel %vm3194_vm5, %v3131_v49, %v11538_v55 }
 0x3c2   :  { %v3260_v61 = vsel %vm3259_vm6, %v3195_v22, %v11756_v24  ;;  %2799 = vrot.lane.b32.xlu0 %v11446_v56, %s9730_s20  ;;  %v2937_v24 = vsel %vm100_vm0, %v9644_v9, %v10664_v59  ;;  %v3261_v5 = vsel %vm3259_vm6, %v3196_v62, %v11758_v41  ;;  %v9645_v41 = vld [vmem:[#allocation2 + $0x2f] sm:$0xff] }
 0x3c3   :  { %v2488_v0 = vpop.permute.xlu1 %2487  ;;  %v3002_v55 = vsel %vm2999_vm2, %v2937_v24, %v10876_v11  ;;  %v3326_v56 = vsel %vm3324_vm7, %v3261_v5, %v2490_v12  ;;  %v9647_v5 = vld [vmem:[#allocation2 + $0x4f] sm:$0xff] }
 0x3c4   :  { %v3325_v31 = vsel %vm3324_vm7, %v3260_v61, %v2488_v0  ;;  %v2746_v15 = vpop.permute.xlu0 %2745  ;;  %v3067_v0 = vsel %vm3064_vm3, %v3002_v55, %v11068_v52  ;;  %v15725_v55 = vld [vmem:[#allocation182_spill] sm:$0xff] }
 0x3c5   :  { %2545 = vrot.lane.b32.xlu1 %v788_v39, %s9729_s1  ;;  %v3391_v59 = vsel %vm3389_vm8, %v3326_v56, %v2746_v15  ;;  %v3132_v42 = vsel %vm3129_vm4, %v3067_v0, %v11260_v1  ;;  %v727_v0 = vld [vmem:[#allocation2 + $0x287] sm:$0xff] }
 0x3c6   :  { %2291 = vrot.lane.b32.xlu0 %v725_v34, %s9728_s29  ;;  %v3197_v52 = vsel %vm3194_vm5, %v3132_v42, %v11542_v10  ;;  %v728_v42 = vld [vmem:[#allocation2 + $0x28f] sm:$0xff] }
 0x3c7   :  { %v2744_v47 = vpop.permute.xlu1 %2743 }
 0x3c8   :  { %v3390_v39 = vsel %vm3389_vm8, %v3325_v31, %v2744_v47  ;;  %v2494_v1 = vpop.permute.xlu0 %2493  ;;  %v9646_v31 = vld [vmem:[#allocation2 + $0x47] sm:$0xff] }
 0x3c9   :  { %2801 = vrot.lane.b32.xlu1 %v11450_v17, %s9730_s20  ;;  %9160 = vmatprep.mubr.msk.f32.mxu0 %vm3465_vm9, %v3390_v39  ;;  %v2938_v17 = vsel %vm100_vm0, %v9645_v41, %v10670_v63  ;;  %v3262_v63 = vsel %vm3259_vm6, %v3197_v52, %v11763_v54  ;;  %v854_v39 = vld [vmem:[#allocation2 + $0x231] sm:$0xff] }
 0x3ca   :  { %9161 = vmatmul.mubr.msk.f32.vlgmr.msra.gmra.mxu0 %vm3465_vm9, %v3391_v59  ;;  %v3003_v11 = vsel %vm2999_vm2, %v2938_v17, %v10878_v27  ;;  %2547 = vrot.lane.b32.xlu0 %v789_v35, %s9729_s1  ;;  %v15728_v59 = vld [vmem:[#allocation123_spill] sm:$0xff] }
 0x3cb   :  { %v2492_v57 = vpop.permute.xlu1 %2491  ;;  %v3068_v22 = vsel %vm3064_vm3, %v3003_v11, %v11070_v50  ;;  %v2939_v50 = vsel %vm100_vm0, %v9646_v31, %v10674_v2  ;;  %v15729_v11 = vld [vmem:[#allocation183_spill] sm:$0xff] }
 0x3cc   :  { %v3133_v61 = vsel %vm3129_vm4, %v3068_v22, %v11262_v32  ;;  %v3327_v12 = vsel %vm3324_vm7, %v3262_v63, %v2492_v57  ;;  %v853_v32 = vld [vmem:[#allocation2 + $0x229] sm:$0xff]  ;;  %v3004_v47 = vsel %vm2999_vm2, %v2939_v50, %v10882_v19  ;;  %v2750_v62 = vpop.permute.xlu0 %2749  ;;  %v15726_v19 = vld [vmem:[#allocation64_spill] sm:$0xff] }
 0x3cd   :  { %2293 = vrot.lane.b32.xlu1 %v726_v33, %s9728_s29  ;;  %v3198_v10 = vsel %vm3194_vm5, %v3133_v61, %v11544_v37  ;;  %v3069_v9 = vsel %vm3064_vm3, %v3004_v47, %v11074_v43  ;;  %v15727_v33 = vld [vmem:[#allocation242_spill] sm:$0xff]  ;;  %v15730_v63 = vld [vmem:[#allocation243_spill] sm:$0xff]  ;;  %v15733_v47 = vld [vmem:[#allocation124_spill] sm:$0xff] }
 0x3ce   :  { %v3263_v54 = vsel %vm3259_vm6, %v3198_v10, %v11765_v53  ;;  %v15724_v53 = vld [vmem:[#allocation5_spill] sm:$0xff]  ;;  %v3134_v56 = vsel %vm3129_vm4, %v3069_v9, %v15725_v55  ;;  %2803 = vrot.lane.b32.xlu0 %v853_v32, %s9730_s20  ;;  %v791_v10 = vld [vmem:[#allocation2 + $0x288] sm:$0xff]  ;;  %v792_v32 = vld [vmem:[#allocation2 + $0x290] sm:$0xff] }
 0x3cf   :  { %v2748_v27 = vpop.permute.xlu1 %2747  ;;  %v3328_v37 = vsel %vm3324_vm7, %v3263_v54, %v2494_v1  ;;  %v2940_v34 = vsel %vm100_vm0, %v9647_v5, %v15724_v53  ;;  %v3199_v43 = vsel %vm3194_vm5, %v3134_v56, %v15727_v33  ;;  %v9648_v61 = vld [vmem:[#allocation2 + $0x67] sm:$0xff]  ;;  %v9649_v9 = vld [vmem:[#allocation2 + $0x6f] sm:$0xff]  ;;  %v15737_v55 = vld [vmem:[#allocation244_spill] sm:$0xff] }
 0x3d0   :  { %v3392_v49 = vsel %vm3389_vm8, %v3327_v12, %v2748_v27  ;;  %v3393_v2 = vsel %vm3389_vm8, %v3328_v37, %v2750_v62  ;;  %v3005_v15 = vsel %vm2999_vm2, %v2940_v34, %v15726_v19  ;;  %v3264_v41 = vsel %vm3259_vm6, %v3199_v43, %v11770_v38  ;;  %v2498_v17 = vpop.permute.xlu0 %2497  ;;  %v15731_v12 = vld [vmem:[#allocation6_spill] sm:$0xff] }
 0x3d1   :  { %2549 = vrot.lane.b32.xlu1 %v790_v51, %s9729_s1  ;;  %9163 = vmatprep.mubr.msk.f32.mxu0 %vm3465_vm9, %v3392_v49  ;;  %v3070_v57 = vsel %vm3064_vm3, %v3005_v15, %v15728_v59  ;;  %v2941_v27 = vsel %vm100_vm0, %v9648_v61, %v15731_v12  ;;  %v15732_v49 = vld [vmem:[#allocation65_spill] sm:$0xff]  ;;  %v15736_v53 = vld [vmem:[#allocation66_spill] sm:$0xff]  ;;  %v856_v59 = vld [vmem:[#allocation2 + $0x291] sm:$0xff] }
 0x3d2   :  { %9164 = vmatmul.mubr.msk.f32.gmra.mxu0 %vm3465_vm9, %v3393_v2  ;;  %v3135_v52 = vsel %vm3129_vm4, %v3070_v57, %v15729_v11  ;;  %2295 = vrot.lane.b32.xlu0 %v727_v0, %s9728_s29  ;;  %v3006_v31 = vsel %vm2999_vm2, %v2941_v27, %v15732_v49  ;;  %v855_v19 = vld [vmem:[#allocation2 + $0x289] sm:$0xff]  ;;  %v15738_v15 = vld [vmem:[#allocation125_spill] sm:$0xff] }
 0x3d3   :  { %v2496_v24 = vpop.permute.xlu1 %2495  ;;  %v3200_v1 = vsel %vm3194_vm5, %v3135_v52, %v15730_v63  ;;  %v3071_v37 = vsel %vm3064_vm3, %v3006_v31, %v15733_v47  ;;  %v15739_v57 = vld [vmem:[#allocation185_spill] sm:$0xff]  ;;  %v15741_v63 = vld [vmem:[#allocation8_spill] sm:$0xff]  ;;  %v15742_v61 = vld [vmem:[#allocation67_spill] sm:$0xff] }
 0x3d4   :  { %v3329_v35 = vsel %vm3324_vm7, %v3264_v41, %v2496_v24  ;;  %v3265_v38 = vsel %vm3259_vm6, %v3200_v1, %v11772_v60  ;;  %v2754_v54 = vpop.permute.xlu0 %2753  ;;  %v15734_v60 = vld [vmem:[#allocation7_spill] sm:$0xff]  ;;  %v15735_v24 = vld [vmem:[#allocation184_spill] sm:$0xff]  ;;  %v15740_v11 = vld [vmem:[#allocation245_spill] sm:$0xff] }
 0x3d5   :  { %2805 = vrot.lane.b32.xlu1 %v854_v39, %s9730_s20  ;;  %v3330_v50 = vsel %vm3324_vm7, %v3265_v38, %v2498_v17  ;;  %v2942_v2 = vsel %vm100_vm0, %v9649_v9, %v15734_v60  ;;  %v3136_v5 = vsel %vm3129_vm4, %v3071_v37, %v15735_v24  ;;  %v15743_v49 = vld [vmem:[#allocation126_spill] sm:$0xff] }
 0x3d6   :  { %v3395_v62 = vsel %vm3389_vm8, %v3330_v50, %v2754_v54  ;;  %2551 = vrot.lane.b32.xlu0 %v791_v10, %s9729_s1  ;;  %v3007_v34 = vsel %vm2999_vm2, %v2942_v2, %v15736_v53  ;;  %v3201_v56 = vsel %vm3194_vm5, %v3136_v5, %v15737_v55  ;;  %v730_v10 = vld [vmem:[#allocation2 + $0x2af] sm:$0xff] }
 0x3d7   :  { %v2752_v22 = vpop.permute.xlu1 %2751  ;;  %v3072_v33 = vsel %vm3064_vm3, %v3007_v34, %v15738_v15  ;;  %v3266_v43 = vsel %vm3259_vm6, %v3201_v56, %v11777_v18  ;;  %v15745_v37 = vld [vmem:[#allocation186_spill] sm:$0xff]  ;;  %v15748_v5 = vld [vmem:[#allocation127_spill] sm:$0xff] }
 0x3d8   :  { %v3394_v51 = vsel %vm3389_vm8, %v3329_v35, %v2752_v22  ;;  %v2502_v0 = vpop.permute.xlu0 %2501  ;;  %v3137_v41 = vsel %vm3129_vm4, %v3072_v33, %v15739_v57  ;;  %v9650_v22 = vld [vmem:[#allocation2 + $0x87] sm:$0xff]  ;;  %v794_v56 = vld [vmem:[#allocation2 + $0x2b0] sm:$0xff] }
 0x3d9   :  { %2297 = vrot.lane.b32.xlu1 %v728_v42, %s9728_s29  ;;  %9166 = vmatprep.mubr.msk.f32.mxu0 %vm3465_vm9, %v3394_v51  ;;  %v3202_v52 = vsel %vm3194_vm5, %v3137_v41, %v15740_v11  ;;  %v2943_v1 = vsel %vm100_vm0, %v9650_v22, %v15741_v63  ;;  %v729_v51 = vld [vmem:[#allocation2 + $0x2a7] sm:$0xff] }
 0x3da   :  { %9167 = vmatmul.mubr.msk.f32.gmra.mxu0 %vm3465_vm9, %v3395_v62  ;;  %2807 = vrot.lane.b32.xlu0 %v855_v19, %s9730_s20  ;;  %v3267_v18 = vsel %vm3259_vm6, %v3202_v52, %v11779_v58  ;;  %v3008_v12 = vsel %vm2999_vm2, %v2943_v1, %v15742_v61  ;;  %v15744_v58 = vld [vmem:[#allocation9_spill] sm:$0xff]  ;;  %v15747_v60 = vld [vmem:[#allocation246_spill] sm:$0xff]  ;;  %v15749_v19 = vld [vmem:[#allocation187_spill] sm:$0xff] }
 0x3db   :  { %v2500_v39 = vpop.permute.xlu1 %2499  ;;  %v3332_v27 = vsel %vm3324_vm7, %v3267_v18, %v2502_v0  ;;  %v3073_v31 = vsel %vm3064_vm3, %v3008_v12, %v15743_v49  ;;  %v793_v24 = vld [vmem:[#allocation2 + $0x2a8] sm:$0xff]  ;;  %v15750_v0 = vld [vmem:[#allocation247_spill] sm:$0xff]  ;;  %v15752_v52 = vld [vmem:[#allocation69_spill] sm:$0xff] }
 0x3dc   :  { %v3331_v17 = vsel %vm3324_vm7, %v3266_v43, %v2500_v39  ;;  %v2758_v38 = vpop.permute.xlu0 %2757  ;;  %v3138_v62 = vsel %vm3129_vm4, %v3073_v31, %v15745_v37  ;;  %v15746_v39 = vld [vmem:[#allocation68_spill] sm:$0xff]  ;;  %v9652_v41 = vld [vmem:[#allocation2 + $0xa7] sm:$0xff] }
 0x3dd   :  { %2553 = vrot.lane.b32.xlu1 %v792_v32, %s9729_s1  ;;  %v3397_v50 = vsel %vm3389_vm8, %v3332_v27, %v2758_v38  ;;  %v9651_v32 = vld [vmem:[#allocation2 + $0x8f] sm:$0xff]  ;;  %v3203_v2 = vsel %vm3194_vm5, %v3138_v62, %v15747_v60  ;;  %v15753_v18 = vld [vmem:[#allocation128_spill] sm:$0xff]  ;;  %v15759_v60 = vld [vmem:[#allocation189_spill] sm:$0xff] }
 0x3de   :  { %v2944_v47 = vsel %vm100_vm0, %v9651_v32, %v15744_v58  ;;  %2299 = vrot.lane.b32.xlu0 %v729_v51, %s9728_s29  ;;  %v3268_v34 = vsel %vm3259_vm6, %v3203_v2, %v11784_v20  ;;  %v857_v11 = vld [vmem:[#allocation2 + $0x2a9] sm:$0xff]  ;;  %v858_v1 = vld [vmem:[#allocation2 + $0x2b1] sm:$0xff] }
 0x3df   :  { %v2756_v42 = vpop.permute.xlu1 %2755  ;;  %v3009_v9 = vsel %vm2999_vm2, %v2944_v47, %v15746_v39  ;;  %v9653_v27 = vld [vmem:[#allocation2 + $0xaf] sm:$0xff]  ;;  %v731_v58 = vld [vmem:[#allocation2 + $0x2c7] sm:$0xff] }
 0x3e0   :  { %v3396_v35 = vsel %vm3389_vm8, %v3331_v17, %v2756_v42  ;;  %v3074_v53 = vsel %vm3064_vm3, %v3009_v9, %v15748_v5  ;;  %v2506_v55 = vpop.permute.xlu0 %2505  ;;  %v15751_v17 = vld [vmem:[#allocation10_spill] sm:$0xff]  ;;  %v15758_v47 = vld [vmem:[#allocation129_spill] sm:$0xff] }
 0x3e1   :  { %2809 = vrot.lane.b32.xlu1 %v856_v59, %s9730_s20  ;;  %9169 = vmatprep.mubr.msk.f32.mxu0 %vm3465_vm9, %v3396_v35  ;;  %v3139_v15 = vsel %vm3129_vm4, %v3074_v53, %v15749_v19  ;;  %v2945_v42 = vsel %vm100_vm0, %v9652_v41, %v15751_v17  ;;  %v15756_v31 = vld [vmem:[#allocation70_spill] sm:$0xff]  ;;  %v15760_v53 = vld [vmem:[#allocation249_spill] sm:$0xff]  ;;  %v15761_v19 = vld [vmem:[#allocation12_spill] sm:$0xff] }
 0x3e2   :  { %9170 = vmatmul.mubr.msk.f32.gmra.mxu0 %vm3465_vm9, %v3397_v50  ;;  %v3204_v59 = vsel %vm3194_vm5, %v3139_v15, %v15750_v0  ;;  %2555 = vrot.lane.b32.xlu0 %v793_v24, %s9729_s1  ;;  %v3010_v35 = vsel %vm2999_vm2, %v2945_v42, %v15752_v52  ;;  %v732_v9 = vld [vmem:[#allocation2 + $0x2cf] sm:$0xff] }
 0x3e3   :  { %v2504_v54 = vpop.permute.xlu1 %2503  ;;  %v3269_v20 = vsel %vm3259_vm6, %v3204_v59, %v11786_v7  ;;  %v3075_v51 = vsel %vm3064_vm3, %v3010_v35, %v15753_v18  ;;  %v15754_v7 = vld [vmem:[#allocation11_spill] sm:$0xff]  ;;  %v15763_v17 = vld [vmem:[#allocation130_spill] sm:$0xff] }
 0x3e4   :  { %v3333_v33 = vsel %vm3324_vm7, %v3268_v34, %v2504_v54  ;;  %v3334_v22 = vsel %vm3324_vm7, %v3269_v20, %v2506_v55  ;;  %v2762_v63 = vpop.permute.xlu0 %2761  ;;  %v2946_v38 = vsel %vm100_vm0, %v9653_v27, %v15754_v7  ;;  %v15757_v54 = vld [vmem:[#allocation248_spill] sm:$0xff]  ;;  %v796_v41 = vld [vmem:[#allocation2 + $0x2d0] sm:$0xff] }
 0x3e5   :  { %2301 = vrot.lane.b32.xlu1 %v730_v10, %s9728_s29  ;;  %v3399_v61 = vsel %vm3389_vm8, %v3334_v22, %v2762_v63  ;;  %v15755_v10 = vld [vmem:[#allocation188_spill] sm:$0xff]  ;;  %v3011_v50 = vsel %vm2999_vm2, %v2946_v38, %v15756_v31  ;;  %v9655_v52 = vld [vmem:[#allocation2 + $0xcf] sm:$0xff] }
 0x3e6   :  { %v3140_v49 = vsel %vm3129_vm4, %v3075_v51, %v15755_v10  ;;  %2811 = vrot.lane.b32.xlu0 %v857_v11, %s9730_s20  ;;  %v3076_v37 = vsel %vm3064_vm3, %v3011_v50, %v15758_v47  ;;  %v15765_v22 = vld [vmem:[#allocation190_spill] sm:$0xff]  ;;  %v15768_v27 = vld [vmem:[#allocation131_spill] sm:$0xff] }
 0x3e7   :  { %v2760_v43 = vpop.permute.xlu1 %2759  ;;  %v3205_v32 = vsel %vm3194_vm5, %v3140_v49, %v15757_v54  ;;  %v3141_v2 = vsel %vm3129_vm4, %v3076_v37, %v15759_v60  ;;  %v15767_v51 = vld [vmem:[#allocation250_spill] sm:$0xff]  ;;  %v860_v49 = vld [vmem:[#allocation2 + $0x2d1] sm:$0xff] }
 0x3e8   :  { %v3398_v57 = vsel %vm3389_vm8, %v3333_v33, %v2760_v43  ;;  %v3270_v62 = vsel %vm3259_vm6, %v3205_v32, %v11791_v40  ;;  %v2510_v39 = vpop.permute.xlu0 %2509  ;;  %v3206_v34 = vsel %vm3194_vm5, %v3141_v2, %v15760_v53  ;;  %v795_v33 = vld [vmem:[#allocation2 + $0x2c8] sm:$0xff]  ;;  %v15762_v43 = vld [vmem:[#allocation71_spill] sm:$0xff]  ;;  %v15772_v2 = vld [vmem:[#allocation73_spill] sm:$0xff] }
 0x3e9   :  { %2557 = vrot.lane.b32.xlu1 %v794_v56, %s9729_s1  ;;  %9172 = vmatprep.mubr.msk.f32.mxu0 %vm3465_vm9, %v3398_v57  ;;  %v9654_v56 = vld [vmem:[#allocation2 + $0xc7] sm:$0xff]  ;;  %v3271_v40 = vsel %vm3259_vm6, %v3206_v34, %v11793_v45  ;;  %v15769_v31 = vld [vmem:[#allocation191_spill] sm:$0xff] }
 0x3ea   :  { %9173 = vmatmul.mubr.msk.f32.gmra.mxu0 %vm3465_vm9, %v3399_v61  ;;  %2303 = vrot.lane.b32.xlu0 %v731_v58, %s9728_s29  ;;  %v2947_v15 = vsel %vm100_vm0, %v9654_v56, %v15761_v19  ;;  %v3336_v59 = vsel %vm3324_vm7, %v3271_v40, %v2510_v39  ;;  %v15764_v45 = vld [vmem:[#allocation13_spill] sm:$0xff]  ;;  %v15770_v58 = vld [vmem:[#allocation251_spill] sm:$0xff]  ;;  %v15771_v39 = vld [vmem:[#allocation14_spill] sm:$0xff] }
 0x3eb   :  { %v2508_v12 = vpop.permute.xlu1 %2507  ;;  %v3012_v0 = vsel %vm2999_vm2, %v2947_v15, %v15762_v43  ;;  %v2948_v35 = vsel %vm100_vm0, %v9655_v52, %v15764_v45  ;;  %v733_v60 = vld [vmem:[#allocation2 + $0x2e7] sm:$0xff]  ;;  %v734_v34 = vld [vmem:[#allocation2 + $0x2ef] sm:$0xff]  ;;  %v15775_v43 = vld [vmem:[#allocation192_spill] sm:$0xff] }
 0x3ec   :  { %v3335_v24 = vsel %vm3324_vm7, %v3270_v62, %v2508_v12  ;;  %v2766_v57 = vpop.permute.xlu0 %2765  ;;  %v3077_v42 = vsel %vm3064_vm3, %v3012_v0, %v15763_v17  ;;  %v859_v12 = vld [vmem:[#allocation2 + $0x2c9] sm:$0xff] }
 0x3ed   :  { %2813 = vrot.lane.b32.xlu1 %v858_v1, %s9730_s20  ;;  %v3401_v20 = vsel %vm3389_vm8, %v3336_v59, %v2766_v57  ;;  %v3142_v63 = vsel %vm3129_vm4, %v3077_v42, %v15765_v22  ;;  %v15766_v1 = vld [vmem:[#allocation72_spill] sm:$0xff]  ;;  %v9656_v62 = vld [vmem:[#allocation2 + $0xe7] sm:$0xff]  ;;  %v9657_v40 = vld [vmem:[#allocation2 + $0xef] sm:$0xff] }
 0x3ee   :  { %2559 = vrot.lane.b32.xlu0 %v795_v33, %s9729_s1  ;;  %v3013_v18 = vsel %vm2999_vm2, %v2948_v35, %v15766_v1  ;;  %v3207_v61 = vsel %vm3194_vm5, %v3142_v63, %v15767_v51  ;;  %v15776_v59 = vld [vmem:[#allocation74_spill] sm:$0xff]  ;;  %v798_v35 = vld [vmem:[#allocation2 + $0x2f0] sm:$0xff]  ;;  %v15779_v22 = vld [vmem:[#allocation193_spill] sm:$0xff] }
 0x3ef   :  { %v2764_v5 = vpop.permute.xlu1 %2763  ;;  %v3078_v7 = vsel %vm3064_vm3, %v3013_v18, %v15768_v27  ;;  %v3272_v38 = vsel %vm3259_vm6, %v3207_v61, %v11798_v23  ;;  %v797_v42 = vld [vmem:[#allocation2 + $0x2e8] sm:$0xff]  ;;  %v15780_v51 = vld [vmem:[#allocation253_spill] sm:$0xff] }
 0x3f0   :  { %v3400_v55 = vsel %vm3389_vm8, %v3335_v24, %v2764_v5  ;;  %v2514_v10 = vpop.permute.xlu0 %2513  ;;  %v3143_v50 = vsel %vm3129_vm4, %v3078_v7, %v15769_v31  ;;  %v9658_v27 = vld [vmem:[#allocation2 + $0x107] sm:$0xff]  ;;  %v15781_v7 = vld [vmem:[#allocation16_spill] sm:$0xff] }
 0x3f1   :  { %2305 = vrot.lane.b32.xlu1 %v732_v9, %s9728_s29  ;;  %9175 = vmatprep.mubr.msk.f32.mxu0 %vm3465_vm9, %v3400_v55  ;;  %v3208_v47 = vsel %vm3194_vm5, %v3143_v50, %v15770_v58  ;;  %v2949_v9 = vsel %vm100_vm0, %v9656_v62, %v15771_v39  ;;  %v15773_v55 = vld [vmem:[#allocation132_spill] sm:$0xff]  ;;  %v15783_v58 = vld [vmem:[#allocation134_spill] sm:$0xff] }
 0x3f2   :  { %9176 = vmatmul.mubr.msk.f32.gmra.mxu0 %vm3465_vm9, %v3401_v20  ;;  %2815 = vrot.lane.b32.xlu0 %v859_v12, %s9730_s20  ;;  %v3273_v23 = vsel %vm3259_vm6, %v3208_v47, %v11800_v36  ;;  %v3014_v24 = vsel %vm2999_vm2, %v2949_v9, %v15772_v2  ;;  %v15774_v36 = vld [vmem:[#allocation15_spill] sm:$0xff]  ;;  %v15778_v20 = vld [vmem:[#allocation133_spill] sm:$0xff]  ;;  %v15786_v2 = vld [vmem:[#allocation76_spill] sm:$0xff] }
 0x3f3   :  { %v2512_v11 = vpop.permute.xlu1 %2511  ;;  %v3338_v5 = vsel %vm3324_vm7, %v3273_v23, %v2514_v10  ;;  %v3079_v56 = vsel %vm3064_vm3, %v3014_v24, %v15773_v55  ;;  %v2950_v33 = vsel %vm100_vm0, %v9657_v40, %v15774_v36  ;;  %v861_v10 = vld [vmem:[#allocation2 + $0x2e9] sm:$0xff] }
 0x3f4   :  { %v3337_v54 = vsel %vm3324_vm7, %v3272_v38, %v2512_v11  ;;  %v2770_v53 = vpop.permute.xlu0 %2769  ;;  %v3144_v0 = vsel %vm3129_vm4, %v3079_v56, %v15775_v43  ;;  %v3015_v57 = vsel %vm2999_vm2, %v2950_v33, %v15776_v59  ;;  %v2951_v38 = vsel %vm100_vm0, %v9658_v27, %v15781_v7  ;;  %v9659_v39 = vld [vmem:[#allocation2 + $0x10f] sm:$0xff]  ;;  %v15795_v7 = vld [vmem:[#allocation196_spill] sm:$0xff] }
 0x3f5   :  { %2561 = vrot.lane.b32.xlu1 %v796_v41, %s9729_s1  ;;  %v3403_v19 = vsel %vm3389_vm8, %v3338_v5, %v2770_v53  ;;  %v15777_v41 = vld [vmem:[#allocation252_spill] sm:$0xff]  ;;  %v3080_v11 = vsel %vm3064_vm3, %v3015_v57, %v15778_v20  ;;  %v15785_v23 = vld [vmem:[#allocation194_spill] sm:$0xff]  ;;  %v15788_v55 = vld [vmem:[#allocation135_spill] sm:$0xff] }
 0x3f6   :  { %2307 = vrot.lane.b32.xlu0 %v733_v60, %s9728_s29  ;;  %v3209_v17 = vsel %vm3194_vm5, %v3144_v0, %v15777_v41  ;;  %v3145_v63 = vsel %vm3129_vm4, %v3080_v11, %v15779_v22  ;;  %v15787_v5 = vld [vmem:[#allocation254_spill] sm:$0xff]  ;;  %v15789_v36 = vld [vmem:[#allocation195_spill] sm:$0xff] }
 0x3f7   :  { %v2768_v32 = vpop.permute.xlu1 %2767  ;;  %v3274_v52 = vsel %vm3259_vm6, %v3209_v17, %v11805_v26  ;;  %v3210_v61 = vsel %vm3194_vm5, %v3145_v63, %v15780_v51  ;;  %v736_v40 = vld [vmem:[#allocation2 + $0x30f] sm:$0xff]  ;;  %v9660_v17 = vld [vmem:[#allocation2 + $0x127] sm:$0xff] }
 0x3f8   :  { %v3402_v37 = vsel %vm3389_vm8, %v3337_v54, %v2768_v32  ;;  %v2518_v45 = vpop.permute.xlu0 %2517  ;;  %v3275_v26 = vsel %vm3259_vm6, %v3210_v61, %v11807_v13  ;;  %v862_v32 = vld [vmem:[#allocation2 + $0x2f1] sm:$0xff]  ;;  %v15784_v13 = vld [vmem:[#allocation17_spill] sm:$0xff]  ;;  %v799_v11 = vld [vmem:[#allocation2 + $0x308] sm:$0xff] }
 0x3f9   :  { %2817 = vrot.lane.b32.xlu1 %v860_v49, %s9730_s20  ;;  %9178 = vmatprep.mubr.msk.f32.mxu0 %vm3465_vm9, %v3402_v37  ;;  %v15782_v49 = vld [vmem:[#allocation75_spill] sm:$0xff]  ;;  %v3340_v50 = vsel %vm3324_vm7, %v3275_v26, %v2518_v45  ;;  %v2952_v9 = vsel %vm100_vm0, %v9659_v39, %v15784_v13  ;;  %v15796_v26 = vld [vmem:[#allocation78_spill] sm:$0xff] }
 0x3fa   :  { %9179 = vmatmul.mubr.msk.f32.gmra.mxu0 %vm3465_vm9, %v3403_v19  ;;  %2563 = vrot.lane.b32.xlu0 %v797_v42, %s9729_s1  ;;  %v3016_v31 = vsel %vm2999_vm2, %v2951_v38, %v15782_v49  ;;  %v3017_v24 = vsel %vm2999_vm2, %v2952_v9, %v15786_v2  ;;  %v15790_v59 = vld [vmem:[#allocation255_spill] sm:$0xff]  ;;  %v15791_v42 = vld [vmem:[#allocation18_spill] sm:$0xff]  ;;  %v15797_v49 = vld [vmem:[#allocation256_spill] sm:$0xff] }
 0x3fb   :  { %v2516_v15 = vpop.permute.xlu1 %2515  ;;  %v3081_v47 = vsel %vm3064_vm3, %v3016_v31, %v15783_v58  ;;  %v3082_v56 = vsel %vm3064_vm3, %v3017_v24, %v15788_v55  ;;  %v2953_v20 = vsel %vm100_vm0, %v9660_v17, %v15791_v42  ;;  %v800_v63 = vld [vmem:[#allocation2 + $0x310] sm:$0xff]  ;;  %v9662_v24 = vld [vmem:[#allocation2 + $0x147] sm:$0xff]  ;;  %v15806_v42 = vld [vmem:[#allocation80_spill] sm:$0xff] }
 0x3fc   :  { %v3339_v1 = vsel %vm3324_vm7, %v3274_v52, %v2516_v15  ;;  %v2774_v54 = vpop.permute.xlu0 %2773  ;;  %v3146_v60 = vsel %vm3129_vm4, %v3081_v47, %v15785_v23  ;;  %v3147_v33 = vsel %vm3129_vm4, %v3082_v56, %v15789_v36  ;;  %v15792_v52 = vld [vmem:[#allocation77_spill] sm:$0xff]  ;;  %v15802_v55 = vld [vmem:[#allocation79_spill] sm:$0xff]  ;;  %v15803_v36 = vld [vmem:[#allocation138_spill] sm:$0xff] }
 0x3fd   :  { %2309 = vrot.lane.b32.xlu1 %v734_v34, %s9728_s29  ;;  %v3405_v37 = vsel %vm3389_vm8, %v3340_v50, %v2774_v54  ;;  %v3211_v53 = vsel %vm3194_vm5, %v3146_v60, %v15787_v5  ;;  %v735_v34 = vld [vmem:[#allocation2 + $0x307] sm:$0xff]  ;;  %v3212_v57 = vsel %vm3194_vm5, %v3147_v33, %v15790_v59  ;;  %v3018_v45 = vsel %vm2999_vm2, %v2953_v20, %v15792_v52  ;;  %v15801_v5 = vld [vmem:[#allocation20_spill] sm:$0xff]  ;;  %v9663_v59 = vld [vmem:[#allocation2 + $0x14f] sm:$0xff] }
 0x3fe   :  { %2819 = vrot.lane.b32.xlu0 %v861_v10, %s9730_s20  ;;  %v3276_v19 = vsel %vm3259_vm6, %v3211_v53, %v11812_v28  ;;  %v3277_v28 = vsel %vm3259_vm6, %v3212_v57, %v11814_v30  ;;  %v15794_v30 = vld [vmem:[#allocation19_spill] sm:$0xff]  ;;  %v15798_v54 = vld [vmem:[#allocation137_spill] sm:$0xff]  ;;  %v2955_v53 = vsel %vm100_vm0, %v9662_v24, %v15801_v5  ;;  %v801_v52 = vld [vmem:[#allocation2 + $0x328] sm:$0xff] }
 0x3ff   :  { %v2772_v18 = vpop.permute.xlu1 %2771  ;;  %v863_v50 = vld [vmem:[#allocation2 + $0x309] sm:$0xff]  ;;  %v15800_v23 = vld [vmem:[#allocation257_spill] sm:$0xff]  ;;  %v3020_v56 = vsel %vm2999_vm2, %v2955_v53, %v15802_v55  ;;  %v15817_v5 = vld [vmem:[#allocation260_spill] sm:$0xff] }
 0x400   :  { %v3404_v12 = vsel %vm3389_vm8, %v3339_v1, %v2772_v18  ;;  %v2522_v15 = vpop.permute.xlu0 %2521  ;;  %v15793_v1 = vld [vmem:[#allocation136_spill] sm:$0xff]  ;;  %v3085_v33 = vsel %vm3064_vm3, %v3020_v56, %v15803_v36 }
 0x401   :  { %2565 = vrot.lane.b32.xlu1 %v798_v35, %s9729_s1  ;;  %9181 = vmatprep.mubr.msk.f32.mxu0 %vm3465_vm9, %v3404_v12  ;;  %v3342_v35 = vsel %vm3324_vm7, %v3277_v28, %v2522_v15  ;;  %v3083_v18 = vsel %vm3064_vm3, %v3018_v45, %v15793_v1  ;;  %v9661_v12 = vld [vmem:[#allocation2 + $0x12f] sm:$0xff] }
 0x402   :  { %9182 = vmatmul.mubr.msk.f32.gmra.mxu0 %vm3465_vm9, %v3405_v37  ;;  %2311 = vrot.lane.b32.xlu0 %v735_v34, %s9728_s29  ;;  %v2954_v27 = vsel %vm100_vm0, %v9661_v12, %v15794_v30  ;;  %v3148_v38 = vsel %vm3129_vm4, %v3083_v18, %v15795_v7  ;;  %v864_v37 = vld [vmem:[#allocation2 + $0x311] sm:$0xff]  ;;  %v737_v34 = vld [vmem:[#allocation2 + $0x327] sm:$0xff] }
 0x403   :  { %v2520_v62 = vpop.permute.xlu1 %2519  ;;  %v3019_v10 = vsel %vm2999_vm2, %v2954_v27, %v15796_v26  ;;  %v3213_v31 = vsel %vm3194_vm5, %v3148_v38, %v15797_v49  ;;  %v15807_v28 = vld [vmem:[#allocation258_spill] sm:$0xff]  ;;  %v15808_v45 = vld [vmem:[#allocation139_spill] sm:$0xff] }
 0x404   :  { %v3341_v43 = vsel %vm3324_vm7, %v3276_v19, %v2520_v62  ;;  %v2778_v22 = vpop.permute.xlu0 %2777  ;;  %v3278_v58 = vsel %vm3259_vm6, %v3213_v31, %v11819_v48  ;;  %v15799_v62 = vld [vmem:[#allocation197_spill] sm:$0xff]  ;;  %v802_v1 = vld [vmem:[#allocation2 + $0x330] sm:$0xff]  ;;  %v15811_v26 = vld [vmem:[#allocation22_spill] sm:$0xff] }
 0x405   :  { %2821 = vrot.lane.b32.xlu1 %v862_v32, %s9730_s20  ;;  %v3407_v51 = vsel %vm3389_vm8, %v3342_v35, %v2778_v22  ;;  %v3084_v32 = vsel %vm3064_vm3, %v3019_v10, %v15798_v54  ;;  %v15809_v18 = vld [vmem:[#allocation199_spill] sm:$0xff]  ;;  %v9664_v38 = vld [vmem:[#allocation2 + $0x167] sm:$0xff] }
 0x406   :  { %2567 = vrot.lane.b32.xlu0 %v799_v11, %s9729_s1  ;;  %v3149_v39 = vsel %vm3129_vm4, %v3084_v32, %v15799_v62  ;;  %v15810_v30 = vld [vmem:[#allocation259_spill] sm:$0xff]  ;;  %v2957_v10 = vsel %vm100_vm0, %v9664_v38, %v15811_v26  ;;  %v15812_v31 = vld [vmem:[#allocation81_spill] sm:$0xff] }
 0x407   :  { %v2776_v0 = vpop.permute.xlu1 %2775  ;;  %v3214_v60 = vsel %vm3194_vm5, %v3149_v39, %v15800_v23  ;;  %v865_v49 = vld [vmem:[#allocation2 + $0x329] sm:$0xff]  ;;  %v15815_v23 = vld [vmem:[#allocation200_spill] sm:$0xff] }
 0x408   :  { %v3406_v41 = vsel %vm3389_vm8, %v3341_v43, %v2776_v0  ;;  %v2526_v47 = vpop.permute.xlu0 %2525  ;;  %v3279_v48 = vsel %vm3259_vm6, %v3214_v60, %v11821_v8  ;;  %v15804_v8 = vld [vmem:[#allocation21_spill] sm:$0xff]  ;;  %v867_v26 = vld [vmem:[#allocation2 + $0x349] sm:$0xff] }
 0x409   :  { %2313 = vrot.lane.b32.xlu1 %v736_v40, %s9728_s29  ;;  %9184 = vmatprep.mubr.msk.f32.mxu0 %vm3465_vm9, %v3406_v41  ;;  %v3344_v19 = vsel %vm3324_vm7, %v3279_v48, %v2526_v47  ;;  %v738_v40 = vld [vmem:[#allocation2 + $0x32f] sm:$0xff]  ;;  %v2956_v57 = vsel %vm100_vm0, %v9663_v59, %v15804_v8  ;;  %v15813_v47 = vld [vmem:[#allocation140_spill] sm:$0xff]  ;;  %v739_v48 = vld [vmem:[#allocation2 + $0x347] sm:$0xff] }
 0x40a   :  { %9185 = vmatmul.mubr.msk.f32.gmra.mxu0 %vm3465_vm9, %v3407_v51  ;;  %2823 = vrot.lane.b32.xlu0 %v863_v50, %s9730_s20  ;;  %v15805_v41 = vld [vmem:[#allocation198_spill] sm:$0xff]  ;;  %v3021_v20 = vsel %vm2999_vm2, %v2956_v57, %v15806_v42  ;;  %v3022_v50 = vsel %vm2999_vm2, %v2957_v10, %v15812_v31  ;;  %v15828_v10 = vld [vmem:[#allocation143_spill] sm:$0xff] }
 0x40b   :  { %v2524_v61 = vpop.permute.xlu1 %2523  ;;  %v3150_v17 = vsel %vm3129_vm4, %v3085_v33, %v15805_v41  ;;  %v3086_v35 = vsel %vm3064_vm3, %v3021_v20, %v15808_v45  ;;  %v9666_v57 = vld [vmem:[#allocation2 + $0x187] sm:$0xff]  ;;  %v15821_v41 = vld [vmem:[#allocation24_spill] sm:$0xff]  ;;  %v15822_v20 = vld [vmem:[#allocation83_spill] sm:$0xff] }
 0x40c   :  { %v3343_v13 = vsel %vm3324_vm7, %v3278_v58, %v2524_v61  ;;  %v2782_v15 = vpop.permute.xlu0 %2781  ;;  %v3215_v11 = vsel %vm3194_vm5, %v3150_v17, %v15807_v28  ;;  %v3151_v51 = vsel %vm3129_vm4, %v3086_v35, %v15809_v18  ;;  %v866_v58 = vld [vmem:[#allocation2 + $0x331] sm:$0xff]  ;;  %v2959_v17 = vsel %vm100_vm0, %v9666_v57, %v15821_v41  ;;  %v803_v42 = vld [vmem:[#allocation2 + $0x348] sm:$0xff] }
 0x40d   :  { %2569 = vrot.lane.b32.xlu1 %v800_v63, %s9729_s1  ;;  %v3409_v43 = vsel %vm3389_vm8, %v3344_v19, %v2782_v15  ;;  %v3280_v22 = vsel %vm3259_vm6, %v3215_v11, %v11826_v3  ;;  %v3216_v27 = vsel %vm3194_vm5, %v3151_v51, %v15810_v30  ;;  %v740_v15 = vld [vmem:[#allocation2 + $0x34f] sm:$0xff]  ;;  %v3024_v28 = vsel %vm2999_vm2, %v2959_v17, %v15822_v20  ;;  %v15826_v30 = vld [vmem:[#allocation84_spill] sm:$0xff] }
 0x40e   :  { %2315 = vrot.lane.b32.xlu0 %v737_v34, %s9728_s29  ;;  %v3281_v3 = vsel %vm3259_vm6, %v3216_v27, %v11828_v29  ;;  %v15814_v29 = vld [vmem:[#allocation23_spill] sm:$0xff]  ;;  %v15818_v34 = vld [vmem:[#allocation141_spill] sm:$0xff]  ;;  %v15823_v35 = vld [vmem:[#allocation142_spill] sm:$0xff] }
 0x40f   :  { %v2780_v9 = vpop.permute.xlu1 %2779  ;;  %v804_v45 = vld [vmem:[#allocation2 + $0x350] sm:$0xff] }
 0x410   :  { %v3408_v2 = vsel %vm3389_vm8, %v3343_v13, %v2780_v9  ;;  %v2530_v63 = vpop.permute.xlu0 %2529  ;;  %v9665_v13 = vld [vmem:[#allocation2 + $0x16f] sm:$0xff] }
 0x411   :  { %2825 = vrot.lane.b32.xlu1 %v864_v37, %s9730_s20  ;;  %9187 = vmatprep.mubr.msk.f32.mxu0 %vm3465_vm9, %v3408_v2  ;;  %v3346_v54 = vsel %vm3324_vm7, %v3281_v3, %v2530_v63  ;;  %v3087_v37 = vsel %vm3064_vm3, %v3022_v50, %v15813_v47  ;;  %v2958_v9 = vsel %vm100_vm0, %v9665_v13, %v15814_v29  ;;  %v15816_v2 = vld [vmem:[#allocation82_spill] sm:$0xff]  ;;  %v868_v50 = vld [vmem:[#allocation2 + $0x351] sm:$0xff] }
 0x412   :  { %9188 = vmatmul.mubr.msk.f32.gmra.mxu0 %vm3465_vm9, %v3409_v43  ;;  %2571 = vrot.lane.b32.xlu0 %v801_v52, %s9729_s1  ;;  %v3152_v60 = vsel %vm3129_vm4, %v3087_v37, %v15815_v23  ;;  %v3023_v24 = vsel %vm2999_vm2, %v2958_v9, %v15816_v2  ;;  %v9667_v18 = vld [vmem:[#allocation2 + $0x18f] sm:$0xff]  ;;  %v741_v9 = vld [vmem:[#allocation2 + $0x367] sm:$0xff] }
 0x413   :  { %v2528_v0 = vpop.permute.xlu1 %2527  ;;  %v3217_v53 = vsel %vm3194_vm5, %v3152_v60, %v15817_v5  ;;  %v3088_v55 = vsel %vm3064_vm3, %v3023_v24, %v15818_v34  ;;  %v15830_v13 = vld [vmem:[#allocation26_spill] sm:$0xff]  ;;  %v15831_v23 = vld [vmem:[#allocation85_spill] sm:$0xff]  ;;  %v15832_v5 = vld [vmem:[#allocation144_spill] sm:$0xff] }
 0x414   :  { %v3345_v61 = vsel %vm3324_vm7, %v3280_v22, %v2528_v0  ;;  %v2786_v32 = vpop.permute.xlu0 %2785  ;;  %v3282_v56 = vsel %vm3259_vm6, %v3217_v53, %v11833_v14  ;;  %v15820_v0 = vld [vmem:[#allocation261_spill] sm:$0xff]  ;;  %v3089_v22 = vsel %vm3064_vm3, %v3024_v28, %v15823_v35  ;;  %v742_v24 = vld [vmem:[#allocation2 + $0x36f] sm:$0xff] }
 0x415   :  { %2317 = vrot.lane.b32.xlu1 %v738_v40, %s9728_s29  ;;  %v3411_v62 = vsel %vm3389_vm8, %v3346_v54, %v2786_v32  ;;  %v15819_v40 = vld [vmem:[#allocation201_spill] sm:$0xff]  ;;  %v15829_v54 = vld [vmem:[#allocation203_spill] sm:$0xff] }
 0x416   :  { %2827 = vrot.lane.b32.xlu0 %v865_v49, %s9730_s20  ;;  %v3153_v36 = vsel %vm3129_vm4, %v3088_v55, %v15819_v40  ;;  %v9669_v55 = vld [vmem:[#allocation2 + $0x1af] sm:$0xff] }
 0x417   :  { %v2784_v12 = vpop.permute.xlu1 %2783  ;;  %v3218_v59 = vsel %vm3194_vm5, %v3153_v36, %v15820_v0  ;;  %v15835_v40 = vld [vmem:[#allocation86_spill] sm:$0xff]  ;;  %v806_v17 = vld [vmem:[#allocation2 + $0x370] sm:$0xff] }
 0x418   :  { %v3410_v7 = vsel %vm3389_vm8, %v3345_v61, %v2784_v12  ;;  %v2534_v19 = vpop.permute.xlu0 %2533  ;;  %v3283_v14 = vsel %vm3259_vm6, %v3218_v59, %v11835_v25  ;;  %v15824_v25 = vld [vmem:[#allocation25_spill] sm:$0xff]  ;;  %v15825_v61 = vld [vmem:[#allocation202_spill] sm:$0xff] }
 0x419   :  { %2573 = vrot.lane.b32.xlu1 %v802_v1, %s9729_s1  ;;  %9190 = vmatprep.mubr.msk.f32.mxu0 %vm3465_vm9, %v3410_v7  ;;  %v3348_v11 = vsel %vm3324_vm7, %v3283_v14, %v2534_v19  ;;  %v2960_v51 = vsel %vm100_vm0, %v9667_v18, %v15824_v25  ;;  %v3154_v12 = vsel %vm3129_vm4, %v3089_v22, %v15825_v61  ;;  %v15827_v7 = vld [vmem:[#allocation262_spill] sm:$0xff]  ;;  %v15834_v19 = vld [vmem:[#allocation204_spill] sm:$0xff]  ;;  %v15837_v59 = vld [vmem:[#allocation145_spill] sm:$0xff] }
 0x41a   :  { %9191 = vmatmul.mubr.msk.f32.gmra.mxu0 %vm3465_vm9, %v3411_v62  ;;  %2319 = vrot.lane.b32.xlu0 %v739_v48, %s9728_s29  ;;  %v3025_v27 = vsel %vm2999_vm2, %v2960_v51, %v15826_v30  ;;  %v3219_v38 = vsel %vm3194_vm5, %v3154_v12, %v15827_v7  ;;  %v805_v0 = vld [vmem:[#allocation2 + $0x368] sm:$0xff]  ;;  %v15838_v14 = vld [vmem:[#allocation205_spill] sm:$0xff]  ;;  %v15840_v61 = vld [vmem:[#allocation28_spill] sm:$0xff] }
 0x41b   :  { %v2532_v39 = vpop.permute.xlu1 %2531  ;;  %v3090_v3 = vsel %vm3064_vm3, %v3025_v27, %v15828_v10  ;;  %v3284_v49 = vsel %vm3259_vm6, %v3219_v38, %v11840_v16  ;;  %v9670_v51 = vld [vmem:[#allocation2 + $0x1c7] sm:$0xff]  ;;  %v15842_v7 = vld [vmem:[#allocation87_spill] sm:$0xff]  ;;  %v15843_v10 = vld [vmem:[#allocation88_spill] sm:$0xff] }
 0x41c   :  { %v3347_v33 = vsel %vm3324_vm7, %v3282_v56, %v2532_v39  ;;  %v2790_v52 = vpop.permute.xlu0 %2789  ;;  %v3155_v32 = vsel %vm3129_vm4, %v3090_v3, %v15829_v54  ;;  %v9668_v39 = vld [vmem:[#allocation2 + $0x1a7] sm:$0xff]  ;;  %v2963_v12 = vsel %vm100_vm0, %v9670_v51, %v15840_v61  ;;  %v744_v54 = vld [vmem:[#allocation2 + $0x38f] sm:$0xff]  ;;  %v15859_v51 = vld [vmem:[#allocation268_spill] sm:$0xff] }
 0x41d   :  { %2829 = vrot.lane.b32.xlu1 %v866_v58, %s9730_s20  ;;  %v3413_v63 = vsel %vm3389_vm8, %v3348_v11, %v2790_v52  ;;  %v3220_v37 = vsel %vm3194_vm5, %v3155_v32, %v11610_v4  ;;  %v2961_v29 = vsel %vm100_vm0, %v9668_v39, %v15830_v13  ;;  %v15839_v11 = vld [vmem:[#allocation264_spill] sm:$0xff]  ;;  %v15841_v30 = vld [vmem:[#allocation29_spill] sm:$0xff]  ;;  %v3028_v38 = vsel %vm2999_vm2, %v2963_v12, %v15842_v7  ;;  %v15845_v32 = vld [vmem:[#allocation147_spill] sm:$0xff] }
 0x41e   :  { %2575 = vrot.lane.b32.xlu0 %v803_v42, %s9729_s1  ;;  %v3285_v16 = vsel %vm3259_vm6, %v3220_v37, %v11842_v46  ;;  %v3026_v60 = vsel %vm2999_vm2, %v2961_v29, %v15831_v23  ;;  %v15833_v46 = vld [vmem:[#allocation27_spill] sm:$0xff]  ;;  %v15848_v29 = vld [vmem:[#allocation265_spill] sm:$0xff] }
 0x41f   :  { %v2788_v43 = vpop.permute.xlu1 %2787  ;;  %v3091_v53 = vsel %vm3064_vm3, %v3026_v60, %v15832_v5  ;;  %v2962_v56 = vsel %vm100_vm0, %v9669_v55, %v15833_v46  ;;  %v15847_v39 = vld [vmem:[#allocation207_spill] sm:$0xff] }
 0x420   :  { %v3412_v8 = vsel %vm3389_vm8, %v3347_v33, %v2788_v43  ;;  %v2538_v31 = vpop.permute.xlu0 %2537  ;;  %v3027_v36 = vsel %vm2999_vm2, %v2962_v56, %v15835_v40  ;;  %v15836_v33 = vld [vmem:[#allocation263_spill] sm:$0xff]  ;;  %v9672_v40 = vld [vmem:[#allocation2 + $0x1e7] sm:$0xff] }
 0x421   :  { %2321 = vrot.lane.b32.xlu1 %v740_v15, %s9728_s29  ;;  %9193 = vmatprep.mubr.msk.f32.mxu0 %vm3465_vm9, %v3412_v8  ;;  %v3350_v4 = vsel %vm3324_vm7, %v3285_v16, %v2538_v31  ;;  %v3156_v15 = vsel %vm3129_vm4, %v3091_v53, %v15834_v19  ;;  %v3092_v8 = vsel %vm3064_vm3, %v3027_v36, %v15837_v59  ;;  %v808_v53 = vld [vmem:[#allocation2 + $0x390] sm:$0xff]  ;;  %v15850_v36 = vld [vmem:[#allocation30_spill] sm:$0xff] }
 0x422   :  { %9194 = vmatmul.mubr.msk.f32.gmra.mxu0 %vm3465_vm9, %v3413_v63  ;;  %2831 = vrot.lane.b32.xlu0 %v867_v26, %s9730_s20  ;;  %v3221_v43 = vsel %vm3194_vm5, %v3156_v15, %v15836_v33  ;;  %v3157_v42 = vsel %vm3129_vm4, %v3092_v8, %v15838_v14  ;;  %v743_v26 = vld [vmem:[#allocation2 + $0x387] sm:$0xff]  ;;  %v872_v19 = vld [vmem:[#allocation2 + $0x391] sm:$0xff]  ;;  %v2965_v33 = vsel %vm100_vm0, %v9672_v40, %v15850_v36 }
 0x423   :  { %v2536_v1 = vpop.permute.xlu1 %2535  ;;  %v3286_v57 = vsel %vm3259_vm6, %v3221_v43, %v11847_v21  ;;  %v3222_v52 = vsel %vm3194_vm5, %v3157_v42, %v15839_v11  ;;  %v869_v21 = vld [vmem:[#allocation2 + $0x369] sm:$0xff]  ;;  %v15852_v8 = vld [vmem:[#allocation89_spill] sm:$0xff]  ;;  %v15854_v42 = vld [vmem:[#allocation148_spill] sm:$0xff] }
 0x424   :  { %v3349_v58 = vsel %vm3324_vm7, %v3284_v49, %v2536_v1  ;;  %v2794_v2 = vpop.permute.xlu0 %2793  ;;  %v3287_v35 = vsel %vm3259_vm6, %v3222_v52, %v11849_v44  ;;  %v870_v1 = vld [vmem:[#allocation2 + $0x371] sm:$0xff]  ;;  %v15844_v49 = vld [vmem:[#allocation146_spill] sm:$0xff]  ;;  %v15855_v52 = vld [vmem:[#allocation149_spill] sm:$0xff] }
 0x425   :  { %2577 = vrot.lane.b32.xlu1 %v804_v45, %s9729_s1  ;;  %v3415_v48 = vsel %vm3389_vm8, %v3350_v4, %v2794_v2  ;;  %v9671_v44 = vld [vmem:[#allocation2 + $0x1cf] sm:$0xff]  ;;  %v3093_v31 = vsel %vm3064_vm3, %v3028_v38, %v15844_v49 }
 0x426   :  { %2323 = vrot.lane.b32.xlu0 %v741_v9, %s9728_s29  ;;  %v2964_v27 = vsel %vm100_vm0, %v9671_v44, %v15841_v30  ;;  %v15849_v9 = vld [vmem:[#allocation266_spill] sm:$0xff]  ;;  %v810_v38 = vld [vmem:[#allocation2 + $0x3b0] sm:$0xff] }
 0x427   :  { %v2792_v47 = vpop.permute.xlu1 %2791  ;;  %v3029_v3 = vsel %vm2999_vm2, %v2964_v27, %v15843_v10  ;;  %v807_v4 = vld [vmem:[#allocation2 + $0x388] sm:$0xff] }
 0x428   :  { %v3414_v62 = vsel %vm3389_vm8, %v3349_v58, %v2792_v47  ;;  %v2542_v41 = vpop.permute.xlu0 %2541  ;;  %v3094_v58 = vsel %vm3064_vm3, %v3029_v3, %v15845_v32  ;;  %v15846_v47 = vld [vmem:[#allocation206_spill] sm:$0xff] }
 0x429   :  { %2833 = vrot.lane.b32.xlu1 %v868_v50, %s9730_s20  ;;  %9196 = vmatprep.mubr.msk.f32.mxu0 %vm3465_vm9, %v3414_v62  ;;  %v3352_v22 = vsel %vm3324_vm7, %v3287_v35, %v2542_v41  ;;  %v3158_v37 = vsel %vm3129_vm4, %v3093_v31, %v15846_v47  ;;  %v3159_v13 = vsel %vm3129_vm4, %v3094_v58, %v15847_v39  ;;  %v9673_v43 = vld [vmem:[#allocation2 + $0x1ef] sm:$0xff]  ;;  %v745_v41 = vld [vmem:[#allocation2 + $0x3a7] sm:$0xff]  ;;  %v15856_v35 = vld [vmem:[#allocation208_spill] sm:$0xff] }
 0x42a   :  { %9197 = vmatmul.mubr.msk.f32.gmra.mxu0 %vm3465_vm9, %v3415_v48  ;;  %2579 = vrot.lane.b32.xlu0 %v805_v0, %s9729_s1  ;;  %v3223_v16 = vsel %vm3194_vm5, %v3158_v37, %v15848_v29  ;;  %v3224_v23 = vsel %vm3194_vm5, %v3159_v13, %v15849_v9  ;;  %v15851_v0 = vld [vmem:[#allocation31_spill] sm:$0xff]  ;;  %v809_v44 = vld [vmem:[#allocation2 + $0x3a8] sm:$0xff]  ;;  %v15860_v37 = vld [vmem:[#allocation32_spill] sm:$0xff] }
 0x42b   :  { %v2540_v34 = vpop.permute.xlu1 %2539  ;;  %v3288_v60 = vsel %vm3259_vm6, %v3223_v16, %v11858_v6  ;;  %v871_v6 = vld [vmem:[#allocation2 + $0x389] sm:$0xff]  ;;  %v2966_v59 = vsel %vm100_vm0, %v9673_v43, %v15851_v0  ;;  %v874_v58 = vld [vmem:[#allocation2 + $0x3b1] sm:$0xff]  ;;  %v15861_v39 = vld [vmem:[#allocation33_spill] sm:$0xff] }
 0x42c   :  { %v3351_v20 = vsel %vm3324_vm7, %v3286_v57, %v2540_v34  ;;  %v2798_v63 = vpop.permute.xlu0 %2797  ;;  %v3030_v57 = vsel %vm2999_vm2, %v2965_v33, %v15852_v8  ;;  %v746_v11 = vld [vmem:[#allocation2 + $0x3af] sm:$0xff]  ;;  %v342_v31 = vld [vmem:[#allocation2 + $0x247] sm:$0xff] }
 0x42d   :  { %2325 = vrot.lane.b32.xlu1 %v742_v24, %s9728_s29  ;;  %v3417_v18 = vsel %vm3389_vm8, %v3352_v22, %v2798_v63  ;;  %v15857_v63 = vld [vmem:[#allocation209_spill] sm:$0xff]  ;;  %v15862_v29 = vld [vmem:[#allocation91_spill] sm:$0xff]  ;;  %v15869_v40 = vld [vmem:[#allocation270_spill] sm:$0xff] }
 0x42e   :  { %2835 = vrot.lane.b32.xlu0 %v869_v21, %s9730_s20  ;;  %v747_v9 = vld [vmem:[#allocation2 + $0x3c7] sm:$0xff] }
 0x42f   :  { %v2796_v28 = vpop.permute.xlu1 %2795  ;;  %v811_v43 = vld [vmem:[#allocation2 + $0x3c8] sm:$0xff] }
 0x430   :  { %v3416_v45 = vsel %vm3389_vm8, %v3351_v20, %v2796_v28  ;;  %v2544_v50 = vpop.permute.xlu0 %2543  ;;  %v3095_v20 = vsel %vm3064_vm3, %v3030_v57, %v15854_v42  ;;  %v812_v57 = vld [vmem:[#allocation2 + $0x3d0] sm:$0xff] }
 0x431   :  { %2581 = vrot.lane.b32.xlu1 %v806_v17, %s9729_s1  ;;  %9199 = vmatprep.mubr.msk.f32.mxu0 %vm3465_vm9, %v3416_v45  ;;  %v3353_v24 = vsel %vm3324_vm7, %v3288_v60, %v2544_v50  ;;  %v15853_v17 = vld [vmem:[#allocation90_spill] sm:$0xff]  ;;  %v3160_v21 = vsel %vm3129_vm4, %v3095_v20, %v15856_v35 }
 0x432   :  { %9200 = vmatmul.mubr.msk.f32.gmra.mxu0 %vm3465_vm9, %v3417_v18  ;;  %2327 = vrot.lane.b32.xlu0 %v743_v26, %s9728_s29  ;;  %v3031_v14 = vsel %vm2999_vm2, %v2966_v59, %v15853_v17  ;;  %v15858_v18 = vld [vmem:[#allocation267_spill] sm:$0xff]  ;;  %v15870_v35 = vld [vmem:[#allocation34_spill] sm:$0xff] }
 0x433   :  { %v2290_v25 = vpop.permute.xlu1 %2289  ;;  %v3096_v45 = vsel %vm3064_vm3, %v3031_v14, %v15855_v52  ;;  %v873_v50 = vld [vmem:[#allocation2 + $0x3a9] sm:$0xff] }
 0x434   :  { %v3289_v2 = vsel %vm3259_vm6, %v3224_v23, %v2290_v25  ;;  %v2800_v5 = vpop.permute.xlu0 %2799  ;;  %v3225_v25 = vsel %vm3194_vm5, %v3160_v21, %v15858_v18  ;;  %v15863_v23 = vld [vmem:[#allocation92_spill] sm:$0xff]  ;;  %v875_v20 = vld [vmem:[#allocation2 + $0x3c9] sm:$0xff]  ;;  %v15872_v18 = vld [vmem:[#allocation93_spill] sm:$0xff] }
 0x435   :  { %2837 = vrot.lane.b32.xlu1 %v870_v1, %s9730_s20  ;;  %v3418_v34 = vsel %vm3389_vm8, %v3353_v24, %v2800_v5  ;;  %v3161_v1 = vsel %vm3129_vm4, %v3096_v45, %v15857_v63  ;;  %v748_v5 = vld [vmem:[#allocation2 + $0x3cf] sm:$0xff]  ;;  %v9674_v45 = vld [vmem:[#allocation2 + $0x267] sm:$0xff] }
 0x436   :  { %2583 = vrot.lane.b32.xlu0 %v807_v4, %s9729_s1  ;;  %9202 = vmatprep.mubr.msk.f32.mxu0 %vm3465_vm9, %v3418_v34  ;;  %v3226_v61 = vsel %vm3194_vm5, %v3161_v1, %v15859_v51  ;;  %v15864_v4 = vld [vmem:[#allocation150_spill] sm:$0xff]  ;;  %v2969_v21 = vsel %vm100_vm0, %v9674_v45, %v15870_v35  ;;  %v15871_v63 = vld [vmem:[#allocation35_spill] sm:$0xff] }
 0x437   :  { %v2546_v62 = vpop.permute.xlu1 %2545  ;;  %v15866_v34 = vld [vmem:[#allocation210_spill] sm:$0xff] }
 0x438   :  { %v3354_v48 = vsel %vm3324_vm7, %v3289_v2, %v2546_v62  ;;  %v2292_v56 = vpop.permute.xlu0 %2291  ;;  %v2967_v62 = vsel %vm100_vm0, %v342_v31, %v15860_v37  ;;  %v749_v51 = vld [vmem:[#allocation2 + $0x3e7] sm:$0xff] }
 0x439   :  { %2329 = vrot.lane.b32.xlu1 %v744_v54, %s9728_s29  ;;  %v3290_v12 = vsel %vm3259_vm6, %v3225_v25, %v2292_v56  ;;  %v343_v54 = vld [vmem:[#allocation2 + $0x24f] sm:$0xff]  ;;  %v3032_v16 = vsel %vm2999_vm2, %v2967_v62, %v15862_v29  ;;  %v3034_v25 = vsel %vm2999_vm2, %v2969_v21, %v15872_v18  ;;  %v15877_v31 = vld [vmem:[#allocation213_spill] sm:$0xff] }
 0x43a   :  { %2839 = vrot.lane.b32.xlu0 %v871_v6, %s9730_s20  ;;  %v2968_v13 = vsel %vm100_vm0, %v343_v54, %v15861_v39  ;;  %v3097_v2 = vsel %vm3064_vm3, %v3032_v16, %v15864_v4  ;;  %v15867_v6 = vld [vmem:[#allocation211_spill] sm:$0xff]  ;;  %v813_v62 = vld [vmem:[#allocation2 + $0x3e8] sm:$0xff] }
 0x43b   :  { %v2802_v55 = vpop.permute.xlu1 %2801  ;;  %v3033_v60 = vsel %vm2999_vm2, %v2968_v13, %v15863_v23  ;;  %v15878_v54 = vld [vmem:[#allocation271_spill] sm:$0xff]  ;;  %v15889_v45 = vld [vmem:[#allocation274_spill] sm:$0xff] }
 0x43c   :  { %v3419_v46 = vsel %vm3389_vm8, %v3354_v48, %v2802_v55  ;;  %v2548_v28 = vpop.permute.xlu0 %2547  ;;  %v3162_v55 = vsel %vm3129_vm4, %v3097_v2, %v15866_v34  ;;  %v814_v16 = vld [vmem:[#allocation2 + $0x3f0] sm:$0xff]  ;;  %v15880_v34 = vld [vmem:[#allocation36_spill] sm:$0xff] }
 0x43d   :  { %2585 = vrot.lane.b32.xlu1 %v808_v53, %s9729_s1  ;;  %9203 = vmatmul.mubr.msk.f32.gmra.mxu0 %vm3465_vm9, %v3419_v46  ;;  %v3355_v27 = vsel %vm3324_vm7, %v3290_v12, %v2548_v28  ;;  %v15865_v53 = vld [vmem:[#allocation151_spill] sm:$0xff] }
 0x43e   :  { %2331 = vrot.lane.b32.xlu0 %v745_v41, %s9728_s29  ;;  %v3098_v48 = vsel %vm3064_vm3, %v3033_v60, %v15865_v53  ;;  %v877_v2 = vld [vmem:[#allocation2 + $0x3e9] sm:$0xff] }
 0x43f   :  { %v2294_v15 = vpop.permute.xlu1 %2293  ;;  %v3163_v56 = vsel %vm3129_vm4, %v3098_v48, %v15867_v6  ;;  %v9676_v48 = vld [vmem:[#allocation2 + $0x287] sm:$0xff] }
 0x440   :  { %v3291_v30 = vsel %vm3259_vm6, %v3226_v61, %v2294_v15  ;;  %v2804_v7 = vpop.permute.xlu0 %2803  ;;  %v3228_v36 = vsel %vm3194_vm5, %v3163_v56, %v15869_v40  ;;  %v15873_v61 = vld [vmem:[#allocation94_spill] sm:$0xff]  ;;  %v15881_v6 = vld [vmem:[#allocation37_spill] sm:$0xff] }
 0x441   :  { %2841 = vrot.lane.b32.xlu1 %v872_v19, %s9730_s20  ;;  %v3420_v10 = vsel %vm3389_vm8, %v3355_v27, %v2804_v7  ;;  %v15868_v19 = vld [vmem:[#allocation269_spill] sm:$0xff]  ;;  %v750_v7 = vld [vmem:[#allocation2 + $0x3ef] sm:$0xff] }
 0x442   :  { %2587 = vrot.lane.b32.xlu0 %v809_v44, %s9729_s1  ;;  %9205 = vmatprep.mubr.msk.f32.mxu0 %vm3465_vm9, %v3420_v10  ;;  %v3227_v15 = vsel %vm3194_vm5, %v3162_v55, %v15868_v19  ;;  %v15874_v44 = vld [vmem:[#allocation152_spill] sm:$0xff]  ;;  %v2971_v55 = vsel %vm100_vm0, %v9676_v48, %v15880_v34  ;;  %v15882_v19 = vld [vmem:[#allocation95_spill] sm:$0xff]  ;;  %v751_v40 = vld [vmem:[#allocation2 + $0x407] sm:$0xff] }
 0x443   :  { %v2550_v22 = vpop.permute.xlu1 %2549  ;;  %v15876_v10 = vld [vmem:[#allocation212_spill] sm:$0xff] }
 0x444   :  { %v3356_v26 = vsel %vm3324_vm7, %v3291_v30, %v2550_v22  ;;  %v2296_v32 = vpop.permute.xlu0 %2295  ;;  %v9675_v22 = vld [vmem:[#allocation2 + $0x26f] sm:$0xff]  ;;  %v3099_v30 = vsel %vm3064_vm3, %v3034_v25, %v15874_v44  ;;  %v15899_v48 = vld [vmem:[#allocation276_spill] sm:$0xff] }
 0x445   :  { %2333 = vrot.lane.b32.xlu1 %v746_v11, %s9728_s29  ;;  %v3292_v33 = vsel %vm3259_vm6, %v3227_v15, %v2296_v32  ;;  %v876_v11 = vld [vmem:[#allocation2 + $0x3d1] sm:$0xff]  ;;  %v2970_v1 = vsel %vm100_vm0, %v9675_v22, %v15871_v63  ;;  %v3036_v15 = vsel %vm2999_vm2, %v2971_v55, %v15882_v19  ;;  %v815_v22 = vld [vmem:[#allocation2 + $0x408] sm:$0xff] }
 0x446   :  { %2843 = vrot.lane.b32.xlu0 %v873_v50, %s9730_s20  ;;  %v3035_v12 = vsel %vm2999_vm2, %v2970_v1, %v15873_v61  ;;  %v816_v25 = vld [vmem:[#allocation2 + $0x410] sm:$0xff] }
 0x447   :  { %v2806_v3 = vpop.permute.xlu1 %2805 }
 0x448   :  { %v3421_v49 = vsel %vm3389_vm8, %v3356_v26, %v2806_v3  ;;  %v2552_v24 = vpop.permute.xlu0 %2551  ;;  %v3164_v3 = vsel %vm3129_vm4, %v3099_v30, %v15876_v10  ;;  %v879_v30 = vld [vmem:[#allocation2 + $0x409] sm:$0xff] }
 0x449   :  { %2589 = vrot.lane.b32.xlu1 %v810_v38, %s9729_s1  ;;  %9206 = vmatmul.mubr.msk.f32.gmra.mxu0 %vm3465_vm9, %v3421_v49  ;;  %v3357_v59 = vsel %vm3324_vm7, %v3292_v33, %v2552_v24  ;;  %v15875_v38 = vld [vmem:[#allocation153_spill] sm:$0xff]  ;;  %v3229_v32 = vsel %vm3194_vm5, %v3164_v3, %v15878_v54  ;;  %v15890_v10 = vld [vmem:[#allocation38_spill] sm:$0xff] }
 0x44a   :  { %2335 = vrot.lane.b32.xlu0 %v747_v9, %s9728_s29  ;;  %v3100_v26 = vsel %vm3064_vm3, %v3035_v12, %v15875_v38  ;;  %v15892_v54 = vld [vmem:[#allocation97_spill] sm:$0xff] }
 0x44b   :  { %v2298_v47 = vpop.permute.xlu1 %2297  ;;  %v3165_v50 = vsel %vm3129_vm4, %v3100_v26, %v15877_v31  ;;  %v9678_v26 = vld [vmem:[#allocation2 + $0x2a7] sm:$0xff]  ;;  %v15891_v31 = vld [vmem:[#allocation39_spill] sm:$0xff] }
 0x44c   :  { %v3293_v0 = vsel %vm3259_vm6, %v3228_v36, %v2298_v47  ;;  %v2808_v8 = vpop.permute.xlu0 %2807  ;;  %v15883_v36 = vld [vmem:[#allocation96_spill] sm:$0xff]  ;;  %v2973_v3 = vsel %vm100_vm0, %v9678_v26, %v15890_v10  ;;  %v15909_v26 = vld [vmem:[#allocation278_spill] sm:$0xff] }
 0x44d   :  { %2845 = vrot.lane.b32.xlu1 %v874_v58, %s9730_s20  ;;  %v3422_v17 = vsel %vm3389_vm8, %v3357_v59, %v2808_v8  ;;  %v15879_v58 = vld [vmem:[#allocation272_spill] sm:$0xff]  ;;  %v752_v8 = vld [vmem:[#allocation2 + $0x40f] sm:$0xff] }
 0x44e   :  { %2591 = vrot.lane.b32.xlu0 %v811_v43, %s9729_s1  ;;  %9208 = vmatprep.mubr.msk.f32.mxu0 %vm3465_vm9, %v3422_v17  ;;  %v3230_v47 = vsel %vm3194_vm5, %v3165_v50, %v15879_v58  ;;  %v15884_v43 = vld [vmem:[#allocation154_spill] sm:$0xff] }
 0x44f   :  { %v2554_v46 = vpop.permute.xlu1 %2553  ;;  %v15886_v17 = vld [vmem:[#allocation214_spill] sm:$0xff] }
 0x450   :  { %v3358_v41 = vsel %vm3324_vm7, %v3293_v0, %v2554_v46  ;;  %v2300_v28 = vpop.permute.xlu0 %2299  ;;  %v9677_v46 = vld [vmem:[#allocation2 + $0x28f] sm:$0xff]  ;;  %v3101_v0 = vsel %vm3064_vm3, %v3036_v15, %v15884_v43  ;;  %v753_v58 = vld [vmem:[#allocation2 + $0x427] sm:$0xff] }
 0x451   :  { %2337 = vrot.lane.b32.xlu1 %v748_v5, %s9728_s29  ;;  %v3294_v37 = vsel %vm3259_vm6, %v3229_v32, %v2300_v28  ;;  %v878_v5 = vld [vmem:[#allocation2 + $0x3f1] sm:$0xff]  ;;  %v2972_v56 = vsel %vm100_vm0, %v9677_v46, %v15881_v6  ;;  %v3038_v32 = vsel %vm2999_vm2, %v2973_v3, %v15892_v54  ;;  %v817_v46 = vld [vmem:[#allocation2 + $0x428] sm:$0xff] }
 0x452   :  { %2847 = vrot.lane.b32.xlu0 %v875_v20, %s9730_s20  ;;  %v3037_v33 = vsel %vm2999_vm2, %v2972_v56, %v15883_v36  ;;  %v15887_v20 = vld [vmem:[#allocation215_spill] sm:$0xff] }
 0x453   :  { %v2810_v14 = vpop.permute.xlu1 %2809  ;;  %v818_v15 = vld [vmem:[#allocation2 + $0x430] sm:$0xff] }
 0x454   :  { %v3423_v42 = vsel %vm3389_vm8, %v3358_v41, %v2810_v14  ;;  %v2556_v27 = vpop.permute.xlu0 %2555  ;;  %v3166_v14 = vsel %vm3129_vm4, %v3101_v0, %v15886_v17  ;;  %v881_v0 = vld [vmem:[#allocation2 + $0x429] sm:$0xff]  ;;  %v15900_v17 = vld [vmem:[#allocation40_spill] sm:$0xff] }
 0x455   :  { %2593 = vrot.lane.b32.xlu1 %v812_v57, %s9729_s1  ;;  %9209 = vmatmul.mubr.msk.f32.gmra.mxu0 %vm3465_vm9, %v3423_v42  ;;  %v3359_v13 = vsel %vm3324_vm7, %v3294_v37, %v2556_v27  ;;  %v15885_v57 = vld [vmem:[#allocation155_spill] sm:$0xff] }
 0x456   :  { %2339 = vrot.lane.b32.xlu0 %v749_v51, %s9728_s29  ;;  %v3102_v41 = vsel %vm3064_vm3, %v3037_v33, %v15885_v57 }
 0x457   :  { %v2302_v52 = vpop.permute.xlu1 %2301  ;;  %v3167_v28 = vsel %vm3129_vm4, %v3102_v41, %v15887_v20  ;;  %v9680_v41 = vld [vmem:[#allocation2 + $0x2c7] sm:$0xff] }
 0x458   :  { %v3295_v39 = vsel %vm3259_vm6, %v3230_v47, %v2302_v52  ;;  %v2812_v29 = vpop.permute.xlu0 %2811  ;;  %v3232_v35 = vsel %vm3194_vm5, %v3167_v28, %v15889_v45  ;;  %v15893_v47 = vld [vmem:[#allocation98_spill] sm:$0xff]  ;;  %v15901_v20 = vld [vmem:[#allocation41_spill] sm:$0xff] }
 0x459   :  { %2849 = vrot.lane.b32.xlu1 %v876_v11, %s9730_s20  ;;  %v3424_v23 = vsel %vm3389_vm8, %v3359_v13, %v2812_v29  ;;  %v15888_v11 = vld [vmem:[#allocation273_spill] sm:$0xff]  ;;  %v754_v29 = vld [vmem:[#allocation2 + $0x42f] sm:$0xff] }
 0x45a   :  { %2595 = vrot.lane.b32.xlu0 %v813_v62, %s9729_s1  ;;  %9211 = vmatprep.mubr.msk.f32.mxu0 %vm3465_vm9, %v3424_v23  ;;  %v3231_v52 = vsel %vm3194_vm5, %v3166_v14, %v15888_v11  ;;  %v15894_v62 = vld [vmem:[#allocation156_spill] sm:$0xff]  ;;  %v2975_v14 = vsel %vm100_vm0, %v9680_v41, %v15900_v17  ;;  %v15902_v11 = vld [vmem:[#allocation99_spill] sm:$0xff]  ;;  %v755_v45 = vld [vmem:[#allocation2 + $0x447] sm:$0xff] }
 0x45b   :  { %v2558_v49 = vpop.permute.xlu1 %2557  ;;  %v15896_v23 = vld [vmem:[#allocation216_spill] sm:$0xff] }
 0x45c   :  { %v3360_v9 = vsel %vm3324_vm7, %v3295_v39, %v2558_v49  ;;  %v2304_v24 = vpop.permute.xlu0 %2303  ;;  %v9679_v49 = vld [vmem:[#allocation2 + $0x2af] sm:$0xff]  ;;  %v3103_v39 = vsel %vm3064_vm3, %v3038_v32, %v15894_v62 }
 0x45d   :  { %2341 = vrot.lane.b32.xlu1 %v750_v7, %s9728_s29  ;;  %v3296_v21 = vsel %vm3259_vm6, %v3231_v52, %v2304_v24  ;;  %v880_v7 = vld [vmem:[#allocation2 + $0x411] sm:$0xff]  ;;  %v2974_v50 = vsel %vm100_vm0, %v9679_v49, %v15891_v31  ;;  %v3040_v52 = vsel %vm2999_vm2, %v2975_v14, %v15902_v11  ;;  %v819_v49 = vld [vmem:[#allocation2 + $0x448] sm:$0xff] }
 0x45e   :  { %2851 = vrot.lane.b32.xlu0 %v877_v2, %s9730_s20  ;;  %v3039_v37 = vsel %vm2999_vm2, %v2974_v50, %v15893_v47  ;;  %v15897_v2 = vld [vmem:[#allocation217_spill] sm:$0xff]  ;;  %v820_v32 = vld [vmem:[#allocation2 + $0x450] sm:$0xff]  ;;  %v15919_v14 = vld [vmem:[#allocation280_spill] sm:$0xff] }
 0x45f   :  { %v2814_v60 = vpop.permute.xlu1 %2813  ;;  %v821_v11 = vld [vmem:[#allocation2 + $0x468] sm:$0xff] }
 0x460   :  { %v3425_v4 = vsel %vm3389_vm8, %v3360_v9, %v2814_v60  ;;  %v2560_v59 = vpop.permute.xlu0 %2559  ;;  %v3168_v60 = vsel %vm3129_vm4, %v3103_v39, %v15896_v23  ;;  %v883_v39 = vld [vmem:[#allocation2 + $0x449] sm:$0xff] }
 0x461   :  { %2597 = vrot.lane.b32.xlu1 %v814_v16, %s9729_s1  ;;  %9212 = vmatmul.mubr.msk.f32.gmra.mxu0 %vm3465_vm9, %v3425_v4  ;;  %v3361_v1 = vsel %vm3324_vm7, %v3296_v21, %v2560_v59  ;;  %v15895_v16 = vld [vmem:[#allocation157_spill] sm:$0xff]  ;;  %v15910_v23 = vld [vmem:[#allocation42_spill] sm:$0xff] }
 0x462   :  { %2343 = vrot.lane.b32.xlu0 %v751_v40, %s9728_s29  ;;  %v3104_v9 = vsel %vm3064_vm3, %v3039_v37, %v15895_v16 }
 0x463   :  { %v2306_v53 = vpop.permute.xlu1 %2305  ;;  %v3169_v24 = vsel %vm3129_vm4, %v3104_v9, %v15897_v2  ;;  %v9682_v9 = vld [vmem:[#allocation2 + $0x2e7] sm:$0xff]  ;;  %v15911_v2 = vld [vmem:[#allocation43_spill] sm:$0xff] }
 0x464   :  { %v3297_v63 = vsel %vm3259_vm6, %v3232_v35, %v2306_v53  ;;  %v2816_v18 = vpop.permute.xlu0 %2815  ;;  %v3234_v34 = vsel %vm3194_vm5, %v3169_v24, %v15899_v48  ;;  %v15903_v35 = vld [vmem:[#allocation100_spill] sm:$0xff]  ;;  %v757_v48 = vld [vmem:[#allocation2 + $0x467] sm:$0xff] }
 0x465   :  { %2853 = vrot.lane.b32.xlu1 %v878_v5, %s9730_s20  ;;  %v3426_v61 = vsel %vm3389_vm8, %v3361_v1, %v2816_v18  ;;  %v15898_v5 = vld [vmem:[#allocation275_spill] sm:$0xff] }
 0x466   :  { %2599 = vrot.lane.b32.xlu0 %v815_v22, %s9729_s1  ;;  %9214 = vmatprep.mubr.msk.f32.mxu0 %vm3465_vm9, %v3426_v61  ;;  %v3233_v53 = vsel %vm3194_vm5, %v3168_v60, %v15898_v5  ;;  %v15904_v22 = vld [vmem:[#allocation158_spill] sm:$0xff]  ;;  %v2977_v60 = vsel %vm100_vm0, %v9682_v9, %v15910_v23  ;;  %v15912_v5 = vld [vmem:[#allocation101_spill] sm:$0xff] }
 0x467   :  { %v2562_v42 = vpop.permute.xlu1 %2561  ;;  %v756_v18 = vld [vmem:[#allocation2 + $0x44f] sm:$0xff] }
 0x468   :  { %v3362_v51 = vsel %vm3324_vm7, %v3297_v63, %v2562_v42  ;;  %v2308_v27 = vpop.permute.xlu0 %2307  ;;  %v9681_v42 = vld [vmem:[#allocation2 + $0x2cf] sm:$0xff]  ;;  %v3105_v63 = vsel %vm3064_vm3, %v3040_v52, %v15904_v22 }
 0x469   :  { %2345 = vrot.lane.b32.xlu1 %v752_v8, %s9728_s29  ;;  %v3298_v55 = vsel %vm3259_vm6, %v3233_v53, %v2308_v27  ;;  %v882_v8 = vld [vmem:[#allocation2 + $0x431] sm:$0xff]  ;;  %v2976_v28 = vsel %vm100_vm0, %v9681_v42, %v15901_v20  ;;  %v15906_v61 = vld [vmem:[#allocation218_spill] sm:$0xff]  ;;  %v3042_v53 = vsel %vm2999_vm2, %v2977_v60, %v15912_v5 }
 0x46a   :  { %2855 = vrot.lane.b32.xlu0 %v879_v30, %s9730_s20  ;;  %v3041_v21 = vsel %vm2999_vm2, %v2976_v28, %v15903_v35  ;;  %v15907_v30 = vld [vmem:[#allocation219_spill] sm:$0xff]  ;;  %v15926_v23 = vld [vmem:[#allocation222_spill] sm:$0xff] }
 0x46b   :  { %v2818_v12 = vpop.permute.xlu1 %2817  ;;  %v822_v22 = vld [vmem:[#allocation2 + $0x470] sm:$0xff] }
 0x46c   :  { %v3427_v44 = vsel %vm3389_vm8, %v3362_v51, %v2818_v12  ;;  %v2564_v13 = vpop.permute.xlu0 %2563  ;;  %v3170_v12 = vsel %vm3129_vm4, %v3105_v63, %v15906_v61  ;;  %v885_v61 = vld [vmem:[#allocation2 + $0x469] sm:$0xff] }
 0x46d   :  { %2601 = vrot.lane.b32.xlu1 %v816_v25, %s9729_s1  ;;  %9215 = vmatmul.mubr.msk.f32.gmra.mxu0 %vm3465_vm9, %v3427_v44  ;;  %v3363_v56 = vsel %vm3324_vm7, %v3298_v55, %v2564_v13  ;;  %v15905_v25 = vld [vmem:[#allocation159_spill] sm:$0xff] }
 0x46e   :  { %2347 = vrot.lane.b32.xlu0 %v753_v58, %s9728_s29  ;;  %v3106_v51 = vsel %vm3064_vm3, %v3041_v21, %v15905_v25 }
 0x46f   :  { %v2310_v38 = vpop.permute.xlu1 %2309  ;;  %v3171_v27 = vsel %vm3129_vm4, %v3106_v51, %v15907_v30 }
 0x470   :  { %v3299_v6 = vsel %vm3259_vm6, %v3234_v34, %v2310_v38  ;;  %v2820_v19 = vpop.permute.xlu0 %2819  ;;  %v3236_v10 = vsel %vm3194_vm5, %v3171_v27, %v15909_v26  ;;  %v15913_v34 = vld [vmem:[#allocation102_spill] sm:$0xff] }
 0x471   :  { %2857 = vrot.lane.b32.xlu1 %v880_v7, %s9730_s20  ;;  %v3428_v36 = vsel %vm3389_vm8, %v3363_v56, %v2820_v19  ;;  %v15908_v7 = vld [vmem:[#allocation277_spill] sm:$0xff] }
 0x472   :  { %2603 = vrot.lane.b32.xlu0 %v817_v46, %s9729_s1  ;;  %9217 = vmatprep.mubr.msk.f32.mxu0 %vm3465_vm9, %v3428_v36  ;;  %v3235_v38 = vsel %vm3194_vm5, %v3170_v12, %v15908_v7  ;;  %v15914_v46 = vld [vmem:[#allocation160_spill] sm:$0xff]  ;;  %v12588_v19 = vld [vmem:[%s15417_s2] ss:$0 sm:$0xff]  ;;  %v9684_v27 = vld [vmem:[#allocation2 + $0x307] sm:$0xff] }
 0x473   :  { %v2566_v4 = vpop.permute.xlu1 %2565  ;;  %v15920_v7 = vld [vmem:[#allocation44_spill] sm:$0xff] }
 0x474   :  { %v3364_v40 = vsel %vm3324_vm7, %v3299_v6, %v2566_v4  ;;  %v2312_v59 = vpop.permute.xlu0 %2311  ;;  %v9683_v4 = vld [vmem:[#allocation2 + $0x2ef] sm:$0xff]  ;;  %v3107_v6 = vsel %vm3064_vm3, %v3042_v53, %v15914_v46  ;;  %v15928_v53 = vld [vmem:[#allocation281_spill] sm:$0xff] }
 0x475   :  { %2349 = vrot.lane.b32.xlu1 %v754_v29, %s9728_s29  ;;  %v3300_v3 = vsel %vm3259_vm6, %v3235_v38, %v2312_v59  ;;  %v884_v29 = vld [vmem:[#allocation2 + $0x451] sm:$0xff]  ;;  %v2978_v24 = vsel %vm100_vm0, %v9683_v4, %v15911_v2  ;;  %v15917_v59 = vld [vmem:[#allocation221_spill] sm:$0xff]  ;;  %v2979_v38 = vsel %vm100_vm0, %v9684_v27, %v15920_v7 }
 0x476   :  { %2859 = vrot.lane.b32.xlu0 %v881_v0, %s9730_s20  ;;  %v3043_v55 = vsel %vm2999_vm2, %v2978_v24, %v15913_v34  ;;  %v15927_v24 = vld [vmem:[#allocation223_spill] sm:$0xff]  ;;  %v15929_v34 = vld [vmem:[#allocation282_spill] sm:$0xff]  ;;  %v15936_v27 = vld [vmem:[#allocation224_spill] sm:$0xff] }
 0x477   :  { %v2822_v33 = vpop.permute.xlu1 %2821 }
 0x478   :  { %v3429_v43 = vsel %vm3389_vm8, %v3364_v40, %v2822_v33  ;;  %v2568_v1 = vpop.permute.xlu0 %2567  ;;  %v15915_v40 = vld [vmem:[#allocation161_spill] sm:$0xff]  ;;  %v15916_v33 = vld [vmem:[#allocation220_spill] sm:$0xff] }
 0x479   :  { %2605 = vrot.lane.b32.xlu1 %v818_v15, %s9729_s1  ;;  %9218 = vmatmul.mubr.msk.f32.gmra.mxu0 %vm3465_vm9, %v3429_v43  ;;  %v3365_v50 = vsel %vm3324_vm7, %v3300_v3, %v2568_v1  ;;  %v758_v15 = vld [vmem:[#allocation2 + $0x46f] sm:$0xff]  ;;  %v3108_v36 = vsel %vm3064_vm3, %v3043_v55, %v15915_v40  ;;  %v3172_v43 = vsel %vm3129_vm4, %v3107_v6, %v15916_v33  ;;  %v15921_v3 = vld [vmem:[#allocation45_spill] sm:$0xff] }
 0x47a   :  { %2351 = vrot.lane.b32.xlu0 %v755_v45, %s9728_s29  ;;  %v4384_v6 = vld [vmem:[#allocation3 + $0x9] sm:$0xff] }
 0x47b   :  { %v2314_v57 = vpop.permute.xlu1 %2313 }
 0x47c   :  { %v3301_v31 = vsel %vm3259_vm6, %v3236_v10, %v2314_v57  ;;  %v2824_v54 = vpop.permute.xlu0 %2823  ;;  %v15918_v57 = vld [vmem:[#allocation279_spill] sm:$0xff] }
 0x47d   :  { %2861 = vrot.lane.b32.xlu1 %v882_v8, %s9730_s20  ;;  %v3430_v47 = vsel %vm3389_vm8, %v3365_v50, %v2824_v54  ;;  %v3173_v8 = vsel %vm3129_vm4, %v3108_v36, %v15917_v59  ;;  %v3237_v41 = vsel %vm3194_vm5, %v3172_v43, %v15918_v57  ;;  %v9685_v10 = vld [vmem:[#allocation2 + $0x30f] sm:$0xff] }
 0x47e   :  { %2607 = vrot.lane.b32.xlu0 %v819_v49, %s9729_s1  ;;  %9220 = vmatprep.mubr.msk.f32.mxu0 %vm3465_vm9, %v3430_v47  ;;  %v3238_v42 = vsel %vm3194_vm5, %v3173_v8, %v15919_v14  ;;  %v2980_v49 = vsel %vm100_vm0, %v9685_v10, %v15921_v3  ;;  %v4385_v36 = vld [vmem:[#allocation3 + $0x11] sm:$0xff]  ;;  %v15937_v10 = vld [vmem:[#allocation225_spill] sm:$0xff] }
 0x47f   :  { %v2570_v44 = vpop.permute.xlu1 %2569 }
 0x480   :  { %v3366_v58 = vsel %vm3324_vm7, %v3301_v31, %v2570_v44  ;;  %v2316_v13 = vpop.permute.xlu0 %2315  ;;  %v886_v44 = vld [vmem:[#allocation2 + $0x471] sm:$0xff] }
 0x481   :  { %2353 = vrot.lane.b32.xlu1 %v756_v18, %s9728_s29  ;;  %v3302_v20 = vsel %vm3259_vm6, %v3237_v41, %v2316_v13  ;;  %v15922_v31 = vld [vmem:[#allocation103_spill] sm:$0xff] }
 0x482   :  { %2863 = vrot.lane.b32.xlu0 %v883_v39, %s9730_s20  ;;  %v3044_v50 = vsel %vm2999_vm2, %v2979_v38, %v15922_v31 }
 0x483   :  { %v2826_v37 = vpop.permute.xlu1 %2825 }
 0x484   :  { %v3431_v62 = vsel %vm3389_vm8, %v3366_v58, %v2826_v37  ;;  %v2572_v56 = vpop.permute.xlu0 %2571  ;;  %v15923_v58 = vld [vmem:[#allocation104_spill] sm:$0xff]  ;;  %v15924_v37 = vld [vmem:[#allocation162_spill] sm:$0xff] }
 0x485   :  { %2609 = vrot.lane.b32.xlu1 %v820_v32, %s9729_s1  ;;  %9221 = vmatmul.mubr.msk.f32.gmra.mxu0 %vm3465_vm9, %v3431_v62  ;;  %v3367_v45 = vsel %vm3324_vm7, %v3302_v20, %v2572_v56  ;;  %v4320_v32 = vld [vmem:[#allocation3 + $0x8] sm:$0xff]  ;;  %v3045_v47 = vsel %vm2999_vm2, %v2980_v49, %v15923_v58  ;;  %v3109_v62 = vsel %vm3064_vm3, %v3044_v50, %v15924_v37  ;;  %v15938_v49 = vld [vmem:[#allocation283_spill] sm:$0xff] }
 0x486   :  { %2355 = vrot.lane.b32.xlu0 %v757_v48, %s9728_s29  ;;  %v3174_v60 = vsel %vm3129_vm4, %v3109_v62, %v15926_v23 }
 0x487   :  { %v2318_v16 = vpop.permute.xlu1 %2317  ;;  %v3239_v48 = vsel %vm3194_vm5, %v3174_v60, %v15928_v53  ;;  %v9688_v53 = vld [vmem:[#allocation2 + $0x347] sm:$0xff] }
 0x488   :  { %v3303_v52 = vsel %vm3259_vm6, %v3238_v42, %v2318_v16  ;;  %v2828_v35 = vpop.permute.xlu0 %2827  ;;  %v15925_v16 = vld [vmem:[#allocation163_spill] sm:$0xff] }
 0x489   :  { %2865 = vrot.lane.b32.xlu1 %v884_v29, %s9730_s20  ;;  %v3432_v1 = vsel %vm3389_vm8, %v3367_v45, %v2828_v35  ;;  %v4321_v29 = vld [vmem:[#allocation3 + $0x10] sm:$0xff]  ;;  %v3110_v9 = vsel %vm3064_vm3, %v3045_v47, %v15925_v16 }
 0x48a   :  { %v9162_v17 = vpop.f32.mrf.mxu0  ;;  %2611 = vrot.lane.b32.xlu0 %v821_v11, %s9729_s1  ;;  %9223 = vmatprep.mubr.msk.f32.mxu0 %vm3465_vm9, %v3432_v1  ;;  %v3175_v5 = vsel %vm3129_vm4, %v3110_v9, %v15927_v24  ;;  %v15930_v11 = vld [vmem:[#allocation46_spill] sm:$0xff] }
 0x48b   :  { %v2574_v0 = vpop.permute.xlu1 %2573  ;;  %v3734_v28 = vadd.f32 %v9162_v17, %v12588_v19  ;;  %v3240_v55 = vsel %vm3194_vm5, %v3175_v5, %v15929_v34  ;;  %v9687_v35 = vld [vmem:[#allocation2 + $0x32f] sm:$0xff] }
 0x48c   :  { %v3728_v21 = vpop.f32.mrf.mxu0  ;;  %v3368_v63 = vsel %vm3324_vm7, %v3303_v52, %v2574_v0  ;;  %v2320_v12 = vpop.permute.xlu0 %2319 }
 0x48d   :  { %2357 = vrot.lane.b32.xlu1 %v758_v15, %s9728_s29  ;;  %4193 = vst.msk [vmem:[#allocation3 + $0x30] sm:$0xff] %vm100_vm0, %v3734_v28  ;;  %v3729_v18 = vadd.f32 %v12588_v19, %v3728_v21  ;;  %v3304_v46 = vsel %vm3259_vm6, %v3239_v48, %v2320_v12  ;;  %v9686_v28 = vld [vmem:[#allocation2 + $0x327] sm:$0xff]  ;;  %v15931_v21 = vld [vmem:[#allocation47_spill] sm:$0xff]  ;;  %v15940_v48 = vld [vmem:[#allocation48_spill] sm:$0xff] }
 0x48e   :  { %2867 = vrot.lane.b32.xlu0 %v885_v61, %s9730_s20  ;;  %v2981_v52 = vsel %vm100_vm0, %v9686_v28, %v15930_v11  ;;  %v2983_v34 = vsel %vm100_vm0, %v9688_v53, %v15940_v48  ;;  %v15956_v48 = vld [vmem:[#allocation228_spill] sm:$0xff] }
 0x48f   :  { %v2830_v25 = vpop.permute.xlu1 %2829  ;;  %4192 = vst.msk [vmem:[#allocation3 + $0x28] sm:$0xff] %vm100_vm0, %v3729_v18  ;;  %v15933_v18 = vld [vmem:[#allocation106_spill] sm:$0xff] }
 0x490   :  { %v3433_v51 = vsel %vm3389_vm8, %v3368_v63, %v2830_v25  ;;  %v2576_v39 = vpop.permute.xlu0 %2575  ;;  %v15932_v63 = vld [vmem:[#allocation105_spill] sm:$0xff] }
 0x491   :  { %2613 = vrot.lane.b32.xlu1 %v822_v22, %s9729_s1  ;;  %9224 = vmatmul.mubr.msk.f32.gmra.mxu0 %vm3465_vm9, %v3433_v51  ;;  %v3369_v15 = vsel %vm3324_vm7, %v3304_v46, %v2576_v39  ;;  %v2982_v22 = vsel %vm100_vm0, %v9687_v35, %v15931_v21  ;;  %v3046_v1 = vsel %vm2999_vm2, %v2981_v52, %v15932_v63  ;;  %v15934_v51 = vld [vmem:[#allocation164_spill] sm:$0xff]  ;;  %v9689_v46 = vld [vmem:[#allocation2 + $0x34f] sm:$0xff]  ;;  %v15948_v35 = vld [vmem:[#allocation285_spill] sm:$0xff] }
 0x492   :  { %v9165_v26 = vpop.f32.mrf.mxu0  ;;  %4897 = vrot.lane.b32.xlu0 %v4320_v32, %s9723_s17  ;;  %v3047_v25 = vsel %vm2999_vm2, %v2982_v22, %v15933_v18  ;;  %v3111_v61 = vsel %vm3064_vm3, %v3046_v1, %v15934_v51  ;;  %v15947_v52 = vld [vmem:[#allocation227_spill] sm:$0xff]  ;;  %v15949_v63 = vld [vmem:[#allocation286_spill] sm:$0xff] }
 0x493   :  { %v2322_v30 = vpop.permute.xlu1 %2321  ;;  %v3744_v54 = vadd.f32 %v9165_v26, %v12588_v19  ;;  %v3176_v7 = vsel %vm3129_vm4, %v3111_v61, %v15936_v27 }
 0x494   :  { %v3738_v13 = vpop.f32.mrf.mxu0  ;;  %v3305_v56 = vsel %vm3259_vm6, %v3240_v55, %v2322_v30  ;;  %v2832_v40 = vpop.permute.xlu0 %2831  ;;  %v3241_v31 = vsel %vm3194_vm5, %v3176_v7, %v15938_v49  ;;  %v4513_v60 = vld [vmem:[#allocation3 + $0x30] sm:$0xff] }
 0x495   :  { %2869 = vrot.lane.b32.xlu1 %v886_v44, %s9730_s20  ;;  %4195 = vst.msk [vmem:[#allocation3 + $0x50] sm:$0xff] %vm100_vm0, %v3744_v54  ;;  %v3739_v4 = vadd.f32 %v12588_v19, %v3738_v13  ;;  %v3434_v43 = vsel %vm3389_vm8, %v3369_v15, %v2832_v40  ;;  %v15935_v44 = vld [vmem:[#allocation165_spill] sm:$0xff]  ;;  %v15939_v54 = vld [vmem:[#allocation284_spill] sm:$0xff]  ;;  %v15942_v15 = vld [vmem:[#allocation107_spill] sm:$0xff] }
 0x496   :  { %5153 = vrot.lane.b32.xlu0 %v4384_v6, %s9724_s18  ;;  %9226 = vmatprep.mubr.msk.f32.mxu0 %vm3465_vm9, %v3434_v43  ;;  %v4448_v20 = vld [vmem:[#allocation3 + $0x27] sm:$0xff]  ;;  %v4449_v45 = vld [vmem:[#allocation3 + $0x2f] sm:$0xff]  ;;  %v3112_v30 = vsel %vm3064_vm3, %v3047_v25, %v15935_v44  ;;  %v3048_v40 = vsel %vm2999_vm2, %v2983_v34, %v15942_v15 }
 0x497   :  { %v2578_v2 = vpop.permute.xlu1 %2577  ;;  %4194 = vst.msk [vmem:[#allocation3 + $0x48] sm:$0xff] %vm100_vm0, %v3739_v4  ;;  %v4512_v26 = vld [vmem:[#allocation3 + $0x28] sm:$0xff]  ;;  %v3177_v3 = vsel %vm3129_vm4, %v3112_v30, %v15937_v10  ;;  %v15941_v6 = vld [vmem:[#allocation49_spill] sm:$0xff]  ;;  %v4577_v11 = vld [vmem:[#allocation3 + $0x31] sm:$0xff] }
 0x498   :  { %v3370_v33 = vsel %vm3324_vm7, %v3305_v56, %v2578_v2  ;;  %v2324_v41 = vpop.permute.xlu0 %2323  ;;  %v3242_v32 = vsel %vm3194_vm5, %v3177_v3, %v15939_v54  ;;  %v4576_v2 = vld [vmem:[#allocation3 + $0x29] sm:$0xff]  ;;  %v2984_v56 = vsel %vm100_vm0, %v9689_v46, %v15941_v6  ;;  %v7393_v46 = vld [vmem:[%s15418_s3] sm:$0xff] }
 0x499   :  { %4899 = vrot.lane.b32.xlu1 %v4321_v29, %s9723_s17  ;;  %v3306_v58 = vsel %vm3259_vm6, %v3241_v31, %v2324_v41  ;;  %v15945_v41 = vld [vmem:[#allocation167_spill] sm:$0xff]  ;;  %v15957_v6 = vld [vmem:[#allocation229_spill] sm:$0xff] }
 0x49a   :  { %v9168_v8 = vpop.f32.mrf.mxu0  ;;  %5409 = vrot.lane.b32.xlu0 %v4448_v20, %s9725_s0  ;;  %v7395_v54 = vld [vmem:[%s15418_s3 + $0x10] sm:$0xff] }
 0x49b   :  { %v2834_v0 = vpop.permute.xlu1 %2833  ;;  %v3754_v57 = vadd.f32 %v9168_v8, %v12588_v19  ;;  %v15958_v15 = vld [vmem:[#allocation287_spill] sm:$0xff] }
 0x49c   :  { %v3435_v59 = vsel %vm3389_vm8, %v3370_v33, %v2834_v0  ;;  %v3748_v17 = vpop.f32.mrf.mxu0  ;;  %v2580_v12 = vpop.permute.xlu0 %2579  ;;  %v15943_v33 = vld [vmem:[#allocation108_spill] sm:$0xff]  ;;  %v15944_v0 = vld [vmem:[#allocation166_spill] sm:$0xff] }
 0x49d   :  { %5155 = vrot.lane.b32.xlu1 %v4385_v36, %s9724_s18  ;;  %9227 = vmatmul.mubr.msk.f32.gmra.mxu0 %vm3465_vm9, %v3435_v59  ;;  %4197 = vst.msk [vmem:[#allocation3 + $0x70] sm:$0xff] %vm100_vm0, %v3754_v57  ;;  %v3749_v14 = vadd.f32 %v12588_v19, %v3748_v17  ;;  %v3371_v62 = vsel %vm3324_vm7, %v3306_v58, %v2580_v12  ;;  %v15950_v58 = vld [vmem:[#allocation50_spill] sm:$0xff] }
 0x49e   :  { %5665 = vrot.lane.b32.xlu0 %v4512_v26, %s9726_s27  ;;  %v3049_v43 = vsel %vm2999_vm2, %v2984_v56, %v15943_v33  ;;  %v3113_v59 = vsel %vm3064_vm3, %v3048_v40, %v15944_v0  ;;  %v4641_v22 = vld [vmem:[#allocation3 + $0x47] sm:$0xff]  ;;  %v15959_v33 = vld [vmem:[#allocation288_spill] sm:$0xff] }
 0x49f   :  { %v2326_v42 = vpop.permute.xlu1 %2325  ;;  %4196 = vst.msk [vmem:[#allocation3 + $0x68] sm:$0xff] %vm100_vm0, %v3749_v14  ;;  %v3114_v17 = vsel %vm3064_vm3, %v3049_v43, %v15945_v41  ;;  %v15946_v14 = vld [vmem:[#allocation226_spill] sm:$0xff] }
 0x4a0   :  { %v3307_v37 = vsel %vm3259_vm6, %v3242_v32, %v2326_v42  ;;  %v2836_v39 = vpop.permute.xlu0 %2835  ;;  %v3178_v42 = vsel %vm3129_vm4, %v3113_v59, %v15946_v14  ;;  %v9690_v32 = vld [vmem:[#allocation2 + $0x367] sm:$0xff] }
 0x4a1   :  { %5411 = vrot.lane.b32.xlu1 %v4449_v45, %s9725_s0  ;;  %v3436_v16 = vsel %vm3389_vm8, %v3371_v62, %v2836_v39  ;;  %v3179_v45 = vsel %vm3129_vm4, %v3114_v17, %v15947_v52  ;;  %v3243_v21 = vsel %vm3194_vm5, %v3178_v42, %v15948_v35  ;;  %v9691_v62 = vld [vmem:[#allocation2 + $0x36f] sm:$0xff] }
 0x4a2   :  { %v9171_v50 = vpop.f32.mrf.mxu0  ;;  %5667 = vrot.lane.b32.xlu0 %v4513_v60, %s9726_s27  ;;  %9229 = vmatprep.mubr.msk.f32.mxu0 %vm3465_vm9, %v3436_v16  ;;  %v3244_v1 = vsel %vm3194_vm5, %v3179_v45, %v15949_v63  ;;  %v15951_v39 = vld [vmem:[#allocation51_spill] sm:$0xff]  ;;  %v15960_v63 = vld [vmem:[#allocation52_spill] sm:$0xff] }
 0x4a3   :  { %v2582_v38 = vpop.permute.xlu1 %2581  ;;  %v3764_v47 = vadd.f32 %v9171_v50, %v12588_v19  ;;  %v4642_v50 = vld [vmem:[#allocation3 + $0x4f] sm:$0xff] }
 0x4a4   :  { %v3758_v13 = vpop.f32.mrf.mxu0  ;;  %v3372_v29 = vsel %vm3324_vm7, %v3307_v37, %v2582_v38  ;;  %v2328_v24 = vpop.permute.xlu0 %2327  ;;  %v4705_v37 = vld [vmem:[#allocation3 + $0x48] sm:$0xff] }
 0x4a5   :  { %4901 = vrot.lane.b32.xlu1 %v4512_v26, %s9723_s17  ;;  %4199 = vst.msk [vmem:[#allocation3 + $0x90] sm:$0xff] %vm100_vm0, %v3764_v47  ;;  %v3759_v9 = vadd.f32 %v12588_v19, %v3758_v13  ;;  %v3308_v18 = vsel %vm3259_vm6, %v3243_v21, %v2328_v24  ;;  %v7396_v26 = vld [vmem:[%s15418_s3 + $0x18] sm:$0x7]  ;;  %v2985_v47 = vsel %vm100_vm0, %v9690_v32, %v15950_v58  ;;  %v4769_v45 = vld [vmem:[#allocation3 + $0x49] sm:$0xff] }
 0x4a6   :  { %4903 = vrot.lane.b32.xlu0 %v4513_v60, %s9723_s17  ;;  %9256 = vmatprep.subr.msk.mxu1 %vm3658_vm1, %v7396_v26  ;;  %v2986_v13 = vsel %vm100_vm0, %v9691_v62, %v15951_v39  ;;  %v15968_v62 = vld [vmem:[#allocation289_spill] sm:$0xff] }
 0x4a7   :  { %v2838_v23 = vpop.permute.xlu1 %2837  ;;  %4198 = vst.msk [vmem:[#allocation3 + $0x88] sm:$0xff] %vm100_vm0, %v3759_v9  ;;  %9257 = vmatpush3.msk.msra.mxu1 %vm3658_vm1, %v7396_v26  ;;  %v7394_v9 = vld [vmem:[%s15418_s3 + $0x8] sm:$0xff] }
 0x4a8   :  { %v3437_v4 = vsel %vm3389_vm8, %v3372_v29, %v2838_v23  ;;  %v2584_v8 = vpop.permute.xlu0 %2583  ;;  %9258 = vmatprep.subr.mxu1 %v7395_v54  ;;  %v15952_v29 = vld [vmem:[#allocation109_spill] sm:$0xff]  ;;  %v15953_v23 = vld [vmem:[#allocation110_spill] sm:$0xff] }
 0x4a9   :  { %5921 = vrot.lane.b32.xlu1 %v4576_v2, %s9727_s28  ;;  %9230 = vmatmul.mubr.msk.f32.gmra.mxu0 %vm3465_vm9, %v3437_v4  ;;  %v3373_v51 = vsel %vm3324_vm7, %v3308_v18, %v2584_v8  ;;  %v3050_v16 = vsel %vm2999_vm2, %v2985_v47, %v15952_v29  ;;  %v3051_v60 = vsel %vm2999_vm2, %v2986_v13, %v15953_v23  ;;  %v15954_v4 = vld [vmem:[#allocation168_spill] sm:$0xff]  ;;  %v15967_v47 = vld [vmem:[#allocation231_spill] sm:$0xff]  ;;  %v15969_v29 = vld [vmem:[#allocation290_spill] sm:$0xff] }
 0x4aa   :  { %v9174_v55 = vpop.f32.mrf.mxu0  ;;  %5923 = vrot.lane.b32.xlu0 %v4577_v11, %s9727_s28  ;;  %9259 = vmatpush3.msra.mxu1 %v7395_v54  ;;  %v4770_v13 = vld [vmem:[#allocation3 + $0x51] sm:$0xff] }
 0x4ab   :  { %v2330_v5 = vpop.permute.xlu1 %2329  ;;  %v3774_v36 = vadd.f32 %v9174_v55, %v12588_v19  ;;  %9260 = vmatprep.subr.mxu1 %v7394_v9 }
 0x4ac   :  { %v3768_v57 = vpop.f32.mrf.mxu0  ;;  %v3309_v25 = vsel %vm3259_vm6, %v3244_v1, %v2330_v5  ;;  %v2840_v61 = vpop.permute.xlu0 %2839  ;;  %v15955_v5 = vld [vmem:[#allocation169_spill] sm:$0xff]  ;;  %9261 = vmatpush3.msra.mxu1 %v7394_v9 }
 0x4ad   :  { %5157 = vrot.lane.b32.xlu1 %v4576_v2, %s9724_s18  ;;  %4201 = vst.msk [vmem:[#allocation3 + $0xb0] sm:$0xff] %vm100_vm0, %v3774_v36  ;;  %v3769_v20 = vadd.f32 %v12588_v19, %v3768_v57  ;;  %v3438_v44 = vsel %vm3389_vm8, %v3373_v51, %v2840_v61  ;;  %v3115_v2 = vsel %vm3064_vm3, %v3050_v16, %v15954_v4  ;;  %v15961_v51 = vld [vmem:[#allocation53_spill] sm:$0xff] }
 0x4ae   :  { %5159 = vrot.lane.b32.xlu0 %v4577_v11, %s9724_s18  ;;  %9232 = vmatprep.mubr.msk.f32.mxu0 %vm3465_vm9, %v3438_v44  ;;  %v3116_v53 = vsel %vm3064_vm3, %v3051_v60, %v15955_v5  ;;  %v3180_v34 = vsel %vm3129_vm4, %v3115_v2, %v15956_v48  ;;  %v4706_v11 = vld [vmem:[#allocation3 + $0x50] sm:$0xff] }
 0x4af   :  { %v2586_v28 = vpop.permute.xlu1 %2585  ;;  %4200 = vst.msk [vmem:[#allocation3 + $0xa8] sm:$0xff] %vm100_vm0, %v3769_v20  ;;  %v3181_v56 = vsel %vm3129_vm4, %v3116_v53, %v15957_v6  ;;  %v3245_v40 = vsel %vm3194_vm5, %v3180_v34, %v15958_v15  ;;  %9262 = vmatprep.subr.mxu1 %v7393_v46  ;;  %v9694_v15 = vld [vmem:[#allocation2 + $0x3a7] sm:$0xff] }
 0x4b0   :  { %v3374_v12 = vsel %vm3324_vm7, %v3309_v25, %v2586_v28  ;;  %v2332_v10 = vpop.permute.xlu0 %2331  ;;  %v3246_v43 = vsel %vm3194_vm5, %v3181_v56, %v15959_v33  ;;  %9263 = vmatpush3.msra.mxu1 %v7393_v46  ;;  %v9693_v25 = vld [vmem:[#allocation2 + $0x38f] sm:$0xff]  ;;  %v12834_v33 = vld [vmem:[#allocation3 + $0x67] sm:$0xff] }
 0x4b1   :  { %6177 = vrot.lane.b32.xlu1 %v4641_v22, %s9728_s29  ;;  %v3310_v0 = vsel %vm3259_vm6, %v3245_v40, %v2332_v10  ;;  %v2988_v61 = vsel %vm100_vm0, %v9693_v25, %v15961_v51  ;;  %v15970_v40 = vld [vmem:[#allocation54_spill] sm:$0xff]  ;;  %v15979_v25 = vld [vmem:[#allocation292_spill] sm:$0xff] }
 0x4b2   :  { %v9177_v7 = vpop.f32.mrf.mxu0  ;;  %6179 = vrot.lane.b32.xlu0 %v4642_v50, %s9728_s29 }
 0x4b3   :  { %v2842_v30 = vpop.permute.xlu1 %2841  ;;  %v3784_v38 = vadd.f32 %v9177_v7, %v12588_v19 }
 0x4b4   :  { %v3439_v27 = vsel %vm3389_vm8, %v3374_v12, %v2842_v30  ;;  %v3778_v3 = vpop.f32.mrf.mxu0  ;;  %v2588_v24 = vpop.permute.xlu0 %2587  ;;  %v15962_v12 = vld [vmem:[#allocation111_spill] sm:$0xff] }
 0x4b5   :  { %9233 = vmatmul.mubr.msk.f32.gmra.mxu0 %vm3465_vm9, %v3439_v27  ;;  %5413 = vrot.lane.b32.xlu1 %v4641_v22, %s9725_s0  ;;  %4203 = vst.msk [vmem:[#allocation3 + $0xd0] sm:$0xff] %vm100_vm0, %v3784_v38  ;;  %v3779_v49 = vadd.f32 %v12588_v19, %v3778_v3  ;;  %v3375_v57 = vsel %vm3324_vm7, %v3310_v0, %v2588_v24  ;;  %v9692_v22 = vld [vmem:[#allocation2 + $0x387] sm:$0xff]  ;;  %v15963_v27 = vld [vmem:[#allocation112_spill] sm:$0xff]  ;;  %v15971_v0 = vld [vmem:[#allocation55_spill] sm:$0xff] }
 0x4b6   :  { %5415 = vrot.lane.b32.xlu0 %v4642_v50, %s9725_s0  ;;  %v2987_v1 = vsel %vm100_vm0, %v9692_v22, %v15960_v63  ;;  %v3053_v7 = vsel %vm2999_vm2, %v2988_v61, %v15963_v27  ;;  %v15964_v38 = vld [vmem:[#allocation170_spill] sm:$0xff]  ;;  %v15978_v63 = vld [vmem:[#allocation291_spill] sm:$0xff] }
 0x4b7   :  { %v2334_v31 = vpop.permute.xlu1 %2333  ;;  %4202 = vst.msk [vmem:[#allocation3 + $0xc8] sm:$0xff] %vm100_vm0, %v3779_v49  ;;  %v3052_v44 = vsel %vm2999_vm2, %v2987_v1, %v15962_v12  ;;  %v15965_v49 = vld [vmem:[#allocation171_spill] sm:$0xff]  ;;  %v15966_v50 = vld [vmem:[#allocation230_spill] sm:$0xff] }
 0x4b8   :  { %v3311_v8 = vsel %vm3259_vm6, %v3246_v43, %v2334_v31  ;;  %v2844_v41 = vpop.permute.xlu0 %2843  ;;  %v3117_v26 = vsel %vm3064_vm3, %v3052_v44, %v15964_v38  ;;  %v3118_v31 = vsel %vm3064_vm3, %v3053_v7, %v15965_v49  ;;  %v9695_v43 = vld [vmem:[#allocation2 + $0x3af] sm:$0xff] }
 0x4b9   :  { %6433 = vrot.lane.b32.xlu1 %v4705_v37, %s9729_s1  ;;  %v3440_v42 = vsel %vm3389_vm8, %v3375_v57, %v2844_v41  ;;  %v3182_v54 = vsel %vm3129_vm4, %v3117_v26, %v15966_v50  ;;  %v15973_v41 = vld [vmem:[#allocation114_spill] sm:$0xff] }
 0x4ba   :  { %v9180_v36 = vpop.f32.mrf.mxu0  ;;  %9235 = vmatprep.mubr.msk.f32.mxu0 %vm3465_vm9, %v3440_v42  ;;  %6435 = vrot.lane.b32.xlu0 %v4706_v11, %s9729_s1  ;;  %v3247_v39 = vsel %vm3194_vm5, %v3182_v54, %v15968_v62  ;;  %v12868_v49 = vld [vmem:[#allocation3 + $0x6f] sm:$0xff] }
 0x4bb   :  { %v2590_v55 = vpop.permute.xlu1 %2589  ;;  %v3794_v59 = vadd.f32 %v9180_v36, %v12588_v19  ;;  %v2989_v36 = vsel %vm100_vm0, %v9694_v15, %v15970_v40  ;;  %v4707_v50 = vld [vmem:[#allocation3 + $0x68] sm:$0xff]  ;;  %v4708_v15 = vld [vmem:[#allocation3 + $0x70] sm:$0xff] }
 0x4bc   :  { %v3788_v17 = vpop.f32.mrf.mxu0  ;;  %v3376_v14 = vsel %vm3324_vm7, %v3311_v8, %v2590_v55  ;;  %v2336_v35 = vpop.permute.xlu0 %2335  ;;  %v15972_v8 = vld [vmem:[#allocation113_spill] sm:$0xff]  ;;  %v15987_v40 = vld [vmem:[#allocation235_spill] sm:$0xff] }
 0x4bd   :  { %5669 = vrot.lane.b32.xlu1 %v4705_v37, %s9726_s27  ;;  %4205 = vst.msk [vmem:[#allocation3 + $0xf0] sm:$0xff] %vm100_vm0, %v3794_v59  ;;  %v3789_v20 = vadd.f32 %v12588_v19, %v3788_v17  ;;  %v3312_v9 = vsel %vm3259_vm6, %v3247_v39, %v2336_v35  ;;  %v2990_v59 = vsel %vm100_vm0, %v9695_v43, %v15971_v0  ;;  %v9697_v39 = vld [vmem:[#allocation2 + $0x3cf] sm:$0xff]  ;;  %v15988_v43 = vld [vmem:[#allocation293_spill] sm:$0xff] }
 0x4be   :  { %4905 = vrot.lane.b32.xlu0 %v4705_v37, %s9723_s17  ;;  %v3183_v37 = vsel %vm3129_vm4, %v3118_v31, %v15967_v47  ;;  %v3054_v57 = vsel %vm2999_vm2, %v2989_v36, %v15972_v8  ;;  %v3055_v17 = vsel %vm2999_vm2, %v2990_v59, %v15973_v41  ;;  %v15980_v47 = vld [vmem:[#allocation56_spill] sm:$0xff]  ;;  %v4771_v59 = vld [vmem:[#allocation3 + $0x69] sm:$0xff] }
 0x4bf   :  { %v2846_v28 = vpop.permute.xlu1 %2845  ;;  %4204 = vst.msk [vmem:[#allocation3 + $0xe8] sm:$0xff] %vm100_vm0, %v3789_v20  ;;  %v3248_v16 = vsel %vm3194_vm5, %v3183_v37, %v15969_v29  ;;  %v15989_v8 = vld [vmem:[#allocation294_spill] sm:$0xff] }
 0x4c0   :  { %v3441_v52 = vsel %vm3389_vm8, %v3376_v14, %v2846_v28  ;;  %v2592_v10 = vpop.permute.xlu0 %2591  ;;  %v15974_v14 = vld [vmem:[#allocation172_spill] sm:$0xff]  ;;  %v15975_v28 = vld [vmem:[#allocation173_spill] sm:$0xff] }
 0x4c1   :  { %9236 = vmatmul.mubr.msk.f32.gmra.mxu0 %vm3465_vm9, %v3441_v52  ;;  %6689 = vrot.lane.b32.xlu1 %v4769_v45, %s9730_s20  ;;  %v3377_v60 = vsel %vm3324_vm7, %v3312_v9, %v2592_v10  ;;  %v3119_v42 = vsel %vm3064_vm3, %v3054_v57, %v15974_v14  ;;  %v15976_v52 = vld [vmem:[#allocation232_spill] sm:$0xff] }
 0x4c2   :  { %v9183_v18 = vpop.f32.mrf.mxu0  ;;  %5925 = vrot.lane.b32.xlu0 %v4769_v45, %s9727_s28 }
 0x4c3   :  { %v2338_v21 = vpop.permute.xlu1 %2337  ;;  %v3804_v30 = vadd.f32 %v9183_v18, %v12588_v19 }
 0x4c4   :  { %v3798_v3 = vpop.f32.mrf.mxu0  ;;  %v3313_v23 = vsel %vm3259_vm6, %v3248_v16, %v2338_v21  ;;  %v2848_v4 = vpop.permute.xlu0 %2847  ;;  %v15977_v21 = vld [vmem:[#allocation233_spill] sm:$0xff]  ;;  %v15982_v16 = vld [vmem:[#allocation115_spill] sm:$0xff] }
 0x4c5   :  { %5671 = vrot.lane.b32.xlu1 %v4706_v11, %s9726_s27  ;;  %4207 = vst.msk [vmem:[#allocation3 + $0x110] sm:$0xff] %vm100_vm0, %v3804_v30  ;;  %v3799_v32 = vadd.f32 %v12588_v19, %v3798_v3  ;;  %v3442_v24 = vsel %vm3389_vm8, %v3377_v60, %v2848_v4  ;;  %v15983_v60 = vld [vmem:[#allocation116_spill] sm:$0xff] }
 0x4c6   :  { %9238 = vmatprep.mubr.msk.f32.mxu0 %vm3465_vm9, %v3442_v24  ;;  %4907 = vrot.lane.b32.xlu0 %v4706_v11, %s9723_s17  ;;  %v3120_v11 = vsel %vm3064_vm3, %v3055_v17, %v15975_v28 }
 0x4c7   :  { %v2594_v58 = vpop.permute.xlu1 %2593  ;;  %4206 = vst.msk [vmem:[#allocation3 + $0x108] sm:$0xff] %vm100_vm0, %v3799_v32  ;;  %v3185_v22 = vsel %vm3129_vm4, %v3120_v11, %v15977_v21 }
 0x4c8   :  { %v3378_v2 = vsel %vm3324_vm7, %v3313_v23, %v2594_v58  ;;  %v2340_v55 = vpop.permute.xlu0 %2339  ;;  %v3250_v51 = vsel %vm3194_vm5, %v3185_v22, %v15979_v25  ;;  %v9696_v58 = vld [vmem:[#allocation2 + $0x3c7] sm:$0xff] }
 0x4c9   :  { %6691 = vrot.lane.b32.xlu1 %v4770_v13, %s9730_s20  ;;  %v2991_v37 = vsel %vm100_vm0, %v9696_v58, %v15980_v47  ;;  %v15990_v25 = vld [vmem:[#allocation58_spill] sm:$0xff] }
 0x4ca   :  { %v9186_v48 = vpop.f32.mrf.mxu0  ;;  %5927 = vrot.lane.b32.xlu0 %v4770_v13, %s9727_s28  ;;  %v3056_v9 = vsel %vm2999_vm2, %v2991_v37, %v15982_v16  ;;  %v15997_v37 = vld [vmem:[#allocation237_spill] sm:$0xff]  ;;  %v15999_v16 = vld [vmem:[#allocation296_spill] sm:$0xff] }
 0x4cb   :  { %v2850_v5 = vpop.permute.xlu1 %2849  ;;  %v3814_v34 = vadd.f32 %v9186_v48, %v12588_v19  ;;  %v15985_v48 = vld [vmem:[#allocation175_spill] sm:$0xff] }
 0x4cc   :  { %v3443_v53 = vsel %vm3389_vm8, %v3378_v2, %v2850_v5  ;;  %v3808_v46 = vpop.f32.mrf.mxu0  ;;  %v2596_v20 = vpop.permute.xlu0 %2595  ;;  %v15984_v2 = vld [vmem:[#allocation174_spill] sm:$0xff] }
 0x4cd   :  { %9239 = vmatmul.mubr.msk.f32.gmra.mxu0 %vm3465_vm9, %v3443_v53  ;;  %5161 = vrot.lane.b32.xlu1 %v4769_v45, %s9724_s18  ;;  %4209 = vst.msk [vmem:[#allocation3 + $0x130] sm:$0xff] %vm100_vm0, %v3814_v34  ;;  %v3809_v6 = vadd.f32 %v12588_v19, %v3808_v46  ;;  %v3184_v45 = vsel %vm3129_vm4, %v3119_v42, %v15976_v52 }
 0x4ce   :  { %v3249_v1 = vsel %vm3194_vm5, %v3184_v45, %v15978_v63  ;;  %5163 = vrot.lane.b32.xlu0 %v4770_v13, %s9724_s18  ;;  %v15981_v13 = vld [vmem:[#allocation57_spill] sm:$0xff]  ;;  %v3121_v24 = vsel %vm3064_vm3, %v3056_v9, %v15984_v2 }
 0x4cf   :  { %v2342_v56 = vpop.permute.xlu1 %2341  ;;  %4208 = vst.msk [vmem:[#allocation3 + $0x128] sm:$0xff] %vm100_vm0, %v3809_v6  ;;  %v3314_v61 = vsel %vm3259_vm6, %v3249_v1, %v2340_v55  ;;  %v2992_v29 = vsel %vm100_vm0, %v9697_v39, %v15981_v13  ;;  %v15986_v55 = vld [vmem:[#allocation234_spill] sm:$0xff]  ;;  %v15998_v39 = vld [vmem:[#allocation295_spill] sm:$0xff] }
 0x4d0   :  { %v3315_v44 = vsel %vm3259_vm6, %v3250_v51, %v2342_v56  ;;  %v3379_v30 = vsel %vm3324_vm7, %v3314_v61, %v2596_v20  ;;  %v2852_v27 = vpop.permute.xlu0 %2851  ;;  %v3057_v4 = vsel %vm2999_vm2, %v2992_v29, %v15983_v60  ;;  %v3186_v46 = vsel %vm3129_vm4, %v3121_v24, %v15986_v55  ;;  %v4772_v61 = vld [vmem:[#allocation3 + $0x71] sm:$0xff] }
 0x4d1   :  { %6181 = vrot.lane.b32.xlu1 %v12834_v33, %s9728_s29  ;;  %v3444_v26 = vsel %vm3389_vm8, %v3379_v30, %v2852_v27  ;;  %v3122_v34 = vsel %vm3064_vm3, %v3057_v4, %v15985_v48  ;;  %v3251_v0 = vsel %vm3194_vm5, %v3186_v46, %v15988_v43  ;;  %v15992_v27 = vld [vmem:[#allocation117_spill] sm:$0xff] }
 0x4d2   :  { %v9189_v18 = vpop.f32.mrf.mxu0  ;;  %9241 = vmatprep.mubr.msk.f32.mxu0 %vm3465_vm9, %v3444_v26  ;;  %6183 = vrot.lane.b32.xlu0 %v12868_v49, %s9728_s29  ;;  %v3187_v36 = vsel %vm3129_vm4, %v3122_v34, %v15987_v40  ;;  %v9700_v40 = vld [vmem:[#allocation2 + $0x407] sm:$0xff] }
 0x4d3   :  { %v2598_v35 = vpop.permute.xlu1 %2597  ;;  %v3824_v12 = vadd.f32 %v9189_v18, %v12588_v19  ;;  %v3252_v57 = vsel %vm3194_vm5, %v3187_v36, %v15989_v8  ;;  %v9698_v18 = vld [vmem:[#allocation2 + $0x3e7] sm:$0xff]  ;;  %v16000_v36 = vld [vmem:[#allocation60_spill] sm:$0xff] }
 0x4d4   :  { %v3818_v7 = vpop.f32.mrf.mxu0  ;;  %v3380_v38 = vsel %vm3324_vm7, %v3315_v44, %v2598_v35  ;;  %v2344_v54 = vpop.permute.xlu0 %2343  ;;  %v2993_v51 = vsel %vm100_vm0, %v9698_v18, %v15990_v25  ;;  %v15991_v44 = vld [vmem:[#allocation59_spill] sm:$0xff]  ;;  %v2995_v43 = vsel %vm100_vm0, %v9700_v40, %v16000_v36  ;;  %v16001_v8 = vld [vmem:[#allocation61_spill] sm:$0xff]  ;;  %v16016_v36 = vld [vmem:[#allocation240_spill] sm:$0xff] }
 0x4d5   :  { %5417 = vrot.lane.b32.xlu1 %v12834_v33, %s9725_s0  ;;  %4211 = vst.msk [vmem:[#allocation3 + $0x150] sm:$0xff] %vm100_vm0, %v3824_v12  ;;  %v3819_v10 = vadd.f32 %v12588_v19, %v3818_v7  ;;  %v3316_v41 = vsel %vm3259_vm6, %v3251_v0, %v2344_v54  ;;  %v9699_v12 = vld [vmem:[#allocation2 + $0x3ef] sm:$0xff]  ;;  %v3058_v7 = vsel %vm2999_vm2, %v2993_v51, %v15992_v27 }
 0x4d6   :  { %5419 = vrot.lane.b32.xlu0 %v12868_v49, %s9725_s0  ;;  %v2994_v30 = vsel %vm100_vm0, %v9699_v12, %v15991_v44  ;;  %v12981_v25 = vld [vmem:[#allocation3 + $0x8f] sm:$0xff]  ;;  %v16008_v12 = vld [vmem:[#allocation297_spill] sm:$0xff] }
 0x4d7   :  { %v2854_v3 = vpop.permute.xlu1 %2853  ;;  %4210 = vst.msk [vmem:[#allocation3 + $0x148] sm:$0xff] %vm100_vm0, %v3819_v10  ;;  %v15994_v10 = vld [vmem:[#allocation176_spill] sm:$0xff]  ;;  %v16007_v51 = vld [vmem:[#allocation239_spill] sm:$0xff]  ;;  %v16009_v27 = vld [vmem:[#allocation298_spill] sm:$0xff] }
 0x4d8   :  { %v3445_v31 = vsel %vm3389_vm8, %v3380_v38, %v2854_v3  ;;  %v2600_v5 = vpop.permute.xlu0 %2599  ;;  %v15993_v38 = vld [vmem:[#allocation118_spill] sm:$0xff]  ;;  %v3123_v3 = vsel %vm3064_vm3, %v3058_v7, %v15994_v10 }
 0x4d9   :  { %9242 = vmatmul.mubr.msk.f32.gmra.mxu0 %vm3465_vm9, %v3445_v31  ;;  %6437 = vrot.lane.b32.xlu1 %v4707_v50, %s9729_s1  ;;  %v3381_v14 = vsel %vm3324_vm7, %v3316_v41, %v2600_v5  ;;  %v3059_v26 = vsel %vm2999_vm2, %v2994_v30, %v15993_v38  ;;  %v16002_v41 = vld [vmem:[#allocation119_spill] sm:$0xff]  ;;  %v4709_v30 = vld [vmem:[#allocation3 + $0x88] sm:$0xff] }
 0x4da   :  { %v9192_v62 = vpop.f32.mrf.mxu0  ;;  %6439 = vrot.lane.b32.xlu0 %v4708_v15, %s9729_s1 }
 0x4db   :  { %v2346_v32 = vpop.permute.xlu1 %2345  ;;  %v3834_v23 = vadd.f32 %v9192_v62, %v12588_v19 }
 0x4dc   :  { %v3828_v53 = vpop.f32.mrf.mxu0  ;;  %v3317_v17 = vsel %vm3259_vm6, %v3252_v57, %v2346_v32  ;;  %v2856_v42 = vpop.permute.xlu0 %2855  ;;  %v15996_v32 = vld [vmem:[#allocation236_spill] sm:$0xff] }
 0x4dd   :  { %5673 = vrot.lane.b32.xlu1 %v4707_v50, %s9726_s27  ;;  %4213 = vst.msk [vmem:[#allocation3 + $0x170] sm:$0xff] %vm100_vm0, %v3834_v23  ;;  %v3829_v6 = vadd.f32 %v12588_v19, %v3828_v53  ;;  %v3446_v28 = vsel %vm3389_vm8, %v3381_v14, %v2856_v42  ;;  %v3188_v58 = vsel %vm3129_vm4, %v3123_v3, %v15996_v32  ;;  %v16003_v42 = vld [vmem:[#allocation120_spill] sm:$0xff] }
 0x4de   :  { %9244 = vmatprep.mubr.msk.f32.mxu0 %vm3465_vm9, %v3446_v28  ;;  %4909 = vrot.lane.b32.xlu0 %v4707_v50, %s9723_s17  ;;  %v15995_v50 = vld [vmem:[#allocation177_spill] sm:$0xff]  ;;  %v3253_v13 = vsel %vm3194_vm5, %v3188_v58, %v15998_v39  ;;  %v16004_v28 = vld [vmem:[#allocation178_spill] sm:$0xff] }
 0x4df   :  { %v2602_v56 = vpop.permute.xlu1 %2601  ;;  %4212 = vst.msk [vmem:[#allocation3 + $0x168] sm:$0xff] %vm100_vm0, %v3829_v6  ;;  %v3124_v54 = vsel %vm3064_vm3, %v3059_v26, %v15995_v50  ;;  %v12955_v6 = vld [vmem:[#allocation3 + $0x87] sm:$0xff] }
 0x4e0   :  { %v3382_v20 = vsel %vm3324_vm7, %v3317_v17, %v2602_v56  ;;  %v2348_v21 = vpop.permute.xlu0 %2347  ;;  %v3189_v62 = vsel %vm3129_vm4, %v3124_v54, %v15997_v37  ;;  %v3060_v17 = vsel %vm2999_vm2, %v2995_v43, %v16002_v41 }
 0x4e1   :  { %6693 = vrot.lane.b32.xlu1 %v4771_v59, %s9730_s20  ;;  %v3254_v9 = vsel %vm3194_vm5, %v3189_v62, %v15999_v16  ;;  %v3318_v23 = vsel %vm3259_vm6, %v3253_v13, %v2348_v21  ;;  %v4710_v13 = vld [vmem:[#allocation3 + $0x90] sm:$0xff]  ;;  %v16010_v16 = vld [vmem:[#allocation62_spill] sm:$0xff] }
 0x4e2   :  { %v9195_v45 = vpop.f32.mrf.mxu0  ;;  %5929 = vrot.lane.b32.xlu0 %v4771_v59, %s9727_s28 }
 0x4e3   :  { %v2858_v11 = vpop.permute.xlu1 %2857  ;;  %v3844_v35 = vadd.f32 %v9195_v45, %v12588_v19 }
 0x4e4   :  { %v3447_v52 = vsel %vm3389_vm8, %v3382_v20, %v2858_v11  ;;  %v3838_v22 = vpop.f32.mrf.mxu0  ;;  %v2604_v31 = vpop.permute.xlu0 %2603  ;;  %v3125_v11 = vsel %vm3064_vm3, %v3060_v17, %v16004_v28  ;;  %v16019_v17 = vld [vmem:[#allocation300_spill] sm:$0xff] }
 0x4e5   :  { %9245 = vmatmul.mubr.msk.f32.gmra.mxu0 %vm3465_vm9, %v3447_v52  ;;  %5675 = vrot.lane.b32.xlu1 %v4708_v15, %s9726_s27  ;;  %4215 = vst.msk [vmem:[#allocation3 + $0x190] sm:$0xff] %vm100_vm0, %v3844_v35  ;;  %v3839_v63 = vadd.f32 %v12588_v19, %v3838_v22  ;;  %v3383_v2 = vsel %vm3324_vm7, %v3318_v23, %v2604_v31  ;;  %v16005_v35 = vld [vmem:[#allocation179_spill] sm:$0xff]  ;;  %v16006_v22 = vld [vmem:[#allocation238_spill] sm:$0xff] }
 0x4e6   :  { %4911 = vrot.lane.b32.xlu0 %v4708_v15, %s9723_s17 }
 0x4e7   :  { %v2350_v1 = vpop.permute.xlu1 %2349  ;;  %4214 = vst.msk [vmem:[#allocation3 + $0x188] sm:$0xff] %vm100_vm0, %v3839_v63  ;;  %v3190_v63 = vsel %vm3129_vm4, %v3125_v11, %v16006_v22  ;;  %v4774_v22 = vld [vmem:[#allocation3 + $0x91] sm:$0xff] }
 0x4e8   :  { %v3319_v4 = vsel %vm3259_vm6, %v3254_v9, %v2350_v1  ;;  %v2860_v24 = vpop.permute.xlu0 %2859  ;;  %v3255_v44 = vsel %vm3194_vm5, %v3190_v63, %v16008_v12 }
 0x4e9   :  { %6695 = vrot.lane.b32.xlu1 %v4772_v61, %s9730_s20  ;;  %v3448_v48 = vsel %vm3389_vm8, %v3383_v2, %v2860_v24  ;;  %v16011_v2 = vld [vmem:[#allocation63_spill] sm:$0xff] }
 0x4ea   :  { %v9198_v29 = vpop.f32.mrf.mxu0  ;;  %9247 = vmatprep.mubr.msk.f32.mxu0 %vm3465_vm9, %v3448_v48  ;;  %5931 = vrot.lane.b32.xlu0 %v4772_v61, %s9727_s28  ;;  %v16013_v48 = vld [vmem:[#allocation122_spill] sm:$0xff] }
 0x4eb   :  { %v2606_v47 = vpop.permute.xlu1 %2605  ;;  %v3854_v60 = vadd.f32 %v9198_v29, %v12588_v19  ;;  %v9702_v29 = vld [vmem:[#allocation2 + $0x427] sm:$0xff] }
 0x4ec   :  { %v3848_v5 = vpop.f32.mrf.mxu0  ;;  %v3384_v53 = vsel %vm3324_vm7, %v3319_v4, %v2606_v47  ;;  %v2352_v56 = vpop.permute.xlu0 %2351  ;;  %v2997_v9 = vsel %vm100_vm0, %v9702_v29, %v16010_v16  ;;  %v9703_v4 = vld [vmem:[#allocation2 + $0x42f] sm:$0xff] }
 0x4ed   :  { %5165 = vrot.lane.b32.xlu1 %v4771_v59, %s9724_s18  ;;  %4217 = vst.msk [vmem:[#allocation3 + $0x1b0] sm:$0xff] %vm100_vm0, %v3854_v60  ;;  %v3849_v34 = vadd.f32 %v12588_v19, %v3848_v5  ;;  %v9701_v59 = vld [vmem:[#allocation2 + $0x40f] sm:$0xff]  ;;  %v3320_v38 = vsel %vm3259_vm6, %v3255_v44, %v2352_v56  ;;  %v2998_v24 = vsel %vm100_vm0, %v9703_v4, %v16011_v2  ;;  %v16012_v5 = vld [vmem:[#allocation121_spill] sm:$0xff] }
 0x4ee   :  { %5167 = vrot.lane.b32.xlu0 %v4772_v61, %s9724_s18  ;;  %v2996_v57 = vsel %vm100_vm0, %v9701_v59, %v16001_v8  ;;  %v4773_v60 = vld [vmem:[#allocation3 + $0x89] sm:$0xff]  ;;  %v16017_v59 = vld [vmem:[#allocation241_spill] sm:$0xff] }
 0x4ef   :  { %v2862_v55 = vpop.permute.xlu1 %2861  ;;  %4216 = vst.msk [vmem:[#allocation3 + $0x1a8] sm:$0xff] %vm100_vm0, %v3849_v34  ;;  %v3061_v20 = vsel %vm2999_vm2, %v2996_v57, %v16003_v42  ;;  %v3063_v34 = vsel %vm2999_vm2, %v2998_v24, %v16013_v48  ;;  %v16018_v57 = vld [vmem:[#allocation299_spill] sm:$0xff]  ;;  %v4256_v48 = vld [vmem:[#allocation3 + $0x7] sm:$0xff] }
 0x4f0   :  { %v3449_v46 = vsel %vm3389_vm8, %v3384_v53, %v2862_v55  ;;  %v2608_v52 = vpop.permute.xlu0 %2607  ;;  %v3126_v21 = vsel %vm3064_vm3, %v3061_v20, %v16005_v35  ;;  %v3062_v53 = vsel %vm2999_vm2, %v2997_v9, %v16012_v5  ;;  %v16014_v55 = vld [vmem:[#allocation180_spill] sm:$0xff]  ;;  %v4775_v29 = vld [vmem:[#allocation3 + $0xa9] sm:$0xff] }
 0x4f1   :  { %9248 = vmatmul.mubr.msk.f32.gmra.mxu0 %vm3465_vm9, %v3449_v46  ;;  %6185 = vrot.lane.b32.xlu1 %v12955_v6, %s9728_s29  ;;  %v3191_v61 = vsel %vm3129_vm4, %v3126_v21, %v16007_v51  ;;  %v3385_v10 = vsel %vm3324_vm7, %v3320_v38, %v2608_v52  ;;  %v3127_v46 = vsel %vm3064_vm3, %v3062_v53, %v16014_v55  ;;  %v4776_v53 = vld [vmem:[#allocation3 + $0xb1] sm:$0xff] }
 0x4f2   :  { %v9201_v0 = vpop.f32.mrf.mxu0  ;;  %6187 = vrot.lane.b32.xlu0 %v12981_v25, %s9728_s29  ;;  %v3256_v7 = vsel %vm3194_vm5, %v3191_v61, %v16009_v27  ;;  %v3192_v43 = vsel %vm3129_vm4, %v3127_v46, %v16016_v36  ;;  %v13053_v27 = vld [vmem:[#allocation3 + $0xa7] sm:$0xff] }
 0x4f3   :  { %v2354_v15 = vpop.permute.xlu1 %2353  ;;  %v3864_v14 = vadd.f32 %v9201_v0, %v12588_v19  ;;  %v3257_v41 = vsel %vm3194_vm5, %v3192_v43, %v16018_v57 }
 0x4f4   :  { %v3858_v45 = vpop.f32.mrf.mxu0  ;;  %v3321_v26 = vsel %vm3259_vm6, %v3256_v7, %v2354_v15  ;;  %v2864_v3 = vpop.permute.xlu0 %2863  ;;  %v16015_v15 = vld [vmem:[#allocation181_spill] sm:$0xff] }
 0x4f5   :  { %5421 = vrot.lane.b32.xlu1 %v12955_v6, %s9725_s0  ;;  %4219 = vst.msk [vmem:[#allocation3 + $0x1d0] sm:$0xff] %vm100_vm0, %v3864_v14  ;;  %v3859_v1 = vadd.f32 %v12588_v19, %v3858_v45  ;;  %v3450_v50 = vsel %vm3389_vm8, %v3385_v10, %v2864_v3  ;;  %v3128_v40 = vsel %vm3064_vm3, %v3063_v34, %v16015_v15  ;;  %v13103_v15 = vld [vmem:[%s15417_s2] ss:$0 sm:$0xff] }
 0x4f6   :  { %9250 = vmatprep.mubr.msk.f32.mxu0 %vm3465_vm9, %v3450_v50  ;;  %5423 = vrot.lane.b32.xlu0 %v12981_v25, %s9725_s0  ;;  %v3193_v8 = vsel %vm3129_vm4, %v3128_v40, %v16017_v59 }
 0x4f7   :  { %v2610_v18 = vpop.permute.xlu1 %2609  ;;  %4218 = vst.msk [vmem:[#allocation3 + $0x1c8] sm:$0xff] %vm100_vm0, %v3859_v1  ;;  %v3258_v14 = vsel %vm3194_vm5, %v3193_v8, %v16019_v17 }
 0x4f8   :  { %v3386_v31 = vsel %vm3324_vm7, %v3321_v26, %v2610_v18  ;;  %v2356_v37 = vpop.permute.xlu0 %2355 }
 0x4f9   :  { %6441 = vrot.lane.b32.xlu1 %v4709_v30, %s9729_s1  ;;  %v3322_v42 = vsel %vm3259_vm6, %v3257_v41, %v2356_v37  ;;  %v13115_v41 = vld [vmem:[#allocation3 + $0xc7] sm:$0xff] }
 0x4fa   :  { %6443 = vrot.lane.b32.xlu0 %v4710_v13, %s9729_s1 }
 0x4fb   :  { %v2866_v54 = vpop.permute.xlu1 %2865 }
 0x4fc   :  { %v3451_v32 = vsel %vm3389_vm8, %v3386_v31, %v2866_v54  ;;  %v2612_v56 = vpop.permute.xlu0 %2611  ;;  %v13065_v54 = vld [vmem:[#allocation3 + $0xaf] sm:$0xff] }
 0x4fd   :  { %v9204_v58 = vpop.f32.mrf.mxu0  ;;  %9251 = vmatmul.mubr.msk.f32.gmra.mxu0 %vm3465_vm9, %v3451_v32  ;;  %5677 = vrot.lane.b32.xlu1 %v4709_v30, %s9726_s27  ;;  %v3387_v28 = vsel %vm3324_vm7, %v3322_v42, %v2612_v56 }
 0x4fe   :  { %v3874_v47 = vadd.f32 %v9204_v58, %v12588_v19  ;;  %4913 = vrot.lane.b32.xlu0 %v4709_v30, %s9723_s17  ;;  %v4711_v58 = vld [vmem:[#allocation3 + $0xa8] sm:$0xff] }
 0x4ff   :  { %v2358_v62 = vpop.permute.xlu1 %2357  ;;  %v3868_v39 = vpop.f32.mrf.mxu0 }
 0x500   :  { %4221 = vst.msk [vmem:[#allocation3 + $0x1f0] sm:$0xff] %vm100_vm0, %v3874_v47  ;;  %v3869_v23 = vadd.f32 %v12588_v19, %v3868_v39  ;;  %v3323_v20 = vsel %vm3259_vm6, %v3258_v14, %v2358_v62  ;;  %v2868_v11 = vpop.permute.xlu0 %2867  ;;  %v4257_v14 = vld [vmem:[#allocation3 + $0xf] sm:$0xff] }
 0x501   :  { %6697 = vrot.lane.b32.xlu1 %v4773_v60, %s9730_s20  ;;  %v3452_v45 = vsel %vm3389_vm8, %v3387_v28, %v2868_v11 }
 0x502   :  { %4220 = vst.msk [vmem:[#allocation3 + $0x1e8] sm:$0xff] %vm100_vm0, %v3869_v23  ;;  %9253 = vmatprep.mubr.msk.f32.mxu0 %vm3465_vm9, %v3452_v45  ;;  %5933 = vrot.lane.b32.xlu0 %v4773_v60, %s9727_s28 }
 0x503   :  { %v2614_v0 = vpop.permute.xlu1 %2613 }
 0x504   :  { %v3388_v52 = vsel %vm3324_vm7, %v3323_v20, %v2614_v0  ;;  %v4898_v18 = vpop.permute.xlu0 %4897 }
 0x505   :  { %5679 = vrot.lane.b32.xlu1 %v4710_v13, %s9726_s27 }
 0x506   :  { %4915 = vrot.lane.b32.xlu0 %v4710_v13, %s9723_s17  ;;  %v4712_v13 = vld [vmem:[#allocation3 + $0xb0] sm:$0xff] }
 0x507   :  { %v2870_v35 = vpop.permute.xlu1 %2869 }
 0x508   :  { %v3453_v21 = vsel %vm3389_vm8, %v3388_v52, %v2870_v35  ;;  %v5154_v44 = vpop.permute.xlu0 %5153 }
 0x509   :  { %v9207_v63 = vpop.f32.mrf.mxu0  ;;  %9254 = vmatmul.mubr.msk.f32.gmra.mxu0 %vm3465_vm9, %v3453_v21  ;;  %6699 = vrot.lane.b32.xlu1 %v4774_v22, %s9730_s20 }
 0x50a   :  { %v3884_v1 = vadd.f32 %v9207_v63, %v12588_v19  ;;  %5935 = vrot.lane.b32.xlu0 %v4774_v22, %s9727_s28 }
 0x50b   :  { %v13043_v51 = vpop.permute.xlu1 %4899  ;;  %v3878_v61 = vpop.f32.mrf.mxu0 }
 0x50c   :  { %4223 = vst.msk [vmem:[#allocation3 + $0x210] sm:$0xff] %vm100_vm0, %v3884_v1  ;;  %v3879_v12 = vadd.f32 %v12588_v19, %v3878_v61  ;;  %v5410_v7 = vpop.permute.xlu0 %5409  ;;  %v6882_v45 = vsel %vm100_vm0, %v4257_v14, %v13043_v51  ;;  %v13138_v1 = vld [vmem:[#allocation3 + $0xcf] sm:$0xff] }
 0x50d   :  { %5169 = vrot.lane.b32.xlu1 %v4773_v60, %s9724_s18  ;;  %v4713_v51 = vld [vmem:[#allocation3 + $0xc8] sm:$0xff] }
 0x50e   :  { %4222 = vst.msk [vmem:[#allocation3 + $0x208] sm:$0xff] %vm100_vm0, %v3879_v12  ;;  %5171 = vrot.lane.b32.xlu0 %v4774_v22, %s9724_s18 }
 0x50f   :  { %v13050_v30 = vpop.permute.xlu1 %5155 }
 0x510   :  { %v5666_v3 = vpop.permute.xlu0 %5665  ;;  %v6946_v35 = vsel %vm2999_vm2, %v6882_v45, %v13050_v30 }
 0x511   :  { %6189 = vrot.lane.b32.xlu1 %v13053_v27, %s9728_s29 }
 0x512   :  { %6191 = vrot.lane.b32.xlu0 %v13065_v54, %s9728_s29 }
 0x513   :  { %v13057_v38 = vpop.permute.xlu1 %5411 }
 0x514   :  { %v13073_v47 = vpop.permute.xlu0 %5667  ;;  %v7010_v22 = vsel %vm3064_vm3, %v6946_v35, %v13057_v38 }
 0x515   :  { %v9210_v26 = vpop.f32.mrf.mxu0  ;;  %5425 = vrot.lane.b32.xlu1 %v13053_v27, %s9725_s0 }
 0x516   :  { %v3894_v10 = vadd.f32 %v9210_v26, %v12588_v19  ;;  %5427 = vrot.lane.b32.xlu0 %v13065_v54, %s9725_s0 }
 0x517   :  { %v13063_v31 = vpop.permute.xlu1 %4901  ;;  %v3888_v50 = vpop.f32.mrf.mxu0 }
 0x518   :  { %4225 = vst.msk [vmem:[#allocation3 + $0x270] sm:$0xff] %vm100_vm0, %v3894_v10  ;;  %v3889_v32 = vadd.f32 %v12588_v19, %v3888_v50  ;;  %v13078_v62 = vpop.permute.xlu0 %4903 }
 0x519   :  { %6445 = vrot.lane.b32.xlu1 %v4711_v58, %s9729_s1 }
 0x51a   :  { %4224 = vst.msk [vmem:[#allocation3 + $0x268] sm:$0xff] %vm100_vm0, %v3889_v32  ;;  %6447 = vrot.lane.b32.xlu0 %v4712_v13, %s9729_s1 }
 0x51b   :  { %v5922_v37 = vpop.permute.xlu1 %5921 }
 0x51c   :  { %v5924_v23 = vpop.permute.xlu0 %5923 }
 0x51d   :  { %5681 = vrot.lane.b32.xlu1 %v4711_v58, %s9726_s27 }
 0x51e   :  { %4917 = vrot.lane.b32.xlu0 %v4711_v58, %s9723_s17 }
 0x51f   :  { %v13080_v39 = vpop.permute.xlu1 %5157 }
 0x520   :  { %v13090_v24 = vpop.permute.xlu0 %5159 }
 0x521   :  { %v9213_v16 = vpop.f32.mrf.mxu0  ;;  %6701 = vrot.lane.b32.xlu1 %v4775_v29, %s9730_s20 }
 0x522   :  { %v3904_v9 = vadd.f32 %v9213_v16, %v12588_v19  ;;  %5937 = vrot.lane.b32.xlu0 %v4775_v29, %s9727_s28 }
 0x523   :  { %v3898_v60 = vpop.f32.mrf.mxu0  ;;  %v6178_v4 = vpop.permute.xlu1 %6177 }
 0x524   :  { %4227 = vst.msk [vmem:[#allocation3 + $0x290] sm:$0xff] %vm100_vm0, %v3904_v9  ;;  %v3899_v2 = vadd.f32 %v12588_v19, %v3898_v60  ;;  %v6180_v34 = vpop.permute.xlu0 %6179  ;;  %v6881_v19 = vsel %vm100_vm0, %v4256_v48, %v4898_v18  ;;  %v7074_v18 = vsel %vm3129_vm4, %v7010_v22, %v13073_v47  ;;  %v4714_v47 = vld [vmem:[#allocation3 + $0xd0] sm:$0xff] }
 0x525   :  { %5683 = vrot.lane.b32.xlu1 %v4712_v13, %s9726_s27  ;;  %v6945_v56 = vsel %vm2999_vm2, %v6881_v19, %v5154_v44  ;;  %v7138_v61 = vsel %vm3194_vm5, %v7074_v18, %v5924_v23 }
 0x526   :  { %4226 = vst.msk [vmem:[#allocation3 + $0x288] sm:$0xff] %vm100_vm0, %v3899_v2  ;;  %4919 = vrot.lane.b32.xlu0 %v4712_v13, %s9723_s17  ;;  %v7009_v43 = vsel %vm3064_vm3, %v6945_v56, %v5410_v7  ;;  %v7202_v44 = vsel %vm3259_vm6, %v7138_v61, %v6180_v34  ;;  %v4715_v61 = vld [vmem:[#allocation3 + $0xe8] sm:$0xff] }
 0x527   :  { %v13092_v5 = vpop.permute.xlu1 %5413  ;;  %v7073_v8 = vsel %vm3129_vm4, %v7009_v43, %v5666_v3 }
 0x528   :  { %v13106_v36 = vpop.permute.xlu0 %5415  ;;  %v7137_v17 = vsel %vm3194_vm5, %v7073_v8, %v5922_v37  ;;  %v4777_v37 = vld [vmem:[#allocation3 + $0xc9] sm:$0xff] }
 0x529   :  { %6703 = vrot.lane.b32.xlu1 %v4776_v53, %s9730_s20  ;;  %v7201_v42 = vsel %vm3259_vm6, %v7137_v17, %v6178_v4  ;;  %v13190_v8 = vld [vmem:[#allocation3 + $0xe7] sm:$0xff] }
 0x52a   :  { %5939 = vrot.lane.b32.xlu0 %v4776_v53, %s9727_s28 }
 0x52b   :  { %v6434_v55 = vpop.permute.xlu1 %6433 }
 0x52c   :  { %v6436_v20 = vpop.permute.xlu0 %6435  ;;  %v7265_v28 = vsel %vm3324_vm7, %v7201_v42, %v6434_v55  ;;  %v9705_v55 = vld [vmem:[#allocation3 + $0x27] sm:$0xff] }
 0x52d   :  { %v9216_v46 = vpop.f32.mrf.mxu0  ;;  %5173 = vrot.lane.b32.xlu1 %v4775_v29, %s9724_s18  ;;  %v7266_v38 = vsel %vm3324_vm7, %v7202_v44, %v6436_v20  ;;  %v6883_v19 = vsel %vm100_vm0, %v9705_v55, %v13063_v31 }
 0x52e   :  { %v3914_v40 = vadd.f32 %v13103_v15, %v9216_v46  ;;  %5175 = vrot.lane.b32.xlu0 %v4776_v53, %s9724_s18  ;;  %v4778_v53 = vld [vmem:[#allocation3 + $0xd1] sm:$0xff]  ;;  %v6947_v46 = vsel %vm2999_vm2, %v6883_v19, %v13080_v39 }
 0x52f   :  { %v3908_v0 = vpop.f32.mrf.mxu0  ;;  %v13109_v59 = vpop.permute.xlu1 %5669 }
 0x530   :  { %4229 = vst.msk [vmem:[#allocation3 + $0x2b0] sm:$0xff] %vm100_vm0, %v3914_v40  ;;  %v3909_v57 = vadd.f32 %v13103_v15, %v3908_v0  ;;  %v13132_v21 = vpop.permute.xlu0 %4905  ;;  %v7011_v40 = vsel %vm3064_vm3, %v6947_v46, %v13092_v5  ;;  %v9707_v46 = vld [vmem:[#allocation3 + $0x47] sm:$0xff] }
 0x531   :  { %6193 = vrot.lane.b32.xlu1 %v13115_v41, %s9728_s29  ;;  %v7075_v0 = vsel %vm3129_vm4, %v7011_v40, %v13109_v59  ;;  %v6885_v40 = vsel %vm100_vm0, %v9707_v46, %v13132_v21  ;;  %v13268_v21 = vld [vmem:[#allocation3 + $0x107] sm:$0xff] }
 0x532   :  { %4228 = vst.msk [vmem:[#allocation3 + $0x2a8] sm:$0xff] %vm100_vm0, %v3909_v57  ;;  %6195 = vrot.lane.b32.xlu0 %v13138_v1, %s9728_s29 }
 0x533   :  { %v6690_v11 = vpop.permute.xlu1 %6689 }
 0x534   :  { %v7329_v52 = vsel %vm3389_vm8, %v7265_v28, %v6690_v11  ;;  %v5926_v7 = vpop.permute.xlu0 %5925  ;;  %v9706_v11 = vld [vmem:[#allocation3 + $0x2f] sm:$0xff] }
 0x535   :  { %9264 = vmatprep.mubr.msk.f32.mxu1 %vm3465_vm9, %v7329_v52  ;;  %5429 = vrot.lane.b32.xlu1 %v13115_v41, %s9725_s0  ;;  %v7139_v31 = vsel %vm3194_vm5, %v7075_v0, %v5926_v7  ;;  %v6884_v52 = vsel %vm100_vm0, %v9706_v11, %v13078_v62 }
 0x536   :  { %5431 = vrot.lane.b32.xlu0 %v13138_v1, %s9725_s0  ;;  %v6948_v45 = vsel %vm2999_vm2, %v6884_v52, %v13090_v24 }
 0x537   :  { %v13136_v63 = vpop.permute.xlu1 %5671  ;;  %v7012_v22 = vsel %vm3064_vm3, %v6948_v45, %v13106_v36 }
 0x538   :  { %v13157_v32 = vpop.permute.xlu0 %4907  ;;  %v7076_v62 = vsel %vm3129_vm4, %v7012_v22, %v13136_v63 }
 0x539   :  { %v9219_v12 = vpop.f32.mrf.mxu0  ;;  %6449 = vrot.lane.b32.xlu1 %v4713_v51, %s9729_s1 }
 0x53a   :  { %v3924_v30 = vadd.f32 %v13103_v15, %v9219_v12  ;;  %6451 = vrot.lane.b32.xlu0 %v4714_v47, %s9729_s1 }
 0x53b   :  { %v3918_v26 = vpop.f32.mrf.mxu0  ;;  %v6692_v10 = vpop.permute.xlu1 %6691 }
 0x53c   :  { %4231 = vst.msk [vmem:[#allocation3 + $0x2d0] sm:$0xff] %vm100_vm0, %v3924_v30  ;;  %v3919_v3 = vadd.f32 %v13103_v15, %v3918_v26  ;;  %v7330_v50 = vsel %vm3389_vm8, %v7266_v38, %v6692_v10  ;;  %v5928_v13 = vpop.permute.xlu0 %5927 }
 0x53d   :  { %9265 = vmatmul.mubr.msk.f32.vlgmr.msra.gmra.mxu1 %vm3465_vm9, %v7330_v50  ;;  %5685 = vrot.lane.b32.xlu1 %v4713_v51, %s9726_s27  ;;  %v7140_v24 = vsel %vm3194_vm5, %v7076_v62, %v5928_v13  ;;  %v4716_v50 = vld [vmem:[#allocation3 + $0xf0] sm:$0xff] }
 0x53e   :  { %4230 = vst.msk [vmem:[#allocation3 + $0x2c8] sm:$0xff] %vm100_vm0, %v3919_v3  ;;  %4921 = vrot.lane.b32.xlu0 %v4713_v51, %s9723_s17  ;;  %v13216_v51 = vld [vmem:[#allocation3 + $0xef] sm:$0xff] }
 0x53f   :  { %v13159_v58 = vpop.permute.xlu1 %5161 }
 0x540   :  { %v13166_v23 = vpop.permute.xlu0 %5163  ;;  %v6949_v0 = vsel %vm2999_vm2, %v6885_v40, %v13159_v58 }
 0x541   :  { %6705 = vrot.lane.b32.xlu1 %v4777_v37, %s9730_s20 }
 0x542   :  { %5941 = vrot.lane.b32.xlu0 %v4777_v37, %s9727_s28 }
 0x543   :  { %v6182_v29 = vpop.permute.xlu1 %6181 }
 0x544   :  { %v6184_v48 = vpop.permute.xlu0 %6183  ;;  %v7203_v39 = vsel %vm3259_vm6, %v7139_v31, %v6182_v29 }
 0x545   :  { %v9222_v16 = vpop.f32.mrf.mxu0  ;;  %5687 = vrot.lane.b32.xlu1 %v4714_v47, %s9726_s27  ;;  %v7204_v12 = vsel %vm3259_vm6, %v7140_v24, %v6184_v48 }
 0x546   :  { %v3934_v9 = vadd.f32 %v13103_v15, %v9222_v16  ;;  %4923 = vrot.lane.b32.xlu0 %v4714_v47, %s9723_s17 }
 0x547   :  { %v3928_v60 = vpop.f32.mrf.mxu0  ;;  %v13168_v4 = vpop.permute.xlu1 %5417 }
 0x548   :  { %4233 = vst.msk [vmem:[#allocation3 + $0x2f0] sm:$0xff] %vm100_vm0, %v3934_v9  ;;  %v3929_v2 = vadd.f32 %v13103_v15, %v3928_v60  ;;  %v13181_v56 = vpop.permute.xlu0 %5419  ;;  %v4780_v60 = vld [vmem:[#allocation3 + $0xf1] sm:$0xff] }
 0x549   :  { %6707 = vrot.lane.b32.xlu1 %v4778_v53, %s9730_s20 }
 0x54a   :  { %4232 = vst.msk [vmem:[#allocation3 + $0x2e8] sm:$0xff] %vm100_vm0, %v3929_v2  ;;  %5943 = vrot.lane.b32.xlu0 %v4778_v53, %s9727_s28 }
 0x54b   :  { %v6438_v34 = vpop.permute.xlu1 %6437 }
 0x54c   :  { %v6440_v5 = vpop.permute.xlu0 %6439  ;;  %v7267_v14 = vsel %vm3324_vm7, %v7203_v39, %v6438_v34 }
 0x54d   :  { %5177 = vrot.lane.b32.xlu1 %v4777_v37, %s9724_s18  ;;  %v7268_v36 = vsel %vm3324_vm7, %v7204_v12, %v6440_v5  ;;  %v4779_v37 = vld [vmem:[#allocation3 + $0xe9] sm:$0xff] }
 0x54e   :  { %5179 = vrot.lane.b32.xlu0 %v4778_v53, %s9724_s18 }
 0x54f   :  { %v13185_v43 = vpop.permute.xlu1 %5673 }
 0x550   :  { %v13210_v35 = vpop.permute.xlu0 %4909 }
 0x551   :  { %v9225_v57 = vpop.f32.mrf.mxu0  ;;  %6197 = vrot.lane.b32.xlu1 %v13190_v8, %s9728_s29  ;;  %v6887_v46 = vsel %vm100_vm0, %v12834_v33, %v13210_v35  ;;  %v13346_v35 = vld [vmem:[#allocation3 + $0x127] sm:$0xff] }
 0x552   :  { %v3944_v17 = vadd.f32 %v13103_v15, %v9225_v57  ;;  %6199 = vrot.lane.b32.xlu0 %v13216_v51, %s9728_s29  ;;  %v7013_v57 = vsel %vm3064_vm3, %v6949_v0, %v13168_v4 }
 0x553   :  { %v3938_v42 = vpop.f32.mrf.mxu0  ;;  %v6694_v20 = vpop.permute.xlu1 %6693 }
 0x554   :  { %4235 = vst.msk [vmem:[#allocation3 + $0x310] sm:$0xff] %vm100_vm0, %v3944_v17  ;;  %v3939_v59 = vadd.f32 %v13103_v15, %v3938_v42  ;;  %v7331_v28 = vsel %vm3389_vm8, %v7267_v14, %v6694_v20  ;;  %v5930_v44 = vpop.permute.xlu0 %5929  ;;  %v7077_v17 = vsel %vm3129_vm4, %v7013_v57, %v13185_v43  ;;  %v9708_v43 = vld [vmem:[#allocation3 + $0x4f] sm:$0xff] }
 0x555   :  { %5433 = vrot.lane.b32.xlu1 %v13190_v8, %s9725_s0  ;;  %9267 = vmatprep.mubr.msk.f32.mxu1 %vm3465_vm9, %v7331_v28  ;;  %v7141_v5 = vsel %vm3194_vm5, %v7077_v17, %v5930_v44 }
 0x556   :  { %4234 = vst.msk [vmem:[#allocation3 + $0x308] sm:$0xff] %vm100_vm0, %v3939_v59  ;;  %5435 = vrot.lane.b32.xlu0 %v13216_v51, %s9725_s0  ;;  %v6886_v59 = vsel %vm100_vm0, %v9708_v43, %v13157_v32  ;;  %v13291_v32 = vld [vmem:[#allocation3 + $0x10f] sm:$0xff] }
 0x557   :  { %v13214_v18 = vpop.permute.xlu1 %5675  ;;  %v6950_v11 = vsel %vm2999_vm2, %v6886_v59, %v13166_v23  ;;  %v4717_v23 = vld [vmem:[#allocation3 + $0x108] sm:$0xff] }
 0x558   :  { %v13232_v26 = vpop.permute.xlu0 %4911  ;;  %v7014_v22 = vsel %vm3064_vm3, %v6950_v11, %v13181_v56 }
 0x559   :  { %6453 = vrot.lane.b32.xlu1 %v4715_v61, %s9729_s1  ;;  %v7078_v24 = vsel %vm3129_vm4, %v7014_v22, %v13214_v18  ;;  %v6888_v59 = vsel %vm100_vm0, %v12868_v49, %v13232_v26  ;;  %v4719_v26 = vld [vmem:[#allocation3 + $0x128] sm:$0xff] }
 0x55a   :  { %6455 = vrot.lane.b32.xlu0 %v4716_v50, %s9729_s1 }
 0x55b   :  { %v6696_v30 = vpop.permute.xlu1 %6695 }
 0x55c   :  { %v7332_v7 = vsel %vm3389_vm8, %v7268_v36, %v6696_v30  ;;  %v5932_v13 = vpop.permute.xlu0 %5931 }
 0x55d   :  { %v9228_v63 = vpop.f32.mrf.mxu0  ;;  %5689 = vrot.lane.b32.xlu1 %v4715_v61, %s9726_s27  ;;  %9268 = vmatmul.mubr.msk.f32.gmra.mxu1 %vm3465_vm9, %v7332_v7  ;;  %v7142_v44 = vsel %vm3194_vm5, %v7078_v24, %v5932_v13 }
 0x55e   :  { %v3954_v38 = vadd.f32 %v13103_v15, %v9228_v63  ;;  %4925 = vrot.lane.b32.xlu0 %v4715_v61, %s9723_s17 }
 0x55f   :  { %v3948_v10 = vpop.f32.mrf.mxu0  ;;  %v13234_v3 = vpop.permute.xlu1 %5165 }
 0x560   :  { %4237 = vst.msk [vmem:[#allocation3 + $0x330] sm:$0xff] %vm100_vm0, %v3954_v38  ;;  %v3949_v47 = vadd.f32 %v13103_v15, %v3948_v10  ;;  %v13243_v16 = vpop.permute.xlu0 %5167  ;;  %v4718_v10 = vld [vmem:[#allocation3 + $0x110] sm:$0xff]  ;;  %v6951_v0 = vsel %vm2999_vm2, %v6887_v46, %v13234_v3 }
 0x561   :  { %6709 = vrot.lane.b32.xlu1 %v4779_v37, %s9730_s20 }
 0x562   :  { %4236 = vst.msk [vmem:[#allocation3 + $0x328] sm:$0xff] %vm100_vm0, %v3949_v47  ;;  %5945 = vrot.lane.b32.xlu0 %v4779_v37, %s9727_s28 }
 0x563   :  { %v6186_v29 = vpop.permute.xlu1 %6185 }
 0x564   :  { %v6188_v48 = vpop.permute.xlu0 %6187  ;;  %v7205_v58 = vsel %vm3259_vm6, %v7141_v5, %v6186_v29 }
 0x565   :  { %5691 = vrot.lane.b32.xlu1 %v4716_v50, %s9726_s27  ;;  %v7206_v56 = vsel %vm3259_vm6, %v7142_v44, %v6188_v48 }
 0x566   :  { %4927 = vrot.lane.b32.xlu0 %v4716_v50, %s9723_s17  ;;  %v4781_v50 = vld [vmem:[#allocation3 + $0x109] sm:$0xff] }
 0x567   :  { %v13245_v9 = vpop.permute.xlu1 %5421 }
 0x568   :  { %v13259_v31 = vpop.permute.xlu0 %5423  ;;  %v7015_v5 = vsel %vm3064_vm3, %v6951_v0, %v13245_v9 }
 0x569   :  { %v9231_v2 = vpop.f32.mrf.mxu0  ;;  %6711 = vrot.lane.b32.xlu1 %v4780_v60, %s9730_s20 }
 0x56a   :  { %v3964_v53 = vadd.f32 %v13103_v15, %v9231_v2  ;;  %5947 = vrot.lane.b32.xlu0 %v4780_v60, %s9727_s28 }
 0x56b   :  { %v3958_v34 = vpop.f32.mrf.mxu0  ;;  %v6442_v55 = vpop.permute.xlu1 %6441 }
 0x56c   :  { %4239 = vst.msk [vmem:[#allocation3 + $0x350] sm:$0xff] %vm100_vm0, %v3964_v53  ;;  %v3959_v19 = vadd.f32 %v13103_v15, %v3958_v34  ;;  %v6444_v14 = vpop.permute.xlu0 %6443  ;;  %v7269_v42 = vsel %vm3324_vm7, %v7205_v58, %v6442_v55  ;;  %v4782_v34 = vld [vmem:[#allocation3 + $0x111] sm:$0xff] }
 0x56d   :  { %5181 = vrot.lane.b32.xlu1 %v4779_v37, %s9724_s18  ;;  %v7270_v30 = vsel %vm3324_vm7, %v7206_v56, %v6444_v14 }
 0x56e   :  { %4238 = vst.msk [vmem:[#allocation3 + $0x348] sm:$0xff] %vm100_vm0, %v3959_v19  ;;  %5183 = vrot.lane.b32.xlu0 %v4780_v60, %s9724_s18 }
 0x56f   :  { %v13263_v39 = vpop.permute.xlu1 %5677 }
 0x570   :  { %v13285_v45 = vpop.permute.xlu0 %4913 }
 0x571   :  { %6201 = vrot.lane.b32.xlu1 %v13268_v21, %s9728_s29  ;;  %v6889_v0 = vsel %vm100_vm0, %v12955_v6, %v13285_v45 }
 0x572   :  { %6203 = vrot.lane.b32.xlu0 %v13291_v32, %s9728_s29 }
 0x573   :  { %v6698_v4 = vpop.permute.xlu1 %6697 }
 0x574   :  { %v7333_v20 = vsel %vm3389_vm8, %v7269_v42, %v6698_v4  ;;  %v5934_v36 = vpop.permute.xlu0 %5933  ;;  %v7079_v42 = vsel %vm3129_vm4, %v7015_v5, %v13263_v39 }
 0x575   :  { %v9234_v28 = vpop.f32.mrf.mxu0  ;;  %5437 = vrot.lane.b32.xlu1 %v13268_v21, %s9725_s0  ;;  %9270 = vmatprep.mubr.msk.f32.mxu1 %vm3465_vm9, %v7333_v20  ;;  %v7143_v3 = vsel %vm3194_vm5, %v7079_v42, %v5934_v36 }
 0x576   :  { %v3974_v52 = vadd.f32 %v13103_v15, %v9234_v28  ;;  %5439 = vrot.lane.b32.xlu0 %v13291_v32, %s9725_s0  ;;  %v6952_v28 = vsel %vm2999_vm2, %v6888_v59, %v13243_v16 }
 0x577   :  { %v3968_v62 = vpop.f32.mrf.mxu0  ;;  %v13289_v61 = vpop.permute.xlu1 %5679 }
 0x578   :  { %4241 = vst.msk [vmem:[#allocation3 + $0x370] sm:$0xff] %vm100_vm0, %v3974_v52  ;;  %v3969_v12 = vadd.f32 %v13103_v15, %v3968_v62  ;;  %v13309_v63 = vpop.permute.xlu0 %4915  ;;  %v7016_v52 = vsel %vm3064_vm3, %v6952_v28, %v13259_v31  ;;  %v13370_v62 = vld [vmem:[#allocation3 + $0x12f] sm:$0xff] }
 0x579   :  { %6457 = vrot.lane.b32.xlu1 %v4717_v23, %s9729_s1  ;;  %v7080_v49 = vsel %vm3129_vm4, %v7016_v52, %v13289_v61  ;;  %v6890_v59 = vsel %vm100_vm0, %v12981_v25, %v13309_v63  ;;  %v4721_v63 = vld [vmem:[#allocation3 + $0x148] sm:$0xff] }
 0x57a   :  { %4240 = vst.msk [vmem:[#allocation3 + $0x368] sm:$0xff] %vm100_vm0, %v3969_v12  ;;  %6459 = vrot.lane.b32.xlu0 %v4718_v10, %s9729_s1 }
 0x57b   :  { %v6700_v18 = vpop.permute.xlu1 %6699 }
 0x57c   :  { %v7334_v7 = vsel %vm3389_vm8, %v7270_v30, %v6700_v18  ;;  %v5936_v13 = vpop.permute.xlu0 %5935 }
 0x57d   :  { %5693 = vrot.lane.b32.xlu1 %v4717_v23, %s9726_s27  ;;  %9271 = vmatmul.mubr.msk.f32.gmra.mxu1 %vm3465_vm9, %v7334_v7  ;;  %v7144_v24 = vsel %vm3194_vm5, %v7080_v49, %v5936_v13 }
 0x57e   :  { %4929 = vrot.lane.b32.xlu0 %v4717_v23, %s9723_s17 }
 0x57f   :  { %v13311_v38 = vpop.permute.xlu1 %5169 }
 0x580   :  { %v13321_v53 = vpop.permute.xlu0 %5171 }
 0x581   :  { %v9237_v47 = vpop.f32.mrf.mxu0  ;;  %6713 = vrot.lane.b32.xlu1 %v4781_v50, %s9730_s20  ;;  %v6954_v28 = vsel %vm2999_vm2, %v6890_v59, %v13321_v53  ;;  %v13522_v59 = vld [vmem:[#allocation3 + $0x16f] sm:$0xff] }
 0x582   :  { %v3984_v37 = vadd.f32 %v13103_v15, %v9237_v47  ;;  %5949 = vrot.lane.b32.xlu0 %v4781_v50, %s9727_s28 }
 0x583   :  { %v3978_v29 = vpop.f32.mrf.mxu0  ;;  %v6190_v60 = vpop.permute.xlu1 %6189 }
 0x584   :  { %4243 = vst.msk [vmem:[#allocation3 + $0x390] sm:$0xff] %vm100_vm0, %v3984_v37  ;;  %v3979_v2 = vadd.f32 %v13103_v15, %v3978_v29  ;;  %v6192_v55 = vpop.permute.xlu0 %6191  ;;  %v7207_v9 = vsel %vm3259_vm6, %v7143_v3, %v6190_v60  ;;  %v13423_v3 = vld [vmem:[#allocation3 + $0x147] sm:$0xff] }
 0x585   :  { %5695 = vrot.lane.b32.xlu1 %v4718_v10, %s9726_s27  ;;  %v7208_v16 = vsel %vm3259_vm6, %v7144_v24, %v6192_v55  ;;  %v13450_v24 = vld [vmem:[#allocation3 + $0x14f] sm:$0xff] }
 0x586   :  { %4242 = vst.msk [vmem:[#allocation3 + $0x388] sm:$0xff] %vm100_vm0, %v3979_v2  ;;  %4931 = vrot.lane.b32.xlu0 %v4718_v10, %s9723_s17  ;;  %v4720_v10 = vld [vmem:[#allocation3 + $0x130] sm:$0xff] }
 0x587   :  { %v13323_v48 = vpop.permute.xlu1 %5425 }
 0x588   :  { %v13335_v17 = vpop.permute.xlu0 %5427 }
 0x589   :  { %6715 = vrot.lane.b32.xlu1 %v4782_v34, %s9730_s20  ;;  %v7018_v49 = vsel %vm3064_vm3, %v6954_v28, %v13335_v17 }
 0x58a   :  { %5951 = vrot.lane.b32.xlu0 %v4782_v34, %s9727_s28 }
 0x58b   :  { %v6446_v19 = vpop.permute.xlu1 %6445 }
 0x58c   :  { %v6448_v4 = vpop.permute.xlu0 %6447  ;;  %v7271_v39 = vsel %vm3324_vm7, %v7207_v9, %v6446_v19  ;;  %v4784_v19 = vld [vmem:[#allocation3 + $0x131] sm:$0xff] }
 0x58d   :  { %v9240_v40 = vpop.f32.mrf.mxu0  ;;  %5185 = vrot.lane.b32.xlu1 %v4781_v50, %s9724_s18  ;;  %v7272_v44 = vsel %vm3324_vm7, %v7208_v16, %v6448_v4  ;;  %v4783_v50 = vld [vmem:[#allocation3 + $0x129] sm:$0xff] }
 0x58e   :  { %v3994_v57 = vadd.f32 %v13103_v15, %v9240_v40  ;;  %5187 = vrot.lane.b32.xlu0 %v4782_v34, %s9724_s18 }
 0x58f   :  { %v3988_v58 = vpop.f32.mrf.mxu0  ;;  %v13339_v14 = vpop.permute.xlu1 %5681 }
 0x590   :  { %4245 = vst.msk [vmem:[#allocation3 + $0x3b0] sm:$0xff] %vm100_vm0, %v3994_v57  ;;  %v3989_v33 = vadd.f32 %v13103_v15, %v3988_v58  ;;  %v13364_v11 = vpop.permute.xlu0 %4917  ;;  %v6953_v57 = vsel %vm2999_vm2, %v6889_v0, %v13311_v38 }
 0x591   :  { %6205 = vrot.lane.b32.xlu1 %v13346_v35, %s9728_s29  ;;  %v7017_v58 = vsel %vm3064_vm3, %v6953_v57, %v13323_v48 }
 0x592   :  { %4244 = vst.msk [vmem:[#allocation3 + $0x3a8] sm:$0xff] %vm100_vm0, %v3989_v33  ;;  %6207 = vrot.lane.b32.xlu0 %v13370_v62, %s9728_s29  ;;  %v7081_v33 = vsel %vm3129_vm4, %v7017_v58, %v13339_v14  ;;  %v6891_v58 = vsel %vm100_vm0, %v13053_v27, %v13364_v11 }
 0x593   :  { %v6702_v20 = vpop.permute.xlu1 %6701 }
 0x594   :  { %v7335_v43 = vsel %vm3389_vm8, %v7271_v39, %v6702_v20  ;;  %v5938_v23 = vpop.permute.xlu0 %5937 }
 0x595   :  { %5441 = vrot.lane.b32.xlu1 %v13346_v35, %s9725_s0  ;;  %9273 = vmatprep.mubr.msk.f32.mxu1 %vm3465_vm9, %v7335_v43  ;;  %v7145_v6 = vsel %vm3194_vm5, %v7081_v33, %v5938_v23 }
 0x596   :  { %5443 = vrot.lane.b32.xlu0 %v13370_v62, %s9725_s0 }
 0x597   :  { %v13368_v22 = vpop.permute.xlu1 %5683 }
 0x598   :  { %v13389_v18 = vpop.permute.xlu0 %4919  ;;  %v7082_v25 = vsel %vm3129_vm4, %v7018_v49, %v13368_v22 }
 0x599   :  { %v9243_v12 = vpop.f32.mrf.mxu0  ;;  %6461 = vrot.lane.b32.xlu1 %v4719_v26, %s9729_s1 }
 0x59a   :  { %v4004_v31 = vadd.f32 %v13103_v15, %v9243_v12  ;;  %6463 = vrot.lane.b32.xlu0 %v4720_v10, %s9729_s1 }
 0x59b   :  { %v3998_v56 = vpop.f32.mrf.mxu0  ;;  %v6704_v36 = vpop.permute.xlu1 %6703 }
 0x59c   :  { %4247 = vst.msk [vmem:[#allocation3 + $0x3d0] sm:$0xff] %vm100_vm0, %v4004_v31  ;;  %v3999_v61 = vadd.f32 %v13103_v15, %v3998_v56  ;;  %v7336_v30 = vsel %vm3389_vm8, %v7272_v44, %v6704_v36  ;;  %v5940_v47 = vpop.permute.xlu0 %5939 }
 0x59d   :  { %5697 = vrot.lane.b32.xlu1 %v4719_v26, %s9726_s27  ;;  %9274 = vmatmul.mubr.msk.f32.gmra.mxu1 %vm3465_vm9, %v7336_v30  ;;  %v7146_v53 = vsel %vm3194_vm5, %v7082_v25, %v5940_v47  ;;  %v4722_v30 = vld [vmem:[#allocation3 + $0x150] sm:$0xff] }
 0x59e   :  { %4246 = vst.msk [vmem:[#allocation3 + $0x3c8] sm:$0xff] %vm100_vm0, %v3999_v61  ;;  %4933 = vrot.lane.b32.xlu0 %v4719_v26, %s9723_s17 }
 0x59f   :  { %v13391_v7 = vpop.permute.xlu1 %5173 }
 0x5a0   :  { %v13398_v60 = vpop.permute.xlu0 %5175  ;;  %v6955_v33 = vsel %vm2999_vm2, %v6891_v58, %v13391_v7 }
 0x5a1   :  { %6717 = vrot.lane.b32.xlu1 %v4783_v50, %s9730_s20 }
 0x5a2   :  { %5953 = vrot.lane.b32.xlu0 %v4783_v50, %s9727_s28 }
 0x5a3   :  { %v6194_v37 = vpop.permute.xlu1 %6193 }
 0x5a4   :  { %v6196_v46 = vpop.permute.xlu0 %6195  ;;  %v7209_v38 = vsel %vm3259_vm6, %v7145_v6, %v6194_v37 }
 0x5a5   :  { %v9246_v13 = vpop.f32.mrf.mxu0  ;;  %5699 = vrot.lane.b32.xlu1 %v4720_v10, %s9726_s27  ;;  %v7210_v12 = vsel %vm3259_vm6, %v7146_v53, %v6196_v46 }
 0x5a6   :  { %v4014_v29 = vadd.f32 %v13103_v15, %v9246_v13  ;;  %4935 = vrot.lane.b32.xlu0 %v4720_v10, %s9723_s17 }
 0x5a7   :  { %v4008_v2 = vpop.f32.mrf.mxu0  ;;  %v13400_v34 = vpop.permute.xlu1 %5429 }
 0x5a8   :  { %4249 = vst.msk [vmem:[#allocation3 + $0x3f0] sm:$0xff] %vm100_vm0, %v4014_v29  ;;  %v4009_v55 = vadd.f32 %v13103_v15, %v4008_v2  ;;  %v13414_v5 = vpop.permute.xlu0 %5431  ;;  %v4786_v2 = vld [vmem:[#allocation3 + $0x151] sm:$0xff] }
 0x5a9   :  { %6719 = vrot.lane.b32.xlu1 %v4784_v19, %s9730_s20 }
 0x5aa   :  { %4248 = vst.msk [vmem:[#allocation3 + $0x3e8] sm:$0xff] %vm100_vm0, %v4009_v55  ;;  %5955 = vrot.lane.b32.xlu0 %v4784_v19, %s9727_s28 }
 0x5ab   :  { %v6450_v40 = vpop.permute.xlu1 %6449 }
 0x5ac   :  { %v6452_v48 = vpop.permute.xlu0 %6451  ;;  %v7273_v4 = vsel %vm3324_vm7, %v7209_v38, %v6450_v40 }
 0x5ad   :  { %5189 = vrot.lane.b32.xlu1 %v4783_v50, %s9724_s18  ;;  %v7274_v17 = vsel %vm3324_vm7, %v7210_v12, %v6452_v48  ;;  %v4785_v50 = vld [vmem:[#allocation3 + $0x149] sm:$0xff] }
 0x5ae   :  { %5191 = vrot.lane.b32.xlu0 %v4784_v19, %s9724_s18  ;;  %v4724_v12 = vld [vmem:[#allocation3 + $0x170] sm:$0xff] }
 0x5af   :  { %v13418_v42 = vpop.permute.xlu1 %5685 }
 0x5b0   :  { %v13444_v52 = vpop.permute.xlu0 %4921 }
 0x5b1   :  { %v9249_v45 = vpop.f32.mrf.mxu0  ;;  %6209 = vrot.lane.b32.xlu1 %v13423_v3, %s9728_s29 }
 0x5b2   :  { %v4024_v9 = vadd.f32 %v13103_v15, %v9249_v45  ;;  %6211 = vrot.lane.b32.xlu0 %v13450_v24, %s9728_s29  ;;  %v7019_v45 = vsel %vm3064_vm3, %v6955_v33, %v13400_v34 }
 0x5b3   :  { %v4018_v39 = vpop.f32.mrf.mxu0  ;;  %v6706_v20 = vpop.permute.xlu1 %6705 }
 0x5b4   :  { %4251 = vst.msk [vmem:[#allocation3 + $0x410] sm:$0xff] %vm100_vm0, %v4024_v9  ;;  %v4019_v14 = vadd.f32 %v13103_v15, %v4018_v39  ;;  %v7337_v43 = vsel %vm3389_vm8, %v7273_v4, %v6706_v20  ;;  %v5942_v16 = vpop.permute.xlu0 %5941  ;;  %v13501_v9 = vld [vmem:[#allocation3 + $0x167] sm:$0xff] }
 0x5b5   :  { %5445 = vrot.lane.b32.xlu1 %v13423_v3, %s9725_s0  ;;  %9276 = vmatprep.mubr.msk.f32.mxu1 %vm3465_vm9, %v7337_v43 }
 0x5b6   :  { %4250 = vst.msk [vmem:[#allocation3 + $0x408] sm:$0xff] %vm100_vm0, %v4019_v14  ;;  %5447 = vrot.lane.b32.xlu0 %v13450_v24, %s9725_s0 }
 0x5b7   :  { %v13448_v26 = vpop.permute.xlu1 %5687 }
 0x5b8   :  { %v13466_v56 = vpop.permute.xlu0 %4923 }
 0x5b9   :  { %6465 = vrot.lane.b32.xlu1 %v4721_v63, %s9729_s1 }
 0x5ba   :  { %6467 = vrot.lane.b32.xlu0 %v4722_v30, %s9729_s1 }
 0x5bb   :  { %v6708_v31 = vpop.permute.xlu1 %6707 }
 0x5bc   :  { %v7338_v23 = vsel %vm3389_vm8, %v7274_v17, %v6708_v31  ;;  %v5944_v47 = vpop.permute.xlu0 %5943 }
 0x5bd   :  { %v9252_v22 = vpop.f32.mrf.mxu0  ;;  %5701 = vrot.lane.b32.xlu1 %v4721_v63, %s9726_s27  ;;  %9277 = vmatmul.mubr.msk.f32.gmra.mxu1 %vm3465_vm9, %v7338_v23 }
 0x5be   :  { %v4034_v44 = vadd.f32 %v13103_v15, %v9252_v22  ;;  %4937 = vrot.lane.b32.xlu0 %v4721_v63, %s9723_s17 }
 0x5bf   :  { %v4028_v36 = vpop.f32.mrf.mxu0  ;;  %v13468_v61 = vpop.permute.xlu1 %5177 }
 0x5c0   :  { %4253 = vst.msk [vmem:[#allocation3 + $0x430] sm:$0xff] %vm100_vm0, %v4034_v44  ;;  %v4029_v10 = vadd.f32 %v13103_v15, %v4028_v36  ;;  %v13477_v13 = vpop.permute.xlu0 %5179  ;;  %v4788_v44 = vld [vmem:[#allocation3 + $0x171] sm:$0xff] }
 0x5c1   :  { %6721 = vrot.lane.b32.xlu1 %v4785_v50, %s9730_s20 }
 0x5c2   :  { %4252 = vst.msk [vmem:[#allocation3 + $0x428] sm:$0xff] %vm100_vm0, %v4029_v10  ;;  %5957 = vrot.lane.b32.xlu0 %v4785_v50, %s9727_s28  ;;  %v6893_v10 = vsel %vm100_vm0, %v13115_v41, %v13444_v52 }
 0x5c3   :  { %v6198_v37 = vpop.permute.xlu1 %6197 }
 0x5c4   :  { %v6200_v46 = vpop.permute.xlu0 %6199 }
 0x5c5   :  { %5703 = vrot.lane.b32.xlu1 %v4722_v30, %s9726_s27 }
 0x5c6   :  { %4939 = vrot.lane.b32.xlu0 %v4722_v30, %s9723_s17 }
 0x5c7   :  { %v13479_v29 = vpop.permute.xlu1 %5433 }
 0x5c8   :  { %v13494_v6 = vpop.permute.xlu0 %5435 }
 0x5c9   :  { %v9255_v55 = vpop.f32.mrf.mxu0  ;;  %6723 = vrot.lane.b32.xlu1 %v4786_v2, %s9730_s20 }
 0x5ca   :  { %v4044_v19 = vadd.f32 %v13103_v15, %v9255_v55  ;;  %5959 = vrot.lane.b32.xlu0 %v4786_v2, %s9727_s28 }
 0x5cb   :  { %v4038_v40 = vpop.f32.mrf.mxu0  ;;  %v6454_v0 = vpop.permute.xlu1 %6453 }
 0x5cc   :  { %4255 = vst.msk [vmem:[#allocation3 + $0x450] sm:$0xff] %vm100_vm0, %v4044_v19  ;;  %v4039_v57 = vadd.f32 %v13103_v15, %v4038_v40  ;;  %v7083_v15 = vsel %vm3129_vm4, %v7019_v45, %v13418_v42  ;;  %v6456_v7 = vpop.permute.xlu0 %6455  ;;  %v6892_v42 = vsel %vm100_vm0, %v13065_v54, %v13389_v18  ;;  %v4723_v54 = vld [vmem:[#allocation3 + $0x168] sm:$0xff] }
 0x5cd   :  { %5193 = vrot.lane.b32.xlu1 %v4785_v50, %s9724_s18  ;;  %v7147_v27 = vsel %vm3194_vm5, %v7083_v15, %v5942_v16  ;;  %v6956_v39 = vsel %vm2999_vm2, %v6892_v42, %v13398_v60  ;;  %v4787_v16 = vld [vmem:[#allocation3 + $0x169] sm:$0xff]  ;;  %v6957_v50 = vsel %vm2999_vm2, %v6893_v10, %v13468_v61 }
 0x5ce   :  { %4254 = vst.msk [vmem:[#allocation3 + $0x448] sm:$0xff] %vm100_vm0, %v4039_v57  ;;  %v7211_v11 = vsel %vm3259_vm6, %v7147_v27, %v6198_v37  ;;  %5195 = vrot.lane.b32.xlu0 %v4786_v2, %s9724_s18  ;;  %v7020_v14 = vsel %vm3064_vm3, %v6956_v39, %v13414_v5  ;;  %v7021_v37 = vsel %vm3064_vm3, %v6957_v50, %v13479_v29  ;;  %v13564_v19 = vld [vmem:[#allocation3 + $0x187] sm:$0xff] }
 0x5cf   :  { %v5690_v38 = vpop.permute.xlu1 %5689  ;;  %v7275_v48 = vsel %vm3324_vm7, %v7211_v11, %v6454_v0  ;;  %v7084_v28 = vsel %vm3129_vm4, %v7020_v14, %v13448_v26  ;;  %v6894_v0 = vsel %vm100_vm0, %v13138_v1, %v13466_v56  ;;  %v4725_v1 = vld [vmem:[#allocation3 + $0x188] sm:$0xff] }
 0x5d0   :  { %v13518_v20 = vpop.permute.xlu0 %4925  ;;  %v7148_v18 = vsel %vm3194_vm5, %v7084_v28, %v5944_v47  ;;  %v7085_v55 = vsel %vm3129_vm4, %v7021_v37, %v5690_v38  ;;  %v6958_v57 = vsel %vm2999_vm2, %v6894_v0, %v13477_v13  ;;  %v13585_v38 = vld [vmem:[#allocation3 + $0x18f] sm:$0xff] }
 0x5d1   :  { %6213 = vrot.lane.b32.xlu1 %v13501_v9, %s9728_s29  ;;  %v7212_v60 = vsel %vm3259_vm6, %v7148_v18, %v6200_v46  ;;  %v7022_v33 = vsel %vm3064_vm3, %v6958_v57, %v13494_v6  ;;  %v4789_v42 = vld [vmem:[#allocation3 + $0x189] sm:$0xff] }
 0x5d2   :  { %6215 = vrot.lane.b32.xlu0 %v13522_v59, %s9728_s29  ;;  %v7276_v25 = vsel %vm3324_vm7, %v7212_v60, %v6456_v7  ;;  %v4791_v0 = vld [vmem:[#allocation3 + $0x1a9] sm:$0xff] }
 0x5d3   :  { %v6710_v4 = vpop.permute.xlu1 %6709 }
 0x5d4   :  { %v7339_v34 = vsel %vm3389_vm8, %v7275_v48, %v6710_v4  ;;  %v5946_v49 = vpop.permute.xlu0 %5945 }
 0x5d5   :  { %5449 = vrot.lane.b32.xlu1 %v13501_v9, %s9725_s0  ;;  %9279 = vmatprep.mubr.msk.f32.mxu1 %vm3465_vm9, %v7339_v34  ;;  %v7149_v46 = vsel %vm3194_vm5, %v7085_v55, %v5946_v49  ;;  %v4726_v34 = vld [vmem:[#allocation3 + $0x190] sm:$0xff]  ;;  %v6895_v49 = vsel %vm100_vm0, %v13190_v8, %v13518_v20 }
 0x5d6   :  { %5451 = vrot.lane.b32.xlu0 %v13522_v59, %s9725_s0 }
 0x5d7   :  { %v5692_v43 = vpop.permute.xlu1 %5691 }
 0x5d8   :  { %v13537_v26 = vpop.permute.xlu0 %4927  ;;  %v7086_v15 = vsel %vm3129_vm4, %v7022_v33, %v5692_v43 }
 0x5d9   :  { %6469 = vrot.lane.b32.xlu1 %v4723_v54, %s9729_s1 }
 0x5da   :  { %6471 = vrot.lane.b32.xlu0 %v4724_v12, %s9729_s1 }
 0x5db   :  { %v6712_v5 = vpop.permute.xlu1 %6711 }
 0x5dc   :  { %v7340_v63 = vsel %vm3389_vm8, %v7276_v25, %v6712_v5  ;;  %v5948_v17 = vpop.permute.xlu0 %5947 }
 0x5dd   :  { %5705 = vrot.lane.b32.xlu1 %v4723_v54, %s9726_s27  ;;  %9280 = vmatmul.mubr.msk.f32.gmra.mxu1 %vm3465_vm9, %v7340_v63  ;;  %v7150_v56 = vsel %vm3194_vm5, %v7086_v15, %v5948_v17  ;;  %v13626_v17 = vld [vmem:[#allocation3 + $0x1a7] sm:$0xff] }
 0x5de   :  { %4941 = vrot.lane.b32.xlu0 %v4723_v54, %s9723_s17  ;;  %v4790_v54 = vld [vmem:[#allocation3 + $0x191] sm:$0xff] }
 0x5df   :  { %v13539_v53 = vpop.permute.xlu1 %5181 }
 0x5e0   :  { %v13545_v23 = vpop.permute.xlu0 %5183  ;;  %v6959_v25 = vsel %vm2999_vm2, %v6895_v49, %v13539_v53 }
 0x5e1   :  { %6725 = vrot.lane.b32.xlu1 %v4787_v16, %s9730_s20 }
 0x5e2   :  { %5961 = vrot.lane.b32.xlu0 %v4787_v16, %s9727_s28 }
 0x5e3   :  { %v6202_v31 = vpop.permute.xlu1 %6201 }
 0x5e4   :  { %v6204_v36 = vpop.permute.xlu0 %6203  ;;  %v7213_v41 = vsel %vm3259_vm6, %v7149_v46, %v6202_v31 }
 0x5e5   :  { %5707 = vrot.lane.b32.xlu1 %v4724_v12, %s9726_s27  ;;  %v7214_v13 = vsel %vm3259_vm6, %v7150_v56, %v6204_v36  ;;  %v6896_v36 = vsel %vm100_vm0, %v13216_v51, %v13537_v26  ;;  %v4727_v51 = vld [vmem:[#allocation3 + $0x1a8] sm:$0xff] }
 0x5e6   :  { %4943 = vrot.lane.b32.xlu0 %v4724_v12, %s9723_s17 }
 0x5e7   :  { %v13547_v22 = vpop.permute.xlu1 %5437 }
 0x5e8   :  { %v13558_v47 = vpop.permute.xlu0 %5439  ;;  %v7023_v63 = vsel %vm3064_vm3, %v6959_v25, %v13547_v22 }
 0x5e9   :  { %6727 = vrot.lane.b32.xlu1 %v4788_v44, %s9730_s20 }
 0x5ea   :  { %5963 = vrot.lane.b32.xlu0 %v4788_v44, %s9727_s28 }
 0x5eb   :  { %v6458_v30 = vpop.permute.xlu1 %6457 }
 0x5ec   :  { %v6460_v52 = vpop.permute.xlu0 %6459  ;;  %v7277_v61 = vsel %vm3324_vm7, %v7213_v41, %v6458_v30  ;;  %v6960_v30 = vsel %vm2999_vm2, %v6896_v36, %v13545_v23  ;;  %v4793_v36 = vld [vmem:[#allocation3 + $0x1c9] sm:$0xff] }
 0x5ed   :  { %5197 = vrot.lane.b32.xlu1 %v4787_v16, %s9724_s18  ;;  %v7278_v11 = vsel %vm3324_vm7, %v7214_v13, %v6460_v52  ;;  %v7024_v50 = vsel %vm3064_vm3, %v6960_v30, %v13558_v47 }
 0x5ee   :  { %5199 = vrot.lane.b32.xlu0 %v4788_v44, %s9724_s18 }
 0x5ef   :  { %v5694_v2 = vpop.permute.xlu1 %5693 }
 0x5f0   :  { %v13581_v58 = vpop.permute.xlu0 %4929  ;;  %v7087_v16 = vsel %vm3129_vm4, %v7023_v63, %v5694_v2  ;;  %v13647_v2 = vld [vmem:[#allocation3 + $0x1af] sm:$0xff] }
 0x5f1   :  { %6217 = vrot.lane.b32.xlu1 %v13564_v19, %s9728_s29 }
 0x5f2   :  { %6219 = vrot.lane.b32.xlu0 %v13585_v38, %s9728_s29 }
 0x5f3   :  { %v6714_v40 = vpop.permute.xlu1 %6713 }
 0x5f4   :  { %v7341_v29 = vsel %vm3389_vm8, %v7277_v61, %v6714_v40  ;;  %v5950_v27 = vpop.permute.xlu0 %5949 }
 0x5f5   :  { %5453 = vrot.lane.b32.xlu1 %v13564_v19, %s9725_s0  ;;  %9282 = vmatprep.mubr.msk.f32.mxu1 %vm3465_vm9, %v7341_v29  ;;  %v7151_v31 = vsel %vm3194_vm5, %v7087_v16, %v5950_v27  ;;  %v4728_v29 = vld [vmem:[#allocation3 + $0x1b0] sm:$0xff]  ;;  %v6897_v27 = vsel %vm100_vm0, %v13268_v21, %v13581_v58 }
 0x5f6   :  { %5455 = vrot.lane.b32.xlu0 %v13585_v38, %s9725_s0 }
 0x5f7   :  { %v5696_v45 = vpop.permute.xlu1 %5695 }
 0x5f8   :  { %v13599_v48 = vpop.permute.xlu0 %4931  ;;  %v7088_v55 = vsel %vm3129_vm4, %v7024_v50, %v5696_v45 }
 0x5f9   :  { %6473 = vrot.lane.b32.xlu1 %v4725_v1, %s9729_s1 }
 0x5fa   :  { %6475 = vrot.lane.b32.xlu0 %v4726_v34, %s9729_s1 }
 0x5fb   :  { %v6716_v7 = vpop.permute.xlu1 %6715 }
 0x5fc   :  { %v7342_v6 = vsel %vm3389_vm8, %v7278_v11, %v6716_v7  ;;  %v5952_v39 = vpop.permute.xlu0 %5951 }
 0x5fd   :  { %5709 = vrot.lane.b32.xlu1 %v4725_v1, %s9726_s27  ;;  %9283 = vmatmul.mubr.msk.f32.gmra.mxu1 %vm3465_vm9, %v7342_v6  ;;  %v7152_v26 = vsel %vm3194_vm5, %v7088_v55, %v5952_v39  ;;  %v13688_v39 = vld [vmem:[#allocation3 + $0x1c7] sm:$0xff] }
 0x5fe   :  { %4945 = vrot.lane.b32.xlu0 %v4725_v1, %s9723_s17  ;;  %v4792_v1 = vld [vmem:[#allocation3 + $0x1b1] sm:$0xff] }
 0x5ff   :  { %v13601_v4 = vpop.permute.xlu1 %5185 }
 0x600   :  { %v13607_v43 = vpop.permute.xlu0 %5187  ;;  %v6961_v11 = vsel %vm2999_vm2, %v6897_v27, %v13601_v4 }
 0x601   :  { %6729 = vrot.lane.b32.xlu1 %v4789_v42, %s9730_s20 }
 0x602   :  { %5965 = vrot.lane.b32.xlu0 %v4789_v42, %s9727_s28 }
 0x603   :  { %v6206_v14 = vpop.permute.xlu1 %6205 }
 0x604   :  { %v6208_v18 = vpop.permute.xlu0 %6207  ;;  %v7215_v8 = vsel %vm3259_vm6, %v7151_v31, %v6206_v14 }
 0x605   :  { %5711 = vrot.lane.b32.xlu1 %v4726_v34, %s9726_s27  ;;  %v7216_v23 = vsel %vm3259_vm6, %v7152_v26, %v6208_v18  ;;  %v6898_v18 = vsel %vm100_vm0, %v13291_v32, %v13599_v48  ;;  %v4729_v32 = vld [vmem:[#allocation3 + $0x1c8] sm:$0xff] }
 0x606   :  { %4947 = vrot.lane.b32.xlu0 %v4726_v34, %s9723_s17 }
 0x607   :  { %v13609_v28 = vpop.permute.xlu1 %5441 }
 0x608   :  { %v13620_v5 = vpop.permute.xlu0 %5443  ;;  %v7025_v6 = vsel %vm3064_vm3, %v6961_v11, %v13609_v28 }
 0x609   :  { %6731 = vrot.lane.b32.xlu1 %v4790_v54, %s9730_s20 }
 0x60a   :  { %5967 = vrot.lane.b32.xlu0 %v4790_v54, %s9727_s28 }
 0x60b   :  { %v6462_v60 = vpop.permute.xlu1 %6461 }
 0x60c   :  { %v6464_v20 = vpop.permute.xlu0 %6463  ;;  %v7279_v53 = vsel %vm3324_vm7, %v7215_v8, %v6462_v60  ;;  %v6962_v60 = vsel %vm2999_vm2, %v6898_v18, %v13607_v43  ;;  %v4795_v18 = vld [vmem:[#allocation3 + $0x1e9] sm:$0xff] }
 0x60d   :  { %5201 = vrot.lane.b32.xlu1 %v4789_v42, %s9724_s18  ;;  %v7280_v41 = vsel %vm3324_vm7, %v7216_v23, %v6464_v20  ;;  %v7026_v25 = vsel %vm3064_vm3, %v6962_v60, %v13620_v5 }
 0x60e   :  { %5203 = vrot.lane.b32.xlu0 %v4790_v54, %s9724_s18 }
 0x60f   :  { %v5698_v12 = vpop.permute.xlu1 %5697 }
 0x610   :  { %v13643_v10 = vpop.permute.xlu0 %4933  ;;  %v7089_v42 = vsel %vm3129_vm4, %v7025_v6, %v5698_v12  ;;  %v13709_v12 = vld [vmem:[#allocation3 + $0x1cf] sm:$0xff] }
 0x611   :  { %6221 = vrot.lane.b32.xlu1 %v13626_v17, %s9728_s29 }
 0x612   :  { %6223 = vrot.lane.b32.xlu0 %v13647_v2, %s9728_s29 }
 0x613   :  { %v6718_v44 = vpop.permute.xlu1 %6717 }
 0x614   :  { %v7343_v22 = vsel %vm3389_vm8, %v7279_v53, %v6718_v44  ;;  %v5954_v46 = vpop.permute.xlu0 %5953 }
 0x615   :  { %5457 = vrot.lane.b32.xlu1 %v13626_v17, %s9725_s0  ;;  %9285 = vmatprep.mubr.msk.f32.mxu1 %vm3465_vm9, %v7343_v22  ;;  %v7153_v14 = vsel %vm3194_vm5, %v7089_v42, %v5954_v46  ;;  %v4730_v22 = vld [vmem:[#allocation3 + $0x1d0] sm:$0xff]  ;;  %v6899_v46 = vsel %vm100_vm0, %v13346_v35, %v13643_v10 }
 0x616   :  { %5459 = vrot.lane.b32.xlu0 %v13647_v2, %s9725_s0 }
 0x617   :  { %v5700_v37 = vpop.permute.xlu1 %5699 }
 0x618   :  { %v13661_v61 = vpop.permute.xlu0 %4935  ;;  %v7090_v16 = vsel %vm3129_vm4, %v7026_v25, %v5700_v37 }
 0x619   :  { %6477 = vrot.lane.b32.xlu1 %v4727_v51, %s9729_s1 }
 0x61a   :  { %6479 = vrot.lane.b32.xlu0 %v4728_v29, %s9729_s1 }
 0x61b   :  { %v6720_v52 = vpop.permute.xlu1 %6719 }
 0x61c   :  { %v7344_v47 = vsel %vm3389_vm8, %v7280_v41, %v6720_v52  ;;  %v5956_v57 = vpop.permute.xlu0 %5955 }
 0x61d   :  { %5713 = vrot.lane.b32.xlu1 %v4727_v51, %s9726_s27  ;;  %9286 = vmatmul.mubr.msk.f32.gmra.mxu1 %vm3465_vm9, %v7344_v47  ;;  %v7154_v48 = vsel %vm3194_vm5, %v7090_v16, %v5956_v57  ;;  %v13750_v57 = vld [vmem:[#allocation3 + $0x1e7] sm:$0xff] }
 0x61e   :  { %4949 = vrot.lane.b32.xlu0 %v4727_v51, %s9723_s17  ;;  %v4794_v51 = vld [vmem:[#allocation3 + $0x1d1] sm:$0xff] }
 0x61f   :  { %v13663_v40 = vpop.permute.xlu1 %5189 }
 0x620   :  { %v13669_v45 = vpop.permute.xlu0 %5191  ;;  %v6963_v41 = vsel %vm2999_vm2, %v6899_v46, %v13663_v40 }
 0x621   :  { %6733 = vrot.lane.b32.xlu1 %v4791_v0, %s9730_s20 }
 0x622   :  { %5969 = vrot.lane.b32.xlu0 %v4791_v0, %s9727_s28 }
 0x623   :  { %v6210_v33 = vpop.permute.xlu1 %6209 }
 0x624   :  { %v6212_v56 = vpop.permute.xlu0 %6211  ;;  %v7217_v21 = vsel %vm3259_vm6, %v7153_v14, %v6210_v33 }
 0x625   :  { %5715 = vrot.lane.b32.xlu1 %v4728_v29, %s9726_s27  ;;  %v7218_v43 = vsel %vm3259_vm6, %v7154_v48, %v6212_v56  ;;  %v6900_v56 = vsel %vm100_vm0, %v13370_v62, %v13661_v61  ;;  %v4731_v62 = vld [vmem:[#allocation3 + $0x1e8] sm:$0xff] }
 0x626   :  { %4951 = vrot.lane.b32.xlu0 %v4728_v29, %s9723_s17 }
 0x627   :  { %v13671_v15 = vpop.permute.xlu1 %5445 }
 0x628   :  { %v13682_v7 = vpop.permute.xlu0 %5447  ;;  %v7027_v47 = vsel %vm3064_vm3, %v6963_v41, %v13671_v15 }
 0x629   :  { %6735 = vrot.lane.b32.xlu1 %v4792_v1, %s9730_s20 }
 0x62a   :  { %5971 = vrot.lane.b32.xlu0 %v4792_v1, %s9727_s28 }
 0x62b   :  { %v6466_v13 = vpop.permute.xlu1 %6465 }
 0x62c   :  { %v6468_v58 = vpop.permute.xlu0 %6467  ;;  %v7281_v4 = vsel %vm3324_vm7, %v7217_v21, %v6466_v13  ;;  %v6964_v13 = vsel %vm2999_vm2, %v6900_v56, %v13669_v45  ;;  %v4797_v56 = vld [vmem:[#allocation3 + $0x209] sm:$0xff] }
 0x62d   :  { %5205 = vrot.lane.b32.xlu1 %v4791_v0, %s9724_s18  ;;  %v7282_v8 = vsel %vm3324_vm7, %v7218_v43, %v6468_v58  ;;  %v7028_v11 = vsel %vm3064_vm3, %v6964_v13, %v13682_v7  ;;  %v4352_v13 = vld [vmem:[#allocation3 + $0x248] sm:$0xff] }
 0x62e   :  { %5207 = vrot.lane.b32.xlu0 %v4792_v1, %s9724_s18 }
 0x62f   :  { %v5702_v34 = vpop.permute.xlu1 %5701 }
 0x630   :  { %v13705_v49 = vpop.permute.xlu0 %4937  ;;  %v7091_v0 = vsel %vm3129_vm4, %v7027_v47, %v5702_v34  ;;  %v13771_v34 = vld [vmem:[#allocation3 + $0x1ef] sm:$0xff] }
 0x631   :  { %6225 = vrot.lane.b32.xlu1 %v13688_v39, %s9728_s29 }
 0x632   :  { %6227 = vrot.lane.b32.xlu0 %v13709_v12, %s9728_s29 }
 0x633   :  { %v6722_v54 = vpop.permute.xlu1 %6721 }
 0x634   :  { %v7345_v28 = vsel %vm3389_vm8, %v7281_v4, %v6722_v54  ;;  %v5958_v31 = vpop.permute.xlu0 %5957 }
 0x635   :  { %5461 = vrot.lane.b32.xlu1 %v13688_v39, %s9725_s0  ;;  %9288 = vmatprep.mubr.msk.f32.mxu1 %vm3465_vm9, %v7345_v28  ;;  %v7155_v33 = vsel %vm3194_vm5, %v7091_v0, %v5958_v31  ;;  %v4732_v28 = vld [vmem:[#allocation3 + $0x1f0] sm:$0xff]  ;;  %v6901_v31 = vsel %vm100_vm0, %v13423_v3, %v13705_v49 }
 0x636   :  { %5463 = vrot.lane.b32.xlu0 %v13709_v12, %s9725_s0 }
 0x637   :  { %v5704_v63 = vpop.permute.xlu1 %5703 }
 0x638   :  { %v13723_v53 = vpop.permute.xlu0 %4939  ;;  %v7092_v42 = vsel %vm3129_vm4, %v7028_v11, %v5704_v63 }
 0x639   :  { %6481 = vrot.lane.b32.xlu1 %v4729_v32, %s9729_s1 }
 0x63a   :  { %6483 = vrot.lane.b32.xlu0 %v4730_v22, %s9729_s1 }
 0x63b   :  { %v6724_v20 = vpop.permute.xlu1 %6723 }
 0x63c   :  { %v7346_v5 = vsel %vm3389_vm8, %v7282_v8, %v6724_v20  ;;  %v5960_v30 = vpop.permute.xlu0 %5959 }
 0x63d   :  { %5717 = vrot.lane.b32.xlu1 %v4729_v32, %s9726_s27  ;;  %9289 = vmatmul.mubr.msk.f32.gmra.mxu1 %vm3465_vm9, %v7346_v5  ;;  %v7156_v61 = vsel %vm3194_vm5, %v7092_v42, %v5960_v30  ;;  %v4669_v30 = vld [vmem:[#allocation3 + $0x207] sm:$0xff] }
 0x63e   :  { %4953 = vrot.lane.b32.xlu0 %v4729_v32, %s9723_s17  ;;  %v4796_v32 = vld [vmem:[#allocation3 + $0x1f1] sm:$0xff] }
 0x63f   :  { %v13725_v44 = vpop.permute.xlu1 %5193 }
 0x640   :  { %v13731_v37 = vpop.permute.xlu0 %5195  ;;  %v6965_v8 = vsel %vm2999_vm2, %v6901_v31, %v13725_v44 }
 0x641   :  { %6737 = vrot.lane.b32.xlu1 %v4793_v36, %s9730_s20 }
 0x642   :  { %5973 = vrot.lane.b32.xlu0 %v4793_v36, %s9727_s28 }
 0x643   :  { %v6214_v50 = vpop.permute.xlu1 %6213 }
 0x644   :  { %v6216_v26 = vpop.permute.xlu0 %6215  ;;  %v7219_v35 = vsel %vm3259_vm6, %v7155_v33, %v6214_v50 }
 0x645   :  { %5719 = vrot.lane.b32.xlu1 %v4730_v22, %s9726_s27  ;;  %v7220_v45 = vsel %vm3259_vm6, %v7156_v61, %v6216_v26  ;;  %v4798_v61 = vld [vmem:[#allocation3 + $0x211] sm:$0xff] }
 0x646   :  { %4955 = vrot.lane.b32.xlu0 %v4730_v22, %s9723_s17 }
 0x647   :  { %v13733_v55 = vpop.permute.xlu1 %5449 }
 0x648   :  { %v13744_v52 = vpop.permute.xlu0 %5451  ;;  %v7029_v5 = vsel %vm3064_vm3, %v6965_v8, %v13733_v55  ;;  %v6902_v55 = vsel %vm100_vm0, %v13450_v24, %v13723_v53  ;;  %v4733_v24 = vld [vmem:[#allocation3 + $0x208] sm:$0xff] }
 0x649   :  { %6739 = vrot.lane.b32.xlu1 %v4794_v51, %s9730_s20 }
 0x64a   :  { %5975 = vrot.lane.b32.xlu0 %v4794_v51, %s9727_s28 }
 0x64b   :  { %v6470_v23 = vpop.permute.xlu1 %6469 }
 0x64c   :  { %v6472_v10 = vpop.permute.xlu0 %6471  ;;  %v7283_v40 = vsel %vm3324_vm7, %v7219_v35, %v6470_v23  ;;  %v6966_v23 = vsel %vm2999_vm2, %v6902_v55, %v13731_v37 }
 0x64d   :  { %5209 = vrot.lane.b32.xlu1 %v4793_v36, %s9724_s18  ;;  %v7284_v21 = vsel %vm3324_vm7, %v7220_v45, %v6472_v10  ;;  %v7030_v41 = vsel %vm3064_vm3, %v6966_v23, %v13744_v52  ;;  %v4353_v45 = vld [vmem:[#allocation3 + $0x250] sm:$0xff] }
 0x64e   :  { %5211 = vrot.lane.b32.xlu0 %v4794_v51, %s9724_s18  ;;  %v13897_v23 = vld [vmem:[#allocation3 + $0x26f] sm:$0xff] }
 0x64f   :  { %v5706_v29 = vpop.permute.xlu1 %5705 }
 0x650   :  { %v13767_v27 = vpop.permute.xlu0 %4941  ;;  %v7093_v36 = vsel %vm3129_vm4, %v7029_v5, %v5706_v29  ;;  %v4670_v29 = vld [vmem:[#allocation3 + $0x20f] sm:$0xff] }
 0x651   :  { %6229 = vrot.lane.b32.xlu1 %v13750_v57, %s9728_s29 }
 0x652   :  { %6231 = vrot.lane.b32.xlu0 %v13771_v34, %s9728_s29 }
 0x653   :  { %v6726_v1 = vpop.permute.xlu1 %6725 }
 0x654   :  { %v7347_v15 = vsel %vm3389_vm8, %v7283_v40, %v6726_v1  ;;  %v5962_v14 = vpop.permute.xlu0 %5961 }
 0x655   :  { %5465 = vrot.lane.b32.xlu1 %v13750_v57, %s9725_s0  ;;  %9291 = vmatprep.mubr.msk.f32.mxu1 %vm3465_vm9, %v7347_v15  ;;  %v7157_v50 = vsel %vm3194_vm5, %v7093_v36, %v5962_v14  ;;  %v4734_v15 = vld [vmem:[#allocation3 + $0x210] sm:$0xff] }
 0x656   :  { %5467 = vrot.lane.b32.xlu0 %v13771_v34, %s9725_s0  ;;  %v4672_v36 = vld [vmem:[#allocation3 + $0x22f] sm:$0xff] }
 0x657   :  { %v5708_v6 = vpop.permute.xlu1 %5707 }
 0x658   :  { %v13785_v4 = vpop.permute.xlu0 %4943  ;;  %v7094_v0 = vsel %vm3129_vm4, %v7030_v41, %v5708_v6  ;;  %v4544_v41 = vld [vmem:[#allocation3 + $0x268] sm:$0xff] }
 0x659   :  { %6485 = vrot.lane.b32.xlu1 %v4731_v62, %s9729_s1 }
 0x65a   :  { %6487 = vrot.lane.b32.xlu0 %v4732_v28, %s9729_s1 }
 0x65b   :  { %v6728_v58 = vpop.permute.xlu1 %6727 }
 0x65c   :  { %v7348_v7 = vsel %vm3389_vm8, %v7284_v21, %v6728_v58  ;;  %v5964_v60 = vpop.permute.xlu0 %5963  ;;  %v4416_v21 = vld [vmem:[#allocation3 + $0x249] sm:$0xff] }
 0x65d   :  { %5721 = vrot.lane.b32.xlu1 %v4731_v62, %s9726_s27  ;;  %9292 = vmatmul.mubr.msk.f32.gmra.mxu1 %vm3465_vm9, %v7348_v7  ;;  %v7158_v53 = vsel %vm3194_vm5, %v7094_v0, %v5964_v60  ;;  %v6903_v7 = vsel %vm100_vm0, %v13501_v9, %v13767_v27  ;;  %v4671_v60 = vld [vmem:[#allocation3 + $0x227] sm:$0xff]  ;;  %v4417_v9 = vld [vmem:[#allocation3 + $0x251] sm:$0xff] }
 0x65e   :  { %4957 = vrot.lane.b32.xlu0 %v4731_v62, %s9723_s17  ;;  %v4799_v0 = vld [vmem:[#allocation3 + $0x229] sm:$0xff] }
 0x65f   :  { %v13787_v54 = vpop.permute.xlu1 %5197 }
 0x660   :  { %v13793_v63 = vpop.permute.xlu0 %5199 }
 0x661   :  { %6741 = vrot.lane.b32.xlu1 %v4795_v18, %s9730_s20 }
 0x662   :  { %5977 = vrot.lane.b32.xlu0 %v4795_v18, %s9727_s28 }
 0x663   :  { %v6218_v25 = vpop.permute.xlu1 %6217 }
 0x664   :  { %v6220_v48 = vpop.permute.xlu0 %6219  ;;  %v7221_v3 = vsel %vm3259_vm6, %v7157_v50, %v6218_v25 }
 0x665   :  { %5723 = vrot.lane.b32.xlu1 %v4732_v28, %s9726_s27  ;;  %v7222_v33 = vsel %vm3259_vm6, %v7158_v53, %v6220_v48 }
 0x666   :  { %4959 = vrot.lane.b32.xlu0 %v4732_v28, %s9723_s17  ;;  %v6967_v28 = vsel %vm2999_vm2, %v6903_v7, %v13787_v54  ;;  %v13932_v7 = vld [vmem:[#allocation3 + $0x287] sm:$0xff] }
 0x667   :  { %v13795_v16 = vpop.permute.xlu1 %5453 }
 0x668   :  { %v13806_v20 = vpop.permute.xlu0 %5455  ;;  %v7031_v25 = vsel %vm3064_vm3, %v6967_v28, %v13795_v16  ;;  %v13876_v16 = vld [vmem:[#allocation3 + $0x267] sm:$0xff] }
 0x669   :  { %6743 = vrot.lane.b32.xlu1 %v4796_v32, %s9730_s20 }
 0x66a   :  { %5979 = vrot.lane.b32.xlu0 %v4796_v32, %s9727_s28 }
 0x66b   :  { %v6474_v43 = vpop.permute.xlu1 %6473 }
 0x66c   :  { %v6476_v49 = vpop.permute.xlu0 %6475  ;;  %v7285_v44 = vsel %vm3324_vm7, %v7221_v3, %v6474_v43  ;;  %v4735_v3 = vld [vmem:[#allocation3 + $0x228] sm:$0xff] }
 0x66d   :  { %5213 = vrot.lane.b32.xlu1 %v4795_v18, %s9724_s18  ;;  %v7286_v35 = vsel %vm3324_vm7, %v7222_v33, %v6476_v49 }
 0x66e   :  { %5215 = vrot.lane.b32.xlu0 %v4796_v32, %s9724_s18 }
 0x66f   :  { %v5710_v22 = vpop.permute.xlu1 %5709 }
 0x670   :  { %v13825_v46 = vpop.permute.xlu0 %4945  ;;  %v7095_v48 = vsel %vm3129_vm4, %v7031_v25, %v5710_v22  ;;  %v6904_v22 = vsel %vm100_vm0, %v13522_v59, %v13785_v4 }
 0x671   :  { %6233 = vrot.lane.b32.xlu1 %v4669_v30, %s9728_s29 }
 0x672   :  { %6235 = vrot.lane.b32.xlu0 %v4670_v29, %s9728_s29 }
 0x673   :  { %v6730_v51 = vpop.permute.xlu1 %6729 }
 0x674   :  { %v7349_v26 = vsel %vm3389_vm8, %v7285_v44, %v6730_v51  ;;  %v5966_v37 = vpop.permute.xlu0 %5965 }
 0x675   :  { %5469 = vrot.lane.b32.xlu1 %v4669_v30, %s9725_s0  ;;  %9294 = vmatprep.mubr.msk.f32.mxu1 %vm3465_vm9, %v7349_v26  ;;  %v7159_v43 = vsel %vm3194_vm5, %v7095_v48, %v5966_v37  ;;  %v6968_v30 = vsel %vm2999_vm2, %v6904_v22, %v13793_v63  ;;  %v4545_v37 = vld [vmem:[#allocation3 + $0x270] sm:$0xff] }
 0x676   :  { %5471 = vrot.lane.b32.xlu0 %v4670_v29, %s9725_s0  ;;  %v7032_v49 = vsel %vm3064_vm3, %v6968_v30, %v13806_v20  ;;  %v4738_v30 = vld [vmem:[#allocation3 + $0x290] sm:$0xff] }
 0x677   :  { %v13829_v47 = vpop.permute.xlu1 %5711 }
 0x678   :  { %v13841_v40 = vpop.permute.xlu0 %4947  ;;  %v7096_v51 = vsel %vm3129_vm4, %v7032_v49, %v13829_v47  ;;  %v4736_v47 = vld [vmem:[#allocation3 + $0x230] sm:$0xff] }
 0x679   :  { %6489 = vrot.lane.b32.xlu1 %v4733_v24, %s9729_s1  ;;  %v6906_v25 = vsel %vm100_vm0, %v13585_v38, %v13841_v40  ;;  %v4737_v38 = vld [vmem:[#allocation3 + $0x288] sm:$0xff] }
 0x67a   :  { %6491 = vrot.lane.b32.xlu0 %v4734_v15, %s9729_s1 }
 0x67b   :  { %v6732_v10 = vpop.permute.xlu1 %6731 }
 0x67c   :  { %v7350_v52 = vsel %vm3389_vm8, %v7286_v35, %v6732_v10  ;;  %v5968_v11 = vpop.permute.xlu0 %5967  ;;  %v4800_v10 = vld [vmem:[#allocation3 + $0x231] sm:$0xff] }
 0x67d   :  { %5725 = vrot.lane.b32.xlu1 %v4733_v24, %s9726_s27  ;;  %9295 = vmatmul.mubr.msk.f32.gmra.mxu1 %vm3465_vm9, %v7350_v52  ;;  %v7160_v59 = vsel %vm3194_vm5, %v7096_v51, %v5968_v11  ;;  %v6905_v11 = vsel %vm100_vm0, %v13564_v19, %v13825_v46 }
 0x67e   :  { %4961 = vrot.lane.b32.xlu0 %v4352_v13, %s9723_s17 }
 0x67f   :  { %v13843_v1 = vpop.permute.xlu1 %5201 }
 0x680   :  { %v13849_v42 = vpop.permute.xlu0 %5203 }
 0x681   :  { %6745 = vrot.lane.b32.xlu1 %v4797_v56, %s9730_s20 }
 0x682   :  { %5981 = vrot.lane.b32.xlu0 %v4797_v56, %s9727_s28 }
 0x683   :  { %v6222_v6 = vpop.permute.xlu1 %6221 }
 0x684   :  { %v6224_v14 = vpop.permute.xlu0 %6223  ;;  %v7223_v27 = vsel %vm3259_vm6, %v7159_v43, %v6222_v6  ;;  %v6969_v6 = vsel %vm2999_vm2, %v6905_v11, %v13843_v1 }
 0x685   :  { %5727 = vrot.lane.b32.xlu1 %v4734_v15, %s9726_s27  ;;  %v7224_v4 = vsel %vm3259_vm6, %v7160_v59, %v6224_v14  ;;  %v4608_v15 = vld [vmem:[#allocation3 + $0x269] sm:$0xff] }
 0x686   :  { %4963 = vrot.lane.b32.xlu0 %v4353_v45, %s9723_s17 }
 0x687   :  { %v13851_v62 = vpop.permute.xlu1 %5457 }
 0x688   :  { %v13862_v18 = vpop.permute.xlu0 %5459  ;;  %v7033_v45 = vsel %vm3064_vm3, %v6969_v6, %v13851_v62 }
 0x689   :  { %6747 = vrot.lane.b32.xlu1 %v4798_v61, %s9730_s20 }
 0x68a   :  { %5983 = vrot.lane.b32.xlu0 %v4798_v61, %s9727_s28 }
 0x68b   :  { %v6478_v58 = vpop.permute.xlu1 %6477 }
 0x68c   :  { %v6480_v54 = vpop.permute.xlu0 %6479  ;;  %v7287_v31 = vsel %vm3324_vm7, %v7223_v27, %v6478_v58  ;;  %v13953_v27 = vld [vmem:[#allocation3 + $0x28f] sm:$0xff] }
 0x68d   :  { %5217 = vrot.lane.b32.xlu1 %v4416_v21, %s9724_s18  ;;  %v7288_v63 = vsel %vm3324_vm7, %v7224_v4, %v6480_v54  ;;  %v4609_v21 = vld [vmem:[#allocation3 + $0x271] sm:$0xff] }
 0x68e   :  { %5219 = vrot.lane.b32.xlu0 %v4417_v9, %s9724_s18  ;;  %v4802_v4 = vld [vmem:[#allocation3 + $0x291] sm:$0xff] }
 0x68f   :  { %v13866_v32 = vpop.permute.xlu1 %5713 }
 0x690   :  { %v13886_v50 = vpop.permute.xlu0 %4949  ;;  %v7097_v58 = vsel %vm3129_vm4, %v7033_v45, %v13866_v32  ;;  %v6970_v32 = vsel %vm2999_vm2, %v6906_v25, %v13849_v42  ;;  %v14015_v45 = vld [vmem:[#allocation3 + $0x2af] sm:$0xff] }
 0x691   :  { %6237 = vrot.lane.b32.xlu1 %v4671_v60, %s9728_s29  ;;  %v7034_v43 = vsel %vm3064_vm3, %v6970_v32, %v13862_v18 }
 0x692   :  { %6239 = vrot.lane.b32.xlu0 %v4672_v36, %s9728_s29 }
 0x693   :  { %v6734_v8 = vpop.permute.xlu1 %6733 }
 0x694   :  { %v7351_v5 = vsel %vm3389_vm8, %v7287_v31, %v6734_v8  ;;  %v5970_v26 = vpop.permute.xlu0 %5969 }
 0x695   :  { %5473 = vrot.lane.b32.xlu1 %v13876_v16, %s9725_s0  ;;  %9297 = vmatprep.mubr.msk.f32.mxu1 %vm3465_vm9, %v7351_v5  ;;  %v7161_v19 = vsel %vm3194_vm5, %v7097_v58, %v5970_v26 }
 0x696   :  { %5475 = vrot.lane.b32.xlu0 %v13897_v23, %s9725_s0 }
 0x697   :  { %v5716_v44 = vpop.permute.xlu1 %5715 }
 0x698   :  { %v13904_v29 = vpop.permute.xlu0 %4951  ;;  %v7098_v54 = vsel %vm3129_vm4, %v7034_v43, %v5716_v44 }
 0x699   :  { %6493 = vrot.lane.b32.xlu1 %v4735_v3, %s9729_s1  ;;  %v4801_v3 = vld [vmem:[#allocation3 + $0x289] sm:$0xff] }
 0x69a   :  { %6495 = vrot.lane.b32.xlu0 %v4736_v47, %s9729_s1 }
 0x69b   :  { %v6736_v55 = vpop.permute.xlu1 %6735 }
 0x69c   :  { %v7352_v20 = vsel %vm3389_vm8, %v7288_v63, %v6736_v55  ;;  %v5972_v53 = vpop.permute.xlu0 %5971  ;;  %v6907_v55 = vsel %vm100_vm0, %v13626_v17, %v13886_v50 }
 0x69d   :  { %5729 = vrot.lane.b32.xlu1 %v4544_v41, %s9726_s27  ;;  %9298 = vmatmul.mubr.msk.f32.gmra.mxu1 %vm3465_vm9, %v7352_v20  ;;  %v7162_v40 = vsel %vm3194_vm5, %v7098_v54, %v5972_v53 }
 0x69e   :  { %4965 = vrot.lane.b32.xlu0 %v4544_v41, %s9723_s17 }
 0x69f   :  { %v13906_v24 = vpop.permute.xlu1 %5205 }
 0x6a0   :  { %v13912_v35 = vpop.permute.xlu0 %5207  ;;  %v6971_v20 = vsel %vm2999_vm2, %v6907_v55, %v13906_v24 }
 0x6a1   :  { %6749 = vrot.lane.b32.xlu1 %v4799_v0, %s9730_s20 }
 0x6a2   :  { %5985 = vrot.lane.b32.xlu0 %v4608_v15, %s9727_s28 }
 0x6a3   :  { %v6226_v33 = vpop.permute.xlu1 %6225 }
 0x6a4   :  { %v6228_v56 = vpop.permute.xlu0 %6227  ;;  %v7225_v46 = vsel %vm3259_vm6, %v7161_v19, %v6226_v33  ;;  %v13994_v33 = vld [vmem:[#allocation3 + $0x2a7] sm:$0xff] }
 0x6a5   :  { %5731 = vrot.lane.b32.xlu1 %v4545_v37, %s9726_s27  ;;  %v7226_v42 = vsel %vm3259_vm6, %v7162_v40, %v6228_v56 }
 0x6a6   :  { %4967 = vrot.lane.b32.xlu0 %v4545_v37, %s9723_s17 }
 0x6a7   :  { %v13914_v52 = vpop.permute.xlu1 %5461 }
 0x6a8   :  { %v13925_v61 = vpop.permute.xlu0 %5463  ;;  %v7035_v47 = vsel %vm3064_vm3, %v6971_v20, %v13914_v52  ;;  %v14077_v20 = vld [vmem:[#allocation3 + $0x2cf] sm:$0xff] }
 0x6a9   :  { %6751 = vrot.lane.b32.xlu1 %v4800_v10, %s9730_s20 }
 0x6aa   :  { %5987 = vrot.lane.b32.xlu0 %v4609_v21, %s9727_s28 }
 0x6ab   :  { %v6482_v13 = vpop.permute.xlu1 %6481 }
 0x6ac   :  { %v6484_v1 = vpop.permute.xlu0 %6483  ;;  %v7289_v28 = vsel %vm3324_vm7, %v7225_v46, %v6482_v13 }
 0x6ad   :  { %5221 = vrot.lane.b32.xlu1 %v4608_v15, %s9724_s18  ;;  %v7290_v8 = vsel %vm3324_vm7, %v7226_v42, %v6484_v1  ;;  %v6908_v15 = vsel %vm100_vm0, %v13647_v2, %v13904_v29  ;;  %v4739_v2 = vld [vmem:[#allocation3 + $0x2a8] sm:$0xff] }
 0x6ae   :  { %5223 = vrot.lane.b32.xlu0 %v4609_v21, %s9724_s18  ;;  %v6972_v56 = vsel %vm2999_vm2, %v6908_v15, %v13912_v35 }
 0x6af   :  { %v5718_v14 = vpop.permute.xlu1 %5717  ;;  %v7036_v11 = vsel %vm3064_vm3, %v6972_v56, %v13925_v61 }
 0x6b0   :  { %v13949_v48 = vpop.permute.xlu0 %4953  ;;  %v7099_v53 = vsel %vm3129_vm4, %v7035_v47, %v5718_v14 }
 0x6b1   :  { %6241 = vrot.lane.b32.xlu1 %v13932_v7, %s9728_s29  ;;  %v6909_v40 = vsel %vm100_vm0, %v13688_v39, %v13949_v48 }
 0x6b2   :  { %6243 = vrot.lane.b32.xlu0 %v13953_v27, %s9728_s29 }
 0x6b3   :  { %v6738_v62 = vpop.permute.xlu1 %6737 }
 0x6b4   :  { %v7353_v60 = vsel %vm3389_vm8, %v7289_v28, %v6738_v62  ;;  %v5974_v31 = vpop.permute.xlu0 %5973  ;;  %v4740_v28 = vld [vmem:[#allocation3 + $0x2b0] sm:$0xff] }
 0x6b5   :  { %5477 = vrot.lane.b32.xlu1 %v13932_v7, %s9725_s0  ;;  %9300 = vmatprep.mubr.msk.f32.mxu1 %vm3465_vm9, %v7353_v60  ;;  %v7163_v37 = vsel %vm3194_vm5, %v7099_v53, %v5974_v31  ;;  %v4803_v62 = vld [vmem:[#allocation3 + $0x2a9] sm:$0xff] }
 0x6b6   :  { %5479 = vrot.lane.b32.xlu0 %v13953_v27, %s9725_s0 }
 0x6b7   :  { %v5720_v9 = vpop.permute.xlu1 %5719 }
 0x6b8   :  { %v13967_v22 = vpop.permute.xlu0 %4955  ;;  %v7100_v14 = vsel %vm3129_vm4, %v7036_v11, %v5720_v9  ;;  %v4804_v9 = vld [vmem:[#allocation3 + $0x2b1] sm:$0xff] }
 0x6b9   :  { %6497 = vrot.lane.b32.xlu1 %v4737_v38, %s9729_s1 }
 0x6ba   :  { %6499 = vrot.lane.b32.xlu0 %v4738_v30, %s9729_s1 }
 0x6bb   :  { %v6740_v5 = vpop.permute.xlu1 %6739 }
 0x6bc   :  { %v7354_v18 = vsel %vm3389_vm8, %v7290_v8, %v6740_v5  ;;  %v5976_v49 = vpop.permute.xlu0 %5975 }
 0x6bd   :  { %5733 = vrot.lane.b32.xlu1 %v4737_v38, %s9726_s27  ;;  %9301 = vmatmul.mubr.msk.f32.gmra.mxu1 %vm3465_vm9, %v7354_v18  ;;  %v7164_v29 = vsel %vm3194_vm5, %v7100_v14, %v5976_v49 }
 0x6be   :  { %4969 = vrot.lane.b32.xlu0 %v4737_v38, %s9723_s17 }
 0x6bf   :  { %v13969_v36 = vpop.permute.xlu1 %5209 }
 0x6c0   :  { %v13975_v51 = vpop.permute.xlu0 %5211  ;;  %v6973_v42 = vsel %vm2999_vm2, %v6909_v40, %v13969_v36 }
 0x6c1   :  { %6753 = vrot.lane.b32.xlu1 %v4801_v3, %s9730_s20 }
 0x6c2   :  { %5989 = vrot.lane.b32.xlu0 %v4801_v3, %s9727_s28 }
 0x6c3   :  { %v6230_v44 = vpop.permute.xlu1 %6229 }
 0x6c4   :  { %v6232_v26 = vpop.permute.xlu0 %6231  ;;  %v7227_v17 = vsel %vm3259_vm6, %v7163_v37, %v6230_v44 }
 0x6c5   :  { %5735 = vrot.lane.b32.xlu1 %v4738_v30, %s9726_s27  ;;  %v7228_v35 = vsel %vm3259_vm6, %v7164_v29, %v6232_v26 }
 0x6c6   :  { %4971 = vrot.lane.b32.xlu0 %v4738_v30, %s9723_s17  ;;  %v14056_v30 = vld [vmem:[#allocation3 + $0x2c7] sm:$0xff] }
 0x6c7   :  { %v13977_v59 = vpop.permute.xlu1 %5465 }
 0x6c8   :  { %v13988_v41 = vpop.permute.xlu0 %5467  ;;  %v7037_v8 = vsel %vm3064_vm3, %v6973_v42, %v13977_v59  ;;  %v6910_v59 = vsel %vm100_vm0, %v13709_v12, %v13967_v22  ;;  %v4741_v12 = vld [vmem:[#allocation3 + $0x2c8] sm:$0xff] }
 0x6c9   :  { %6755 = vrot.lane.b32.xlu1 %v4802_v4, %s9730_s20  ;;  %v14139_v42 = vld [vmem:[#allocation3 + $0x2ef] sm:$0xff] }
 0x6ca   :  { %5991 = vrot.lane.b32.xlu0 %v4802_v4, %s9727_s28 }
 0x6cb   :  { %v6486_v63 = vpop.permute.xlu1 %6485 }
 0x6cc   :  { %v6488_v50 = vpop.permute.xlu0 %6487  ;;  %v7291_v24 = vsel %vm3324_vm7, %v7227_v17, %v6486_v63 }
 0x6cd   :  { %5225 = vrot.lane.b32.xlu1 %v4801_v3, %s9724_s18  ;;  %v7292_v58 = vsel %vm3324_vm7, %v7228_v35, %v6488_v50 }
 0x6ce   :  { %5227 = vrot.lane.b32.xlu0 %v4802_v4, %s9724_s18  ;;  %v6974_v4 = vsel %vm2999_vm2, %v6910_v59, %v13975_v51 }
 0x6cf   :  { %v5722_v0 = vpop.permute.xlu1 %5721  ;;  %v7038_v63 = vsel %vm3064_vm3, %v6974_v4, %v13988_v41 }
 0x6d0   :  { %v14011_v13 = vpop.permute.xlu0 %4957  ;;  %v7101_v18 = vsel %vm3129_vm4, %v7037_v8, %v5722_v0 }
 0x6d1   :  { %6245 = vrot.lane.b32.xlu1 %v13994_v33, %s9728_s29  ;;  %v6911_v29 = vsel %vm100_vm0, %v13750_v57, %v14011_v13 }
 0x6d2   :  { %6247 = vrot.lane.b32.xlu0 %v14015_v45, %s9728_s29 }
 0x6d3   :  { %v6742_v10 = vpop.permute.xlu1 %6741 }
 0x6d4   :  { %v7355_v52 = vsel %vm3389_vm8, %v7291_v24, %v6742_v10  ;;  %v5978_v21 = vpop.permute.xlu0 %5977  ;;  %v4742_v24 = vld [vmem:[#allocation3 + $0x2d0] sm:$0xff] }
 0x6d5   :  { %5481 = vrot.lane.b32.xlu1 %v13994_v33, %s9725_s0  ;;  %9303 = vmatprep.mubr.msk.f32.mxu1 %vm3465_vm9, %v7355_v52  ;;  %v7165_v3 = vsel %vm3194_vm5, %v7101_v18, %v5978_v21  ;;  %v4805_v10 = vld [vmem:[#allocation3 + $0x2c9] sm:$0xff] }
 0x6d6   :  { %5483 = vrot.lane.b32.xlu0 %v14015_v45, %s9725_s0 }
 0x6d7   :  { %v5724_v6 = vpop.permute.xlu1 %5723 }
 0x6d8   :  { %v14029_v46 = vpop.permute.xlu0 %4959  ;;  %v7102_v47 = vsel %vm3129_vm4, %v7038_v63, %v5724_v6  ;;  %v4806_v6 = vld [vmem:[#allocation3 + $0x2d1] sm:$0xff] }
 0x6d9   :  { %6501 = vrot.lane.b32.xlu1 %v4739_v2, %s9729_s1 }
 0x6da   :  { %6503 = vrot.lane.b32.xlu0 %v4740_v28, %s9729_s1 }
 0x6db   :  { %v6744_v19 = vpop.permute.xlu1 %6743 }
 0x6dc   :  { %v7356_v61 = vsel %vm3389_vm8, %v7292_v58, %v6744_v19  ;;  %v5980_v60 = vpop.permute.xlu0 %5979 }
 0x6dd   :  { %5737 = vrot.lane.b32.xlu1 %v4739_v2, %s9726_s27  ;;  %9304 = vmatmul.mubr.msk.f32.gmra.mxu1 %vm3465_vm9, %v7356_v61  ;;  %v7166_v22 = vsel %vm3194_vm5, %v7102_v47, %v5980_v60  ;;  %v4288_v47 = vld [vmem:[#allocation3 + $0x247] sm:$0xff] }
 0x6de   :  { %4973 = vrot.lane.b32.xlu0 %v4739_v2, %s9723_s17 }
 0x6df   :  { %v14031_v1 = vpop.permute.xlu1 %5213 }
 0x6e0   :  { %v14037_v32 = vpop.permute.xlu0 %5215  ;;  %v6975_v35 = vsel %vm2999_vm2, %v6911_v29, %v14031_v1 }
 0x6e1   :  { %6757 = vrot.lane.b32.xlu1 %v4803_v62, %s9730_s20 }
 0x6e2   :  { %5993 = vrot.lane.b32.xlu0 %v4803_v62, %s9727_s28 }
 0x6e3   :  { %v6234_v25 = vpop.permute.xlu1 %6233 }
 0x6e4   :  { %v6236_v54 = vpop.permute.xlu0 %6235  ;;  %v7229_v39 = vsel %vm3259_vm6, %v7165_v3, %v6234_v25 }
 0x6e5   :  { %5739 = vrot.lane.b32.xlu1 %v4740_v28, %s9726_s27  ;;  %v7230_v51 = vsel %vm3259_vm6, %v7166_v22, %v6236_v54 }
 0x6e6   :  { %4975 = vrot.lane.b32.xlu0 %v4740_v28, %s9723_s17  ;;  %v14118_v28 = vld [vmem:[#allocation3 + $0x2e7] sm:$0xff] }
 0x6e7   :  { %v14039_v43 = vpop.permute.xlu1 %5469 }
 0x6e8   :  { %v14050_v31 = vpop.permute.xlu0 %5471  ;;  %v7039_v58 = vsel %vm3064_vm3, %v6975_v35, %v14039_v43  ;;  %v6912_v43 = vsel %vm100_vm0, %v13771_v34, %v14029_v46  ;;  %v4743_v34 = vld [vmem:[#allocation3 + $0x2e8] sm:$0xff] }
 0x6e9   :  { %6759 = vrot.lane.b32.xlu1 %v4804_v9, %s9730_s20 }
 0x6ea   :  { %5995 = vrot.lane.b32.xlu0 %v4804_v9, %s9727_s28 }
 0x6eb   :  { %v6490_v38 = vpop.permute.xlu1 %6489 }
 0x6ec   :  { %v6492_v48 = vpop.permute.xlu0 %6491  ;;  %v7293_v36 = vsel %vm3324_vm7, %v7229_v39, %v6490_v38 }
 0x6ed   :  { %5229 = vrot.lane.b32.xlu1 %v4803_v62, %s9724_s18  ;;  %v7294_v53 = vsel %vm3324_vm7, %v7230_v51, %v6492_v48 }
 0x6ee   :  { %5231 = vrot.lane.b32.xlu0 %v4804_v9, %s9724_s18  ;;  %v6976_v9 = vsel %vm2999_vm2, %v6912_v43, %v14037_v32 }
 0x6ef   :  { %v5726_v5 = vpop.permute.xlu1 %5725  ;;  %v7040_v38 = vsel %vm3064_vm3, %v6976_v9, %v14050_v31  ;;  %v4746_v9 = vld [vmem:[#allocation3 + $0x310] sm:$0xff] }
 0x6f0   :  { %v14073_v26 = vpop.permute.xlu0 %4961  ;;  %v7103_v61 = vsel %vm3129_vm4, %v7039_v58, %v5726_v5 }
 0x6f1   :  { %6249 = vrot.lane.b32.xlu1 %v14056_v30, %s9728_s29  ;;  %v6913_v51 = vsel %vm100_vm0, %v4288_v47, %v14073_v26  ;;  %v4289_v26 = vld [vmem:[#allocation3 + $0x24f] sm:$0xff] }
 0x6f2   :  { %6251 = vrot.lane.b32.xlu0 %v14077_v20, %s9728_s29 }
 0x6f3   :  { %v6746_v49 = vpop.permute.xlu1 %6745 }
 0x6f4   :  { %v7357_v44 = vsel %vm3389_vm8, %v7293_v36, %v6746_v49  ;;  %v5982_v0 = vpop.permute.xlu0 %5981  ;;  %v4744_v36 = vld [vmem:[#allocation3 + $0x2f0] sm:$0xff] }
 0x6f5   :  { %5485 = vrot.lane.b32.xlu1 %v14056_v30, %s9725_s0  ;;  %9306 = vmatprep.mubr.msk.f32.mxu1 %vm3465_vm9, %v7357_v44  ;;  %v7167_v62 = vsel %vm3194_vm5, %v7103_v61, %v5982_v0  ;;  %v4807_v49 = vld [vmem:[#allocation3 + $0x2e9] sm:$0xff] }
 0x6f6   :  { %5487 = vrot.lane.b32.xlu0 %v14077_v20, %s9725_s0  ;;  %v4682_v61 = vld [vmem:[#allocation3 + $0x30f] sm:$0xff] }
 0x6f7   :  { %v5728_v55 = vpop.permute.xlu1 %5727 }
 0x6f8   :  { %v14091_v17 = vpop.permute.xlu0 %4963  ;;  %v7104_v8 = vsel %vm3129_vm4, %v7040_v38, %v5728_v55  ;;  %v4808_v55 = vld [vmem:[#allocation3 + $0x2f1] sm:$0xff]  ;;  %v4809_v38 = vld [vmem:[#allocation3 + $0x309] sm:$0xff] }
 0x6f9   :  { %6505 = vrot.lane.b32.xlu1 %v4741_v12, %s9729_s1 }
 0x6fa   :  { %6507 = vrot.lane.b32.xlu0 %v4742_v24, %s9729_s1 }
 0x6fb   :  { %v6748_v37 = vpop.permute.xlu1 %6747 }
 0x6fc   :  { %v7358_v41 = vsel %vm3389_vm8, %v7294_v53, %v6748_v37  ;;  %v5984_v52 = vpop.permute.xlu0 %5983 }
 0x6fd   :  { %5741 = vrot.lane.b32.xlu1 %v4741_v12, %s9726_s27  ;;  %9307 = vmatmul.mubr.msk.f32.gmra.mxu1 %vm3465_vm9, %v7358_v41  ;;  %v7168_v46 = vsel %vm3194_vm5, %v7104_v8, %v5984_v52 }
 0x6fe   :  { %4977 = vrot.lane.b32.xlu0 %v4741_v12, %s9723_s17 }
 0x6ff   :  { %v14093_v50 = vpop.permute.xlu1 %5217 }
 0x700   :  { %v14099_v56 = vpop.permute.xlu0 %5219  ;;  %v6977_v0 = vsel %vm2999_vm2, %v6913_v51, %v14093_v50 }
 0x701   :  { %6761 = vrot.lane.b32.xlu1 %v4805_v10, %s9730_s20 }
 0x702   :  { %5997 = vrot.lane.b32.xlu0 %v4805_v10, %s9727_s28 }
 0x703   :  { %v6238_v15 = vpop.permute.xlu1 %6237 }
 0x704   :  { %v6240_v14 = vpop.permute.xlu0 %6239  ;;  %v7231_v57 = vsel %vm3259_vm6, %v7167_v62, %v6238_v15 }
 0x705   :  { %5743 = vrot.lane.b32.xlu1 %v4742_v24, %s9726_s27  ;;  %v7232_v32 = vsel %vm3259_vm6, %v7168_v46, %v6240_v14 }
 0x706   :  { %4979 = vrot.lane.b32.xlu0 %v4742_v24, %s9723_s17 }
 0x707   :  { %v14101_v11 = vpop.permute.xlu1 %5473 }
 0x708   :  { %v14112_v21 = vpop.permute.xlu0 %5475  ;;  %v7041_v37 = vsel %vm3064_vm3, %v6977_v0, %v14101_v11 }
 0x709   :  { %6763 = vrot.lane.b32.xlu1 %v4806_v6, %s9730_s20 }
 0x70a   :  { %5999 = vrot.lane.b32.xlu0 %v4806_v6, %s9727_s28 }
 0x70b   :  { %v6494_v2 = vpop.permute.xlu1 %6493 }
 0x70c   :  { %v6496_v13 = vpop.permute.xlu0 %6495  ;;  %v7295_v1 = vsel %vm3324_vm7, %v7231_v57, %v6494_v2  ;;  %v6914_v2 = vsel %vm100_vm0, %v4289_v26, %v14091_v17  ;;  %v4745_v17 = vld [vmem:[#allocation3 + $0x308] sm:$0xff] }
 0x70d   :  { %5233 = vrot.lane.b32.xlu1 %v4805_v10, %s9724_s18  ;;  %v7296_v18 = vsel %vm3324_vm7, %v7232_v32, %v6496_v13  ;;  %v14179_v10 = vld [vmem:[#allocation3 + $0x307] sm:$0xff]  ;;  %v6978_v29 = vsel %vm2999_vm2, %v6914_v2, %v14099_v56  ;;  %v4810_v32 = vld [vmem:[#allocation3 + $0x311] sm:$0xff] }
 0x70e   :  { %5235 = vrot.lane.b32.xlu0 %v4806_v6, %s9724_s18  ;;  %v7042_v58 = vsel %vm3064_vm3, %v6978_v29, %v14112_v21  ;;  %v4747_v26 = vld [vmem:[#allocation3 + $0x328] sm:$0xff] }
 0x70f   :  { %v5730_v19 = vpop.permute.xlu1 %5729  ;;  %v4811_v2 = vld [vmem:[#allocation3 + $0x329] sm:$0xff] }
 0x710   :  { %v14135_v54 = vpop.permute.xlu0 %4965  ;;  %v7105_v24 = vsel %vm3129_vm4, %v7041_v37, %v5730_v19 }
 0x711   :  { %6253 = vrot.lane.b32.xlu1 %v14118_v28, %s9728_s29 }
 0x712   :  { %6255 = vrot.lane.b32.xlu0 %v14139_v42, %s9728_s29 }
 0x713   :  { %v6750_v60 = vpop.permute.xlu1 %6749 }
 0x714   :  { %v7359_v25 = vsel %vm3389_vm8, %v7295_v1, %v6750_v60  ;;  %v5986_v5 = vpop.permute.xlu0 %5985 }
 0x715   :  { %5489 = vrot.lane.b32.xlu1 %v14118_v28, %s9725_s0  ;;  %9309 = vmatprep.mubr.msk.f32.mxu1 %vm3465_vm9, %v7359_v25  ;;  %v7169_v52 = vsel %vm3194_vm5, %v7105_v24, %v5986_v5  ;;  %v4684_v24 = vld [vmem:[#allocation3 + $0x32f] sm:$0xff] }
 0x716   :  { %5491 = vrot.lane.b32.xlu0 %v14139_v42, %s9725_s0 }
 0x717   :  { %v5732_v40 = vpop.permute.xlu1 %5731 }
 0x718   :  { %v14153_v39 = vpop.permute.xlu0 %4967  ;;  %v7106_v62 = vsel %vm3129_vm4, %v7042_v58, %v5732_v40 }
 0x719   :  { %6509 = vrot.lane.b32.xlu1 %v4743_v34, %s9729_s1 }
 0x71a   :  { %6511 = vrot.lane.b32.xlu0 %v4744_v36, %s9729_s1 }
 0x71b   :  { %v6752_v3 = vpop.permute.xlu1 %6751 }
 0x71c   :  { %v7360_v31 = vsel %vm3389_vm8, %v7296_v18, %v6752_v3  ;;  %v5988_v44 = vpop.permute.xlu0 %5987  ;;  %v6915_v3 = vsel %vm100_vm0, %v13876_v16, %v14135_v54 }
 0x71d   :  { %5745 = vrot.lane.b32.xlu1 %v4743_v34, %s9726_s27  ;;  %9310 = vmatmul.mubr.msk.f32.gmra.mxu1 %vm3465_vm9, %v7360_v31  ;;  %v7170_v57 = vsel %vm3194_vm5, %v7106_v62, %v5988_v44  ;;  %v4812_v62 = vld [vmem:[#allocation3 + $0x331] sm:$0xff] }
 0x71e   :  { %4981 = vrot.lane.b32.xlu0 %v4743_v34, %s9723_s17 }
 0x71f   :  { %v14155_v48 = vpop.permute.xlu1 %5221 }
 0x720   :  { %v14161_v4 = vpop.permute.xlu0 %5223  ;;  %v6979_v31 = vsel %vm2999_vm2, %v6915_v3, %v14155_v48 }
 0x721   :  { %6765 = vrot.lane.b32.xlu1 %v4807_v49, %s9730_s20 }
 0x722   :  { %6001 = vrot.lane.b32.xlu0 %v4807_v49, %s9727_s28 }
 0x723   :  { %v6242_v59 = vpop.permute.xlu1 %6241 }
 0x724   :  { %v6244_v12 = vpop.permute.xlu0 %6243  ;;  %v7233_v50 = vsel %vm3259_vm6, %v7169_v52, %v6242_v59 }
 0x725   :  { %5747 = vrot.lane.b32.xlu1 %v4744_v36, %s9726_s27  ;;  %v7234_v13 = vsel %vm3259_vm6, %v7170_v57, %v6244_v12 }
 0x726   :  { %4983 = vrot.lane.b32.xlu0 %v4744_v36, %s9723_s17 }
 0x727   :  { %v14163_v63 = vpop.permute.xlu1 %5477 }
 0x728   :  { %v14173_v53 = vpop.permute.xlu0 %5479 }
 0x729   :  { %6767 = vrot.lane.b32.xlu1 %v4808_v55, %s9730_s20 }
 0x72a   :  { %6003 = vrot.lane.b32.xlu0 %v4808_v55, %s9727_s28 }
 0x72b   :  { %v6498_v22 = vpop.permute.xlu1 %6497 }
 0x72c   :  { %v6500_v15 = vpop.permute.xlu0 %6499  ;;  %v7297_v6 = vsel %vm3324_vm7, %v7233_v50, %v6498_v22 }
 0x72d   :  { %5237 = vrot.lane.b32.xlu1 %v4807_v49, %s9724_s18  ;;  %v7298_v56 = vsel %vm3324_vm7, %v7234_v13, %v6500_v15  ;;  %v7043_v49 = vsel %vm3064_vm3, %v6979_v31, %v14163_v63  ;;  %v6916_v63 = vsel %vm100_vm0, %v13897_v23, %v14153_v39 }
 0x72e   :  { %5239 = vrot.lane.b32.xlu0 %v4808_v55, %s9724_s18  ;;  %v4683_v55 = vld [vmem:[#allocation3 + $0x327] sm:$0xff]  ;;  %v6980_v51 = vsel %vm2999_vm2, %v6916_v63, %v14161_v4 }
 0x72f   :  { %v5734_v41 = vpop.permute.xlu1 %5733  ;;  %v7044_v37 = vsel %vm3064_vm3, %v6980_v51, %v14173_v53  ;;  %v4813_v63 = vld [vmem:[#allocation3 + $0x349] sm:$0xff] }
 0x730   :  { %v14195_v35 = vpop.permute.xlu0 %4969  ;;  %v7107_v59 = vsel %vm3129_vm4, %v7043_v49, %v5734_v41  ;;  %v4686_v49 = vld [vmem:[#allocation3 + $0x34f] sm:$0xff] }
 0x731   :  { %6257 = vrot.lane.b32.xlu1 %v14179_v10, %s9728_s29  ;;  %v6917_v13 = vsel %vm100_vm0, %v13932_v7, %v14195_v35 }
 0x732   :  { %6259 = vrot.lane.b32.xlu0 %v4682_v61, %s9728_s29 }
 0x733   :  { %v6754_v14 = vpop.permute.xlu1 %6753 }
 0x734   :  { %v7361_v11 = vsel %vm3389_vm8, %v7297_v6, %v6754_v14  ;;  %v5990_v1 = vpop.permute.xlu0 %5989 }
 0x735   :  { %5493 = vrot.lane.b32.xlu1 %v14179_v10, %s9725_s0  ;;  %9312 = vmatprep.mubr.msk.f32.mxu1 %vm3465_vm9, %v7361_v11  ;;  %v7171_v47 = vsel %vm3194_vm5, %v7107_v59, %v5990_v1  ;;  %v4748_v11 = vld [vmem:[#allocation3 + $0x330] sm:$0xff] }
 0x736   :  { %5495 = vrot.lane.b32.xlu0 %v4682_v61, %s9725_s0 }
 0x737   :  { %v5736_v19 = vpop.permute.xlu1 %5735 }
 0x738   :  { %v14209_v21 = vpop.permute.xlu0 %4971  ;;  %v7108_v52 = vsel %vm3129_vm4, %v7044_v37, %v5736_v19 }
 0x739   :  { %6513 = vrot.lane.b32.xlu1 %v4745_v17, %s9729_s1 }
 0x73a   :  { %6515 = vrot.lane.b32.xlu0 %v4746_v9, %s9729_s1 }
 0x73b   :  { %v6756_v60 = vpop.permute.xlu1 %6755 }
 0x73c   :  { %v7362_v25 = vsel %vm3389_vm8, %v7298_v56, %v6756_v60  ;;  %v5992_v40 = vpop.permute.xlu0 %5991 }
 0x73d   :  { %5749 = vrot.lane.b32.xlu1 %v4745_v17, %s9726_s27  ;;  %9313 = vmatmul.mubr.msk.f32.gmra.mxu1 %vm3465_vm9, %v7362_v25  ;;  %v7172_v23 = vsel %vm3194_vm5, %v7108_v52, %v5992_v40 }
 0x73e   :  { %4985 = vrot.lane.b32.xlu0 %v4745_v17, %s9723_s17 }
 0x73f   :  { %v14211_v43 = vpop.permute.xlu1 %5225 }
 0x740   :  { %v14217_v34 = vpop.permute.xlu0 %5227  ;;  %v6981_v1 = vsel %vm2999_vm2, %v6917_v13, %v14211_v43 }
 0x741   :  { %6769 = vrot.lane.b32.xlu1 %v4809_v38, %s9730_s20 }
 0x742   :  { %6005 = vrot.lane.b32.xlu0 %v4809_v38, %s9727_s28 }
 0x743   :  { %v6246_v8 = vpop.permute.xlu1 %6245 }
 0x744   :  { %v6248_v5 = vpop.permute.xlu0 %6247  ;;  %v7235_v16 = vsel %vm3259_vm6, %v7171_v47, %v6246_v8 }
 0x745   :  { %5751 = vrot.lane.b32.xlu1 %v4746_v9, %s9726_s27  ;;  %v7236_v39 = vsel %vm3259_vm6, %v7172_v23, %v6248_v5 }
 0x746   :  { %4987 = vrot.lane.b32.xlu0 %v4746_v9, %s9723_s17 }
 0x747   :  { %v14219_v46 = vpop.permute.xlu1 %5481 }
 0x748   :  { %v14230_v36 = vpop.permute.xlu0 %5483  ;;  %v7045_v60 = vsel %vm3064_vm3, %v6981_v1, %v14219_v46  ;;  %v6918_v46 = vsel %vm100_vm0, %v13953_v27, %v14209_v21  ;;  %v4749_v27 = vld [vmem:[#allocation3 + $0x348] sm:$0xff] }
 0x749   :  { %6771 = vrot.lane.b32.xlu1 %v4810_v32, %s9730_s20  ;;  %v6982_v5 = vsel %vm2999_vm2, %v6918_v46, %v14217_v34 }
 0x74a   :  { %6007 = vrot.lane.b32.xlu0 %v4810_v32, %s9727_s28  ;;  %v7046_v3 = vsel %vm3064_vm3, %v6982_v5, %v14230_v36 }
 0x74b   :  { %v6502_v18 = vpop.permute.xlu1 %6501 }
 0x74c   :  { %v6504_v54 = vpop.permute.xlu0 %6503  ;;  %v7299_v48 = vsel %vm3324_vm7, %v7235_v16, %v6502_v18 }
 0x74d   :  { %5241 = vrot.lane.b32.xlu1 %v4809_v38, %s9724_s18  ;;  %v7300_v4 = vsel %vm3324_vm7, %v7236_v39, %v6504_v54  ;;  %v4685_v38 = vld [vmem:[#allocation3 + $0x347] sm:$0xff]  ;;  %v4814_v39 = vld [vmem:[#allocation3 + $0x351] sm:$0xff] }
 0x74e   :  { %5243 = vrot.lane.b32.xlu0 %v4810_v32, %s9724_s18 }
 0x74f   :  { %v5738_v44 = vpop.permute.xlu1 %5737 }
 0x750   :  { %v14249_v0 = vpop.permute.xlu0 %4973  ;;  %v7109_v9 = vsel %vm3129_vm4, %v7045_v60, %v5738_v44 }
 0x751   :  { %6261 = vrot.lane.b32.xlu1 %v4683_v55, %s9728_s29 }
 0x752   :  { %6263 = vrot.lane.b32.xlu0 %v4684_v24, %s9728_s29 }
 0x753   :  { %v6758_v12 = vpop.permute.xlu1 %6757 }
 0x754   :  { %v7363_v22 = vsel %vm3389_vm8, %v7299_v48, %v6758_v12  ;;  %v5994_v50 = vpop.permute.xlu0 %5993 }
 0x755   :  { %5497 = vrot.lane.b32.xlu1 %v4683_v55, %s9725_s0  ;;  %9315 = vmatprep.mubr.msk.f32.mxu1 %vm3465_vm9, %v7363_v22  ;;  %v7173_v40 = vsel %vm3194_vm5, %v7109_v9, %v5994_v50  ;;  %v14316_v55 = vpop.f32.mrf.mxu1  ;;  %v4750_v22 = vld [vmem:[#allocation3 + $0x350] sm:$0xff] }
 0x756   :  { %5499 = vrot.lane.b32.xlu0 %v4684_v24, %s9725_s0 }
 0x757   :  { %v5740_v41 = vpop.permute.xlu1 %5739  ;;  %v14325_v48 = vpop.f32.mrf.mxu1 }
 0x758   :  { %v14263_v53 = vpop.permute.xlu0 %4975  ;;  %v7110_v44 = vsel %vm3129_vm4, %v7046_v3, %v5740_v41 }
 0x759   :  { %6517 = vrot.lane.b32.xlu1 %v4747_v26, %s9729_s1  ;;  %v14330_v51 = vpop.f32.mrf.mxu1 }
 0x75a   :  { %6519 = vrot.lane.b32.xlu0 %v4748_v11, %s9729_s1 }
 0x75b   :  { %v6760_v15 = vpop.permute.xlu1 %6759  ;;  %v14334_v24 = vpop.f32.mrf.mxu1 }
 0x75c   :  { %v7364_v6 = vsel %vm3389_vm8, %v7300_v4, %v6760_v15  ;;  %v5996_v29 = vpop.permute.xlu0 %5995 }
 0x75d   :  { %5753 = vrot.lane.b32.xlu1 %v4747_v26, %s9726_s27  ;;  %9316 = vmatmul.mubr.msk.f32.gmra.mxu1 %vm3465_vm9, %v7364_v6  ;;  %v7174_v21 = vsel %vm3194_vm5, %v7110_v44, %v5996_v29 }
 0x75e   :  { %4989 = vrot.lane.b32.xlu0 %v4747_v26, %s9723_s17  ;;  %v14339_v26 = vpop.f32.mrf.mxu1 }
 0x75f   :  { %v14265_v14 = vpop.permute.xlu1 %5229 }
 0x760   :  { %v14271_v19 = vpop.permute.xlu0 %5231  ;;  %v14345_v4 = vpop.f32.mrf.mxu1 }
 0x761   :  { %6773 = vrot.lane.b32.xlu1 %v4811_v2, %s9730_s20 }
 0x762   :  { %6009 = vrot.lane.b32.xlu0 %v4811_v2, %s9727_s28  ;;  %v14348_v6 = vpop.f32.mrf.mxu1 }
 0x763   :  { %v6250_v58 = vpop.permute.xlu1 %6249 }
 0x764   :  { %v6252_v17 = vpop.permute.xlu0 %6251  ;;  %v7237_v7 = vsel %vm3259_vm6, %v7173_v40, %v6250_v58  ;;  %v14365_v13 = vpop.f32.mrf.mxu1 }
 0x765   :  { %5755 = vrot.lane.b32.xlu1 %v4748_v11, %s9726_s27  ;;  %v7238_v59 = vsel %vm3259_vm6, %v7174_v21, %v6252_v17 }
 0x766   :  { %4991 = vrot.lane.b32.xlu0 %v4748_v11, %s9723_s17  ;;  %v6919_v11 = vsel %vm100_vm0, %v13994_v33, %v14249_v0  ;;  %v14370_v1 = vpop.f32.mrf.mxu1 }
 0x767   :  { %v14273_v61 = vpop.permute.xlu1 %5485 }
 0x768   :  { %v14284_v56 = vpop.permute.xlu0 %5487 }
 0x769   :  { %6775 = vrot.lane.b32.xlu1 %v4812_v62, %s9730_s20 }
 0x76a   :  { %6011 = vrot.lane.b32.xlu0 %v4812_v62, %s9727_s28 }
 0x76b   :  { %v6506_v57 = vpop.permute.xlu1 %6505 }
 0x76c   :  { %v6508_v35 = vpop.permute.xlu0 %6507  ;;  %v7301_v43 = vsel %vm3324_vm7, %v7237_v7, %v6506_v57  ;;  %v4687_v57 = vld [vmem:[#allocation3 + $0x367] sm:$0xff]  ;;  %v14384_v7 = vpop.f32.mrf.mxu1 }
 0x76d   :  { %5245 = vrot.lane.b32.xlu1 %v4811_v2, %s9724_s18  ;;  %v7302_v47 = vsel %vm3324_vm7, %v7238_v59, %v6508_v35  ;;  %v6983_v2 = vsel %vm2999_vm2, %v6919_v11, %v14265_v14  ;;  %v4752_v59 = vld [vmem:[#allocation3 + $0x370] sm:$0xff] }
 0x76e   :  { %5247 = vrot.lane.b32.xlu0 %v4812_v62, %s9724_s18  ;;  %v7047_v58 = vsel %vm3064_vm3, %v6983_v2, %v14273_v61 }
 0x76f   :  { %v14288_v25 = vpop.permute.xlu1 %5741 }
 0x770   :  { %v14305_v18 = vpop.permute.xlu0 %4977  ;;  %v7111_v17 = vsel %vm3129_vm4, %v7047_v58, %v14288_v25  ;;  %v6920_v25 = vsel %vm100_vm0, %v14015_v45, %v14263_v53  ;;  %v4751_v53 = vld [vmem:[#allocation3 + $0x368] sm:$0xff] }
 0x771   :  { %6265 = vrot.lane.b32.xlu1 %v4685_v38, %s9728_s29  ;;  %v6921_v2 = vsel %vm100_vm0, %v14056_v30, %v14305_v18  ;;  %v4689_v30 = vld [vmem:[#allocation3 + $0x387] sm:$0xff] }
 0x772   :  { %6267 = vrot.lane.b32.xlu0 %v4686_v49, %s9728_s29 }
 0x773   :  { %v6762_v8 = vpop.permute.xlu1 %6761 }
 0x774   :  { %v7365_v32 = vsel %vm3389_vm8, %v7301_v43, %v6762_v8  ;;  %v5998_v34 = vpop.permute.xlu0 %5997  ;;  %v4688_v8 = vld [vmem:[#allocation3 + $0x36f] sm:$0xff] }
 0x775   :  { %5501 = vrot.lane.b32.xlu1 %v4685_v38, %s9725_s0  ;;  %9318 = vmatprep.mubr.msk.f32.mxu1 %vm3465_vm9, %v7365_v32  ;;  %v7175_v33 = vsel %vm3194_vm5, %v7111_v17, %v5998_v34  ;;  %v6984_v38 = vsel %vm2999_vm2, %v6920_v25, %v14271_v19  ;;  %v14393_v32 = vpop.f32.mrf.mxu1  ;;  %v4815_v34 = vld [vmem:[#allocation3 + $0x369] sm:$0xff] }
 0x776   :  { %5503 = vrot.lane.b32.xlu0 %v4686_v49, %s9725_s0  ;;  %v7048_v35 = vsel %vm3064_vm3, %v6984_v38, %v14284_v56 }
 0x777   :  { %v14309_v31 = vpop.permute.xlu1 %5743 }
 0x778   :  { %v14323_v54 = vpop.permute.xlu0 %4979  ;;  %v7112_v45 = vsel %vm3129_vm4, %v7048_v35, %v14309_v31  ;;  %v14401_v31 = vpop.f32.mrf.mxu1 }
 0x779   :  { %6521 = vrot.lane.b32.xlu1 %v4749_v27, %s9729_s1  ;;  %v6922_v38 = vsel %vm100_vm0, %v14077_v20, %v14323_v54  ;;  %v4753_v54 = vld [vmem:[#allocation3 + $0x388] sm:$0xff] }
 0x77a   :  { %6523 = vrot.lane.b32.xlu0 %v4750_v22, %s9729_s1 }
 0x77b   :  { %v6764_v36 = vpop.permute.xlu1 %6763 }
 0x77c   :  { %v7366_v16 = vsel %vm3389_vm8, %v7302_v47, %v6764_v36  ;;  %v6000_v37 = vpop.permute.xlu0 %5999 }
 0x77d   :  { %5757 = vrot.lane.b32.xlu1 %v4749_v27, %s9726_s27  ;;  %9319 = vmatmul.mubr.msk.f32.gmra.mxu1 %vm3465_vm9, %v7366_v16  ;;  %v7176_v19 = vsel %vm3194_vm5, %v7112_v45, %v6000_v37 }
 0x77e   :  { %4993 = vrot.lane.b32.xlu0 %v4749_v27, %s9723_s17  ;;  %v14407_v27 = vpop.f32.mrf.mxu1 }
 0x77f   :  { %v14327_v12 = vpop.permute.xlu1 %5233 }
 0x780   :  { %v14337_v52 = vpop.permute.xlu0 %5235  ;;  %v14413_v36 = vpop.f32.mrf.mxu1  ;;  %v6985_v58 = vsel %vm2999_vm2, %v6921_v2, %v14327_v12 }
 0x781   :  { %6777 = vrot.lane.b32.xlu1 %v4813_v63, %s9730_s20  ;;  %v6986_v35 = vsel %vm2999_vm2, %v6922_v38, %v14337_v52 }
 0x782   :  { %6013 = vrot.lane.b32.xlu0 %v4813_v63, %s9727_s28 }
 0x783   :  { %v6254_v41 = vpop.permute.xlu1 %6253 }
 0x784   :  { %v6256_v50 = vpop.permute.xlu0 %6255  ;;  %v7239_v0 = vsel %vm3259_vm6, %v7175_v33, %v6254_v41  ;;  %v4816_v41 = vld [vmem:[#allocation3 + $0x371] sm:$0xff] }
 0x785   :  { %5759 = vrot.lane.b32.xlu1 %v4750_v22, %s9726_s27  ;;  %v7240_v46 = vsel %vm3259_vm6, %v7176_v19, %v6256_v50 }
 0x786   :  { %4995 = vrot.lane.b32.xlu0 %v4750_v22, %s9723_s17  ;;  %v14416_v22 = vpop.f32.mrf.mxu1 }
 0x787   :  { %v14341_v23 = vpop.permute.xlu1 %5489 }
 0x788   :  { %v14356_v29 = vpop.permute.xlu0 %5491  ;;  %v7049_v33 = vsel %vm3064_vm3, %v6985_v58, %v14341_v23 }
 0x789   :  { %6779 = vrot.lane.b32.xlu1 %v4814_v39, %s9730_s20 }
 0x78a   :  { %6015 = vrot.lane.b32.xlu0 %v4814_v39, %s9727_s28 }
 0x78b   :  { %v6510_v15 = vpop.permute.xlu1 %6509 }
 0x78c   :  { %v6512_v14 = vpop.permute.xlu0 %6511  ;;  %v7303_v61 = vsel %vm3324_vm7, %v7239_v0, %v6510_v15 }
 0x78d   :  { %5249 = vrot.lane.b32.xlu1 %v4813_v63, %s9724_s18  ;;  %v7304_v56 = vsel %vm3324_vm7, %v7240_v46, %v6512_v14  ;;  %v4690_v46 = vld [vmem:[#allocation3 + $0x38f] sm:$0xff] }
 0x78e   :  { %5251 = vrot.lane.b32.xlu0 %v4814_v39, %s9724_s18  ;;  %v14424_v39 = vpop.f32.mrf.mxu1 }
 0x78f   :  { %v14360_v62 = vpop.permute.xlu1 %5745 }
 0x790   :  { %v14382_v40 = vpop.permute.xlu0 %4981  ;;  %v14427_v15 = vpop.f32.mrf.mxu1  ;;  %v7113_v14 = vsel %vm3129_vm4, %v7049_v33, %v14360_v62 }
 0x791   :  { %6269 = vrot.lane.b32.xlu1 %v4687_v57, %s9728_s29 }
 0x792   :  { %6271 = vrot.lane.b32.xlu0 %v4688_v8, %s9728_s29 }
 0x793   :  { %v6766_v60 = vpop.permute.xlu1 %6765 }
 0x794   :  { %v7367_v9 = vsel %vm3389_vm8, %v7303_v61, %v6766_v60  ;;  %v6002_v5 = vpop.permute.xlu0 %6001 }
 0x795   :  { %5505 = vrot.lane.b32.xlu1 %v4687_v57, %s9725_s0  ;;  %9321 = vmatprep.mubr.msk.f32.mxu1 %vm3465_vm9, %v7367_v9  ;;  %v14438_v57 = vpop.f32.mrf.mxu1  ;;  %v7177_v61 = vsel %vm3194_vm5, %v7113_v14, %v6002_v5 }
 0x796   :  { %5507 = vrot.lane.b32.xlu0 %v4688_v8, %s9725_s0 }
 0x797   :  { %v14388_v43 = vpop.permute.xlu1 %5747  ;;  %v14447_v18 = vpop.f32.mrf.mxu1 }
 0x798   :  { %v14405_v44 = vpop.permute.xlu0 %4983 }
 0x799   :  { %6525 = vrot.lane.b32.xlu1 %v4751_v53, %s9729_s1  ;;  %v14455_v62 = vpop.f32.mrf.mxu1 }
 0x79a   :  { %6527 = vrot.lane.b32.xlu0 %v4752_v59, %s9729_s1 }
 0x79b   :  { %v6768_v3 = vpop.permute.xlu1 %6767  ;;  %v14466_v45 = vpop.f32.mrf.mxu1 }
 0x79c   :  { %v7368_v49 = vsel %vm3389_vm8, %v7304_v56, %v6768_v3  ;;  %v6004_v47 = vpop.permute.xlu0 %6003 }
 0x79d   :  { %5761 = vrot.lane.b32.xlu1 %v4751_v53, %s9726_s27  ;;  %9322 = vmatmul.mubr.msk.f32.gmra.mxu1 %vm3465_vm9, %v7368_v49  ;;  %v14480_v3 = vpop.f32.mrf.mxu1 }
 0x79e   :  { %4997 = vrot.lane.b32.xlu0 %v4751_v53, %s9723_s17  ;;  %v7050_v53 = vsel %vm3064_vm3, %v6986_v35, %v14356_v29 }
 0x79f   :  { %v14409_v21 = vpop.permute.xlu1 %5237  ;;  %v7114_v20 = vsel %vm3129_vm4, %v7050_v53, %v14388_v43  ;;  %v14488_v43 = vld [vmem:[%s15419_s4] ss:$0 sm:$0xff] }
 0x7a0   :  { %v14419_v63 = vpop.permute.xlu0 %5239  ;;  %v7178_v5 = vsel %vm3194_vm5, %v7114_v20, %v6004_v47  ;;  %v7666_v58 = vadd.f32 %v14488_v43, %v14325_v48  ;;  %v7736_v35 = vadd.f32 %v14488_v43, %v14424_v39  ;;  %v7676_v53 = vadd.f32 %v14488_v43, %v14334_v24 }
 0x7a1   :  { %6781 = vrot.lane.b32.xlu1 %v4815_v34, %s9730_s20  ;;  %v7721_v39 = vadd.f32 %v14393_v32, %v14488_v43  ;;  %v7731_v32 = vadd.f32 %v14407_v27, %v14488_v43  ;;  %v7726_v27 = vadd.f32 %v14488_v43, %v14413_v36 }
 0x7a2   :  { %6017 = vrot.lane.b32.xlu0 %v4815_v34, %s9727_s28  ;;  %v7986_v24 = vmax.f32 %v7676_v53, 0.0  ;;  %v7686_v53 = vadd.f32 %v14488_v43, %v14345_v4 }
 0x7a3   :  { %v6258_v16 = vpop.permute.xlu1 %6257  ;;  %v7997_v36 = vmax.f32 %v7731_v32, 0.0  ;;  %v6924_v32 = vsel %vm100_vm0, %v14139_v42, %v14405_v44 }
 0x7a4   :  { %v6260_v50 = vpop.permute.xlu0 %6259  ;;  %v7241_v12 = vsel %vm3259_vm6, %v7177_v61, %v6258_v16 }
 0x7a5   :  { %5763 = vrot.lane.b32.xlu1 %v4752_v59, %s9726_s27  ;;  %v7242_v52 = vsel %vm3259_vm6, %v7178_v5, %v6260_v50  ;;  %v7671_v50 = vadd.f32 %v14316_v55, %v14488_v43  ;;  %v7984_v55 = vmax.f32 %v7666_v58, 0.0  ;;  %v7711_v5 = vadd.f32 %v14370_v1, %v14488_v43 }
 0x7a6   :  { %4999 = vrot.lane.b32.xlu0 %v4752_v59, %s9723_s17  ;;  %v6923_v1 = vsel %vm100_vm0, %v14118_v28, %v14382_v40 }
 0x7a7   :  { %v14421_v37 = vpop.permute.xlu1 %5493  ;;  %v7985_v61 = vmax.f32 %v7671_v50, 0.0  ;;  %v7706_v50 = vadd.f32 %v14488_v43, %v14384_v7  ;;  %v7995_v7 = vmax.f32 %v7721_v39, 0.0 }
 0x7a8   :  { %v14436_v17 = vpop.permute.xlu0 %5495 }
 0x7a9   :  { %6783 = vrot.lane.b32.xlu1 %v4816_v41, %s9730_s20 }
 0x7aa   :  { %6019 = vrot.lane.b32.xlu0 %v4816_v41, %s9727_s28 }
 0x7ab   :  { %v6514_v11 = vpop.permute.xlu1 %6513 }
 0x7ac   :  { %v6516_v60 = vpop.permute.xlu0 %6515  ;;  %v7305_v9 = vsel %vm3324_vm7, %v7241_v12, %v6514_v11  ;;  %v4817_v11 = vld [vmem:[#allocation3 + $0x389] sm:$0xff]  ;;  %v7681_v12 = vadd.f32 %v14330_v51, %v14488_v43  ;;  %v4818_v51 = vld [vmem:[#allocation3 + $0x391] sm:$0xff] }
 0x7ad   :  { %5253 = vrot.lane.b32.xlu1 %v4815_v34, %s9724_s18  ;;  %v7306_v29 = vsel %vm3324_vm7, %v7242_v52, %v6516_v60  ;;  %v14490_v34 = vpop.f32.mrf.mxu1  ;;  %v7741_v60 = vadd.f32 %v14416_v22, %v14488_v43  ;;  %v8049_v22 = vmax.f32 %v7984_v55, 1e-06  ;;  %v7716_v55 = vadd.f32 %v14488_v43, %v14401_v31 }
 0x7ae   :  { %5255 = vrot.lane.b32.xlu0 %v4816_v41, %s9724_s18  ;;  %v4754_v41 = vld [vmem:[#allocation3 + $0x390] sm:$0xff]  ;;  %v7987_v38 = vmax.f32 %v7681_v12, 0.0  ;;  %v7993_v12 = vmax.f32 %v7711_v5, 0.0  ;;  %v8060_v5 = vmax.f32 %v7995_v7, 1e-06 }
 0x7af   :  { %v14442_v0 = vpop.permute.xlu1 %5749  ;;  %v14501_v2 = vpop.f32.mrf.mxu1  ;;  %v7999_v20 = vmax.f32 %v7741_v60, 0.0  ;;  %v7994_v39 = vmax.f32 %v7716_v55, 0.0  ;;  %v4692_v55 = vld [vmem:[#allocation3 + $0x3af] sm:$0xff] }
 0x7b0   :  { %v14464_v8 = vpop.permute.xlu0 %4985 }
 0x7b1   :  { %6273 = vrot.lane.b32.xlu1 %v4689_v30, %s9728_s29  ;;  %v14508_v14 = vpop.f32.mrf.mxu1 }
 0x7b2   :  { %6275 = vrot.lane.b32.xlu0 %v4690_v46, %s9728_s29 }
 0x7b3   :  { %v6770_v23 = vpop.permute.xlu1 %6769  ;;  %v14518_v48 = vpop.f32.mrf.mxu1 }
 0x7b4   :  { %v7369_v25 = vsel %vm3389_vm8, %v7305_v9, %v6770_v23  ;;  %v14478_v56 = vpop.permute.xlu0 %6005 }
 0x7b5   :  { %5509 = vrot.lane.b32.xlu1 %v4689_v30, %s9725_s0  ;;  %9324 = vmatprep.mubr.msk.f32.mxu1 %vm3465_vm9, %v7369_v25  ;;  %v8050_v25 = vmax.f32 %v7985_v61, 1e-06  ;;  %v6987_v61 = vsel %vm2999_vm2, %v6923_v1, %v14409_v21 }
 0x7b6   :  { %5511 = vrot.lane.b32.xlu0 %v4690_v46, %s9725_s0  ;;  %v14527_v46 = vpop.f32.mrf.mxu1  ;;  %v7051_v28 = vsel %vm3064_vm3, %v6987_v61, %v14421_v37  ;;  %v6988_v61 = vsel %vm2999_vm2, %v6924_v32, %v14419_v63 }
 0x7b7   :  { %v14470_v19 = vpop.permute.xlu1 %5751  ;;  %9382 = vlog2.f32 %v8050_v25  ;;  %v7115_v21 = vsel %vm3129_vm4, %v7051_v28, %v14442_v0  ;;  %v4691_v25 = vld [vmem:[#allocation3 + $0x3a7] sm:$0xff]  ;;  %v7801_v7 = vadd.f32 %v14527_v46, %v14488_v43  ;;  %v7052_v42 = vsel %vm3064_vm3, %v6988_v61, %v14436_v17 }
 0x7b8   :  { %v14494_v47 = vpop.permute.xlu0 %4987  ;;  %v14544_v58 = vpop.f32.mrf.mxu1  ;;  %9384 = vlog2.f32 %v8049_v22  ;;  %v7179_v37 = vsel %vm3194_vm5, %v7115_v21, %v14478_v56  ;;  %v7116_v63 = vsel %vm3129_vm4, %v7052_v42, %v14470_v19  ;;  %v7781_v61 = vadd.f32 %v14490_v34, %v14488_v43 }
 0x7b9   :  { %6529 = vrot.lane.b32.xlu1 %v4753_v54, %s9729_s1  ;;  %v7796_v17 = vadd.f32 %v14488_v43, %v14544_v58  ;;  %v7791_v58 = vadd.f32 %v14508_v14, %v14488_v43  ;;  %v7786_v14 = vadd.f32 %v14488_v43, %v14518_v48 }
 0x7ba   :  { %6531 = vrot.lane.b32.xlu0 %v4754_v41, %s9729_s1 }
 0x7bb   :  { %v6772_v49 = vpop.permute.xlu1 %6771 }
 0x7bc   :  { %v7370_v59 = vsel %vm3389_vm8, %v7306_v29, %v6772_v49  ;;  %v14506_v33 = vpop.permute.xlu0 %6007  ;;  %v8052_v29 = vmax.f32 %v7987_v38, 1e-06  ;;  %v7998_v49 = vmax.f32 %v7736_v35, 0.0  ;;  %v14564_v38 = vmax.f32 %v7986_v24, 1e-06 }
 0x7bd   :  { %5765 = vrot.lane.b32.xlu1 %v4753_v54, %s9726_s27  ;;  %9325 = vmatmul.mubr.msk.f32.gmra.mxu1 %vm3465_vm9, %v7370_v59  ;;  %v7691_v59 = vadd.f32 %v14339_v26, %v14488_v43  ;;  %v9308_v40 = vpop.f32.mrf.mxu1  ;;  %v7992_v35 = vmax.f32 %v7706_v50, 0.0  ;;  %v7180_v46 = vsel %vm3194_vm5, %v7116_v63, %v14506_v33  ;;  %v14649_v63 = vstv %s15420_s5 }
 0x7be   :  { %5001 = vrot.lane.b32.xlu0 %v4753_v54, %s9723_s17  ;;  %9386 = vlog2.f32 %v8052_v29  ;;  %v8063_v60 = vmax.f32 %v7998_v49, 1e-06  ;;  %v7811_v56 = vadd.f32 %v9308_v40, %v14488_v43 }
 0x7bf   :  { %v14496_v16 = vpop.permute.xlu1 %5241  ;;  %v7989_v31 = vmax.f32 %v7691_v59, 0.0  ;;  %v7805_v29 = vpop.f32.mrf.mxu1  ;;  %v7996_v59 = vmax.f32 %v7726_v27, 0.0  ;;  %v8057_v1 = vmax.f32 %v7992_v35, 1e-06  ;;  %v14597_v27 = vld [vmem:[#allocation3 + $0x3a8] sm:$0xff] }
 0x7c0   :  { %v14516_v9 = vpop.permute.xlu0 %5243  ;;  %v8013_v40 = vmax.f32 %v7811_v56, 0.0 }
 0x7c1   :  { %6785 = vrot.lane.b32.xlu1 %v4817_v11, %s9730_s20  ;;  %v8054_v4 = vmax.f32 %v7989_v31, 1e-06  ;;  %v8061_v28 = vmax.f32 %v7996_v59, 1e-06 }
 0x7c2   :  { %6021 = vrot.lane.b32.xlu0 %v4817_v11, %s9727_s28 }
 0x7c3   :  { %v6262_v30 = vpop.permute.xlu1 %6261 }
 0x7c4   :  { %v14530_v54 = vpop.permute.xlu0 %6263  ;;  %v7243_v22 = vsel %vm3259_vm6, %v7179_v37, %v6262_v30  ;;  %v7701_v30 = vadd.f32 %v14348_v6, %v14488_v43  ;;  %v8059_v6 = vmax.f32 %v7994_v39, 1e-06 }
 0x7c5   :  { %5767 = vrot.lane.b32.xlu1 %v4754_v41, %s9726_s27  ;;  %v7244_v31 = vsel %vm3259_vm6, %v7180_v46, %v14530_v54 }
 0x7c6   :  { %5003 = vrot.lane.b32.xlu0 %v4754_v41, %s9723_s17  ;;  %v8064_v41 = vmax.f32 %v7999_v20, 1e-06  ;;  %v8058_v20 = vmax.f32 %v7993_v12, 1e-06  ;;  %v7991_v21 = vmax.f32 %v7701_v30, 0.0  ;;  %v14633_v30 = vld [vmem:[#allocation3 + $0x3b0] sm:$0xff] }
 0x7c7   :  { %v14520_v23 = vpop.permute.xlu1 %5497 }
 0x7c8   :  { %v14551_v26 = vpop.permute.xlu0 %5499  ;;  %9388 = vlog2.f32 %v8064_v41  ;;  %v8062_v41 = vmax.f32 %v7997_v36, 1e-06  ;;  %v8056_v39 = vmax.f32 %v7991_v21, 1e-06 }
 0x7c9   :  { %6787 = vrot.lane.b32.xlu1 %v4818_v51, %s9730_s20  ;;  %9390 = vlog2.f32 %v8063_v60  ;;  %v14599_v60 = vpop.eup %9382 }
 0x7ca   :  { %6023 = vrot.lane.b32.xlu0 %v4818_v51, %s9727_s28  ;;  %9392 = vlog2.f32 %v8060_v5  ;;  %v14611_v37 = vpop.eup %9384 }
 0x7cb   :  { %v6518_v52 = vpop.permute.xlu1 %6517  ;;  %9394 = vlog2.f32 %v8058_v20  ;;  %v8078_v20 = vmax.f32 %v8013_v40, 1e-06  ;;  %v14620_v54 = vpop.eup %9386  ;;  %v7776_v40 = vadd.f32 %v14488_v43, %v14501_v2 }
 0x7cc   :  { %v6520_v0 = vpop.permute.xlu0 %6519  ;;  %v7307_v49 = vsel %vm3324_vm7, %v7243_v22, %v6518_v52  ;;  %v7988_v52 = vmax.f32 %v7686_v53, 0.0  ;;  %9396 = vlog2.f32 %v8057_v1  ;;  %v8011_v53 = vmax.f32 %v7801_v7, 0.0 }
 0x7cd   :  { %5257 = vrot.lane.b32.xlu1 %v4817_v11, %s9724_s18  ;;  %9398 = vlog2.f32 %v8062_v41  ;;  %v7308_v33 = vsel %vm3324_vm7, %v7244_v31, %v6520_v0  ;;  %v7696_v22 = vadd.f32 %v14488_v43, %v14365_v13 }
 0x7ce   :  { %5259 = vrot.lane.b32.xlu0 %v4818_v51, %s9724_s18  ;;  %v7806_v51 = vadd.f32 %v14488_v43, %v7805_v29  ;;  %9400 = vlog2.f32 %v8059_v6  ;;  %v8010_v29 = vmax.f32 %v7796_v17, 0.0  ;;  %v8076_v56 = vmax.f32 %v8011_v53, 1e-06 }
 0x7cf   :  { %v14557_v11 = vpop.permute.xlu1 %5753  ;;  %9402 = vlog2.f32 %v8061_v28  ;;  %v7990_v1 = vmax.f32 %v7696_v22, 0.0  ;;  %v8007_v53 = vmax.f32 %v7781_v61, 0.0 }
 0x7d0   :  { %v14586_v12 = vpop.permute.xlu0 %4989  ;;  %v8012_v19 = vmax.f32 %v7806_v51, 0.0  ;;  %9404 = vlog2.f32 %v14564_v38  ;;  %v8009_v38 = vmax.f32 %v7791_v58, 0.0  ;;  %v8008_v51 = vmax.f32 %v7786_v14, 0.0 }
 0x7d1   :  { %6277 = vrot.lane.b32.xlu1 %v4691_v25, %s9728_s29  ;;  %9406 = vlog2.f32 %v8054_v4  ;;  %v14638_v4 = vld [vmem:[#allocation3 + $0x3a9] sm:$0xff]  ;;  %v8075_v6 = vmax.f32 %v8010_v29, 1e-06  ;;  %v8055_v46 = vmax.f32 %v7990_v1, 1e-06  ;;  %v7771_v58 = vadd.f32 %v14466_v45, %v14488_v43 }
 0x7d2   :  { %6279 = vrot.lane.b32.xlu0 %v4692_v55, %s9728_s29  ;;  %v8077_v13 = vmax.f32 %v8012_v19, 1e-06  ;;  %v8074_v34 = vmax.f32 %v8009_v38, 1e-06  ;;  %v8072_v38 = vmax.f32 %v8007_v53, 1e-06 }
 0x7d3   :  { %v6774_v24 = vpop.permute.xlu1 %6773 }
 0x7d4   :  { %v7371_v50 = vsel %vm3389_vm8, %v7307_v49, %v6774_v24  ;;  %v14609_v35 = vpop.permute.xlu0 %6009 }
 0x7d5   :  { %5513 = vrot.lane.b32.xlu1 %v4691_v25, %s9725_s0  ;;  %9327 = vmatprep.mubr.msk.f32.mxu1 %vm3465_vm9, %v7371_v50  ;;  %v8053_v25 = vmax.f32 %v7988_v52, 1e-06  ;;  %v9389_v59 = vpop.eup %9388 }
 0x7d6   :  { %5515 = vrot.lane.b32.xlu0 %v4692_v55, %s9725_s0  ;;  %v9391_v41 = vpop.eup %9390  ;;  %v8144_v7 = vmul.f32 0.6931472, %v9389_v59  ;;  %v7761_v59 = vadd.f32 %v14447_v18, %v14488_v43 }
 0x7d7   :  { %v14592_v44 = vpop.permute.xlu1 %5755  ;;  %9408 = vlog2.f32 %v8053_v25  ;;  %v9393_v17 = vpop.eup %9392  ;;  %v8142_v25 = vmul.f32 0.6931472, %v9391_v41 }
 0x7d8   :  { %v14629_v24 = vpop.permute.xlu0 %4991  ;;  %9410 = vlog2.f32 %v8078_v20  ;;  %v9395_v31 = vpop.eup %9394 }
 0x7d9   :  { %6533 = vrot.lane.b32.xlu1 %v14597_v27, %s9729_s1  ;;  %9412 = vlog2.f32 %v8056_v39  ;;  %v9397_v2 = vpop.eup %9396  ;;  %v8006_v39 = vmax.f32 %v7776_v40, 0.0  ;;  %v14668_v29 = vmul.f32 0.6931472, %v9395_v31 }
 0x7da   :  { %6535 = vrot.lane.b32.xlu0 %v14633_v30, %s9729_s1  ;;  %9414 = vlog2.f32 %v8077_v13  ;;  %v9399_v20 = vpop.eup %9398  ;;  %v14673_v13 = vld [vmem:[#allocation3 + $0x3b1] sm:$0xff] }
 0x7db   :  { %v6776_v36 = vpop.permute.xlu1 %6775  ;;  %9416 = vlog2.f32 %v8076_v56  ;;  %v9401_v14 = vpop.eup %9400  ;;  %v8140_v1 = vmul.f32 0.6931472, %v9399_v20 }
 0x7dc   :  { %v7372_v5 = vsel %vm3389_vm8, %v7308_v33, %v6776_v36  ;;  %v14644_v28 = vpop.permute.xlu0 %6011  ;;  %v8073_v33 = vmax.f32 %v8008_v51, 1e-06  ;;  %v8257_v36 = vmul.f32 %v14649_v63, %v8144_v7  ;;  %v7756_v51 = vadd.f32 %v14488_v43, %v14455_v62 }
 0x7dd   :  { %5769 = vrot.lane.b32.xlu1 %v14597_v27, %s9726_s27  ;;  %v9311_v0 = vpop.f32.mrf.mxu1  ;;  %9328 = vmatmul.mubr.msk.f32.gmra.mxu1 %vm3465_vm9, %v7372_v5  ;;  %v8136_v5 = vmul.f32 0.6931472, %v9393_v17  ;;  %v8071_v7 = vmax.f32 %v8006_v39, 1e-06  ;;  %v14696_v40 = vmul.f32 0.6931472, %v9401_v14  ;;  %v6925_v62 = vsel %vm100_vm0, %v14179_v10, %v14464_v8 }
 0x7de   :  { %v7821_v49 = vadd.f32 %v9311_v0, %v14488_v43  ;;  %5005 = vrot.lane.b32.xlu0 %v14597_v27, %s9723_s17  ;;  %v7766_v27 = vadd.f32 %v14488_v43, %v14480_v3  ;;  %v8256_v0 = vmul.f32 %v14649_v63, %v8142_v25  ;;  %v8005_v3 = vmax.f32 %v7771_v58, 0.0 }
 0x7df   :  { %v14631_v50 = vpop.permute.xlu1 %5245  ;;  %v7815_v48 = vpop.f32.mrf.mxu1  ;;  %v14690_v18 = vmul.f32 %v14649_v63, %v8136_v5  ;;  %v8003_v25 = vmax.f32 %v7761_v59, 0.0  ;;  %v14710_v58 = vmul.f32 %v14649_v63, %v8140_v1  ;;  %v4693_v5 = vld [vmem:[#allocation3 + $0x3c7] sm:$0xff] }
 0x7e0   :  { %v8015_v32 = vmax.f32 %v7821_v49, 0.0  ;;  %v7816_v52 = vadd.f32 %v14488_v43, %v7815_v48  ;;  %v14662_v22 = vpop.permute.xlu0 %5247  ;;  %v9403_v49 = vpop.eup %9402  ;;  %v14681_v48 = vmul.f32 0.6931472, %v9397_v2  ;;  %v8334_v17 = vmul.f32 1.442695, %v8256_v0 }
 0x7e1   :  { %6789 = vrot.lane.b32.xlu1 %v14638_v4, %s9730_s20  ;;  %v14679_v56 = vpop.eup %9404  ;;  %v8068_v14 = vmax.f32 %v8003_v25, 1e-06 }
 0x7e2   :  { %v8080_v42 = vmax.f32 %v8015_v32, 1e-06  ;;  %v8014_v55 = vmax.f32 %v7816_v52, 0.0  ;;  %6025 = vrot.lane.b32.xlu0 %v14638_v4, %s9727_s28  ;;  %v8336_v32 = vmul.f32 1.442695, %v8257_v36  ;;  %v7751_v52 = vadd.f32 %v14427_v15, %v14488_v43  ;;  %v14687_v61 = vpop.eup %9406 }
 0x7e3   :  { %v14653_v21 = vpop.permute.xlu1 %6265  ;;  %v7746_v15 = vadd.f32 %v14488_v43, %v14438_v57  ;;  %v6989_v43 = vsel %vm2999_vm2, %v6925_v62, %v14496_v16 }
 0x7e4   :  { %9418 = vlog2.f32 %v8080_v42  ;;  %v8079_v19 = vmax.f32 %v8014_v55, 1e-06  ;;  %v14685_v41 = vpop.permute.xlu0 %6267  ;;  %v14694_v55 = vpop.eup %9408  ;;  %v8001_v57 = vmax.f32 %v7751_v52, 0.0  ;;  %v7053_v10 = vsel %vm3064_vm3, %v6989_v43, %v14520_v23 }
 0x7e5   :  { %9420 = vlog2.f32 %v8075_v6  ;;  %5771 = vrot.lane.b32.xlu1 %v14633_v30, %s9726_s27  ;;  %v8004_v6 = vmax.f32 %v7766_v27, 0.0  ;;  %v7117_v16 = vsel %vm3129_vm4, %v7053_v10, %v14557_v11  ;;  %v8000_v39 = vmax.f32 %v7746_v15, 0.0 }
 0x7e6   :  { %9422 = vlog2.f32 %v8079_v19  ;;  %5007 = vrot.lane.b32.xlu0 %v14633_v30, %s9723_s17  ;;  %v8070_v19 = vmax.f32 %v8005_v3, 1e-06  ;;  %v7181_v23 = vsel %vm3194_vm5, %v7117_v16, %v14609_v35 }
 0x7e7   :  { %9424 = vlog2.f32 %v8074_v34  ;;  %v14666_v45 = vpop.permute.xlu1 %5501  ;;  %v8138_v34 = vmul.f32 0.6931472, %v9403_v49  ;;  %v8069_v2 = vmax.f32 %v8004_v6, 1e-06  ;;  %v8066_v49 = vmax.f32 %v8001_v57, 1e-06 }
 0x7e8   :  { %9426 = vlog2.f32 %v8055_v46  ;;  %v9411_v46 = vpop.eup %9410  ;;  %v14714_v30 = vpop.permute.xlu0 %5503  ;;  %v7245_v11 = vsel %vm3259_vm6, %v7181_v23, %v14653_v21 }
 0x7e9   :  { %9428 = vlog2.f32 %v8073_v33  ;;  %6791 = vrot.lane.b32.xlu1 %v14673_v13, %s9730_s20  ;;  %v14707_v31 = vpop.eup %9412  ;;  %v8002_v33 = vmax.f32 %v7756_v51, 0.0  ;;  %v14721_v36 = vmul.f32 %v14649_v63, %v8138_v34  ;;  %v8172_v20 = vmul.f32 0.6931472, %v9411_v46 }
 0x7ea   :  { %9430 = vlog2.f32 %v8072_v38  ;;  %v9415_v53 = vpop.eup %9414  ;;  %6027 = vrot.lane.b32.xlu0 %v14673_v13, %s9727_s28  ;;  %v8065_v46 = vmax.f32 %v8000_v39, 1e-06  ;;  %v8332_v39 = vmul.f32 1.442695, %v14710_v58  ;;  %v8252_v58 = vmul.f32 %v14649_v63, %v14696_v40 }
 0x7eb   :  { %v6522_v42 = vpop.permute.xlu1 %6521  ;;  %9432 = vpow2.f32 %v8336_v32  ;;  %v8170_v59 = vmul.f32 0.6931472, %v9415_v53  ;;  %v8067_v32 = vmax.f32 %v8002_v33, 1e-06  ;;  %v8271_v35 = vmul.f32 %v14649_v63, %v8172_v20  ;;  %v14755_v20 = vld [vmem:[#allocation3 + $0x3cf] sm:$0xff] }
 0x7ec   :  { %9434 = vlog2.f32 %v8071_v7  ;;  %v6524_v38 = vpop.permute.xlu0 %6523  ;;  %v7309_v51 = vsel %vm3324_vm7, %v7245_v11, %v6522_v42  ;;  %v8251_v40 = vmul.f32 %v14649_v63, %v14668_v29 }
 0x7ed   :  { %5261 = vrot.lane.b32.xlu1 %v14638_v4, %s9724_s18  ;;  %v9417_v4 = vpop.eup %9416  ;;  %9436 = vpow2.f32 %v8334_v17  ;;  %v8270_v57 = vmul.f32 %v14649_v63, %v8170_v59  ;;  %v8364_v16 = vmul.f32 1.442695, %v8271_v35  ;;  %v8128_v35 = vmul.f32 0.6931472, %v14707_v31 }
 0x7ee   :  { %9438 = vlog2.f32 %v8070_v19  ;;  %v8168_v52 = vmul.f32 0.6931472, %v9417_v4  ;;  %5263 = vrot.lane.b32.xlu0 %v14673_v13, %s9724_s18  ;;  %v9709_v19 = vld [vmem:[#allocation3 + $0x30f] sm:$0xff] }
 0x7ef   :  { %v14718_v8 = vpop.permute.xlu1 %5757  ;;  %9440 = vlog2.f32 %v8069_v2  ;;  %v6926_v42 = vsel %vm100_vm0, %v9709_v19, %v14494_v47 }
 0x7f0   :  { %9442 = vlog2.f32 %v8068_v14  ;;  %v6990_v43 = vsel %vm2999_vm2, %v6926_v42, %v14516_v9  ;;  %v14748_v33 = vpop.permute.xlu0 %4993  ;;  %v8269_v10 = vmul.f32 %v14649_v63, %v8168_v52 }
 0x7f1   :  { %v9419_v27 = vpop.eup %9418  ;;  %6281 = vrot.lane.b32.xlu1 %v4693_v5, %s9728_s29  ;;  %9444 = vlog2.f32 %v8067_v32  ;;  %v7054_v47 = vsel %vm3064_vm3, %v6990_v43, %v14551_v26  ;;  %v8324_v43 = vmul.f32 1.442695, %v8251_v40 }
 0x7f2   :  { %v9421_v0 = vpop.eup %9420  ;;  %v8176_v3 = vmul.f32 0.6931472, %v9419_v27  ;;  %v7118_v9 = vsel %vm3129_vm4, %v7054_v47, %v14592_v44  ;;  %6283 = vrot.lane.b32.xlu0 %v14755_v20, %s9728_s29  ;;  %v14761_v27 = vld [vmem:[#allocation3 + $0x3c8] sm:$0xff] }
 0x7f3   :  { %v9423_v1 = vpop.eup %9422  ;;  %v6778_v6 = vpop.permute.xlu1 %6777  ;;  %v8166_v25 = vmul.f32 0.6931472, %v9421_v0  ;;  %v7182_v26 = vsel %vm3194_vm5, %v7118_v9, %v14644_v28  ;;  %v8362_v0 = vmul.f32 1.442695, %v8270_v57  ;;  %v8330_v28 = vmul.f32 1.442695, %v14721_v36 }
 0x7f4   :  { %v9425_v7 = vpop.eup %9424  ;;  %v8273_v34 = vmul.f32 %v14649_v63, %v8176_v3  ;;  %v8174_v17 = vmul.f32 0.6931472, %v9423_v1  ;;  %v7373_v15 = vsel %vm3389_vm8, %v7309_v51, %v6778_v6  ;;  %v7246_v59 = vsel %vm3259_vm6, %v7182_v26, %v14685_v41  ;;  %v14771_v3 = vpop.permute.xlu0 %6013  ;;  %v14804_v57 = vld [vmem:[#allocation3 + $0x3c9] sm:$0xff] }
 0x7f5   :  { %v14738_v21 = vpop.eup %9426  ;;  %5517 = vrot.lane.b32.xlu1 %v4693_v5, %s9725_s0  ;;  %9330 = vmatprep.mubr.msk.f32.mxu1 %vm3465_vm9, %v7373_v15  ;;  %v8164_v2 = vmul.f32 0.6931472, %v9425_v7  ;;  %v8268_v44 = vmul.f32 %v14649_v63, %v8166_v25  ;;  %v8360_v51 = vmul.f32 1.442695, %v8269_v10  ;;  %v8328_v36 = vmul.f32 1.442695, %v14690_v18 }
 0x7f6   :  { %v9429_v62 = vpop.eup %9428  ;;  %v8368_v13 = vmul.f32 1.442695, %v8273_v34  ;;  %v8272_v53 = vmul.f32 %v14649_v63, %v8174_v17  ;;  %5519 = vrot.lane.b32.xlu0 %v14755_v20, %s9725_s0  ;;  %v14797_v25 = vld [vmem:[#allocation3 + $0x3d0] sm:$0xff]  ;;  %v8126_v42 = vmul.f32 0.6931472, %v14738_v21 }
 0x7f7   :  { %v14753_v4 = vpop.permute.xlu1 %5759  ;;  %v8162_v14 = vmul.f32 0.6931472, %v9429_v62  ;;  %v9431_v23 = vpop.eup %9430  ;;  %v8267_v52 = vmul.f32 %v14649_v63, %v8164_v2  ;;  %v8358_v17 = vmul.f32 1.442695, %v8268_v44  ;;  %v8250_v62 = vmul.f32 %v14649_v63, %v14681_v48 }
 0x7f8   :  { %9446 = vpow2.f32 %v8368_v13  ;;  %v8366_v5 = vmul.f32 1.442695, %v8272_v53  ;;  %v14773_v11 = vpop.eup %9432  ;;  %v14793_v15 = vpop.permute.xlu0 %4995  ;;  %v8124_v21 = vmul.f32 0.6931472, %v14687_v61  ;;  %v8249_v48 = vmul.f32 %v14649_v63, %v8128_v35 }
 0x7f9   :  { %9448 = vlog2.f32 %v8066_v49  ;;  %6537 = vrot.lane.b32.xlu1 %v14761_v27, %s9729_s1  ;;  %v7310_v49 = vsel %vm3324_vm7, %v7246_v59, %v6524_v38  ;;  %v9435_v32 = vpop.eup %9434  ;;  %v8160_v38 = vmul.f32 0.6931472, %v9431_v23  ;;  %v8266_v34 = vmul.f32 %v14649_v63, %v8162_v14 }
 0x7fa   :  { %9450 = vpow2.f32 %v8366_v5  ;;  %v14783_v6 = vpop.eup %9436  ;;  %v8158_v29 = vmul.f32 0.6931472, %v9435_v32  ;;  %v8356_v31 = vmul.f32 1.442695, %v8267_v52  ;;  %6539 = vrot.lane.b32.xlu0 %v14797_v25, %s9729_s1  ;;  %v8122_v14 = vmul.f32 0.6931472, %v14694_v55 }
 0x7fb   :  { %9452 = vlog2.f32 %v8065_v46  ;;  %v6780_v1 = vpop.permute.xlu1 %6779  ;;  %v9439_v7 = vpop.eup %9438  ;;  %v8326_v46 = vmul.f32 1.442695, %v8252_v58  ;;  %v8265_v53 = vmul.f32 %v14649_v63, %v8160_v38  ;;  %v8354_v10 = vmul.f32 1.442695, %v8266_v34 }
 0x7fc   :  { %9454 = vpow2.f32 %v8364_v16  ;;  %v7374_v41 = vsel %vm3389_vm8, %v7310_v49, %v6780_v1  ;;  %v9441_v19 = vpop.eup %9440  ;;  %v8156_v13 = vmul.f32 0.6931472, %v9439_v7  ;;  %v14811_v47 = vpop.permute.xlu0 %6015  ;;  %v8264_v9 = vmul.f32 %v14649_v63, %v8158_v29  ;;  %v14835_v7 = vld [vmem:[#allocation3 + $0x3d1] sm:$0xff] }
 0x7fd   :  { %9456 = vpow2.f32 %v8332_v39  ;;  %5773 = vrot.lane.b32.xlu1 %v14761_v27, %s9726_s27  ;;  %9331 = vmatmul.mubr.msk.f32.gmra.mxu1 %vm3465_vm9, %v7374_v41  ;;  %v9443_v2 = vpop.eup %9442  ;;  %v8154_v16 = vmul.f32 0.6931472, %v9441_v19  ;;  %v8248_v26 = vmul.f32 %v14649_v63, %v8126_v42  ;;  %v8322_v23 = vmul.f32 1.442695, %v8250_v62 }
 0x7fe   :  { %9458 = vpow2.f32 %v8362_v0  ;;  %v9445_v39 = vpop.eup %9444  ;;  %5009 = vrot.lane.b32.xlu0 %v14761_v27, %s9723_s17  ;;  %v8152_v44 = vmul.f32 0.6931472, %v9443_v2  ;;  %v8263_v0 = vmul.f32 %v14649_v63, %v8156_v13  ;;  %v8352_v59 = vmul.f32 1.442695, %v8265_v53 }
 0x7ff   :  { %9460 = vpow2.f32 %v8330_v28  ;;  %v14795_v18 = vpop.permute.xlu1 %5249  ;;  %v8120_v28 = vmul.f32 0.6931472, %v14620_v54  ;;  %v8247_v55 = vmul.f32 %v14649_v63, %v8124_v21  ;;  %v8320_v49 = vmul.f32 1.442695, %v8249_v48 }
 0x800   :  { %9462 = vpow2.f32 %v8360_v51  ;;  %v14825_v1 = vpop.permute.xlu0 %5251  ;;  %v8150_v32 = vmul.f32 0.6931472, %v9445_v39  ;;  %v8262_v52 = vmul.f32 %v14649_v63, %v8154_v16  ;;  %v8350_v51 = vmul.f32 1.442695, %v8264_v9  ;;  %v9710_v9 = vld [vmem:[#allocation3 + $0x327] sm:$0xff] }
 0x801   :  { %9464 = vpow2.f32 %v8328_v36  ;;  %6793 = vrot.lane.b32.xlu1 %v14804_v57, %s9730_s20  ;;  %v8118_v36 = vmul.f32 0.6931472, %v14679_v56  ;;  %v8246_v54 = vmul.f32 %v14649_v63, %v8122_v14  ;;  %v8318_v38 = vmul.f32 1.442695, %v8248_v26 }
 0x802   :  { %9466 = vpow2.f32 %v8358_v17  ;;  %6029 = vrot.lane.b32.xlu0 %v14804_v57, %s9727_s28  ;;  %v8261_v17 = vmul.f32 %v14649_v63, %v8152_v44  ;;  %v8245_v29 = vmul.f32 %v14649_v63, %v8120_v28  ;;  %v8316_v19 = vmul.f32 1.442695, %v8247_v55  ;;  %v14870_v55 = vld [vmem:[#allocation3 + $0x3e7] sm:$0xff] }
 0x803   :  { %9468 = vpow2.f32 %v8326_v46  ;;  %v14814_v5 = vpop.permute.xlu1 %6269  ;;  %v8348_v46 = vmul.f32 1.442695, %v8263_v0  ;;  %v8346_v13 = vmul.f32 1.442695, %v8262_v52  ;;  %v8314_v21 = vmul.f32 1.442695, %v8246_v54 }
 0x804   :  { %9470 = vpow2.f32 %v8356_v31  ;;  %v14843_v42 = vpop.permute.xlu0 %6271  ;;  %v8344_v16 = vmul.f32 1.442695, %v8261_v17  ;;  %v6927_v39 = vsel %vm100_vm0, %v9710_v9, %v14586_v12  ;;  %v8312_v26 = vmul.f32 1.442695, %v8245_v29 }
 0x805   :  { %v9447_v61 = vpop.eup %9446  ;;  %9472 = vpow2.f32 %v8324_v43  ;;  %5775 = vrot.lane.b32.xlu1 %v14797_v25, %s9726_s27  ;;  %v8260_v43 = vmul.f32 %v14649_v63, %v8150_v32 }
 0x806   :  { %v9449_v58 = vpop.eup %9448  ;;  %9474 = vpow2.f32 %v8354_v10  ;;  %9077 = vmatprep.subr.mxu0 %v9447_v61  ;;  %5011 = vrot.lane.b32.xlu0 %v14797_v25, %s9723_s17  ;;  %v6991_v25 = vsel %vm2999_vm2, %v6927_v39, %v14631_v50  ;;  %v4760_v39 = vld [vmem:[#allocation3 + $0x3f0] sm:$0xff] }
 0x807   :  { %v9451_v27 = vpop.eup %9450  ;;  %v14828_v41 = vpop.permute.xlu1 %5505  ;;  %9078 = vmatpush3.msra.mxu0 %v14773_v11  ;;  %9476 = vpow2.f32 %v8322_v23  ;;  %v8148_v34 = vmul.f32 0.6931472, %v9449_v58  ;;  %v8116_v11 = vmul.f32 0.6931472, %v14599_v60  ;;  %v8244_v60 = vmul.f32 %v14649_v63, %v8118_v36 }
 0x808   :  { %v9453_v40 = vpop.eup %9452  ;;  %9079 = vmatprep.subr.mxu0 %v9451_v27  ;;  %9478 = vpow2.f32 %v8352_v59  ;;  %v14858_v23 = vpop.permute.xlu0 %5507  ;;  %v8342_v0 = vmul.f32 1.442695, %v8260_v43  ;;  %v7055_v12 = vsel %vm3064_vm3, %v6991_v25, %v14666_v45 }
 0x809   :  { %v9455_v35 = vpop.eup %9454  ;;  %6795 = vrot.lane.b32.xlu1 %v14835_v7, %s9730_s20  ;;  %9080 = vmatpush3.msra.mxu0 %v14783_v6  ;;  %9480 = vpow2.f32 %v8320_v49  ;;  %v8146_v31 = vmul.f32 0.6931472, %v9453_v40  ;;  %v8114_v6 = vmul.f32 0.6931472, %v14611_v37  ;;  %v8259_v10 = vmul.f32 %v14649_v63, %v8148_v34 }
 0x80a   :  { %v9457_v56 = vpop.eup %9456  ;;  %9081 = vmatprep.subr.mxu0 %v9455_v35  ;;  %9482 = vpow2.f32 %v8350_v51  ;;  %v8243_v14 = vmul.f32 %v14649_v63, %v8116_v11  ;;  %v8310_v28 = vmul.f32 1.442695, %v8244_v60  ;;  %v7119_v50 = vsel %vm3129_vm4, %v7055_v12, %v14718_v8  ;;  %6031 = vrot.lane.b32.xlu0 %v14835_v7, %s9727_s28 }
 0x80b   :  { %v9459_v62 = vpop.eup %9458  ;;  %v6526_v53 = vpop.permute.xlu1 %6525  ;;  %9082 = vmatpush3.msra.mxu0 %v9457_v56  ;;  %9484 = vpow2.f32 %v8318_v38  ;;  %v8258_v44 = vmul.f32 %v14649_v63, %v8146_v31  ;;  %v8242_v58 = vmul.f32 %v14649_v63, %v8114_v6  ;;  %v8340_v27 = vmul.f32 1.442695, %v8259_v10 }
 0x80c   :  { %v9461_v2 = vpop.eup %9460  ;;  %9083 = vmatprep.subr.mxu0 %v9459_v62  ;;  %9486 = vpow2.f32 %v8348_v46  ;;  %v7183_v45 = vsel %vm3194_vm5, %v7119_v50, %v14771_v3  ;;  %v8308_v52 = vmul.f32 1.442695, %v8243_v14  ;;  %v6528_v51 = vpop.permute.xlu0 %6527  ;;  %v4823_v14 = vld [vmem:[#allocation3 + $0x3e9] sm:$0xff]  ;;  %v16020_v50 = vmov 0.0  }
 0x80d   :  { %v9463_v48 = vpop.eup %9462  ;;  %5265 = vrot.lane.b32.xlu1 %v14804_v57, %s9724_s18  ;;  %9084 = vmatpush3.msra.mxu0 %v9461_v2  ;;  %9488 = vpow2.f32 %v8316_v19  ;;  %v7247_v8 = vsel %vm3259_vm6, %v7183_v45, %v14814_v5  ;;  %v8338_v36 = vmul.f32 1.442695, %v8258_v44  ;;  %v8306_v3 = vmul.f32 1.442695, %v8242_v58  ;;  %v9711_v5 = vld [vmem:[#allocation3 + $0x32f] sm:$0xff] }
 0x80e   :  { %v9465_v37 = vpop.eup %9464  ;;  %9085 = vmatprep.subr.mxu0 %v9463_v48  ;;  %9490 = vpow2.f32 %v8346_v13  ;;  %v7311_v54 = vsel %vm3324_vm7, %v7247_v8, %v6526_v53  ;;  %5267 = vrot.lane.b32.xlu0 %v14835_v7, %s9724_s18  ;;  %v6928_v17 = vsel %vm100_vm0, %v9711_v5, %v14629_v24  ;;  %v14895_v19 = vld [vmem:[#allocation3 + $0x3ef] sm:$0xff] }
 0x80f   :  { %v9467_v61 = vpop.eup %9466  ;;  %v14863_v57 = vpop.permute.xlu1 %5761  ;;  %9086 = vmatpush3.msra.mxu0 %v9465_v37  ;;  %9492 = vpow2.f32 %v8314_v21  ;;  %v6992_v56 = vsel %vm2999_vm2, %v6928_v17, %v14662_v22  ;;  %v4759_v22 = vld [vmem:[#allocation3 + $0x3e8] sm:$0xff] }
 0x810   :  { %v9469_v59 = vpop.eup %9468  ;;  %9087 = vmatprep.subr.mxu0 %v9467_v61  ;;  %9494 = vpow2.f32 %v8344_v16  ;;  %v14889_v11 = vpop.permute.xlu0 %4997  ;;  %v7056_v29 = vsel %vm3064_vm3, %v6992_v56, %v14714_v30 }
 0x811   :  { %v9471_v49 = vpop.eup %9470  ;;  %6285 = vrot.lane.b32.xlu1 %v14870_v55, %s9728_s29  ;;  %9088 = vmatpush3.msra.mxu0 %v9469_v59  ;;  %9496 = vpow2.f32 %v8312_v26  ;;  %v7120_v31 = vsel %vm3129_vm4, %v7056_v29, %v14753_v4  ;;  %v14960_v29 = vld [vmem:[#allocation3 + $0x40f] sm:$0xff] }
 0x812   :  { %v9473_v32 = vpop.eup %9472  ;;  %9089 = vmatprep.subr.mxu0 %v9471_v49  ;;  %9498 = vpow2.f32 %v8342_v0  ;;  %6287 = vrot.lane.b32.xlu0 %v14895_v19, %s9728_s29  ;;  %v7184_v13 = vsel %vm3194_vm5, %v7120_v31, %v14811_v47  ;;  %v4824_v49 = vld [vmem:[#allocation3 + $0x3f1] sm:$0xff] }
 0x813   :  { %v9475_v40 = vpop.eup %9474  ;;  %v6782_v38 = vpop.permute.xlu1 %6781  ;;  %9090 = vmatpush3.msra.mxu0 %v9473_v32  ;;  %9500 = vpow2.f32 %v8310_v28  ;;  %v7248_v53 = vsel %vm3259_vm6, %v7184_v13, %v14843_v42  ;;  %v9712_v32 = vld [vmem:[#allocation3 + $0x347] sm:$0xff] }
 0x814   :  { %v7375_v35 = vsel %vm3389_vm8, %v7311_v54, %v6782_v38  ;;  %9091 = vmatprep.subr.mxu0 %v9475_v40  ;;  %v9477_v34 = vpop.eup %9476  ;;  %9502 = vpow2.f32 %v8340_v27  ;;  %v6018_v2 = vpop.permute.xlu0 %6017  ;;  %v7312_v4 = vsel %vm3324_vm7, %v7248_v53, %v6528_v51  ;;  %v14940_v38 = vld [vmem:[#allocation3 + $0x407] sm:$0xff]  ;;  %v4762_v53 = vld [vmem:[#allocation3 + $0x410] sm:$0xff] }
 0x815   :  { %5521 = vrot.lane.b32.xlu1 %v14870_v55, %s9725_s0  ;;  %9333 = vmatprep.mubr.msk.f32.mxu1 %vm3465_vm9, %v7375_v35  ;;  %v9479_v46 = vpop.eup %9478  ;;  %9504 = vpow2.f32 %v8308_v52  ;;  %v6929_v52 = vsel %vm100_vm0, %v9712_v32, %v14748_v33 }
 0x816   :  { %9092 = vmatpush3.msra.mxu0 %v9477_v34  ;;  %v9481_v7 = vpop.eup %9480  ;;  %9506 = vpow2.f32 %v8338_v36  ;;  %5523 = vrot.lane.b32.xlu0 %v14895_v19, %s9725_s0  ;;  %v6993_v8 = vsel %vm2999_vm2, %v6929_v52, %v14795_v18 }
 0x817   :  { %9093 = vmatprep.subr.mxu0 %v9479_v46  ;;  %v14893_v24 = vpop.permute.xlu1 %5763  ;;  %v9483_v62 = vpop.eup %9482  ;;  %9508 = vpow2.f32 %v8306_v3  ;;  %v7057_v40 = vsel %vm3064_vm3, %v6993_v8, %v14828_v41 }
 0x818   :  { %9094 = vmatpush3.msra.mxu0 %v9481_v7  ;;  %v9485_v43 = vpop.eup %9484  ;;  %v14912_v42 = vpop.permute.xlu0 %4999  ;;  %v7121_v54 = vsel %vm3129_vm4, %v7057_v40, %v14863_v57  ;;  %v9713_v57 = vld [vmem:[#allocation3 + $0x34f] sm:$0xff] }
 0x819   :  { %9095 = vmatprep.subr.mxu0 %v9483_v62  ;;  %6541 = vrot.lane.b32.xlu1 %v4759_v22, %s9729_s1  ;;  %v9487_v30 = vpop.eup %9486  ;;  %v7185_v33 = vsel %vm3194_vm5, %v7121_v54, %v6018_v2  ;;  %v6930_v5 = vsel %vm100_vm0, %v9713_v57, %v14793_v15  ;;  %v4761_v15 = vld [vmem:[#allocation3 + $0x408] sm:$0xff] }
 0x81a   :  { %9096 = vmatpush3.msra.mxu0 %v9485_v43  ;;  %v9489_v6 = vpop.eup %9488  ;;  %6543 = vrot.lane.b32.xlu0 %v4760_v39, %s9729_s1  ;;  %v6994_v17 = vsel %vm2999_vm2, %v6930_v5, %v14825_v1  ;;  %v4825_v2 = vld [vmem:[#allocation3 + $0x409] sm:$0xff] }
 0x81b   :  { %9097 = vmatprep.subr.mxu0 %v9487_v30  ;;  %v6784_v60 = vpop.permute.xlu1 %6783  ;;  %v9491_v21 = vpop.eup %9490  ;;  %v7058_v56 = vsel %vm3064_vm3, %v6994_v17, %v14858_v23  ;;  %v15021_v40 = vld [vmem:[#allocation3 + $0x42f] sm:$0xff] }
 0x81c   :  { %v7376_v48 = vsel %vm3389_vm8, %v7312_v4, %v6784_v60  ;;  %9098 = vmatpush3.msra.mxu0 %v9489_v6  ;;  %v9493_v47 = vpop.eup %9492  ;;  %v6020_v61 = vpop.permute.xlu0 %6019  ;;  %v7122_v62 = vsel %vm3129_vm4, %v7058_v56, %v14893_v24  ;;  %v4827_v57 = vld [vmem:[#allocation3 + $0x429] sm:$0xff] }
 0x81d   :  { %9099 = vmatprep.subr.mxu0 %v9491_v21  ;;  %5777 = vrot.lane.b32.xlu1 %v4759_v22, %s9726_s27  ;;  %v9495_v10 = vpop.eup %9494  ;;  %v7186_v31 = vsel %vm3194_vm5, %v7122_v62, %v6020_v61  ;;  %v4828_v62 = vld [vmem:[#allocation3 + $0x431] sm:$0xff] }
 0x81e   :  { %9334 = vmatmul.mubr.msk.f32.gmra.mxu1 %vm3465_vm9, %v7376_v48  ;;  %9100 = vmatpush3.msra.mxu0 %v9493_v47  ;;  %v9497_v16 = vpop.eup %9496  ;;  %v4826_v48 = vld [vmem:[#allocation3 + $0x411] sm:$0xff] }
 0x81f   :  { %9101 = vmatprep.subr.mxu0 %v9495_v10  ;;  %v14914_v9 = vpop.permute.xlu1 %5253  ;;  %v9499_v37 = vpop.eup %9498  ;;  %5013 = vrot.lane.b32.xlu0 %v4759_v22, %s9723_s17 }
 0x820   :  { %9102 = vmatpush3.msra.mxu0 %v9497_v16  ;;  %v9501_v26 = vpop.eup %9500  ;;  %v14920_v58 = vpop.permute.xlu0 %5255  ;;  %v9714_v16 = vld [vmem:[#allocation3 + $0x367] sm:$0xff] }
 0x821   :  { %9103 = vmatprep.subr.mxu0 %v9499_v37  ;;  %6797 = vrot.lane.b32.xlu1 %v4823_v14, %s9730_s20  ;;  %v9503_v25 = vpop.eup %9502 }
 0x822   :  { %9104 = vmatpush3.msra.mxu0 %v9501_v26  ;;  %v9505_v44 = vpop.eup %9504 }
 0x823   :  { %9105 = vmatprep.subr.mxu0 %v9503_v25  ;;  %v6274_v0 = vpop.permute.xlu1 %6273  ;;  %v9507_v12 = vpop.eup %9506  ;;  %6033 = vrot.lane.b32.xlu0 %v4823_v14, %s9727_s28 }
 0x824   :  { %9106 = vmatpush3.msra.mxu0 %v9505_v44  ;;  %v9509_v59 = vpop.eup %9508  ;;  %v6276_v27 = vpop.permute.xlu0 %6275  ;;  %v7249_v18 = vsel %vm3259_vm6, %v7185_v33, %v6274_v0  ;;  %v15001_v44 = vld [vmem:[#allocation3 + $0x427] sm:$0xff] }
 0x825   :  { %9107 = vmatprep.subr.mxu0 %v9507_v12  ;;  %5779 = vrot.lane.b32.xlu1 %v4760_v39, %s9726_s27  ;;  %v7250_v1 = vsel %vm3259_vm6, %v7186_v31, %v6276_v27 }
 0x826   :  { %9108 = vmatpush3.msra.mxu0 %v9509_v59 }
 0x827   :  { %v14922_v28 = vpop.permute.xlu1 %5509  ;;  %9360 = vmatprep.subr.mxu0 %v16020_v50  ;;  %5015 = vrot.lane.b32.xlu0 %v4760_v39, %s9723_s17  ;;  %v6931_v39 = vsel %vm100_vm0, %v9714_v16, %v14889_v11 }
 0x828   :  { %v14933_v51 = vpop.permute.xlu0 %5511  ;;  %v6995_v37 = vsel %vm2999_vm2, %v6931_v39, %v14914_v9 }
 0x829   :  { %6799 = vrot.lane.b32.xlu1 %v4824_v49, %s9730_s20  ;;  %v7059_v26 = vsel %vm3064_vm3, %v6995_v37, %v14922_v28 }
 0x82b   :  { %v6530_v45 = vpop.permute.xlu1 %6529  ;;  %6035 = vrot.lane.b32.xlu0 %v4824_v49, %s9727_s28 }
 0x82c   :  { %v6532_v3 = vpop.permute.xlu0 %6531  ;;  %v7313_v35 = vsel %vm3324_vm7, %v7249_v18, %v6530_v45 }
 0x82d   :  { %5269 = vrot.lane.b32.xlu1 %v4823_v14, %s9724_s18  ;;  %v7314_v43 = vsel %vm3324_vm7, %v7250_v1, %v6532_v3  ;;  %v9716_v1 = vld [vmem:[#allocation3 + $0x387] sm:$0xff] }
 0x82f   :  { %v5766_v36 = vpop.permute.xlu1 %5765  ;;  %5271 = vrot.lane.b32.xlu0 %v4824_v49, %s9724_s18  ;;  %v9715_v49 = vld [vmem:[#allocation3 + $0x36f] sm:$0xff] }
 0x830   :  { %v14956_v46 = vpop.permute.xlu0 %5001  ;;  %v7123_v61 = vsel %vm3129_vm4, %v7059_v26, %v5766_v36  ;;  %v6932_v27 = vsel %vm100_vm0, %v9715_v49, %v14912_v42  ;;  %v4763_v42 = vld [vmem:[#allocation3 + $0x428] sm:$0xff] }
 0x831   :  { %6289 = vrot.lane.b32.xlu1 %v14940_v38, %s9728_s29  ;;  %v6996_v45 = vsel %vm2999_vm2, %v6932_v27, %v14920_v58  ;;  %v4766_v27 = vld [vmem:[#allocation3 + $0x450] sm:$0xff] }
 0x832   :  { %v7060_v52 = vsel %vm3064_vm3, %v6996_v45, %v14933_v51  ;;  %v4829_v45 = vld [vmem:[#allocation3 + $0x449] sm:$0xff] }
 0x833   :  { %v6786_v34 = vpop.permute.xlu1 %6785  ;;  %6291 = vrot.lane.b32.xlu0 %v14960_v29, %s9728_s29 }
 0x834   :  { %v7377_v41 = vsel %vm3389_vm8, %v7313_v35, %v6786_v34  ;;  %v6022_v22 = vpop.permute.xlu0 %6021 }
 0x835   :  { %5525 = vrot.lane.b32.xlu1 %v14940_v38, %s9725_s0  ;;  %9336 = vmatprep.mubr.msk.f32.mxu1 %vm3465_vm9, %v7377_v41  ;;  %v7187_v0 = vsel %vm3194_vm5, %v7123_v61, %v6022_v22  ;;  %v4764_v41 = vld [vmem:[#allocation3 + $0x430] sm:$0xff]  ;;  %v6933_v22 = vsel %vm100_vm0, %v9716_v1, %v14956_v46 }
 0x836   :  { %v4702_v61 = vld [vmem:[#allocation3 + $0x44f] sm:$0xff] }
 0x837   :  { %v5768_v7 = vpop.permute.xlu1 %5767  ;;  %5527 = vrot.lane.b32.xlu0 %v14960_v29, %s9725_s0 }
 0x838   :  { %v14975_v24 = vpop.permute.xlu0 %5003  ;;  %v7124_v36 = vsel %vm3129_vm4, %v7060_v52, %v5768_v7 }
 0x839   :  { %6545 = vrot.lane.b32.xlu1 %v4761_v15, %s9729_s1 }
 0x83b   :  { %v6788_v23 = vpop.permute.xlu1 %6787  ;;  %6547 = vrot.lane.b32.xlu0 %v4762_v53, %s9729_s1 }
 0x83c   :  { %v7378_v13 = vsel %vm3389_vm8, %v7314_v43, %v6788_v23  ;;  %v6024_v6 = vpop.permute.xlu0 %6023 }
 0x83d   :  { %5781 = vrot.lane.b32.xlu1 %v4761_v15, %s9726_s27  ;;  %9337 = vmatmul.mubr.msk.f32.gmra.mxu1 %vm3465_vm9, %v7378_v13  ;;  %v7188_v54 = vsel %vm3194_vm5, %v7124_v36, %v6024_v6  ;;  %v4701_v6 = vld [vmem:[#allocation3 + $0x447] sm:$0xff] }
 0x83f   :  { %v14977_v30 = vpop.permute.xlu1 %5257  ;;  %5017 = vrot.lane.b32.xlu0 %v4761_v15, %s9723_s17 }
 0x840   :  { %v14983_v60 = vpop.permute.xlu0 %5259  ;;  %v6997_v43 = vsel %vm2999_vm2, %v6933_v22, %v14977_v30 }
 0x841   :  { %6801 = vrot.lane.b32.xlu1 %v4825_v2, %s9730_s20 }
 0x843   :  { %v6278_v4 = vpop.permute.xlu1 %6277  ;;  %6037 = vrot.lane.b32.xlu0 %v4825_v2, %s9727_s28 }
 0x844   :  { %v6280_v47 = vpop.permute.xlu0 %6279  ;;  %v7251_v11 = vsel %vm3259_vm6, %v7187_v0, %v6278_v4 }
 0x845   :  { %5783 = vrot.lane.b32.xlu1 %v4762_v53, %s9726_s27  ;;  %v7252_v58 = vsel %vm3259_vm6, %v7188_v54, %v6280_v47  ;;  %v4830_v54 = vld [vmem:[#allocation3 + $0x451] sm:$0xff] }
 0x847   :  { %v14985_v21 = vpop.permute.xlu1 %5513  ;;  %5019 = vrot.lane.b32.xlu0 %v4762_v53, %s9723_s17 }
 0x848   :  { %v14995_v14 = vpop.permute.xlu0 %5515  ;;  %v7061_v13 = vsel %vm3064_vm3, %v6997_v43, %v14985_v21  ;;  %v9717_v21 = vld [vmem:[#allocation3 + $0x38f] sm:$0xff] }
 0x849   :  { %6803 = vrot.lane.b32.xlu1 %v4826_v48, %s9730_s20  ;;  %v6934_v16 = vsel %vm100_vm0, %v9717_v21, %v14975_v24  ;;  %v4765_v24 = vld [vmem:[#allocation3 + $0x448] sm:$0xff] }
 0x84a   :  { %v6998_v39 = vsel %vm2999_vm2, %v6934_v16, %v14983_v60 }
 0x84b   :  { %v6534_v10 = vpop.permute.xlu1 %6533  ;;  %6039 = vrot.lane.b32.xlu0 %v4826_v48, %s9727_s28  ;;  %v7062_v26 = vsel %vm3064_vm3, %v6998_v39, %v14995_v14 }
 0x84c   :  { %v6536_v9 = vpop.permute.xlu0 %6535  ;;  %v7315_v12 = vsel %vm3324_vm7, %v7251_v11, %v6534_v10 }
 0x84d   :  { %5273 = vrot.lane.b32.xlu1 %v4825_v2, %s9724_s18  ;;  %v7316_v18 = vsel %vm3324_vm7, %v7252_v58, %v6536_v9  ;;  %v4703_v58 = vld [vmem:[#allocation3 + $0x467] sm:$0xff] }
 0x84f   :  { %v5770_v25 = vpop.permute.xlu1 %5769  ;;  %5275 = vrot.lane.b32.xlu0 %v4826_v48, %s9724_s18 }
 0x850   :  { %v15017_v32 = vpop.permute.xlu0 %5005  ;;  %v7125_v2 = vsel %vm3129_vm4, %v7061_v13, %v5770_v25 }
 0x851   :  { %6293 = vrot.lane.b32.xlu1 %v15001_v44, %s9728_s29 }
 0x853   :  { %v6790_v59 = vpop.permute.xlu1 %6789  ;;  %6295 = vrot.lane.b32.xlu0 %v15021_v40, %s9728_s29 }
 0x854   :  { %v7379_v28 = vsel %vm3389_vm8, %v7315_v12, %v6790_v59  ;;  %v6026_v33 = vpop.permute.xlu0 %6025 }
 0x855   :  { %5529 = vrot.lane.b32.xlu1 %v15001_v44, %s9725_s0  ;;  %9339 = vmatprep.mubr.msk.f32.mxu1 %vm3465_vm9, %v7379_v28  ;;  %v7189_v4 = vsel %vm3194_vm5, %v7125_v2, %v6026_v33 }
 0x857   :  { %v5772_v8 = vpop.permute.xlu1 %5771  ;;  %5531 = vrot.lane.b32.xlu0 %v15021_v40, %s9725_s0 }
 0x858   :  { %v15035_v35 = vpop.permute.xlu0 %5007  ;;  %v7126_v0 = vsel %vm3129_vm4, %v7062_v26, %v5772_v8 }
 0x859   :  { %6549 = vrot.lane.b32.xlu1 %v4763_v42, %s9729_s1 }
 0x85b   :  { %v6792_v3 = vpop.permute.xlu1 %6791  ;;  %6551 = vrot.lane.b32.xlu0 %v4764_v41, %s9729_s1 }
 0x85c   :  { %v7380_v51 = vsel %vm3389_vm8, %v7316_v18, %v6792_v3  ;;  %v6028_v5 = vpop.permute.xlu0 %6027  ;;  %v4704_v18 = vld [vmem:[#allocation3 + $0x46f] sm:$0xff] }
 0x85d   :  { %5785 = vrot.lane.b32.xlu1 %v4763_v42, %s9726_s27  ;;  %9340 = vmatmul.mubr.msk.f32.gmra.mxu1 %vm3465_vm9, %v7380_v51  ;;  %v7190_v11 = vsel %vm3194_vm5, %v7126_v0, %v6028_v5  ;;  %v9718_v51 = vld [vmem:[#allocation3 + $0x3a7] sm:$0xff] }
 0x85f   :  { %v15037_v34 = vpop.permute.xlu1 %5261  ;;  %5021 = vrot.lane.b32.xlu0 %v4763_v42, %s9723_s17 }
 0x860   :  { %v15043_v56 = vpop.permute.xlu0 %5263 }
 0x861   :  { %6805 = vrot.lane.b32.xlu1 %v4827_v57, %s9730_s20 }
 0x863   :  { %v6282_v17 = vpop.permute.xlu1 %6281  ;;  %6041 = vrot.lane.b32.xlu0 %v4827_v57, %s9727_s28 }
 0x864   :  { %v6284_v15 = vpop.permute.xlu0 %6283  ;;  %v7253_v46 = vsel %vm3259_vm6, %v7189_v4, %v6282_v17  ;;  %v9719_v4 = vld [vmem:[#allocation3 + $0x3af] sm:$0xff] }
 0x865   :  { %5787 = vrot.lane.b32.xlu1 %v4764_v41, %s9726_s27  ;;  %v7254_v9 = vsel %vm3259_vm6, %v7190_v11, %v6284_v15 }
 0x867   :  { %v15045_v7 = vpop.permute.xlu1 %5517  ;;  %5023 = vrot.lane.b32.xlu0 %v4764_v41, %s9723_s17  ;;  %v6935_v41 = vsel %vm100_vm0, %v9718_v51, %v15017_v32  ;;  %v4831_v32 = vld [vmem:[#allocation3 + $0x469] sm:$0xff] }
 0x868   :  { %v15055_v23 = vpop.permute.xlu0 %5519  ;;  %v6999_v5 = vsel %vm2999_vm2, %v6935_v41, %v15037_v34  ;;  %v4832_v34 = vld [vmem:[#allocation3 + $0x471] sm:$0xff] }
 0x869   :  { %6807 = vrot.lane.b32.xlu1 %v4828_v62, %s9730_s20  ;;  %v7063_v15 = vsel %vm3064_vm3, %v6999_v5, %v15045_v7 }
 0x86b   :  { %v6538_v31 = vpop.permute.xlu1 %6537  ;;  %6043 = vrot.lane.b32.xlu0 %v4828_v62, %s9727_s28 }
 0x86c   :  { %v6540_v48 = vpop.permute.xlu0 %6539  ;;  %v7317_v30 = vsel %vm3324_vm7, %v7253_v46, %v6538_v31 }
 0x86d   :  { %5277 = vrot.lane.b32.xlu1 %v4827_v57, %s9724_s18  ;;  %v7318_v12 = vsel %vm3324_vm7, %v7254_v9, %v6540_v48  ;;  %v4767_v57 = vld [vmem:[#allocation3 + $0x468] sm:$0xff] }
 0x86f   :  { %v15059_v53 = vpop.permute.xlu1 %5773  ;;  %5279 = vrot.lane.b32.xlu0 %v4828_v62, %s9724_s18  ;;  %v4768_v62 = vld [vmem:[#allocation3 + $0x470] sm:$0xff] }
 0x870   :  { %v15075_v37 = vpop.permute.xlu0 %5009  ;;  %v7127_v1 = vsel %vm3129_vm4, %v7063_v15, %v15059_v53  ;;  %v6936_v53 = vsel %vm100_vm0, %v9719_v4, %v15035_v35 }
 0x871   :  { %6297 = vrot.lane.b32.xlu1 %v4701_v6, %s9728_s29  ;;  %v7000_v46 = vsel %vm2999_vm2, %v6936_v53, %v15043_v56 }
 0x873   :  { %v6794_v47 = vpop.permute.xlu1 %6793  ;;  %6299 = vrot.lane.b32.xlu0 %v4702_v61, %s9728_s29 }
 0x874   :  { %v7381_v10 = vsel %vm3389_vm8, %v7317_v30, %v6794_v47  ;;  %v6030_v60 = vpop.permute.xlu0 %6029  ;;  %v7064_v30 = vsel %vm3064_vm3, %v7000_v46, %v15055_v23 }
 0x875   :  { %5533 = vrot.lane.b32.xlu1 %v4701_v6, %s9725_s0  ;;  %9342 = vmatprep.mubr.msk.f32.mxu1 %vm3465_vm9, %v7381_v10  ;;  %v7191_v22 = vsel %vm3194_vm5, %v7127_v1, %v6030_v60 }
 0x877   :  { %v15079_v25 = vpop.permute.xlu1 %5775  ;;  %5535 = vrot.lane.b32.xlu0 %v4702_v61, %s9725_s0 }
 0x878   :  { %v15091_v28 = vpop.permute.xlu0 %5011  ;;  %v7128_v10 = vsel %vm3129_vm4, %v7064_v30, %v15079_v25 }
 0x879   :  { %6553 = vrot.lane.b32.xlu1 %v4765_v24, %s9729_s1 }
 0x87b   :  { %v6796_v59 = vpop.permute.xlu1 %6795  ;;  %6555 = vrot.lane.b32.xlu0 %v4766_v27, %s9729_s1 }
 0x87c   :  { %v7382_v14 = vsel %vm3389_vm8, %v7318_v12, %v6796_v59  ;;  %v6032_v52 = vpop.permute.xlu0 %6031  ;;  %v9720_v12 = vld [vmem:[#allocation3 + $0x3c7] sm:$0xff] }
 0x87d   :  { %5789 = vrot.lane.b32.xlu1 %v4765_v24, %s9726_s27  ;;  %9343 = vmatmul.mubr.msk.f32.gmra.mxu1 %vm3465_vm9, %v7382_v14  ;;  %v7192_v21 = vsel %vm3194_vm5, %v7128_v10, %v6032_v52  ;;  %v6937_v59 = vsel %vm100_vm0, %v9720_v12, %v15075_v37  ;;  %v6938_v37 = vsel %vm100_vm0, %v14755_v20, %v15091_v28 }
 0x87f   :  { %v15093_v49 = vpop.permute.xlu1 %5265  ;;  %5791 = vrot.lane.b32.xlu0 %v4766_v27, %s9726_s27 }
 0x880   :  { %v15099_v36 = vpop.permute.xlu0 %5267  ;;  %v7001_v14 = vsel %vm2999_vm2, %v6937_v59, %v15093_v49 }
 0x881   :  { %6809 = vrot.lane.b32.xlu1 %v4829_v45, %s9730_s20  ;;  %v7002_v49 = vsel %vm2999_vm2, %v6938_v37, %v15099_v36 }
 0x883   :  { %v6286_v8 = vpop.permute.xlu1 %6285  ;;  %6811 = vrot.lane.b32.xlu0 %v4830_v54, %s9730_s20 }
 0x884   :  { %v6288_v33 = vpop.permute.xlu0 %6287  ;;  %v7255_v43 = vsel %vm3259_vm6, %v7191_v22, %v6286_v8 }
 0x885   :  { %6045 = vrot.lane.b32.xlu1 %v4829_v45, %s9727_s28  ;;  %v7256_v16 = vsel %vm3259_vm6, %v7192_v21, %v6288_v33 }
 0x887   :  { %v5522_v42 = vpop.permute.xlu1 %5521  ;;  %6301 = vrot.lane.b32.xlu0 %v4703_v58, %s9728_s29 }
 0x888   :  { %v5524_v17 = vpop.permute.xlu0 %5523  ;;  %v7065_v45 = vsel %vm3064_vm3, %v7001_v14, %v5522_v42 }
 0x889   :  { %6047 = vrot.lane.b32.xlu1 %v4830_v54, %s9727_s28  ;;  %v7066_v41 = vsel %vm3064_vm3, %v7002_v49, %v5524_v17 }
 0x88b   :  { %v6542_v3 = vpop.permute.xlu1 %6541  ;;  %6557 = vrot.lane.b32.xlu0 %v4767_v57, %s9729_s1 }
 0x88c   :  { %v6544_v13 = vpop.permute.xlu0 %6543  ;;  %v7319_v2 = vsel %vm3324_vm7, %v7255_v43, %v6542_v3 }
 0x88d   :  { %6303 = vrot.lane.b32.xlu1 %v4704_v18, %s9728_s29  ;;  %v7320_v39 = vsel %vm3324_vm7, %v7256_v16, %v6544_v13 }
 0x88f   :  { %v5778_v31 = vpop.permute.xlu1 %5777  ;;  %6813 = vrot.lane.b32.xlu0 %v4831_v32, %s9730_s20 }
 0x890   :  { %v7129_v8 = vsel %vm3129_vm4, %v7065_v45, %v5778_v31 }
 0x891   :  { %6559 = vrot.lane.b32.xlu1 %v4768_v62, %s9729_s1  ;;  %v5014_v48 = vpop.permute.xlu0 %5013 }
 0x893   :  { %v6798_v6 = vpop.permute.xlu1 %6797 }
 0x894   :  { %v7383_v7 = vsel %vm3389_vm8, %v7319_v2, %v6798_v6  ;;  %v6939_v6 = vsel %vm100_vm0, %v14870_v55, %v5014_v48 }
 0x895   :  { %6815 = vrot.lane.b32.xlu1 %v4832_v34, %s9730_s20  ;;  %9345 = vmatprep.mubr.msk.f32.mxu1 %vm3465_vm9, %v7383_v7  ;;  %v6034_v35 = vpop.permute.xlu0 %6033 }
 0x896   :  { %v7193_v54 = vsel %vm3194_vm5, %v7129_v8, %v6034_v35 }
 0x897   :  { %v5780_v47 = vpop.permute.xlu1 %5779 }
 0x898   :  { %v7130_v5 = vsel %vm3129_vm4, %v7066_v41, %v5780_v47 }
 0x899   :  { %v5016_v56 = vpop.permute.xlu0 %5015 }
 0x89a   :  { %v6940_v55 = vsel %vm100_vm0, %v14895_v19, %v5016_v56 }
 0x89b   :  { %v6800_v26 = vpop.permute.xlu1 %6799 }
 0x89c   :  { %v7384_v61 = vsel %vm3389_vm8, %v7320_v39, %v6800_v26 }
 0x89d   :  { %9346 = vmatmul.mubr.msk.f32.gmra.mxu1 %vm3465_vm9, %v7384_v61  ;;  %v6036_v24 = vpop.permute.xlu0 %6035 }
 0x89e   :  { %v7194_v62 = vsel %vm3194_vm5, %v7130_v5, %v6036_v24 }
 0x89f   :  { %v5270_v0 = vpop.permute.xlu1 %5269 }
 0x8a0   :  { %v7003_v7 = vsel %vm2999_vm2, %v6939_v6, %v5270_v0 }
 0x8a1   :  { %v5272_v11 = vpop.permute.xlu0 %5271 }
 0x8a2   :  { %v7004_v48 = vsel %vm2999_vm2, %v6940_v55, %v5272_v11 }
 0x8a3   :  { %v6290_v23 = vpop.permute.xlu1 %6289 }
 0x8a4   :  { %v7257_v58 = vsel %vm3259_vm6, %v7193_v54, %v6290_v23 }
 0x8a5   :  { %v6292_v60 = vpop.permute.xlu0 %6291 }
 0x8a6   :  { %v7258_v15 = vsel %vm3259_vm6, %v7194_v62, %v6292_v60 }
 0x8a7   :  { %v5526_v9 = vpop.permute.xlu1 %5525 }
 0x8a8   :  { %v7067_v53 = vsel %vm3064_vm3, %v7003_v7, %v5526_v9 }
 0x8a9   :  { %v5528_v27 = vpop.permute.xlu0 %5527 }
 0x8aa   :  { %v7068_v61 = vsel %vm3064_vm3, %v7004_v48, %v5528_v27 }
 0x8ab   :  { %v6546_v25 = vpop.permute.xlu1 %6545 }
 0x8ac   :  { %v7321_v18 = vsel %vm3324_vm7, %v7257_v58, %v6546_v25 }
 0x8ad   :  { %v6548_v33 = vpop.permute.xlu0 %6547 }
 0x8ae   :  { %v7322_v1 = vsel %vm3324_vm7, %v7258_v15, %v6548_v33 }
 0x8af   :  { %v5782_v52 = vpop.permute.xlu1 %5781 }
 0x8b0   :  { %v7131_v30 = vsel %vm3129_vm4, %v7067_v53, %v5782_v52 }
 0x8b1   :  { %v5018_v42 = vpop.permute.xlu0 %5017 }
 0x8b2   :  { %v6941_v54 = vsel %vm100_vm0, %v14940_v38, %v5018_v42 }
 0x8b3   :  { %v6802_v3 = vpop.permute.xlu1 %6801 }
 0x8b4   :  { %v7385_v51 = vsel %vm3389_vm8, %v7321_v18, %v6802_v3 }
 0x8b5   :  { %9348 = vmatprep.mubr.msk.f32.mxu1 %vm3465_vm9, %v7385_v51  ;;  %v6038_v31 = vpop.permute.xlu0 %6037 }
 0x8b6   :  { %v7195_v47 = vsel %vm3194_vm5, %v7131_v30, %v6038_v31 }
 0x8b7   :  { %v5784_v57 = vpop.permute.xlu1 %5783 }
 0x8b8   :  { %v7132_v24 = vsel %vm3129_vm4, %v7068_v61, %v5784_v57 }
 0x8b9   :  { %v5020_v28 = vpop.permute.xlu0 %5019 }
 0x8ba   :  { %v6942_v62 = vsel %vm100_vm0, %v14960_v29, %v5020_v28 }
 0x8bb   :  { %v6804_v22 = vpop.permute.xlu1 %6803 }
 0x8bc   :  { %v7386_v20 = vsel %vm3389_vm8, %v7322_v1, %v6804_v22 }
 0x8bd   :  { %9349 = vmatmul.mubr.msk.f32.gmra.mxu1 %vm3465_vm9, %v7386_v20  ;;  %v6040_v32 = vpop.permute.xlu0 %6039 }
 0x8be   :  { %v7196_v23 = vsel %vm3194_vm5, %v7132_v24, %v6040_v32 }
 0x8bf   :  { %v5274_v36 = vpop.permute.xlu1 %5273 }
 0x8c0   :  { %v7005_v58 = vsel %vm2999_vm2, %v6941_v54, %v5274_v36 }
 0x8c1   :  { %v5276_v17 = vpop.permute.xlu0 %5275 }
 0x8c2   :  { %v7006_v42 = vsel %vm2999_vm2, %v6942_v62, %v5276_v17 }
 0x8c3   :  { %v6294_v43 = vpop.permute.xlu1 %6293 }
 0x8c4   :  { %v7259_v10 = vsel %vm3259_vm6, %v7195_v47, %v6294_v43 }
 0x8c5   :  { %v6296_v34 = vpop.permute.xlu0 %6295 }
 0x8c6   :  { %v7260_v9 = vsel %vm3259_vm6, %v7196_v23, %v6296_v34 }
 0x8c7   :  { %v5530_v13 = vpop.permute.xlu1 %5529 }
 0x8c8   :  { %v7069_v18 = vsel %vm3064_vm3, %v7005_v58, %v5530_v13 }
 0x8c9   :  { %v5532_v4 = vpop.permute.xlu0 %5531 }
 0x8ca   :  { %v7070_v15 = vsel %vm3064_vm3, %v7006_v42, %v5532_v4 }
 0x8cb   :  { %v6550_v2 = vpop.permute.xlu1 %6549 }
 0x8cc   :  { %v7323_v16 = vsel %vm3324_vm7, %v7259_v10, %v6550_v2 }
 0x8cd   :  { %v6552_v21 = vpop.permute.xlu0 %6551 }
 0x8ce   :  { %v7324_v25 = vsel %vm3324_vm7, %v7260_v9, %v6552_v21 }
 0x8cf   :  { %v5786_v46 = vpop.permute.xlu1 %5785 }
 0x8d0   :  { %v7133_v51 = vsel %vm3129_vm4, %v7069_v18, %v5786_v46 }
 0x8d1   :  { %v5022_v26 = vpop.permute.xlu0 %5021 }
 0x8d2   :  { %v6943_v34 = vsel %vm100_vm0, %v15001_v44, %v5022_v26 }
 0x8d3   :  { %v6806_v35 = vpop.permute.xlu1 %6805 }
 0x8d4   :  { %v7387_v39 = vsel %vm3389_vm8, %v7323_v16, %v6806_v35 }
 0x8d5   :  { %9351 = vmatprep.mubr.msk.f32.mxu1 %vm3465_vm9, %v7387_v39  ;;  %v6042_v60 = vpop.permute.xlu0 %6041 }
 0x8d6   :  { %v7197_v37 = vsel %vm3194_vm5, %v7133_v51, %v6042_v60 }
 0x8d7   :  { %v5788_v0 = vpop.permute.xlu1 %5787 }
 0x8d8   :  { %v7134_v1 = vsel %vm3129_vm4, %v7070_v15, %v5788_v0  ;;  %v9314_v0 = vpop.f32.mrf.mxu1 }
 0x8d9   :  { %v5024_v56 = vpop.permute.xlu0 %5023 }
 0x8da   :  { %v6944_v2 = vsel %vm100_vm0, %v15021_v40, %v5024_v56  ;;  %v7825_v24 = vpop.f32.mrf.mxu1 }
 0x8db   :  { %v6808_v12 = vpop.permute.xlu1 %6807 }
 0x8dc   :  { %v7388_v19 = vsel %vm3389_vm8, %v7324_v25, %v6808_v12  ;;  %v9317_v23 = vpop.f32.mrf.mxu1 }
 0x8dd   :  { %9352 = vmatmul.mubr.msk.f32.gmra.mxu1 %vm3465_vm9, %v7388_v19  ;;  %v6044_v59 = vpop.permute.xlu0 %6043 }
 0x8de   :  { %v7198_v20 = vsel %vm3194_vm5, %v7134_v1, %v6044_v59  ;;  %v7835_v9 = vpop.f32.mrf.mxu1 }
 0x8df   :  { %v5278_v11 = vpop.permute.xlu1 %5277 }
 0x8e0   :  { %v7007_v6 = vsel %vm2999_vm2, %v6943_v34, %v5278_v11  ;;  %v9320_v60 = vpop.f32.mrf.mxu1 }
 0x8e1   :  { %v5280_v27 = vpop.permute.xlu0 %5279 }
 0x8e2   :  { %v7008_v7 = vsel %vm2999_vm2, %v6944_v2, %v5280_v27  ;;  %v15218_v25 = vpop.f32.mrf.mxu1 }
 0x8e3   :  { %v6298_v14 = vpop.permute.xlu1 %6297 }
 0x8e4   :  { %v7261_v49 = vsel %vm3259_vm6, %v7197_v37, %v6298_v14  ;;  %v15220_v12 = vpop.f32.mrf.mxu1  ;;  %v8434_v14 = vlaneseq  ;;  %v9731_v37 = vmov 0.00390625  }
 0x8e5   :  { %v6300_v52 = vpop.permute.xlu0 %6299 }
 0x8e6   :  { %v7262_v36 = vsel %vm3259_vm6, %v7198_v20, %v6300_v52  ;;  %v15222_v19 = vpop.f32.mrf.mxu1  ;;  %v15228_v27 = vshrl.u32 %v8434_v14, 7  ;;  %v8435_v52 = vand.u32 127, %v8434_v14 }
 0x8e7   :  { %v5534_v45 = vpop.permute.xlu1 %5533 }
 0x8e8   :  { %v7071_v4 = vsel %vm3064_vm3, %v7007_v6, %v5534_v45  ;;  %v15224_v56 = vpop.f32.mrf.mxu1  ;;  %v8436_v58 = vadd.s32 128, %v8435_v52  ;;  %v8438_v18 = vadd.s32 384, %v8435_v52 }
 0x8e9   :  { %v5536_v33 = vpop.permute.xlu0 %5535 }
 0x8ea   :  { %v7072_v46 = vsel %vm3064_vm3, %v7008_v7, %v5536_v33  ;;  %v15226_v11 = vpop.f32.mrf.mxu1 }
 0x8eb   :  { %v6554_v8 = vpop.permute.xlu1 %6553 }
 0x8ec   :  { %v7325_v57 = vsel %vm3324_vm7, %v7261_v49, %v6554_v8  ;;  %v9329_v59 = vpop.f32.mrf.mxu1  ;;  %v8441_v8 = vmul.u32 256, %v15228_v27 }
 0x8ed   :  { %v6556_v41 = vpop.permute.xlu0 %6555 }
 0x8ee   :  { %v7326_v32 = vsel %vm3324_vm7, %v7262_v36, %v6556_v41  ;;  %v7875_v45 = vpop.f32.mrf.mxu1  ;;  %v8446_v33 = vadd.s32 256, %v8441_v8  ;;  %vm8443_vm10 = vcmp.ge.s32.totalorder %v8436_v58, %v8441_v8  ;;  %vm8442_vm13 = vcmp.ge.s32.totalorder %v8435_v52, %v8441_v8  ;;  %v8605_v41 = vld [vmem:[%s15421_s6] sm:$0xff] }
 0x8ef   :  { %v5790_v3 = vpop.permute.xlu1 %5789  ;;  %vm8445_vm15 = vcmp.ge.s32.totalorder %v8438_v18, %v8441_v8 }
 0x8f0   :  { %v7135_v30 = vsel %vm3129_vm4, %v7071_v4, %v5790_v3  ;;  %v9332_v54 = vpop.f32.mrf.mxu1  ;;  %vm8448_vm11 = vcmp.lt.s32.totalorder %v8436_v58, %v8446_v33  ;;  %vm8447_vm14 = vcmp.lt.s32.totalorder %v8435_v52, %v8446_v33  ;;  %v8437_v3 = vadd.s32 256, %v8435_v52 }
 0x8f1   :  { %v5792_v31 = vpop.permute.xlu0 %5791  ;;  %vm8452_vm12 = vmand %vm8443_vm10, %vm8448_vm11  ;;  %vm8450_vm0 = vcmp.lt.s32.totalorder %v8438_v18, %v8446_v33 }
 0x8f2   :  { %v7136_v10 = vsel %vm3129_vm4, %v7072_v46, %v5792_v31  ;;  %v7885_v51 = vpop.f32.mrf.mxu1  ;;  %8933 = vmatprep.mubr.msk.f32.mxu0 %vm8452_vm12, %v9731_v37  ;;  %vm8451_vm1 = vmand %vm8442_vm13, %vm8447_vm14  ;;  %vm8444_vm3 = vcmp.ge.s32.totalorder %v8437_v3, %v8441_v8  ;;  %vm8449_vm4 = vcmp.lt.s32.totalorder %v8437_v3, %v8446_v33 }
 0x8f3   :  { %v6810_v5 = vpop.permute.xlu1 %6809  ;;  %vm8454_vm2 = vmand %vm8445_vm15, %vm8450_vm0  ;;  %8934 = vmatmul.mubr.msk.f32.vlgmr.msra.gmra.mxu0 %vm8451_vm1, %v9731_v37 }
 0x8f4   :  { %v7389_v38 = vsel %vm3389_vm8, %v7325_v57, %v6810_v5  ;;  %v9335_v49 = vpop.f32.mrf.mxu1 }
 0x8f5   :  { %9354 = vmatprep.mubr.msk.f32.mxu1 %vm3465_vm9, %v7389_v38  ;;  %v6812_v43 = vpop.permute.xlu0 %6811 }
 0x8f6   :  { %v7390_v29 = vsel %vm3389_vm8, %v7326_v32, %v6812_v43  ;;  %v7895_v57 = vpop.f32.mrf.mxu1  ;;  %v15259_v32 = vld [vmem:[%s15419_s4] ss:$0 sm:$0xff] }
 0x8f7   :  { %v6046_v22 = vpop.permute.xlu1 %6045  ;;  %9355 = vmatmul.mubr.msk.f32.gmra.mxu1 %vm3465_vm9, %v7390_v29  ;;  %v7901_v43 = vadd.f32 %v15259_v32, %v9335_v49  ;;  %v7836_v2 = vadd.f32 %v15259_v32, %v7835_v9  ;;  %v7851_v4 = vadd.f32 %v15259_v32, %v9320_v60  ;;  %v7881_v46 = vadd.f32 %v15259_v32, %v9329_v59 }
 0x8f8   :  { %v7199_v21 = vsel %vm3194_vm5, %v7135_v30, %v6046_v22  ;;  %v7886_v9 = vadd.f32 %v15259_v32, %v7885_v51 }
 0x8f9   :  { %v6302_v17 = vpop.permute.xlu0 %6301  ;;  %v8031_v34 = vmax.f32 %v7901_v43, 0.0 }
 0x8fa   :  { %v7263_v40 = vsel %vm3259_vm6, %v7199_v21, %v6302_v17  ;;  %v7826_v17 = vadd.f32 %v15259_v32, %v7825_v24  ;;  %v8028_v18 = vmax.f32 %v7886_v9, 0.0 }
 0x8fb   :  { %v6048_v28 = vpop.permute.xlu1 %6047  ;;  %v8096_v21 = vmax.f32 %v8031_v34, 1e-06  ;;  %v7871_v34 = vadd.f32 %v15259_v32, %v15224_v56 }
 0x8fc   :  { %v7200_v44 = vsel %vm3194_vm5, %v7136_v10, %v6048_v28  ;;  %vm15234_vm5 = vmand %vm8444_vm3, %vm8449_vm4  ;;  %v7831_v28 = vadd.f32 %v15259_v32, %v9314_v0  ;;  %v7876_v10 = vadd.f32 %v15259_v32, %v7875_v45 }
 0x8fd   :  { %v6558_v53 = vpop.permute.xlu0 %6557  ;;  %v15238_v5 = vpop.f32.mrf.mxu1  ;;  %9510 = vlog2.f32 %v8096_v21 }
 0x8fe   :  { %v7327_v35 = vsel %vm3324_vm7, %v7263_v40, %v6558_v53  ;;  %v8017_v7 = vmax.f32 %v7831_v28, 0.0  ;;  %v8016_v53 = vmax.f32 %v7826_v17, 0.0  ;;  %v7891_v40 = vadd.f32 %v15259_v32, %v9332_v54 }
 0x8ff   :  { %v6304_v13 = vpop.permute.xlu1 %6303  ;;  %v15240_v62 = vpop.f32.mrf.mxu1 }
 0x900   :  { %v7264_v16 = vsel %vm3259_vm6, %v7200_v44, %v6304_v13  ;;  %v7841_v13 = vadd.f32 %v15259_v32, %v9317_v23  ;;  %v8018_v44 = vmax.f32 %v7836_v2, 0.0  ;;  %v8026_v23 = vmax.f32 %v7876_v10, 0.0 }
 0x901   :  { %v6814_v39 = vpop.permute.xlu0 %6813  ;;  %v8029_v59 = vmax.f32 %v7891_v40, 0.0  ;;  %v8093_v2 = vmax.f32 %v8028_v18, 1e-06  ;;  %vm9732_vm6 = vmmov 0  }
 0x902   :  { %v7391_v48 = vsel %vm3389_vm8, %v7327_v35, %v6814_v39  ;;  %v8021_v35 = vmax.f32 %v7851_v4, 0.0  ;;  %v7896_v39 = vadd.f32 %v15259_v32, %v7895_v57  ;;  %v8083_v60 = vmax.f32 %v8018_v44, 1e-06  ;;  %9368 = vmatprep.mubr.msk.f32.mxu0 %vm9732_vm6, %v16020_v50 }
 0x903   :  { %v6560_v47 = vpop.permute.xlu1 %6559  ;;  %9357 = vmatprep.mubr.msk.f32.mxu1 %vm3465_vm9, %v7391_v48  ;;  %v8081_v48 = vmax.f32 %v8016_v53, 1e-06  ;;  %v8091_v33 = vmax.f32 %v8026_v23, 1e-06  ;;  %v8094_v51 = vmax.f32 %v8029_v59, 1e-06 }
 0x904   :  { %v7328_v55 = vsel %vm3324_vm7, %v7264_v16, %v6560_v47  ;;  %v8019_v47 = vmax.f32 %v7841_v13, 0.0  ;;  %v8082_v16 = vmax.f32 %v8017_v7, 1e-06  ;;  %v8086_v45 = vmax.f32 %v8021_v35, 1e-06 }
 0x905   :  { %v8030_v52 = vmax.f32 %v7896_v39, 0.0  ;;  %v8025_v44 = vmax.f32 %v7871_v34, 0.0  ;;  %vm8616_vm7 = vcmask 261120  }
 0x906   :  { %v8084_v24 = vmax.f32 %v8019_v47, 1e-06  ;;  %9512 = vlog2.f32 %v8082_v16 }
 0x907   :  { %v6816_v26 = vpop.permute.xlu1 %6815  ;;  %9514 = vlog2.f32 %v8081_v48  ;;  %v8095_v57 = vmax.f32 %v8030_v52, 1e-06  ;;  %v8090_v9 = vmax.f32 %v8025_v44, 1e-06 }
 0x908   :  { %v7392_v61 = vsel %vm3389_vm8, %v7328_v55, %v6816_v26  ;;  %v7846_v26 = vadd.f32 %v15259_v32, %v15218_v25  ;;  %9516 = vlog2.f32 %v8084_v24 }
 0x909   :  { %9358 = vmatmul.mubr.msk.f32.gmra.mxu1 %vm3465_vm9, %v7392_v61  ;;  %v8027_v61 = vmax.f32 %v7881_v46, 0.0  ;;  %9518 = vlog2.f32 %v8083_v60  ;;  %v7866_v46 = vadd.f32 %v15259_v32, %v15226_v11 }
 0x90a   :  { %8935 = vmatprep.mubr.msk.f32.mxu1 %vm8454_vm2, %v9731_v37  ;;  %v8020_v54 = vmax.f32 %v7846_v26, 0.0  ;;  %9520 = vlog2.f32 %v8086_v45  ;;  %v9511_v16 = vpop.eup %9510 }
 0x90b   :  { %v8092_v25 = vmax.f32 %v8027_v61, 1e-06  ;;  %v8024_v48 = vmax.f32 %v7866_v46, 0.0  ;;  %v8208_v60 = vmul.f32 0.6931472, %v9511_v16 }
 0x90c   :  { %v8085_v17 = vmax.f32 %v8020_v54, 1e-06 }
 0x90d   :  { %9522 = vlog2.f32 %v8092_v25 }
 0x90e   :  { %9524 = vlog2.f32 %v8091_v33 }
 0x90f   :  { %9526 = vlog2.f32 %v8094_v51 }
 0x910   :  { %9528 = vlog2.f32 %v8095_v57 }
 0x913   :  { %v15295_v26 = vpop.eup %9512 }
 0x914   :  { %v15299_v24 = vpop.eup %9514 }
 0x915   :  { %v15301_v59 = vpop.eup %9516 }
 0x916   :  { %v15305_v52 = vpop.eup %9518 }
 0x917   :  { %v15309_v25 = vpop.eup %9520 }
 0x91a   :  { %v9523_v18 = vpop.eup %9522 }
 0x91d   :  { %v15242_v38 = vpop.f32.mrf.mxu1 }
 0x91e   :  { %v7921_v54 = vadd.f32 %v15259_v32, %v15242_v38 }
 0x91f   :  { %v15244_v42 = vpop.f32.mrf.mxu1 }
 0x920   :  { %v7916_v51 = vadd.f32 %v15259_v32, %v15244_v42  ;;  %v7906_v42 = vadd.f32 %v15259_v32, %v15240_v62 }
 0x93d   :  { %v15246_v15 = vpop.f32.mrf.mxu1 }
 0x93e   :  { %v7931_v61 = vadd.f32 %v15259_v32, %v15246_v15 }
 0x93f   :  { %v15248_v31 = vpop.f32.mrf.mxu1 }
 0x95d   :  { %v15250_v1 = vpop.f32.mrf.mxu1 }
 0x95e   :  { %v7941_v56 = vadd.f32 %v15259_v32, %v15250_v1 }
 0x95f   :  { %v15252_v22 = vpop.f32.mrf.mxu1 }
 0x97d   :  { %v9350_v20 = vpop.f32.mrf.mxu1 }
 0x97e   :  { %v7951_v43 = vadd.f32 %v15259_v32, %v9350_v20 }
 0x97f   :  { %v15254_v36 = vpop.f32.mrf.mxu1 }
 0x980   :  { %v7946_v4 = vadd.f32 %v15259_v32, %v15254_v36  ;;  %v7936_v36 = vadd.f32 %v15259_v32, %v15252_v22 }
 0x982   :  { %v8040_v35 = vmax.f32 %v7946_v4, 0.0 }
 0x984   :  { %v8105_v45 = vmax.f32 %v8040_v35, 1e-06 }
 0x99d   :  { %v9353_v29 = vpop.f32.mrf.mxu1 }
 0x99e   :  { %v7961_v8 = vadd.f32 %v15259_v32, %v9353_v29  ;;  %v7861_v29 = vadd.f32 %v15259_v32, %v15220_v12  ;;  %v8041_v12 = vmax.f32 %v7951_v43, 0.0 }
 0x99f   :  { %v7955_v6 = vpop.f32.mrf.mxu1 }
 0x9a0   :  { %v7956_v3 = vadd.f32 %v15259_v32, %v7955_v6  ;;  %v8043_v28 = vmax.f32 %v7961_v8, 0.0  ;;  %v8106_v1 = vmax.f32 %v8041_v12, 1e-06  ;;  %v8023_v23 = vmax.f32 %v7861_v29, 0.0 }
 0x9a1   :  { %v8089_v8 = vmax.f32 %v8024_v48, 1e-06  ;;  %v8035_v29 = vmax.f32 %v7921_v54, 0.0 }
 0x9a2   :  { %v8042_v6 = vmax.f32 %v7956_v3, 0.0  ;;  %v8088_v3 = vmax.f32 %v8023_v23, 1e-06 }
 0x9a4   :  { %v8107_v40 = vmax.f32 %v8042_v6, 1e-06 }
 0x9b7   :  { %v9356_v30 = vpop.f32.mrf.mxu1 }
 0x9b8   :  { %v7971_v0 = vadd.f32 %v15259_v32, %v9356_v30  ;;  %v8108_v30 = vmax.f32 %v8043_v28, 1e-06 }
 0x9b9   :  { %v7965_v55 = vpop.f32.mrf.mxu1 }
 0x9ba   :  { %v7966_v14 = vadd.f32 %v15259_v32, %v7965_v55  ;;  %v8045_v58 = vmax.f32 %v7971_v0, 0.0  ;;  %v7856_v55 = vadd.f32 %v15259_v32, %v15222_v19  ;;  %v8039_v0 = vmax.f32 %v7941_v56, 0.0 }
 0x9bb   :  { %v7926_v19 = vadd.f32 %v15259_v32, %v15248_v31  ;;  %v8289_v31 = vmul.f32 %v14649_v63, %v8208_v60 }
 0x9bc   :  { %v8044_v49 = vmax.f32 %v7966_v14, 0.0  ;;  %v8110_v13 = vmax.f32 %v8045_v58, 1e-06  ;;  %v8038_v14 = vmax.f32 %v7936_v36, 0.0  ;;  %v8022_v15 = vmax.f32 %v7856_v55, 0.0 }
 0x9bd   :  { %v8037_v58 = vmax.f32 %v7931_v61, 0.0  ;;  %v8104_v33 = vmax.f32 %v8039_v0, 1e-06  ;;  %v8036_v57 = vmax.f32 %v7926_v19, 0.0  ;;  %v8400_v6 = vmul.f32 1.442695, %v8289_v31 }
 0x9be   :  { %v8109_v53 = vmax.f32 %v8044_v49, 1e-06  ;;  %9530 = vlog2.f32 %v8110_v13  ;;  %v9525_v49 = vpop.eup %9524  ;;  %v8103_v43 = vmax.f32 %v8038_v14, 1e-06  ;;  %v8087_v38 = vmax.f32 %v8022_v15, 1e-06 }
 0x9bf   :  { %9532 = vlog2.f32 %v8093_v2  ;;  %v9527_v28 = vpop.eup %9526  ;;  %v8102_v34 = vmax.f32 %v8037_v58, 1e-06  ;;  %v8198_v23 = vmul.f32 0.6931472, %v9525_v49 }
 0x9c0   :  { %9534 = vlog2.f32 %v8109_v53  ;;  %v9529_v13 = vpop.eup %9528  ;;  %v8101_v53 = vmax.f32 %v8036_v57, 1e-06 }
 0x9c1   :  { %9536 = vlog2.f32 %v8108_v30  ;;  %v8206_v46 = vmul.f32 0.6931472, %v9529_v13  ;;  %v8100_v30 = vmax.f32 %v8035_v29, 1e-06 }
 0x9c9   :  { %v9359_v7 = vpop.f32.mrf.mxu1 }
 0x9ca   :  { %v7981_v20 = vadd.f32 %v15259_v32, %v9359_v7  ;;  %v8034_v7 = vmax.f32 %v7916_v51, 0.0 }
 0x9cb   :  { %v7975_v47 = vpop.f32.mrf.mxu1  ;;  %v9531_v2 = vpop.eup %9530 }
 0x9cc   :  { %v8047_v10 = vmax.f32 %v7981_v20, 0.0  ;;  %v7976_v21 = vadd.f32 %v15259_v32, %v7975_v47  ;;  %v9533_v4 = vpop.eup %9532  ;;  %v8236_v47 = vmul.f32 0.6931472, %v9531_v2  ;;  %v8099_v44 = vmax.f32 %v8034_v7, 1e-06 }
 0x9cd   :  { %v9535_v20 = vpop.eup %9534  ;;  %v8202_v35 = vmul.f32 0.6931472, %v9533_v4 }
 0x9ce   :  { %v8112_v11 = vmax.f32 %v8047_v10, 1e-06  ;;  %v8046_v39 = vmax.f32 %v7976_v21, 0.0  ;;  %v8204_v10 = vmul.f32 0.6931472, %v9527_v28  ;;  %v8032_v21 = vmax.f32 %v7906_v42, 0.0 }
 0x9cf   :  { %v8234_v62 = vmul.f32 0.6931472, %v9535_v20  ;;  %v8286_v58 = vmul.f32 %v14649_v63, %v8202_v35  ;;  %v8284_v42 = vmul.f32 %v14649_v63, %v8198_v23 }
 0x9d0   :  { %9538 = vlog2.f32 %v8112_v11  ;;  %v8111_v22 = vmax.f32 %v8046_v39, 1e-06  ;;  %v8288_v11 = vmul.f32 %v14649_v63, %v8206_v46  ;;  %v8097_v60 = vmax.f32 %v8032_v21, 1e-06 }
 0x9d1   :  { %9540 = vlog2.f32 %v8107_v40  ;;  %v8200_v40 = vmul.f32 0.6931472, %v9523_v18  ;;  %v8394_v7 = vmul.f32 1.442695, %v8286_v58  ;;  %v8184_v58 = vmul.f32 0.6931472, %v15301_v59 }
 0x9d2   :  { %9542 = vlog2.f32 %v8111_v22 }
 0x9d3   :  { %9544 = vlog2.f32 %v8106_v1  ;;  %v8303_v1 = vmul.f32 %v14649_v63, %v8236_v47  ;;  %v8285_v28 = vmul.f32 %v14649_v63, %v8200_v40 }
 0x9d4   :  { %9546 = vlog2.f32 %v8085_v17  ;;  %v7911_v17 = vadd.f32 %v15259_v32, %v15238_v5  ;;  %v9537_v5 = vpop.eup %9536 }
 0x9d5   :  { %9548 = vlog2.f32 %v8090_v9  ;;  %v8232_v48 = vmul.f32 0.6931472, %v9537_v5  ;;  %v8287_v9 = vmul.f32 %v14649_v63, %v8204_v10  ;;  %v8428_v51 = vmul.f32 1.442695, %v8303_v1 }
 0x9d6   :  { %9550 = vlog2.f32 %v8105_v45  ;;  %v8033_v12 = vmax.f32 %v7911_v17, 0.0  ;;  %v8302_v45 = vmul.f32 %v14649_v63, %v8234_v62  ;;  %v8392_v47 = vmul.f32 1.442695, %v8285_v28 }
 0x9d7   :  { %9552 = vlog2.f32 %v8089_v8  ;;  %v8301_v31 = vmul.f32 %v14649_v63, %v8232_v48 }
 0x9d8   :  { %9554 = vlog2.f32 %v8104_v33  ;;  %v8098_v39 = vmax.f32 %v8033_v12, 1e-06  ;;  %v8398_v33 = vmul.f32 1.442695, %v8288_v11 }
 0x9d9   :  { %9556 = vlog2.f32 %v8088_v3  ;;  %v8424_v46 = vmul.f32 1.442695, %v8301_v31 }
 0x9da   :  { %9558 = vlog2.f32 %v8103_v43 }
 0x9db   :  { %9560 = vlog2.f32 %v8087_v38  ;;  %v8396_v38 = vmul.f32 1.442695, %v8287_v9 }
 0x9dc   :  { %9562 = vlog2.f32 %v8102_v34  ;;  %v8426_v34 = vmul.f32 1.442695, %v8302_v45 }
 0x9dd   :  { %v9539_v56 = vpop.eup %9538  ;;  %9564 = vpow2.f32 %v8400_v6 }
 0x9de   :  { %v9541_v36 = vpop.eup %9540  ;;  %9566 = vlog2.f32 %v8101_v53  ;;  %v8240_v32 = vmul.f32 0.6931472, %v9539_v56 }
 0x9df   :  { %v9543_v16 = vpop.eup %9542  ;;  %9568 = vlog2.f32 %v8100_v30  ;;  %v8230_v14 = vmul.f32 0.6931472, %v9541_v36 }
 0x9e0   :  { %v9545_v55 = vpop.eup %9544  ;;  %v8305_v61 = vmul.f32 %v14649_v63, %v8240_v32  ;;  %v8238_v0 = vmul.f32 0.6931472, %v9543_v16  ;;  %9570 = vlog2.f32 %v8099_v44  ;;  %v8390_v32 = vmul.f32 1.442695, %v8284_v42 }
 0x9e1   :  { %v15321_v22 = vpop.eup %9546  ;;  %9572 = vlog2.f32 %v8098_v39  ;;  %v8228_v18 = vmul.f32 0.6931472, %v9545_v55  ;;  %v8300_v13 = vmul.f32 %v14649_v63, %v8230_v14  ;;  %v8188_v55 = vmul.f32 0.6931472, %v15309_v25 }
 0x9e2   :  { %v9549_v19 = vpop.eup %9548  ;;  %v8432_v15 = vmul.f32 1.442695, %v8305_v61  ;;  %v8304_v8 = vmul.f32 %v14649_v63, %v8238_v0 }
 0x9e3   :  { %v9551_v54 = vpop.eup %9550  ;;  %v8196_v43 = vmul.f32 0.6931472, %v9549_v19  ;;  %v8299_v20 = vmul.f32 %v14649_v63, %v8228_v18  ;;  %v8422_v44 = vmul.f32 1.442695, %v8300_v13 }
 0x9e4   :  { %v9553_v3 = vpop.eup %9552  ;;  %9574 = vpow2.f32 %v8432_v15  ;;  %v8430_v49 = vmul.f32 1.442695, %v8304_v8  ;;  %v8226_v29 = vmul.f32 0.6931472, %v9551_v54 }
 0x9e5   :  { %v9555_v57 = vpop.eup %9554  ;;  %9576 = vlog2.f32 %v8097_v60  ;;  %v8194_v6 = vmul.f32 0.6931472, %v9553_v3  ;;  %v8283_v5 = vmul.f32 %v14649_v63, %v8196_v43  ;;  %v8420_v39 = vmul.f32 1.442695, %v8299_v20 }
 0x9e6   :  { %v9557_v17 = vpop.eup %9556  ;;  %9578 = vpow2.f32 %v8430_v49  ;;  %v8224_v53 = vmul.f32 0.6931472, %v9555_v57  ;;  %v8298_v21 = vmul.f32 %v14649_v63, %v8226_v29  ;;  %v8186_v60 = vmul.f32 0.6931472, %v15321_v22 }
 0x9e7   :  { %v9559_v2 = vpop.eup %9558  ;;  %9580 = vpow2.f32 %v8398_v33  ;;  %v8192_v30 = vmul.f32 0.6931472, %v9557_v17  ;;  %v8282_v62 = vmul.f32 %v14649_v63, %v8194_v6  ;;  %v8388_v1 = vmul.f32 1.442695, %v8283_v5 }
 0x9e8   :  { %v9561_v4 = vpop.eup %9560  ;;  %9582 = vpow2.f32 %v8428_v51  ;;  %v8222_v10 = vmul.f32 0.6931472, %v9559_v2  ;;  %v8297_v11 = vmul.f32 %v14649_v63, %v8224_v53  ;;  %v8418_v9 = vmul.f32 1.442695, %v8298_v21 }
 0x9e9   :  { %v9563_v12 = vpop.eup %9562  ;;  %9584 = vpow2.f32 %v8396_v38  ;;  %v8190_v40 = vmul.f32 0.6931472, %v9561_v4  ;;  %v8281_v48 = vmul.f32 %v14649_v63, %v8192_v30  ;;  %v8386_v14 = vmul.f32 1.442695, %v8282_v62 }
 0x9ea   :  { %v9565_v56 = vpop.eup %9564  ;;  %9586 = vpow2.f32 %v8426_v34  ;;  %v8220_v35 = vmul.f32 0.6931472, %v9563_v12  ;;  %v8296_v23 = vmul.f32 %v14649_v63, %v8222_v10  ;;  %v8416_v8 = vmul.f32 1.442695, %v8297_v11 }
 0x9eb   :  { %v9567_v36 = vpop.eup %9566  ;;  %9588 = vpow2.f32 %v8394_v7  ;;  %v8280_v19 = vmul.f32 %v14649_v63, %v8190_v40  ;;  %v8279_v33 = vmul.f32 %v14649_v63, %v8188_v55  ;;  %v8384_v18 = vmul.f32 1.442695, %v8281_v48 }
 0x9ec   :  { %v9569_v16 = vpop.eup %9568  ;;  %9590 = vpow2.f32 %v8424_v46  ;;  %v8218_v0 = vmul.f32 0.6931472, %v9567_v36  ;;  %v8295_v25 = vmul.f32 %v14649_v63, %v8220_v35  ;;  %v8414_v51 = vmul.f32 1.442695, %v8296_v23 }
 0x9ed   :  { %9592 = vpow2.f32 %v8392_v47  ;;  %v9571_v61 = vpop.eup %9570  ;;  %v8216_v15 = vmul.f32 0.6931472, %v9569_v16  ;;  %v8182_v57 = vmul.f32 0.6931472, %v15305_v52  ;;  %v8278_v43 = vmul.f32 %v14649_v63, %v8186_v60 }
 0x9ee   :  { %9594 = vpow2.f32 %v8422_v44  ;;  %v9573_v45 = vpop.eup %9572  ;;  %v8214_v31 = vmul.f32 0.6931472, %v9571_v61  ;;  %v8294_v22 = vmul.f32 %v14649_v63, %v8218_v0  ;;  %v8382_v28 = vmul.f32 1.442695, %v8280_v19 }
 0x9ef   :  { %9596 = vpow2.f32 %v8390_v32  ;;  %v8212_v38 = vmul.f32 0.6931472, %v9573_v45  ;;  %v8293_v17 = vmul.f32 %v14649_v63, %v8216_v15  ;;  %v8412_v29 = vmul.f32 1.442695, %v8295_v25 }
 0x9f0   :  { %9598 = vpow2.f32 %v8420_v39  ;;  %v8180_v34 = vmul.f32 0.6931472, %v15295_v26  ;;  %v8277_v2 = vmul.f32 %v14649_v63, %v8184_v58  ;;  %v8380_v6 = vmul.f32 1.442695, %v8279_v33 }
 0x9f1   :  { %v9575_v54 = vpop.eup %9574  ;;  %9600 = vpow2.f32 %v8388_v1  ;;  %v8292_v7 = vmul.f32 %v14649_v63, %v8214_v31  ;;  %v8410_v4 = vmul.f32 1.442695, %v8294_v22  ;;  %v8178_v20 = vmul.f32 0.6931472, %v15299_v24  ;;  %v8608_v22 = vld [vmem:[%s15421_s6 + $0x18] sm:$0xff] }
 0x9f2   :  { %v9577_v3 = vpop.eup %9576  ;;  %9602 = vpow2.f32 %v8418_v9  ;;  %9112 = vmatprep.subr.mxu1 %v9575_v54  ;;  %v8276_v46 = vmul.f32 %v14649_v63, %v8182_v57  ;;  %v8378_v12 = vmul.f32 1.442695, %v8278_v43  ;;  %v8291_v30 = vmul.f32 %v14649_v63, %v8212_v38  ;;  %9361 = vmatpush3.msra.mxu0 %v8608_v22  ;;  %v8697_v57 = vld [vmem:[%s15422_s8 + $0x30] sm:$0xff]  ;;  %v8696_v43 = vld [vmem:[%s15422_s8 + $0x28] sm:$0xff] }
 0x9f3   :  { %v9579_v49 = vpop.eup %9578  ;;  %9604 = vpow2.f32 %v8386_v14  ;;  %9113 = vmatpush3.msra.mxu1 %v9565_v56  ;;  %v8210_v42 = vmul.f32 0.6931472, %v9577_v3  ;;  %v8408_v5 = vmul.f32 1.442695, %v8293_v17  ;;  %v8275_v56 = vmul.f32 %v14649_v63, %v8180_v34  ;;  %9362 = vmatprep.subr.mxu0 %v16020_v50 }
 0x9f4   :  { %v9581_v59 = vpop.eup %9580  ;;  %9606 = vpow2.f32 %v8416_v8  ;;  %9114 = vmatprep.subr.mxu1 %v9579_v49  ;;  %v8376_v10 = vmul.f32 1.442695, %v8277_v2  ;;  %v8406_v44 = vmul.f32 1.442695, %v8292_v7  ;;  %v8274_v40 = vmul.f32 %v14649_v63, %v8178_v20  ;;  %v8698_v49 = vld [vmem:[%s15422_s8 + $0x38] sm:$0xff]  ;;  %v8692_v20 = vld [vmem:[%s15422_s8 + $0x8] sm:$0xff] }
 0x9f5   :  { %v9583_v13 = vpop.eup %9582  ;;  %9608 = vpow2.f32 %v8384_v18  ;;  %9115 = vmatpush3.msra.mxu1 %v9581_v59  ;;  %v8290_v24 = vmul.f32 %v14649_v63, %v8210_v42  ;;  %v8374_v62 = vmul.f32 1.442695, %v8276_v46  ;;  %v8404_v16 = vmul.f32 1.442695, %v8291_v30  ;;  %v8691_v46 = vld [vmem:[%s15422_s8] sm:$0xff] }
 0x9f6   :  { %v9585_v52 = vpop.eup %9584  ;;  %9610 = vpow2.f32 %v8414_v51  ;;  %9116 = vmatprep.subr.mxu1 %v9583_v13  ;;  %v8372_v11 = vmul.f32 1.442695, %v8275_v56  ;;  %v8370_v1 = vmul.f32 1.442695, %v8274_v40  ;;  %v8607_v51 = vld [vmem:[%s15421_s6 + $0x10] sm:$0xff]  ;;  %v8703_v56 = vsub.s32 0, %v15228_v27 }
 0x9f7   :  { %v9587_v53 = vpop.eup %9586  ;;  %9612 = vpow2.f32 %v8382_v28  ;;  %9117 = vmatpush3.msra.mxu1 %v9585_v52  ;;  %v8402_v55 = vmul.f32 1.442695, %v8290_v24  ;;  %9363 = vmatpush3.msra.mxu0 %v8607_v51  ;;  %v9109_v28 = vpop.f32.mrf.mxu0 }
 0x9f8   :  { %v9589_v26 = vpop.eup %9588  ;;  %9614 = vpow2.f32 %v8412_v29  ;;  %9118 = vmatprep.subr.mxu1 %v9587_v53  ;;  %9364 = vmatprep.subr.mxu0 %v16020_v50  ;;  %v8693_v53 = vld [vmem:[%s15422_s8 + $0x10] sm:$0xff] }
 0x9f9   :  { %v9591_v47 = vpop.eup %9590  ;;  %9616 = vpow2.f32 %v8380_v6  ;;  %9119 = vmatpush3.msra.mxu1 %v9589_v26  ;;  %v9110_v38 = vpop.f32.mrf.mxu0 }
 0x9fa   :  { %v9593_v21 = vpop.eup %9592  ;;  %9618 = vpow2.f32 %v8410_v4  ;;  %9120 = vmatprep.subr.mxu1 %v9591_v47  ;;  %v9111_v17 = vadd.f32 %v9110_v38, %v9109_v28  ;;  %v8695_v4 = vld [vmem:[%s15422_s8 + $0x20] sm:$0xff] }
 0x9fb   :  { %v9595_v36 = vpop.eup %9594  ;;  %9620 = vpow2.f32 %v8378_v12  ;;  %9121 = vmatpush3.msra.mxu1 %v9593_v21  ;;  %v8937_v12 = vld [vmem:[%s15423_s7] ss:$0 sm:$0xff] }
 0x9fc   :  { %v9597_v32 = vpop.eup %9596  ;;  %9622 = vpow2.f32 %v8408_v5  ;;  %9122 = vmatprep.subr.mxu1 %v9595_v36  ;;  %v8699_v21 = vld [vmem:[%s15424_s9] sm:$0x3] }
 0x9fd   :  { %v9599_v35 = vpop.eup %9598  ;;  %9624 = vpow2.f32 %v8376_v10  ;;  %9123 = vmatpush3.msra.mxu1 %v9597_v32  ;;  %v8707_v10 = vsub.s32 1, %v15228_v27  ;;  %v8704_v24 = vrot.slane %v8699_v21, %v8703_v56 }
 0x9fe   :  { %v9601_v39 = vpop.eup %9600  ;;  %9626 = vpow2.f32 %v8406_v44  ;;  %9124 = vmatprep.subr.mxu1 %v9599_v35 }
 0x9ff   :  { %v9603_v48 = vpop.eup %9602  ;;  %9628 = vpow2.f32 %v8374_v62  ;;  %9125 = vmatpush3.msra.mxu1 %v9601_v39  ;;  %v8708_v44 = vrot.slane %v8699_v21, %v8707_v10 }
 0xa00   :  { %v9605_v61 = vpop.eup %9604  ;;  %9630 = vpow2.f32 %v8404_v16  ;;  %9126 = vmatprep.subr.mxu1 %v9603_v48 }
 0xa01   :  { %v9607_v0 = vpop.eup %9606  ;;  %9632 = vpow2.f32 %v8372_v11  ;;  %9127 = vmatpush3.msra.mxu1 %v9605_v61 }
 0xa02   :  { %v9609_v23 = vpop.eup %9608  ;;  %9634 = vpow2.f32 %v8402_v55  ;;  %9128 = vmatprep.subr.mxu1 %v9607_v0 }
 0xa03   :  { %v9611_v9 = vpop.eup %9610  ;;  %9636 = vpow2.f32 %v8370_v1  ;;  %9129 = vmatpush3.msra.mxu1 %v9609_v23 }
 0xa04   :  { %v9613_v60 = vpop.eup %9612  ;;  %9130 = vmatprep.subr.mxu1 %v9611_v9  ;;  %9638 = vrcp.f32 %v14649_v63  ;;  %v8694_v63 = vld [vmem:[%s15422_s8 + $0x18] sm:$0xff] }
 0xa05   :  { %v9615_v19 = vpop.eup %9614  ;;  %9131 = vmatpush3.msra.mxu1 %v9613_v60 }
 0xa06   :  { %v9617_v14 = vpop.eup %9616  ;;  %9132 = vmatprep.subr.mxu1 %v9615_v19 }
 0xa07   :  { %v9619_v45 = vpop.eup %9618  ;;  %9133 = vmatpush3.msra.mxu1 %v9617_v14 }
 0xa08   :  { %v9621_v15 = vpop.eup %9620  ;;  %9134 = vmatprep.subr.mxu1 %v9619_v45 }
 0xa09   :  { %v9623_v25 = vpop.eup %9622  ;;  %9135 = vmatpush3.msra.mxu1 %v9621_v15 }
 0xa0a   :  { %v9625_v8 = vpop.eup %9624  ;;  %9136 = vmatprep.subr.mxu1 %v9623_v25 }
 0xa0b   :  { %v9627_v54 = vpop.eup %9626  ;;  %9137 = vmatpush3.msra.mxu1 %v9625_v8 }
 0xa0c   :  { %v9629_v58 = vpop.eup %9628  ;;  %9138 = vmatprep.subr.mxu1 %v9627_v54 }
 0xa0d   :  { %v9631_v33 = vpop.eup %9630  ;;  %9139 = vmatpush3.msra.mxu1 %v9629_v58 }
 0xa0e   :  { %v9633_v18 = vpop.eup %9632  ;;  %9140 = vmatprep.subr.mxu1 %v9631_v33 }
 0xa0f   :  { %v9635_v3 = vpop.eup %9634  ;;  %9141 = vmatpush3.msra.mxu1 %v9633_v18 }
 0xa10   :  { %v9637_v31 = vpop.eup %9636  ;;  %9142 = vmatprep.subr.mxu1 %v9635_v3 }
 0xa11   :  { %9143 = vmatpush3.msra.mxu1 %v9637_v31  ;;  %v9639_v34 = vpop.eup %9638 }
 0xa12   :  { %8936 = vmatmul.mubr.msk.f32.vlgmr.msra.gmra.mxu1 %vm15234_vm5, %v9731_v37  ;;  %v8606_v37 = vld [vmem:[%s15421_s6 + $0x8] sm:$0xff]  ;;  %8738 = vmatprep.subr.mxu1 %v8698_v49 }
 0xa13   :  { %8778 = vmatprep.mubr.f32.mxu1 %v16020_v50  ;;  %9365 = vmatpush3.msra.mxu0 %v8606_v37 }
 0xa14   :  { %9366 = vmatprep.subr.mxu0 %v16020_v50  ;;  %8739 = vmatpush1.msra.mxu1 %v8697_v57 }
 0xa15   :  { %9367 = vmatpush3.msra.mxu0 %v8605_v41  ;;  %8740 = vmatprep.subr.mxu1 %v8696_v43 }
 0xa16   :  { %8741 = vmatpush1.msra.mxu1 %v8695_v4 }
 0xa17   :  { %8742 = vmatprep.subr.mxu1 %v8694_v63 }
 0xa18   :  { %8743 = vmatpush1.msra.mxu1 %v8693_v53 }
 0xa19   :  { %8744 = vmatprep.subr.mxu1 %v8692_v20 }
 0xa1a   :  { %8745 = vmatpush1.msra.mxu1 %v8691_v46 }
 0xad2   :  { %v9144_v59 = vpop.f32.mrf.mxu1 }
 0xad4   :  { %v9145_v50 = vpop.f32.mrf.mxu1 }
 0xad5   :  { %v9146_v29 = vadd.f32 %v9145_v50, %v9144_v59 }
 0xad7   :  { %v8596_v13 = vadd.f32 %v9146_v29, %v9111_v17 }
 0xad9   :  { %9640 = vlog2.f32 %v8596_v13 }
 0xae6   :  { %v9641_v2 = vpop.eup %9640 }
 0xae7   :  { %v8600_v6 = vmul.f32 0.6931472, %v9641_v2 }
 0xae9   :  { %v8602_v52 = vmul.f32 %v9639_v34, %v8600_v6 }
 0xaeb   :  { %v8603_v42 = vmul.f32 1.442695, %v8602_v52 }
 0xaed   :  { %9642 = vpow2.f32 %v8603_v42 }
 0xafa   :  { %v9643_v7 = vpop.eup %9642 }
 0xafb   :  { %9369 = vmatmul.mubr.msk.f32.vlgmr.msra.gmra.mxu0 %vm8616_vm7, %v9643_v7 }
 0xbbb   :  { %v8686_v26 = vpop.f32.mrf.mxu0 }
 0xbbc   :  { %v8687_v30 = vadd.f32 %v8937_v12, %v8686_v26 }
 0xbbd   :  { %v9370_v5 = vpop.f32.mrf.mxu0 }
 0xbbe   :  { %v8690_v47 = vmax.f32 %v8687_v30, 0.0 }
 0xbc0   :  { %8939 = vmatmul.mubr.msk.f32.vlgmr.msra.gmra.mxu1 %vm8616_vm7, %v8690_v47 }
 0xc80   :  { %v8780_v36 = vpop.f32.mrf.mxu1 }
 0xc81   :  { %v8781_v62 = vadd.f32 %v8780_v36, %v8704_v24 }
 0xc82   :  { %v8782_v40 = vpop.f32.mrf.mxu1 }
 0xc83   :  { %v8783_v32 = vadd.f32 %v8782_v40, %v8708_v44 }
 0xc85   :  { %v8787_v16 = vcombine.low %v8781_v62, %v8783_v32 }
 0xc87   :  { %8940 = vst.sshfl [vmem:[%s15425_s10] sm:$0x33 pattern:$0x76325410] %v8787_v16 }

</bundles_post_ra>
